<compile_context>
chip_gen: v5e
topology: v5e:2x2
jax: 0.10.0
libtpu: 0.0.40
codegen_flags: <defaults>
</compile_context>

<pallas_src>
import math

import jax
import jax.numpy as jnp
from jax.experimental import pallas as pl
from jax.experimental.pallas import tpu as pltpu


def _round_up(n: int, m: int) -> int:
    return ((n + m - 1) // m) * m


def _vmem_plan():
    """Per-generation (vmem_budget_bytes, vmem_limit_bytes_or_None, n_tensorcores)."""
    kind = ""
    try:
        kind = jax.devices()[0].device_kind.lower()
    except Exception:
        pass
    if "v7" in kind or "tpu7" in kind:
        # 64 MiB physical VMEM per core, 2 TensorCores per chip.
        return 40 << 20, 48 << 20, 2
    if "v6" in kind:
        # 128 MiB physical VMEM, 1 TensorCore.
        return 80 << 20, 96 << 20, 1
    if "v5 lite" in kind or "v5e" in kind or "v5lite" in kind:
        # 128 MiB physical but only 16 MiB default scoped VMEM -> raise limit.
        return 48 << 20, 64 << 20, 1
    if "v5" in kind or "v4" in kind:
        # v5p / v4 megacore.
        return 64 << 20, 80 << 20, 2
    # Unknown hardware: stay inside any default scoped-VMEM limit.
    return 6 << 20, None, 1


def _freq_weight_and_phase(in_dim, num_frequencies, min_freq_exp, max_freq_exp):
    """W2[d, c]: 2*pi*freq scatter matrix (sin half then cos half); phase row adds pi/2."""
    df = in_dim * num_frequencies
    freqs = (2.0 ** jnp.linspace(min_freq_exp, max_freq_exp,
                                 num_frequencies)).astype(jnp.float32)     # (F,)
    w = (jnp.eye(in_dim, dtype=jnp.float32)[:, :, None]
         * freqs[None, None, :]).reshape(in_dim, df)                       # (D, D*F)
    w2 = (2.0 * math.pi) * jnp.concatenate([w, w], axis=1)                 # (D, 2*D*F)
    phase = jnp.concatenate(
        [jnp.zeros((df,), jnp.float32),
         jnp.full((df,), math.pi / 2.0, dtype=jnp.float32)]).reshape(1, 2 * df)
    return w2, phase


def _flat_kernel(two_df: int, in_dim: int, include_input: bool):
    def kernel(x_ref, w_ref, ph_ref, o_ref):
        x = x_ref[...]                                              # (tm, D)
        si = jnp.dot(x.astype(jnp.float32), w_ref[...],
                     preferred_element_type=jnp.float32,
                     precision=jax.lax.Precision.HIGHEST) + ph_ref[...]
        o_ref[:, 0:two_df] = jnp.sin(si).astype(o_ref.dtype)        # one wide store
        if include_input:
            # TODO(synk): assemble x into the same output vregs (pltpu.roll +
            # select) to avoid this extra narrow masked store on v5e's single
            # vst slot.
            o_ref[:, two_df:two_df + in_dim] = x.astype(o_ref.dtype)
    return kernel


def _packed_kernel():
    def kernel(x_ref, w_ref, ph_ref, o_ref):
        si = jnp.dot(x_ref[...].astype(jnp.float32), w_ref[...],
                     preferred_element_type=jnp.float32,
                     precision=jax.lax.Precision.HIGHEST) + ph_ref[...]
        o_ref[...] = jnp.sin(si).astype(o_ref.dtype)                # full-lane store
    return kernel


def _pick_rows(n_block_rows, per_row_bytes, vmem_budget, fixed_bytes, n_cores):
    """Largest row tile that fits the VMEM budget (double-buffered, lane-padded)."""
    budget = max(1 << 20, vmem_budget - fixed_bytes)
    tm = max(8, (budget // per_row_bytes) // 8 * 8)
    tm = min(tm, _round_up(n_block_rows, 8))
    if n_cores > 1:
        # Guarantee >= 2 blocks per TensorCore so both cores get pipelined work.
        tm = min(tm, max(8, _round_up(pl.cdiv(n_block_rows, 2 * n_cores), 8)))
    return tm


def nerf_pos_embed(x: jnp.ndarray,
                   num_frequencies: int,
                   min_freq_exp: float = 0.0,
                   max_freq_exp: float = 8.0,
                   include_input: bool = False,
                   out_dtype=None) -> jnp.ndarray:
    """Pallas TPU implementation of NeRFPosEmbedder.forward."""
    *lead, in_dim = x.shape
    n_rows = int(math.prod(lead)) if lead else 1
    x2d = x.reshape(n_rows, in_dim)

    x_item = jnp.dtype(x.dtype).itemsize
    out_dtype = jnp.dtype(x.dtype) if out_dtype is None else jnp.dtype(out_dtype)
    out_item = out_dtype.itemsize

    df = in_dim * num_frequencies
    two_df = 2 * df
    out_dim = two_df + (in_dim if include_input else 0)

    w2, phase = _freq_weight_and_phase(in_dim, num_frequencies,
                                       min_freq_exp, max_freq_exp)
    vmem_budget, vmem_limit, n_cores = _vmem_plan()
    cp_kwargs = dict(dimension_semantics=("parallel",))
    if vmem_limit is not None:
        cp_kwargs["vmem_limit_bytes"] = int(vmem_limit)
    compiler_params = pltpu.CompilerParams(**cp_kwargs)

    # Row-packed full-lane-density path (128/128 lane occupancy, unmasked vst).
    pack = (128 // in_dim) if in_dim <= 128 else 1
    use_packed = (not include_input and pack > 1 and n_rows % pack == 0
                  and pack * two_df <= 8192)

    if use_packed:
        n_pk = n_rows // pack
        k_dim = pack * in_dim                      # <= 128
        width = pack * two_df
        wp = jnp.kron(jnp.eye(pack, dtype=jnp.float32), w2)       # (k_dim, width)
        php = jnp.tile(phase, (1, pack))                           # (1, width)
        xin = x2d.reshape(n_pk, k_dim)                             # free bitcast

        per_row = 2 * (_round_up(k_dim, 128) * x_item
                       + _round_up(width, 128) * out_item)
        fixed = 2 * (wp.size + php.size) * 4 + (2 << 20)
        tm = _pick_rows(n_pk, per_row, vmem_budget, fixed, n_cores)
        grid = (pl.cdiv(n_pk, tm),)

        cost = pl.CostEstimate(
            flops=2 * n_pk * k_dim * width,
            transcendentals=n_rows * two_df,
            bytes_accessed=n_rows * (in_dim * x_item + two_df * out_item)
                           + wp.size * 4)

        out = pl.pallas_call(
            _packed_kernel(),
            out_shape=jax.ShapeDtypeStruct((n_pk, width), out_dtype),
            grid_spec=pltpu.PrefetchScalarGridSpec(
                num_scalar_prefetch=0,
                grid=grid,
                in_specs=[
                    pl.BlockSpec((tm, k_dim), lambda i: (i, 0)),
                    pl.BlockSpec((k_dim, width), lambda i: (0, 0)),
                    pl.BlockSpec((1, width), lambda i: (0, 0)),
                ],
                out_specs=pl.BlockSpec((tm, width), lambda i: (i, 0))),
            compiler_params=compiler_params,
            cost_estimate=cost,
        )(xin, wp, php)
        return out.reshape(n_rows, two_df).reshape(*lead, out_dim)

    # Flat (row-tile) path: handles ragged n_rows and include_input.
    per_row = 2 * (_round_up(in_dim, 128) * x_item
                   + _round_up(out_dim, 128) * out_item)
    fixed = 2 * (w2.size + phase.size) * 4 + (2 << 20)
    tm = _pick_rows(n_rows, per_row, vmem_budget, fixed, n_cores)
    grid = (pl.cdiv(n_rows, tm),)

    cost = pl.CostEstimate(
        flops=2 * n_rows * in_dim * two_df,
        transcendentals=n_rows * two_df,
        bytes_accessed=n_rows * (in_dim * x_item + out_dim * out_item)
                       + w2.size * 4)

    out = pl.pallas_call(
        _flat_kernel(two_df, in_dim, include_input),
        out_shape=jax.ShapeDtypeStruct((n_rows, out_dim), out_dtype),
        grid_spec=pltpu.PrefetchScalarGridSpec(
            num_scalar_prefetch=0,
            grid=grid,
            in_specs=[
                pl.BlockSpec((tm, in_dim), lambda i: (i, 0)),
                pl.BlockSpec((in_dim, two_df), lambda i: (0, 0)),
                pl.BlockSpec((1, two_df), lambda i: (0, 0)),
            ],
            out_specs=pl.BlockSpec((tm, out_dim), lambda i: (i, 0))),
        compiler_params=compiler_params,
        cost_estimate=cost,
    )(x2d, w2, phase)
    return out.reshape(*lead, out_dim)


def nerf_pos_embed_ref(x, num_frequencies, min_freq_exp=0.0, max_freq_exp=8.0,
                       include_input=False):
    """Pure-JAX reference mirroring the PyTorch forward."""
    freqs = 2.0 ** jnp.linspace(min_freq_exp, max_freq_exp, num_frequencies)
    scaled = 2.0 * jnp.pi * x
    si = scaled[..., None] * freqs                                  # (..., D, F)
    si = si.reshape(*si.shape[:-2], -1)                             # (..., D*F)
    enc = jnp.sin(jnp.concatenate([si, si + jnp.pi / 2.0], axis=-1))
    if include_input:
        enc = jnp.concatenate([enc, x], axis=-1)
    return enc


if __name__ == "__main__":
    key = jax.random.PRNGKey(0)
    k1, k2, k3 = jax.random.split(key, 3)

    # ULP-level differences vs. the reference come from folding 2*pi into the
    # weight + the HIGHEST-precision MXU path; sin arguments reach ~1.6e3 so a
    # few f32 ulps there is ~4e-4 absolute in the output.
    ATOL = 2e-3

    # Test 1: include_input=True -> flat path.
    batch, seq, in_dim = 2, 128, 4
    num_frequencies = 8
    x = jax.random.uniform(k1, (batch, seq, in_dim), dtype=jnp.float32,
                           minval=-1.0, maxval=1.0)
    out = jax.block_until_ready(
        nerf_pos_embed(x, num_frequencies, 0.0, 8.0, include_input=True))
    ref = nerf_pos_embed_ref(x, num_frequencies, 0.0, 8.0, include_input=True)
    expected_out_dim = in_dim * num_frequencies * 2 + in_dim
    assert out.shape == (batch, seq, expected_out_dim), out.shape
    assert out.dtype == x.dtype
    assert jnp.allclose(out, ref, atol=ATOL, rtol=0.0), \
        float(jnp.max(jnp.abs(out - ref)))

    # Test 2: ragged row count (masked last block), include_input=False -> flat path.
    x2 = jax.random.uniform(k2, (2, 100, in_dim), dtype=jnp.float32,
                            minval=-1.0, maxval=1.0)
    out2 = jax.block_until_ready(nerf_pos_embed(x2, 6, 0.0, 6.0, include_input=False))
    ref2 = nerf_pos_embed_ref(x2, 6, 0.0, 6.0, include_input=False)
    assert out2.shape == (2, 100, in_dim * 6 * 2), out2.shape
    assert jnp.allclose(out2, ref2, atol=ATOL, rtol=0.0), \
        float(jnp.max(jnp.abs(out2 - ref2)))

    # Test 3: rows divisible by 128//in_dim, include_input=False -> packed path.
    x3 = jax.random.uniform(k3, (4, 64, in_dim), dtype=jnp.float32,
                            minval=-1.0, maxval=1.0)
    out3 = jax.block_until_ready(
        nerf_pos_embed(x3, num_frequencies, 0.0, 8.0, include_input=False))
    ref3 = nerf_pos_embed_ref(x3, num_frequencies, 0.0, 8.0, include_input=False)
    assert out3.shape == (4, 64, in_dim * num_frequencies * 2), out3.shape
    assert jnp.allclose(out3, ref3, atol=ATOL, rtol=0.0), \
        float(jnp.max(jnp.abs(out3 - ref3)))

    print("KERNEL_OK")
</pallas_src>

<mosaic_0001>
module attributes {stable_mosaic.version = 11 : i64} {
  func.func @kernel(%arg0: i32, %arg1: memref<256x4xf32, #tpu.memory_space<vmem>>, %arg2: memref<4x64xf32, #tpu.memory_space<vmem>>, %arg3: memref<1x64xf32, #tpu.memory_space<vmem>>, %arg4: memref<256x68xf32, #tpu.memory_space<vmem>>) attributes {dimension_semantics = [#tpu.dimension_semantics<parallel>], iteration_bounds = array<i64: 1>, scalar_prefetch = 0 : i64, scratch_operands = 0 : i64, tpu.core_type = #tpu.core_type<tc>, window_params = [{transform_indices = @transform_0, window_bounds = array<i64: 256, 4>}, {pipeline_mode = #tpu.pipeline_mode<synchronous>, transform_indices = @transform_1, window_bounds = array<i64: 4, 64>}, {pipeline_mode = #tpu.pipeline_mode<synchronous>, transform_indices = @transform_2, window_bounds = array<i64: 1, 64>}, {transform_indices = @transform_3, window_bounds = array<i64: 256, 68>}]} {
    %c0 = arith.constant 0 : index
    %c0_0 = arith.constant 0 : index
    %0 = vector.load %arg1[%c0, %c0_0] : memref<256x4xf32, #tpu.memory_space<vmem>>, vector<256x4xf32>
    %c0_1 = arith.constant 0 : index
    %c0_2 = arith.constant 0 : index
    %1 = vector.load %arg2[%c0_1, %c0_2] : memref<4x64xf32, #tpu.memory_space<vmem>>, vector<4x64xf32>
    %cst = arith.constant dense<0.000000e+00> : vector<256x64xf32>
    %2 = tpu.matmul %0, %1, %cst {dimension_numbers = #tpu.dot_dimension_numbers<[1], [0], [0], [1], [0, 0, 1, 1], [], []>, precision = #tpu.contract_precision<fp32>} : vector<256x4xf32>, vector<4x64xf32>, vector<256x64xf32> -> vector<256x64xf32>
    %c0_3 = arith.constant 0 : index
    %c0_4 = arith.constant 0 : index
    %3 = vector.load %arg3[%c0_3, %c0_4] : memref<1x64xf32, #tpu.memory_space<vmem>>, vector<1x64xf32>
    %4 = vector.broadcast %3 : vector<1x64xf32> to vector<256x64xf32>
    %5 = arith.addf %2, %4 : vector<256x64xf32>
    %6 = math.sin %5 : vector<256x64xf32>
    %c0_5 = arith.constant 0 : index
    %c0_6 = arith.constant 0 : index
    %7 = vector.load %arg4[%c0_5, %c0_6] : memref<256x68xf32, #tpu.memory_space<vmem>>, vector<256x64xf32>
    tpu.vector_store %arg4[%c0_5, %c0_6], %6 {strides = array<i32>} : memref<256x68xf32, #tpu.memory_space<vmem>>, vector<256x64xf32>,
    %c0_7 = arith.constant 0 : index
    %c64 = arith.constant 64 : index
    %8 = vector.load %arg4[%c0_7, %c64] : memref<256x68xf32, #tpu.memory_space<vmem>>, vector<256x4xf32>
    tpu.vector_store %arg4[%c0_7, %c64], %0 {strides = array<i32>} : memref<256x68xf32, #tpu.memory_space<vmem>>, vector<256x4xf32>,
    return
  }
  func.func @transform_0(%arg0: i32) -> (i32, i32) {
    %c0_i32 = arith.constant 0 : i32
    %c0_i32_0 = arith.constant 0 : i32
    return %arg0, %c0_i32 : i32, i32
  }
  func.func @transform_1(%arg0: i32) -> (i32, i32) {
    %c0_i32 = arith.constant 0 : i32
    %c0_i32_0 = arith.constant 0 : i32
    %c0_i32_1 = arith.constant 0 : i32
    return %c0_i32, %c0_i32_0 : i32, i32
  }
  func.func @transform_2(%arg0: i32) -> (i32, i32) {
    %c0_i32 = arith.constant 0 : i32
    %c0_i32_0 = arith.constant 0 : i32
    %c0_i32_1 = arith.constant 0 : i32
    return %c0_i32, %c0_i32_0 : i32, i32
  }
  func.func @transform_3(%arg0: i32) -> (i32, i32) {
    %c0_i32 = arith.constant 0 : i32
    %c0_i32_0 = arith.constant 0 : i32
    return %arg0, %c0_i32 : i32, i32
  }
}

</mosaic_0001>

<bundles_post_ra>
// kernel: tpu_custom_call.1
= control target key start
LH: loop header
LB: loop body
LE: loop exit
PB: predicated region body
PF: predicated region fallthrough
CT: control target
= control target key end

     0   :  { %vm148_vm0 = vcmask 1043456   ;;  %vm51_vm1 = vcmask 31744   ;;  %s6532_s26 = smov 64   ;;  %s13579_s1 = inlined_call_operand.vmem [shape: f32[4,64], index: 1, kind: input, shape index: {}]   ;;  %s13580_s0 = inlined_call_operand.vmem [shape: f32[256,4], index: 0, kind: input, shape index: {}]   ;;  %s13581_s2 = inlined_call_operand.vmem [shape: f32[1,64], index: 2, kind: input, shape index: {}]   ;;  %s13582_s3 = inlined_call_operand.vmem [shape: f32[256,68], index: 3, kind: output, shape index: {}]  }
   0x1   :  { %v46_v0 = vld [vmem:[%s13579_s1] sm:$0xf]  ;;  %v31_v2 = vld [vmem:[%s13580_s0 + $0x88] sm:$0xff]  ;;  %v32_v12 = vld [vmem:[%s13580_s0 + $0x90] sm:$0xff] }
   0x2   :  { %v30_v1 = vld [vmem:[%s13580_s0 + $0x80] sm:$0xff]  ;;  %v150_v3 = vsel %vm148_vm0, %v46_v0, 0  ;;  %v104_v5 = vsel %vm51_vm1, %v31_v2, 0  ;;  %v15_v7 = vld [vmem:[%s13580_s0 + $0x8] sm:$0xff]  ;;  %v16_v15 = vld [vmem:[%s13580_s0 + $0x10] sm:$0xff]  ;;  %v107_v20 = vsel %vm51_vm1, %v32_v12, 0 }
   0x3   :  { %v101_v4 = vsel %vm51_vm1, %v30_v1, 0  ;;  %v14_v6 = vld [vmem:[%s13580_s0] sm:$0xff]  ;;  %v167_v8 = vand.u32 4294901760, %v150_v3  ;;  %v6572_v10 = vand.u32 4294901760, %v104_v5  ;;  %v56_v14 = vsel %vm51_vm1, %v15_v7, 0  ;;  %v33_v36 = vld [vmem:[%s13580_s0 + $0x98] sm:$0xff] }
   0x4   :  { %v6570_v9 = vand.u32 4294901760, %v101_v4  ;;  %v53_v11 = vsel %vm51_vm1, %v14_v6, 0  ;;  %v6594_v21 = vand.u32 4294901760, %v56_v14  ;;  %v59_v24 = vsel %vm51_vm1, %v16_v15, 0  ;;  %v17_v38 = vld [vmem:[%s13580_s0 + $0x18] sm:$0xff]  ;;  %v34_v51 = vld [vmem:[%s13580_s0 + $0xa0] sm:$0xff] }
   0x5   :  { %v6578_v13 = vand.u32 4294901760, %v53_v11  ;;  %6481 = vmatpush.msra.mxu2 %v167_v8  ;;  %v442_v17 = vsub.f32 %v150_v3, %v167_v8  ;;  %v6588_v18 = vsub.f32 %v104_v5, %v6572_v10  ;;  %168 = vmatpush.msra.mxu0 %v167_v8  ;;  %v6606_v30 = vand.u32 4294901760, %v107_v20  ;;  %v18_v52 = vld [vmem:[%s13580_s0 + $0x20] sm:$0xff]  ;;  %v35_v1 = vld [vmem:[%s13580_s0 + $0xa8] sm:$0xff] }
   0x6   :  { %v6585_v16 = vsub.f32 %v101_v4, %v6570_v9  ;;  %v6600_v26 = vsub.f32 %v56_v14, %v6594_v21  ;;  %v6612_v33 = vand.u32 4294901760, %v59_v24  ;;  %v110_v42 = vsel %vm51_vm1, %v33_v36, 0  ;;  %v19_v2 = vld [vmem:[%s13580_s0 + $0x28] sm:$0xff] }
   0x7   :  { %v6591_v19 = vsub.f32 %v53_v11, %v6578_v13  ;;  %593 = vmatpush.msrb.mxu2 %v442_v17  ;;  %v443_v23 = vand.u32 4294901760, %v442_v17  ;;  %v13590_v29 = vand.u32 4294901760, %v6588_v18  ;;  %v6624_v40 = vsub.f32 %v107_v20, %v6606_v30 }
   0x8   :  { %v13591_v22 = vand.u32 4294901760, %v6585_v16  ;;  %v13603_v32 = vand.u32 4294901760, %v6600_v26  ;;  %v6632_v43 = vsub.f32 %v59_v24, %v6612_v33  ;;  %v62_v44 = vsel %vm51_vm1, %v17_v38, 0  ;;  %v20_v24 = vld [vmem:[%s13580_s0 + $0x30] sm:$0xff] }
   0x9   :  { %v13605_v25 = vand.u32 4294901760, %v6591_v19  ;;  %v444_v28 = vsub.f32 %v442_v17, %v443_v23  ;;  %983 = vmatpush.msrb.mxu0 %v443_v23  ;;  %v308_v39 = vsub.f32 %v6588_v18, %v13590_v29  ;;  %v13589_v46 = vand.u32 4294901760, %v6624_v40  ;;  %v36_v23 = vld [vmem:[%s13580_s0 + $0xb0] sm:$0xff] }
   0xa   :  { %v300_v27 = vsub.f32 %v6585_v16, %v13591_v22  ;;  %v180_v41 = vsub.f32 %v6600_v26, %v13603_v32  ;;  %v6637_v47 = vand.u32 4294901760, %v110_v42  ;;  %v13601_v49 = vand.u32 4294901760, %v6632_v43 }
   0xb   :  { %v172_v31 = vsub.f32 %v6591_v19, %v13605_v25  ;;  %v445_v35 = vand.u32 4294901760, %v444_v28  ;;  %v309_v45 = vand.u32 4294901760, %v308_v39  ;;  %v6640_v50 = vand.u32 4294901760, %v62_v44 }
   0xc   :  { %v301_v34 = vand.u32 4294901760, %v300_v27  ;;  %v181_v48 = vand.u32 4294901760, %v180_v41  ;;  %v316_v53 = vsub.f32 %v6624_v40, %v13589_v46  ;;  %v6652_v54 = vsub.f32 %v110_v42, %v6637_v47 }
   0xd   :  { %v173_v37 = vand.u32 4294901760, %v172_v31  ;;  %6482 = vmatpush.msra.mxu3 %v445_v35  ;;  %446 = vmatpush.msra.mxu1 %v445_v35  ;;  %v188_v55 = vsub.f32 %v6632_v43, %v13601_v49  ;;  %v113_v56 = vsel %vm51_vm1, %v34_v51, 0  ;;  %v6660_v57 = vsub.f32 %v62_v44, %v6640_v50 }
   0xe   :  { %302 = vmatmul.f32.vlgmr.msra.gmra.mxu2 %v301_v34  ;;  %512 = vmatmul.f32.vlgmr.msra.gmra.mxu3 %v6570_v9  ;;  %v65_v58 = vsel %vm51_vm1, %v18_v52, 0  ;;  %v317_v59 = vand.u32 4294901760, %v316_v53  ;;  %v13588_v60 = vand.u32 4294901760, %v6652_v54  ;;  %v6665_v61 = vand.u32 4294901760, %v113_v56 }
   0xf   :  { %174 = vmatmul.f32.vlgmr.msra.gmra.mxu0 %v173_v37  ;;  %771 = vmatpush.msrb.mxu3 %v167_v8  ;;  %v189_v62 = vand.u32 4294901760, %v188_v55  ;;  %v13600_v63 = vand.u32 4294901760, %v6660_v57  ;;  %v6668_v0 = vand.u32 4294901760, %v65_v58  ;;  %v116_v6 = vsel %vm51_vm1, %v35_v1, 0 }
  0x10   :  { %448 = vmatmul.f32.vlgmr.msra.gmra.mxu1 %v6578_v13  ;;  %v324_v3 = vsub.f32 %v6652_v54, %v13588_v60  ;;  %v6680_v4 = vsub.f32 %v113_v56, %v6665_v61  ;;  %v6693_v14 = vand.u32 4294901760, %v116_v6  ;;  %v119_v34 = vsel %vm51_vm1, %v36_v23, 0 }
  0x11   :  { %1129 = vmatpush.msrb.mxu1 %v167_v8  ;;  %v196_v5 = vsub.f32 %v6660_v57, %v13600_v63  ;;  %v6688_v7 = vsub.f32 %v65_v58, %v6668_v0  ;;  %v68_v8 = vsel %vm51_vm1, %v19_v2, 0  ;;  %v71_v36 = vsel %vm51_vm1, %v20_v24, 0 }
  0x12   :  { %v325_v11 = vand.u32 4294901760, %v324_v3  ;;  %v13587_v12 = vand.u32 4294901760, %v6680_v4  ;;  %v6696_v20 = vand.u32 4294901760, %v68_v8  ;;  %v6708_v28 = vsub.f32 %v116_v6, %v6693_v14  ;;  %v38_v6 = vld [vmem:[%s13580_s0 + $0xc0] sm:$0xff] }
  0x13   :  { %v197_v15 = vand.u32 4294901760, %v196_v5  ;;  %v13599_v17 = vand.u32 4294901760, %v6688_v7  ;;  %v6721_v39 = vand.u32 4294901760, %v119_v34  ;;  %v6724_v44 = vand.u32 4294901760, %v71_v36 }
  0x14   :  { %v332_v27 = vsub.f32 %v6680_v4, %v13587_v12  ;;  %v6716_v35 = vsub.f32 %v68_v8, %v6696_v20  ;;  %v13585_v38 = vand.u32 4294901760, %v6708_v28  ;;  %v22_v8 = vld [vmem:[%s13580_s0 + $0x40] sm:$0xff]  ;;  %v125_v24 = vsel %vm51_vm1, %v38_v6, 0 }
  0x15   :  { %v204_v31 = vsub.f32 %v6688_v7, %v13599_v17  ;;  %v6736_v52 = vsub.f32 %v119_v34, %v6721_v39  ;;  %v6744_v56 = vsub.f32 %v71_v36, %v6724_v44 }
  0x16   :  { %310 = vmatmul.f32.gmra.mxu2 %v309_v45  ;;  %516 = vmatmul.f32.gmra.mxu3 %v6572_v10  ;;  %v333_v37 = vand.u32 4294901760, %v332_v27  ;;  %v13597_v42 = vand.u32 4294901760, %v6716_v35  ;;  %v37_v45 = vld [vmem:[%s13580_s0 + $0xb8] sm:$0xff]  ;;  %v340_v51 = vsub.f32 %v6708_v28, %v13585_v38 }
  0x17   :  { %182 = vmatmul.f32.gmra.mxu0 %v181_v48  ;;  %v205_v41 = vand.u32 4294901760, %v204_v31  ;;  %v21_v48 = vld [vmem:[%s13580_s0 + $0x38] sm:$0xff]  ;;  %v122_v55 = vsel %vm51_vm1, %v37_v45, 0  ;;  %v13595_v3 = vand.u32 4294901760, %v6744_v56  ;;  %v77_v31 = vsel %vm51_vm1, %v22_v8, 0 }
  0x18   :  { %452 = vmatmul.f32.gmra.mxu1 %v6594_v21  ;;  %v212_v53 = vsub.f32 %v6716_v35, %v13597_v42  ;;  %v74_v58 = vsel %vm51_vm1, %v21_v48, 0  ;;  %v6749_v1 = vand.u32 4294901760, %v122_v55  ;;  %v6780_v48 = vand.u32 4294901760, %v77_v31 }
  0x19   :  { %v6752_v5 = vand.u32 4294901760, %v74_v58  ;;  %v220_v23 = vsub.f32 %v6744_v56, %v13595_v3 }
  0x1a   :  { %v213_v2 = vand.u32 4294901760, %v212_v53  ;;  %v23_v53 = vld [vmem:[%s13580_s0 + $0x48] sm:$0xff]  ;;  %v6800_v6 = vsub.f32 %v77_v31, %v6780_v48  ;;  %v24_v31 = vld [vmem:[%s13580_s0 + $0x50] sm:$0xff] }
  0x1b   :  { %v6772_v27 = vsub.f32 %v74_v58, %v6752_v5  ;;  %v80_v8 = vsel %vm51_vm1, %v23_v53, 0 }
  0x1d   :  { %v13594_v45 = vand.u32 4294901760, %v6772_v27 }
  0x1e   :  { %318 = vmatmul.f32.gmra.mxu2 %v317_v59  ;;  %520 = vmatmul.f32.gmra.mxu3 %v6606_v30  ;;  %v341_v59 = vand.u32 4294901760, %v340_v51  ;;  %v39_v51 = vld [vmem:[%s13580_s0 + $0xc8] sm:$0xff] }
  0x1f   :  { %190 = vmatmul.f32.gmra.mxu0 %v189_v62  ;;  %v13584_v62 = vand.u32 4294901760, %v6736_v52 }
  0x20   :  { %456 = vmatmul.f32.gmra.mxu1 %v6612_v33 }
  0x26   :  { %326 = vmatmul.f32.gmra.mxu2 %v325_v11  ;;  %524 = vmatmul.f32.gmra.mxu3 %v6637_v47  ;;  %v348_v11 = vsub.f32 %v6736_v52, %v13584_v62 }
  0x27   :  { %198 = vmatmul.f32.gmra.mxu0 %v197_v15  ;;  %v6764_v15 = vsub.f32 %v122_v55, %v6749_v1 }
  0x28   :  { %460 = vmatmul.f32.gmra.mxu1 %v6640_v50  ;;  %v349_v34 = vand.u32 4294901760, %v348_v11 }
  0x29   :  { %v13583_v36 = vand.u32 4294901760, %v6764_v15 }
  0x2b   :  { %v356_v55 = vsub.f32 %v6764_v15, %v13583_v36  ;;  %v6808_v36 = vand.u32 4294901760, %v80_v8 }
  0x2d   :  { %v357_v11 = vand.u32 4294901760, %v356_v55  ;;  %v6828_v38 = vsub.f32 %v80_v8, %v6808_v36  ;;  %v25_v8 = vld [vmem:[%s13580_s0 + $0x58] sm:$0xff] }
  0x2e   :  { %334 = vmatmul.f32.gmra.mxu2 %v333_v37  ;;  %528 = vmatmul.f32.gmra.mxu3 %v6665_v61  ;;  %v6777_v37 = vand.u32 4294901760, %v125_v24 }
  0x2f   :  { %206 = vmatmul.f32.gmra.mxu0 %v205_v41  ;;  %v221_v41 = vand.u32 4294901760, %v220_v23 }
  0x30   :  { %464 = vmatmul.f32.gmra.mxu1 %v6668_v0  ;;  %13941 = vst [vmem:[#allocation2_spill] sm:$0xff] %v6777_v37  ;;  %v6792_v58 = vsub.f32 %v125_v24, %v6777_v37 }
  0x32   :  { %v13586_v23 = vand.u32 4294901760, %v6792_v58 }
  0x34   :  { %v364_v53 = vsub.f32 %v6792_v58, %v13586_v23 }
  0x36   :  { %342 = vmatmul.f32.gmra.mxu2 %v341_v59  ;;  %532 = vmatmul.f32.gmra.mxu3 %v6693_v14  ;;  %v228_v59 = vsub.f32 %v6772_v27, %v13594_v45  ;;  %v365_v23 = vand.u32 4294901760, %v364_v53 }
  0x37   :  { %214 = vmatmul.f32.gmra.mxu0 %v213_v2  ;;  %v128_v2 = vsel %vm51_vm1, %v39_v51, 0  ;;  %v40_v51 = vld [vmem:[%s13580_s0 + $0xd0] sm:$0xff] }
  0x38   :  { %468 = vmatmul.f32.gmra.mxu1 %v6696_v20  ;;  %v6805_v24 = vand.u32 4294901760, %v128_v2  ;;  %v131_v62 = vsel %vm51_vm1, %v40_v51, 0  ;;  %v41_v51 = vld [vmem:[%s13580_s0 + $0xd8] sm:$0xff] }
  0x39   :  { %v6833_v12 = vand.u32 4294901760, %v131_v62  ;;  %v134_v29 = vsel %vm51_vm1, %v41_v51, 0  ;;  %v42_v51 = vld [vmem:[%s13580_s0 + $0xe0] sm:$0xff] }
  0x3a   :  { %13942 = vst [vmem:[#allocation3_spill] sm:$0xff] %v6805_v24  ;;  %v6820_v55 = vsub.f32 %v128_v2, %v6805_v24 }
  0x3b   :  { %13944 = vst [vmem:[#allocation5_spill] sm:$0xff] %v6833_v12  ;;  %v6848_v53 = vsub.f32 %v131_v62, %v6833_v12 }
  0x3c   :  { %13943 = vst [vmem:[#allocation4_spill] sm:$0xff] %v6820_v55  ;;  %v13592_v2 = vand.u32 4294901760, %v6820_v55 }
  0x3d   :  { %13945 = vst [vmem:[#allocation6_spill] sm:$0xff] %v6848_v53  ;;  %v13598_v62 = vand.u32 4294901760, %v6848_v53 }
  0x3e   :  { %350 = vmatmul.f32.gmra.mxu2 %v349_v34  ;;  %536 = vmatmul.f32.gmra.mxu3 %v6721_v39  ;;  %v229_v34 = vand.u32 4294901760, %v228_v59 }
  0x3f   :  { %222 = vmatmul.f32.gmra.mxu0 %v221_v41  ;;  %v13593_v41 = vand.u32 4294901760, %v6800_v6 }
  0x40   :  { %472 = vmatmul.f32.gmra.mxu1 %v6724_v44 }
  0x41   :  { %v236_v59 = vsub.f32 %v6800_v6, %v13593_v41  ;;  %v6861_v41 = vand.u32 4294901760, %v134_v29 }
  0x43   :  { %v237_v60 = vand.u32 4294901760, %v236_v59  ;;  %13946 = vst [vmem:[#allocation7_spill] sm:$0xff] %v6861_v41 }
  0x46   :  { %358 = vmatmul.f32.gmra.mxu2 %v357_v11  ;;  %540 = vmatmul.f32.gmra.mxu3 %v6749_v1  ;;  %v83_v11 = vsel %vm51_vm1, %v24_v31, 0  ;;  %v372_v31 = vsub.f32 %v6820_v55, %v13592_v2 }
  0x47   :  { %230 = vmatmul.f32.gmra.mxu0 %v229_v34  ;;  %v13596_v34 = vand.u32 4294901760, %v6828_v38  ;;  %v6836_v46 = vand.u32 4294901760, %v83_v11 }
  0x48   :  { %476 = vmatmul.f32.gmra.mxu1 %v6752_v5  ;;  %v373_v2 = vand.u32 4294901760, %v372_v31  ;;  %v6876_v31 = vsub.f32 %v134_v29, %v6861_v41 }
  0x49   :  { %v244_v59 = vsub.f32 %v6828_v38, %v13596_v34  ;;  %v6856_v22 = vsub.f32 %v83_v11, %v6836_v46  ;;  %v26_v11 = vld [vmem:[%s13580_s0 + $0x60] sm:$0xff]  ;;  %v137_v34 = vsel %vm51_vm1, %v42_v51, 0  ;;  %v43_v51 = vld [vmem:[%s13580_s0 + $0xe8] sm:$0xff] }
  0x4a   :  { %13947 = vst [vmem:[#allocation8_spill] sm:$0xff] %v6876_v31  ;;  %v13604_v29 = vand.u32 4294901760, %v6876_v31  ;;  %v6889_v17 = vand.u32 4294901760, %v137_v34 }
  0x4b   :  { %v245_v45 = vand.u32 4294901760, %v244_v59 }
  0x4c   :  { %13948 = vst [vmem:[#allocation9_spill] sm:$0xff] %v6889_v17 }
  0x4e   :  { %366 = vmatmul.f32.gmra.mxu2 %v365_v23  ;;  %544 = vmatmul.f32.gmra.mxu3 %v6777_v37  ;;  %v86_v23 = vsel %vm51_vm1, %v25_v8, 0  ;;  %v380_v8 = vsub.f32 %v6848_v53, %v13598_v62 }
  0x4f   :  { %238 = vmatmul.f32.gmra.mxu0 %v237_v60  ;;  %v13602_v60 = vand.u32 4294901760, %v6856_v22  ;;  %v6864_v3 = vand.u32 4294901760, %v86_v23 }
  0x50   :  { %480 = vmatmul.f32.gmra.mxu1 %v6780_v48  ;;  %v381_v62 = vand.u32 4294901760, %v380_v8  ;;  %v6904_v8 = vsub.f32 %v137_v34, %v6889_v17 }
  0x51   :  { %v252_v59 = vsub.f32 %v6856_v22, %v13602_v60  ;;  %v6884_v42 = vsub.f32 %v86_v23, %v6864_v3  ;;  %v27_v23 = vld [vmem:[%s13580_s0 + $0x68] sm:$0xff]  ;;  %v140_v60 = vsel %vm51_vm1, %v43_v51, 0  ;;  %v44_v51 = vld [vmem:[%s13580_s0 + $0xf0] sm:$0xff] }
  0x52   :  { %13949 = vst [vmem:[#allocation10_spill] sm:$0xff] %v6904_v8  ;;  %v13613_v34 = vand.u32 4294901760, %v6904_v8  ;;  %v6917_v25 = vand.u32 4294901760, %v140_v60 }
  0x53   :  { %v253_v63 = vand.u32 4294901760, %v252_v59 }
  0x56   :  { %374 = vmatmul.f32.gmra.mxu2 %v373_v2  ;;  %548 = vmatmul.f32.gmra.mxu3 %v6805_v24  ;;  %v89_v2 = vsel %vm51_vm1, %v26_v11, 0  ;;  %v388_v11 = vsub.f32 %v6876_v31, %v13604_v29 }
  0x57   :  { %246 = vmatmul.f32.gmra.mxu0 %v245_v45  ;;  %v13610_v45 = vand.u32 4294901760, %v6884_v42  ;;  %v6892_v49 = vand.u32 4294901760, %v89_v2 }
  0x58   :  { %484 = vmatmul.f32.gmra.mxu1 %v6808_v36  ;;  %v389_v29 = vand.u32 4294901760, %v388_v11  ;;  %v6932_v11 = vsub.f32 %v140_v60, %v6917_v25 }
  0x59   :  { %v260_v59 = vsub.f32 %v6884_v42, %v13610_v45  ;;  %v6912_v32 = vsub.f32 %v89_v2, %v6892_v49  ;;  %v28_v2 = vld [vmem:[%s13580_s0 + $0x70] sm:$0xff]  ;;  %v143_v45 = vsel %vm51_vm1, %v44_v51, 0  ;;  %v45_v51 = vld [vmem:[%s13580_s0 + $0xf8] sm:$0xff] }
  0x5a   :  { %13950 = vst [vmem:[#allocation11_spill] sm:$0xff] %v6932_v11  ;;  %v13623_v60 = vand.u32 4294901760, %v6932_v11 }
  0x5b   :  { %v261_v31 = vand.u32 4294901760, %v260_v59 }
  0x5e   :  { %382 = vmatmul.f32.gmra.mxu2 %v381_v62  ;;  %552 = vmatmul.f32.gmra.mxu3 %v6833_v12  ;;  %v92_v62 = vsel %vm51_vm1, %v27_v23, 0  ;;  %v396_v23 = vsub.f32 %v6904_v8, %v13613_v34  ;;  %v6945_v8 = vand.u32 4294901760, %v143_v45 }
  0x5f   :  { %254 = vmatmul.f32.gmra.mxu0 %v253_v63  ;;  %v13620_v63 = vand.u32 4294901760, %v6912_v32  ;;  %v6920_v12 = vand.u32 4294901760, %v92_v62 }
  0x60   :  { %488 = vmatmul.f32.gmra.mxu1 %v6836_v46  ;;  %v397_v34 = vand.u32 4294901760, %v396_v23  ;;  %v6960_v23 = vsub.f32 %v143_v45, %v6945_v8 }
  0x61   :  { %v268_v59 = vsub.f32 %v6912_v32, %v13620_v63  ;;  %v6940_v53 = vsub.f32 %v92_v62, %v6920_v12  ;;  %v29_v62 = vld [vmem:[%s13580_s0 + $0x78] sm:$0xff]  ;;  %v146_v63 = vsel %vm51_vm1, %v45_v51, 0 }
  0x62   :  { %v13631_v45 = vand.u32 4294901760, %v6960_v23 }
  0x66   :  { %390 = vmatmul.f32.gmra.mxu2 %v389_v29  ;;  %556 = vmatmul.f32.gmra.mxu3 %v6861_v41  ;;  %v95_v29 = vsel %vm51_vm1, %v28_v2, 0  ;;  %v269_v41 = vand.u32 4294901760, %v268_v59  ;;  %v404_v2 = vsub.f32 %v6932_v11, %v13623_v60  ;;  %v6973_v11 = vand.u32 4294901760, %v146_v63 }
  0x67   :  { %262 = vmatmul.f32.gmra.mxu0 %v261_v31  ;;  %v13630_v31 = vand.u32 4294901760, %v6940_v53  ;;  %v6948_v24 = vand.u32 4294901760, %v95_v29 }
  0x68   :  { %492 = vmatmul.f32.gmra.mxu1 %v6864_v3  ;;  %v405_v60 = vand.u32 4294901760, %v404_v2  ;;  %13951 = vst [vmem:[#allocation12_spill] sm:$0xff] %v6973_v11  ;;  %v6982_v51 = vsub.f32 %v146_v63, %v6973_v11 }
  0x69   :  { %v276_v59 = vsub.f32 %v6940_v53, %v13630_v31  ;;  %v6968_v55 = vsub.f32 %v95_v29, %v6948_v24  ;;  %v412_v29 = vsub.f32 %v6960_v23, %v13631_v45 }
  0x6a   :  { %13952 = vst [vmem:[#allocation13_spill] sm:$0xff] %v6982_v51 }
  0x6e   :  { %398 = vmatmul.f32.gmra.mxu2 %v397_v34  ;;  %560 = vmatmul.f32.gmra.mxu3 %v6889_v17  ;;  %v98_v34 = vsel %vm51_vm1, %v29_v62, 0  ;;  %v277_v17 = vand.u32 4294901760, %v276_v59  ;;  %v13632_v59 = vand.u32 4294901760, %v6982_v51 }
  0x6f   :  { %270 = vmatmul.f32.gmra.mxu0 %v269_v41  ;;  %v13634_v41 = vand.u32 4294901760, %v6968_v55  ;;  %v6976_v37 = vand.u32 4294901760, %v98_v34 }
  0x70   :  { %496 = vmatmul.f32.gmra.mxu1 %v6892_v49 }
  0x71   :  { %v284_v62 = vsub.f32 %v6968_v55, %v13634_v41  ;;  %v6989_v2 = vsub.f32 %v98_v34, %v6976_v37 }
  0x73   :  { %v285_v31 = vand.u32 4294901760, %v284_v62  ;;  %v13633_v45 = vand.u32 4294901760, %v6989_v2 }
  0x75   :  { %v292_v63 = vsub.f32 %v6989_v2, %v13633_v45 }
  0x76   :  { %406 = vmatmul.f32.gmra.mxu2 %v405_v60  ;;  %564 = vmatmul.f32.gmra.mxu3 %v6917_v25  ;;  %v413_v60 = vand.u32 4294901760, %v412_v29 }
  0x77   :  { %278 = vmatmul.f32.gmra.mxu0 %v277_v17  ;;  %v420_v17 = vsub.f32 %v6982_v51, %v13632_v59  ;;  %v293_v29 = vand.u32 4294901760, %v292_v63  ;;  %v14018_v51 = vand.u32 4294901760, %v6764_v15 }
  0x78   :  { %500 = vmatmul.f32.gmra.mxu1 %v6920_v12 }
  0x79   :  { %v421_v34 = vand.u32 4294901760, %v420_v17  ;;  %v13953_v17 = vand.u32 4294901760, %v6591_v19 }
  0x7e   :  { %414 = vmatmul.f32.gmra.mxu2 %v413_v60  ;;  %568 = vmatmul.f32.gmra.mxu3 %v6945_v8 }
  0x7f   :  { %286 = vmatmul.f32.gmra.mxu0 %v285_v31  ;;  %v7010_v31 = vld [vmem:[%s13581_s2] ss:$0 sm:$0xff] }
  0x80   :  { %504 = vmatmul.f32.gmra.mxu1 %v6948_v24 }
  0x86   :  { %422 = vmatmul.f32.gmra.mxu2 %v421_v34  ;;  %572 = vmatmul.f32.gmra.mxu3 %v6973_v11  ;;  %v13955_v11 = vand.u32 4294901760, %v6600_v26 }
  0x87   :  { %294 = vmatmul.f32.gmra.mxu0 %v293_v29 }
  0x88   :  { %508 = vmatmul.f32.gmra.mxu1 %v6976_v37 }
  0x8c   :  { %v7004_v62 = vpop.f32.mrf.mxu0 }
  0x8d   :  { %v7012_v60 = vpop.f32.mrf.mxu1 }
  0x8e   :  { %596 = vmatmul.f32.vlgmr.msrb.gmra.mxu2 %v6591_v19  ;;  %775 = vmatmul.f32.vlgmr.msrb.gmra.mxu3 %v13953_v17 }
  0x8f   :  { %985 = vmatmul.f32.vlgmr.msrb.gmra.mxu0 %v6578_v13 }
  0x90   :  { %1131 = vmatmul.f32.vlgmr.msrb.gmra.mxu1 %v6578_v13 }
  0x91   :  { %v303_v63 = vpop.f32.mrf.mxu2  ;;  %v513_v29 = vpop.f32.mrf.mxu3 }
  0x92   :  { %v304_v34 = vadd.f32 %v7010_v31, %v303_v63 }
  0x94   :  { %v7019_v59 = vadd.f32 %v513_v29, %v304_v34  ;;  %v7021_v45 = vpop.f32.mrf.mxu0 }
  0x95   :  { %v7024_v41 = vpop.f32.mrf.mxu1 }
  0x96   :  { %13954 = vst [vmem:[#allocation14_spill] sm:$0xff] %v7019_v59  ;;  %601 = vmatmul.f32.gmra.mxu2 %v6600_v26  ;;  %781 = vmatmul.f32.gmra.mxu3 %v13955_v11  ;;  %v13957_v59 = vand.u32 4294901760, %v6632_v43 }
  0x97   :  { %989 = vmatmul.f32.gmra.mxu0 %v6594_v21 }
  0x98   :  { %1135 = vmatmul.f32.gmra.mxu1 %v6594_v21 }
  0x99   :  { %v311_v19 = vpop.f32.mrf.mxu2  ;;  %v517_v17 = vpop.f32.mrf.mxu3 }
  0x9a   :  { %v312_v13 = vadd.f32 %v7010_v31, %v311_v19 }
  0x9c   :  { %v7031_v63 = vadd.f32 %v517_v17, %v312_v13  ;;  %v7033_v34 = vpop.f32.mrf.mxu0 }
  0x9d   :  { %v7036_v29 = vpop.f32.mrf.mxu1 }
  0x9e   :  { %13956 = vst [vmem:[#allocation15_spill] sm:$0xff] %v7031_v63  ;;  %606 = vmatmul.f32.gmra.mxu2 %v6632_v43  ;;  %787 = vmatmul.f32.gmra.mxu3 %v13957_v59  ;;  %v13959_v63 = vand.u32 4294901760, %v6660_v57 }
  0x9f   :  { %993 = vmatmul.f32.gmra.mxu0 %v6612_v33 }
  0xa0   :  { %1139 = vmatmul.f32.gmra.mxu1 %v6612_v33 }
  0xa1   :  { %v319_v26 = vpop.f32.mrf.mxu2  ;;  %v521_v11 = vpop.f32.mrf.mxu3 }
  0xa2   :  { %v320_v21 = vadd.f32 %v7010_v31, %v319_v26 }
  0xa4   :  { %v7043_v19 = vadd.f32 %v521_v11, %v320_v21  ;;  %v7045_v13 = vpop.f32.mrf.mxu0 }
  0xa5   :  { %v7048_v17 = vpop.f32.mrf.mxu1 }
  0xa6   :  { %13958 = vst [vmem:[#allocation16_spill] sm:$0xff] %v7043_v19  ;;  %611 = vmatmul.f32.gmra.mxu2 %v6660_v57  ;;  %793 = vmatmul.f32.gmra.mxu3 %v13959_v63  ;;  %v13961_v19 = vand.u32 4294901760, %v6688_v7 }
  0xa7   :  { %997 = vmatmul.f32.gmra.mxu0 %v6640_v50 }
  0xa8   :  { %1143 = vmatmul.f32.gmra.mxu1 %v6640_v50 }
  0xa9   :  { %v327_v43 = vpop.f32.mrf.mxu2  ;;  %v525_v59 = vpop.f32.mrf.mxu3 }
  0xaa   :  { %v328_v33 = vadd.f32 %v7010_v31, %v327_v43 }
  0xac   :  { %v7055_v26 = vadd.f32 %v525_v59, %v328_v33  ;;  %v7057_v21 = vpop.f32.mrf.mxu0 }
  0xad   :  { %v7060_v11 = vpop.f32.mrf.mxu1 }
  0xae   :  { %13960 = vst [vmem:[#allocation17_spill] sm:$0xff] %v7055_v26  ;;  %616 = vmatmul.f32.gmra.mxu2 %v6688_v7  ;;  %799 = vmatmul.f32.gmra.mxu3 %v13961_v19  ;;  %v13963_v26 = vand.u32 4294901760, %v6716_v35 }
  0xaf   :  { %1001 = vmatmul.f32.gmra.mxu0 %v6668_v0 }
  0xb0   :  { %1147 = vmatmul.f32.gmra.mxu1 %v6668_v0 }
  0xb1   :  { %v335_v57 = vpop.f32.mrf.mxu2  ;;  %v529_v63 = vpop.f32.mrf.mxu3 }
  0xb2   :  { %v336_v50 = vadd.f32 %v7010_v31, %v335_v57 }
  0xb4   :  { %v7067_v43 = vadd.f32 %v529_v63, %v336_v50  ;;  %v7069_v33 = vpop.f32.mrf.mxu0 }
  0xb5   :  { %v7072_v59 = vpop.f32.mrf.mxu1 }
  0xb6   :  { %13962 = vst [vmem:[#allocation18_spill] sm:$0xff] %v7067_v43  ;;  %621 = vmatmul.f32.gmra.mxu2 %v6716_v35  ;;  %805 = vmatmul.f32.gmra.mxu3 %v13963_v26  ;;  %v13965_v43 = vand.u32 4294901760, %v6744_v56 }
  0xb7   :  { %1005 = vmatmul.f32.gmra.mxu0 %v6696_v20 }
  0xb8   :  { %1151 = vmatmul.f32.gmra.mxu1 %v6696_v20 }
  0xb9   :  { %v343_v7 = vpop.f32.mrf.mxu2  ;;  %v533_v19 = vpop.f32.mrf.mxu3 }
  0xba   :  { %v344_v0 = vadd.f32 %v7010_v31, %v343_v7 }
  0xbc   :  { %v7079_v57 = vadd.f32 %v533_v19, %v344_v0  ;;  %v7081_v50 = vpop.f32.mrf.mxu0 }
  0xbd   :  { %v7084_v63 = vpop.f32.mrf.mxu1 }
  0xbe   :  { %13964 = vst [vmem:[#allocation19_spill] sm:$0xff] %v7079_v57  ;;  %626 = vmatmul.f32.gmra.mxu2 %v6744_v56  ;;  %811 = vmatmul.f32.gmra.mxu3 %v13965_v43  ;;  %v13967_v57 = vand.u32 4294901760, %v6772_v27 }
  0xbf   :  { %1009 = vmatmul.f32.gmra.mxu0 %v6724_v44 }
  0xc0   :  { %1155 = vmatmul.f32.gmra.mxu1 %v6724_v44 }
  0xc1   :  { %v351_v35 = vpop.f32.mrf.mxu2  ;;  %v537_v26 = vpop.f32.mrf.mxu3 }
  0xc2   :  { %v352_v20 = vadd.f32 %v7010_v31, %v351_v35 }
  0xc4   :  { %v7091_v7 = vadd.f32 %v537_v26, %v352_v20  ;;  %v7093_v0 = vpop.f32.mrf.mxu0 }
  0xc5   :  { %v7096_v19 = vpop.f32.mrf.mxu1 }
  0xc6   :  { %13966 = vst [vmem:[#allocation20_spill] sm:$0xff] %v7091_v7  ;;  %631 = vmatmul.f32.gmra.mxu2 %v6772_v27  ;;  %817 = vmatmul.f32.gmra.mxu3 %v13967_v57  ;;  %v13970_v7 = vand.u32 4294901760, %v6800_v6 }
  0xc7   :  { %1013 = vmatmul.f32.gmra.mxu0 %v6752_v5 }
  0xc8   :  { %1159 = vmatmul.f32.gmra.mxu1 %v6752_v5 }
  0xc9   :  { %v359_v56 = vpop.f32.mrf.mxu2  ;;  %v541_v43 = vpop.f32.mrf.mxu3 }
  0xca   :  { %v360_v44 = vadd.f32 %v7010_v31, %v359_v56 }
  0xcc   :  { %v7103_v35 = vadd.f32 %v541_v43, %v360_v44  ;;  %v7105_v20 = vpop.f32.mrf.mxu0 }
  0xcd   :  { %v7108_v26 = vpop.f32.mrf.mxu1 }
  0xce   :  { %13968 = vst [vmem:[#allocation21_spill] sm:$0xff] %v7103_v35  ;;  %636 = vmatmul.f32.gmra.mxu2 %v6800_v6  ;;  %823 = vmatmul.f32.gmra.mxu3 %v13970_v7  ;;  %v13974_v35 = vand.u32 4294901760, %v6828_v38 }
  0xcf   :  { %13969 = vst [vmem:[#allocation22_spill] sm:$0xff] %v7108_v26  ;;  %1017 = vmatmul.f32.gmra.mxu0 %v6780_v48 }
  0xd0   :  { %1163 = vmatmul.f32.gmra.mxu1 %v6780_v48 }
  0xd1   :  { %v367_v27 = vpop.f32.mrf.mxu2  ;;  %v545_v57 = vpop.f32.mrf.mxu3 }
  0xd2   :  { %v368_v5 = vadd.f32 %v7010_v31, %v367_v27 }
  0xd4   :  { %v7115_v56 = vadd.f32 %v545_v57, %v368_v5  ;;  %v7117_v44 = vpop.f32.mrf.mxu0 }
  0xd5   :  { %13972 = vst [vmem:[#allocation24_spill] sm:$0xff] %v7117_v44  ;;  %v7120_v43 = vpop.f32.mrf.mxu1 }
  0xd6   :  { %13971 = vst [vmem:[#allocation23_spill] sm:$0xff] %v7115_v56  ;;  %641 = vmatmul.f32.gmra.mxu2 %v6828_v38  ;;  %829 = vmatmul.f32.gmra.mxu3 %v13974_v35  ;;  %v13978_v56 = vand.u32 4294901760, %v6856_v22 }
  0xd7   :  { %13973 = vst [vmem:[#allocation25_spill] sm:$0xff] %v7120_v43  ;;  %1021 = vmatmul.f32.gmra.mxu0 %v6808_v36 }
  0xd8   :  { %1167 = vmatmul.f32.gmra.mxu1 %v6808_v36 }
  0xd9   :  { %v375_v6 = vpop.f32.mrf.mxu2  ;;  %v549_v7 = vpop.f32.mrf.mxu3 }
  0xda   :  { %v376_v48 = vadd.f32 %v7010_v31, %v375_v6 }
  0xdc   :  { %v7127_v27 = vadd.f32 %v549_v7, %v376_v48  ;;  %v7129_v5 = vpop.f32.mrf.mxu0 }
  0xdd   :  { %13976 = vst [vmem:[#allocation27_spill] sm:$0xff] %v7129_v5  ;;  %v7132_v57 = vpop.f32.mrf.mxu1 }
  0xde   :  { %13975 = vst [vmem:[#allocation26_spill] sm:$0xff] %v7127_v27  ;;  %646 = vmatmul.f32.gmra.mxu2 %v6856_v22  ;;  %835 = vmatmul.f32.gmra.mxu3 %v13978_v56  ;;  %v13982_v27 = vand.u32 4294901760, %v6884_v42 }
  0xdf   :  { %13977 = vst [vmem:[#allocation28_spill] sm:$0xff] %v7132_v57  ;;  %1025 = vmatmul.f32.gmra.mxu0 %v6836_v46 }
  0xe0   :  { %1171 = vmatmul.f32.gmra.mxu1 %v6836_v46 }
  0xe1   :  { %v383_v38 = vpop.f32.mrf.mxu2  ;;  %v553_v35 = vpop.f32.mrf.mxu3 }
  0xe2   :  { %v384_v36 = vadd.f32 %v7010_v31, %v383_v38 }
  0xe4   :  { %v7139_v6 = vadd.f32 %v553_v35, %v384_v36  ;;  %v7141_v48 = vpop.f32.mrf.mxu0 }
  0xe5   :  { %13980 = vst [vmem:[#allocation30_spill] sm:$0xff] %v7141_v48  ;;  %v7144_v7 = vpop.f32.mrf.mxu1 }
  0xe6   :  { %13979 = vst [vmem:[#allocation29_spill] sm:$0xff] %v7139_v6  ;;  %651 = vmatmul.f32.gmra.mxu2 %v6884_v42  ;;  %841 = vmatmul.f32.gmra.mxu3 %v13982_v27  ;;  %v13986_v6 = vand.u32 4294901760, %v6912_v32 }
  0xe7   :  { %13981 = vst [vmem:[#allocation31_spill] sm:$0xff] %v7144_v7  ;;  %1029 = vmatmul.f32.gmra.mxu0 %v6864_v3 }
  0xe8   :  { %1175 = vmatmul.f32.gmra.mxu1 %v6864_v3 }
  0xe9   :  { %v391_v22 = vpop.f32.mrf.mxu2  ;;  %v557_v56 = vpop.f32.mrf.mxu3 }
  0xea   :  { %v392_v46 = vadd.f32 %v7010_v31, %v391_v22 }
  0xec   :  { %v7151_v38 = vadd.f32 %v557_v56, %v392_v46  ;;  %v7153_v36 = vpop.f32.mrf.mxu0 }
  0xed   :  { %13984 = vst [vmem:[#allocation33_spill] sm:$0xff] %v7153_v36  ;;  %v7156_v35 = vpop.f32.mrf.mxu1  ;;  %v14017_v36 = vmov 2131351028  }
  0xee   :  { %13983 = vst [vmem:[#allocation32_spill] sm:$0xff] %v7151_v38  ;;  %656 = vmatmul.f32.gmra.mxu2 %v6912_v32  ;;  %847 = vmatmul.f32.gmra.mxu3 %v13986_v6  ;;  %v13990_v38 = vand.u32 4294901760, %v6940_v53 }
  0xef   :  { %13985 = vst [vmem:[#allocation34_spill] sm:$0xff] %v7156_v35  ;;  %1033 = vmatmul.f32.gmra.mxu0 %v6892_v49 }
  0xf0   :  { %1179 = vmatmul.f32.gmra.mxu1 %v6892_v49 }
  0xf1   :  { %v399_v42 = vpop.f32.mrf.mxu2  ;;  %v561_v27 = vpop.f32.mrf.mxu3 }
  0xf2   :  { %v400_v3 = vadd.f32 %v7010_v31, %v399_v42 }
  0xf4   :  { %v7163_v22 = vadd.f32 %v561_v27, %v400_v3  ;;  %v7165_v46 = vpop.f32.mrf.mxu0  ;;  %v13993_v27 = vand.u32 4294901760, %v6968_v55 }
  0xf5   :  { %13988 = vst [vmem:[#allocation36_spill] sm:$0xff] %v7165_v46  ;;  %v7168_v56 = vpop.f32.mrf.mxu1 }
  0xf6   :  { %13987 = vst [vmem:[#allocation35_spill] sm:$0xff] %v7163_v22  ;;  %661 = vmatmul.f32.gmra.mxu2 %v6940_v53  ;;  %853 = vmatmul.f32.gmra.mxu3 %v13990_v38 }
  0xf7   :  { %13989 = vst [vmem:[#allocation37_spill] sm:$0xff] %v7168_v56  ;;  %1037 = vmatmul.f32.gmra.mxu0 %v6920_v12 }
  0xf8   :  { %1183 = vmatmul.f32.gmra.mxu1 %v6920_v12 }
  0xf9   :  { %v407_v32 = vpop.f32.mrf.mxu2  ;;  %v565_v6 = vpop.f32.mrf.mxu3 }
  0xfa   :  { %v408_v49 = vadd.f32 %v7010_v31, %v407_v32 }
  0xfc   :  { %v7175_v42 = vadd.f32 %v565_v6, %v408_v49  ;;  %v7177_v3 = vpop.f32.mrf.mxu0  ;;  %v13996_v49 = vand.u32 4294901760, %v6989_v2 }
  0xfd   :  { %13992 = vst [vmem:[#allocation39_spill] sm:$0xff] %v7177_v3  ;;  %v7182_v22 = vpop.f32.mrf.mxu1  ;;  %v14015_v3 = vmov 2102212464  }
  0xfe   :  { %13991 = vst [vmem:[#allocation38_spill] sm:$0xff] %v7175_v42  ;;  %666 = vmatmul.f32.gmra.mxu2 %v6968_v55  ;;  %859 = vmatmul.f32.gmra.mxu3 %v13993_v27 }
  0xff   :  { %13994 = vst [vmem:[#allocation40_spill] sm:$0xff] %v7182_v22  ;;  %1041 = vmatmul.f32.gmra.mxu0 %v6948_v24  ;;  %v13643_v22 = vmov 683565275  }
 0x100   :  { %1187 = vmatmul.f32.gmra.mxu1 %v6948_v24 }
 0x101   :  { %v415_v53 = vpop.f32.mrf.mxu2  ;;  %v569_v38 = vpop.f32.mrf.mxu3 }
 0x102   :  { %v416_v12 = vadd.f32 %v7010_v31, %v415_v53 }
 0x104   :  { %v7187_v32 = vadd.f32 %v569_v38, %v416_v12  ;;  %v7192_v6 = vpop.f32.mrf.mxu0  ;;  %v176_v12 = vadd.f32 %v7010_v31, %v7004_v62  ;;  %v184_v62 = vadd.f32 %v7010_v31, %v7021_v45 }
 0x105   :  { %13997 = vst [vmem:[#allocation42_spill] sm:$0xff] %v7192_v6  ;;  %v7195_v27 = vpop.f32.mrf.mxu1 }
 0x106   :  { %13995 = vst [vmem:[#allocation41_spill] sm:$0xff] %v7187_v32  ;;  %671 = vmatmul.f32.gmra.mxu2 %v6989_v2  ;;  %865 = vmatmul.f32.gmra.mxu3 %v13996_v49  ;;  %v14000_v2 = vand.u32 4294901760, %v6585_v16  ;;  %v450_v49 = vadd.f32 %v7012_v60, %v176_v12  ;;  %v454_v60 = vadd.f32 %v7024_v41, %v184_v62  ;;  %v14003_v41 = vand.u32 4294901760, %v6624_v40 }
 0x107   :  { %1045 = vmatmul.f32.gmra.mxu0 %v6976_v37  ;;  %13998 = vst [vmem:[#allocation43_spill] sm:$0xff] %v7195_v27 }
 0x108   :  { %1191 = vmatmul.f32.gmra.mxu1 %v6976_v37 }
 0x109   :  { %v423_v55 = vpop.f32.mrf.mxu2  ;;  %v573_v53 = vpop.f32.mrf.mxu3 }
 0x10a   :  { %v424_v24 = vadd.f32 %v7010_v31, %v423_v55 }
 0x10c   :  { %v7201_v38 = vadd.f32 %v573_v53, %v424_v24  ;;  %v986_v42 = vpop.f32.mrf.mxu0 }
 0x10d   :  { %v1132_v27 = vpop.f32.mrf.mxu1 }
 0x10e   :  { %13999 = vst [vmem:[#allocation44_spill] sm:$0xff] %v7201_v38  ;;  %676 = vmatmul.f32.gmra.mxu2 %v6585_v16  ;;  %871 = vmatmul.f32.gmra.mxu3 %v14000_v2  ;;  %v14001_v16 = vand.u32 4294901760, %v6588_v18 }
 0x10f   :  { %1049 = vmatmul.f32.gmra.mxu0 %v6570_v9 }
 0x110   :  { %1195 = vmatmul.f32.gmra.mxu1 %v6570_v9 }
 0x111   :  { %v597_v32 = vpop.f32.mrf.mxu2  ;;  %v776_v55 = vpop.f32.mrf.mxu3 }
 0x112   :  { %v598_v37 = vadd.f32 %v597_v32, %v450_v49 }
 0x114   :  { %v777_v24 = vadd.f32 %v776_v55, %v598_v37  ;;  %v990_v49 = vpop.f32.mrf.mxu0 }
 0x115   :  { %v1136_v55 = vpop.f32.mrf.mxu1 }
 0x116   :  { %v987_v53 = vadd.f32 %v986_v42, %v777_v24  ;;  %681 = vmatmul.f32.gmra.mxu2 %v6588_v18  ;;  %877 = vmatmul.f32.gmra.mxu3 %v14001_v16  ;;  %v192_v18 = vadd.f32 %v7010_v31, %v7033_v34 }
 0x117   :  { %1053 = vmatmul.f32.gmra.mxu0 %v6572_v10 }
 0x118   :  { %v7216_v12 = vadd.f32 %v1132_v27, %v987_v53  ;;  %1199 = vmatmul.f32.gmra.mxu1 %v6572_v10  ;;  %v458_v62 = vadd.f32 %v7036_v29, %v192_v18  ;;  %v13637_v29 = vmov 2102212464   ;;  %v13639_v18 = vmov 920167782  }
 0x119   :  { %v602_v9 = vpop.f32.mrf.mxu2  ;;  %v782_v45 = vpop.f32.mrf.mxu3 }
 0x11a   :  { %14002 = vst [vmem:[#allocation45_spill] sm:$0xff] %v7216_v12  ;;  %v1262_v32 = vand.u32 2139095040, %v7216_v12  ;;  %v603_v2 = vadd.f32 %v602_v9, %v454_v60  ;;  %v14006_v56 = vand.u32 2147483647, %v7216_v12 }
 0x11c   :  { %v1263_v42 = vshrl.u32 %v1262_v32, 23  ;;  %v783_v37 = vadd.f32 %v782_v45, %v603_v2 }
 0x11e   :  { %v6385_v24 = vadd.s32 4294967169, %v1263_v42  ;;  %v991_v16 = vadd.f32 %v990_v49, %v783_v37  ;;  %686 = vmatmul.f32.gmra.mxu2 %v6624_v40  ;;  %883 = vmatmul.f32.gmra.mxu3 %v14003_v41  ;;  %v14005_v42 = vand.u32 4294901760, %v6652_v54  ;;  %v13650_v41 = vmov 2131351028  }
 0x11f   :  { %1057 = vmatmul.f32.gmra.mxu0 %v6606_v30 }
 0x120   :  { %v1269_v10 = vadd.s32 1, %v6385_v24  ;;  %v7226_v27 = vadd.f32 %v1136_v55, %v991_v16  ;;  %1203 = vmatmul.f32.gmra.mxu1 %v6606_v30  ;;  %v994_v16 = vpop.f32.mrf.mxu0 }
 0x121   :  { %v607_v53 = vpop.f32.mrf.mxu2  ;;  %v788_v34 = vpop.f32.mrf.mxu3 }
 0x122   :  { %14004 = vst [vmem:[#allocation46_spill] sm:$0xff] %v7226_v27  ;;  %vm1270_vm2 = vcmp.gt.s32.totalorder %v1269_v10, 0  ;;  %v608_v9 = vadd.f32 %v607_v53, %v458_v62  ;;  %v1417_v2 = vand.u32 2139095040, %v7226_v27  ;;  %v13641_v53 = vmov 1326507024  }
 0x123   :  { %v1271_v60 = vsel %vm1270_vm2, %v1269_v10, 0 }
 0x124   :  { %v1273_v32 = vand.u32 31, %v1271_v60  ;;  %v789_v45 = vadd.f32 %v788_v34, %v608_v9  ;;  %v7238_v30 = vshrl.u32 %v1271_v60, 5  ;;  %v1418_v24 = vshrl.u32 %v1417_v2, 23 }
 0x125   :  { %v13645_v60 = vmov 2475754826  }
 0x126   :  { %v7231_v40 = vsub.s32 32, %v1273_v32  ;;  %691 = vmatmul.f32.gmra.mxu2 %v6652_v54  ;;  %889 = vmatmul.f32.gmra.mxu3 %v14005_v42  ;;  %v1285_v37 = vshll.u32 %v13637_v29, %v1273_v32  ;;  %v1288_v55 = vshll.u32 %v13639_v18, %v1273_v32  ;;  %v1279_v2 = vshll.u32 %v13645_v60, %v1273_v32 }
 0x127   :  { %1061 = vmatmul.f32.gmra.mxu0 %v6637_v47  ;;  %v1282_v42 = vshll.u32 %v13650_v41, %v1273_v32  ;;  %v6388_v6 = vadd.s32 4294967169, %v1418_v24  ;;  %vm1294_vm3 = vcmp.lt.s32.totalorder %v7238_v30, 4  ;;  %vm1291_vm4 = vcmp.lt.s32.totalorder %v7238_v30, 1 }
 0x128   :  { %v1280_v10 = vshrl.u32 %v13650_v41, %v7231_v40  ;;  %v1283_v54 = vshrl.u32 %v13637_v29, %v7231_v40  ;;  %v1286_v62 = vshrl.u32 %v13639_v18, %v7231_v40  ;;  %v1289_v34 = vshrl.u32 %v13641_v53, %v7231_v40  ;;  %1207 = vmatmul.f32.gmra.mxu1 %v6637_v47 }
 0x129   :  { %v1277_v9 = vshrl.u32 %v13645_v60, %v7231_v40  ;;  %v995_v29 = vadd.f32 %v994_v16, %v789_v45  ;;  %v1276_v18 = vshll.u32 %v13643_v22, %v1273_v32  ;;  %v1266_v53 = vand.u32 8388607, %v14006_v56 }
 0x12a   :  { %v1287_v49 = vor.u32 %v1286_v62, %v1285_v37  ;;  %v1290_v38 = vor.u32 %v1289_v34, %v1288_v55  ;;  %v7258_v35 = vor.u32 %v1280_v10, %v1279_v2  ;;  %v7260_v47 = vor.u32 %v1283_v54, %v1282_v42  ;;  %v1140_v55 = vpop.f32.mrf.mxu1 }
 0x12b   :  { %v7263_v7 = vor.u32 %v1277_v9, %v1276_v18  ;;  %v14007_v45 = vand.u32 4294901760, %v6680_v4  ;;  %vm1293_vm5 = vcmp.lt.s32.totalorder %v7238_v30, 3  ;;  %v1424_v56 = vadd.s32 1, %v6388_v6 }
 0x12c   :  { %v1304_v37 = vsel %vm1294_vm3, %v1290_v38, 1326507024  ;;  %v1300_v32 = vsel %vm1294_vm3, %v1287_v49, 920167782  ;;  %v1267_v18 = vor.u32 8388608, %v1266_v53  ;;  %v1303_v38 = vsel %vm1291_vm4, %v7258_v35, %v7260_v47 }
 0x12d   :  { %v1305_v24 = vsel %vm1293_vm5, %v1287_v49, %v1304_v37  ;;  %v7281_v16 = vadd.f32 %v1140_v55, %v995_v29  ;;  %v1301_v6 = vsel %vm1293_vm5, %v7260_v47, %v1300_v32  ;;  %vm1292_vm6 = vcmp.lt.s32.totalorder %v7238_v30, 2  ;;  %v14030_v30 = vld [vmem:[#allocation5_spill] sm:$0xff] }
 0x12e   :  { %696 = vmatmul.f32.gmra.mxu2 %v6680_v4  ;;  %895 = vmatmul.f32.gmra.mxu3 %v14007_v45  ;;  %v1299_v4 = vsel %vm1291_vm4, %v7263_v7, %v7258_v35  ;;  %v1306_v10 = vsel %vm1292_vm6, %v1303_v38, %v1305_v24  ;;  %vm1425_vm7 = vcmp.gt.s32.totalorder %v1424_v56, 0  ;;  %v7296_v29 = vshll.u32 %v1267_v18, 8 }
 0x12f   :  { %1065 = vmatmul.f32.gmra.mxu0 %v6665_v61  ;;  %14008 = vst [vmem:[#allocation47_spill] sm:$0xff] %v7281_v16  ;;  %v1302_v49 = vsel %vm1292_vm6, %v1299_v4, %v1301_v6  ;;  %v1426_v54 = vsel %vm1425_vm7, %v1424_v56, 0  ;;  %v14009_v62 = vand.u32 4294901760, %v6708_v28  ;;  %v1310_v37 = vand.u32 65535, %v1306_v10 }
 0x130   :  { %1211 = vmatmul.f32.gmra.mxu1 %v6665_v61  ;;  %v1311_v61 = vshrl.u32 %v1306_v10, 16  ;;  %v1333_v53 = vshrl.u32 %v1302_v49, 16  ;;  %v1308_v34 = vand.u32 65535, %v7296_v29  ;;  %v1428_v9 = vand.u32 31, %v1426_v54 }
 0x131   :  { %v1332_v55 = vand.u32 65535, %v1302_v49  ;;  %v13649_v45 = vand.u32 2147483647, %v7226_v27  ;;  %v14010_v56 = vand.u32 4294901760, %v6736_v52  ;;  %v14011_v10 = vmov 1326507024  }
 0x132   :  { %v7304_v2 = vmul.u32 %v1311_v61, %v1308_v34  ;;  %v7306_v42 = vmul.u32 %v1333_v53, %v1308_v34  ;;  %v7308_v32 = vsub.s32 32, %v1428_v9  ;;  %v1312_v38 = vmul.u32 %v1310_v37, %v1308_v34 }
 0x133   :  { %v1334_v4 = vmul.u32 %v1332_v55, %v1308_v34  ;;  %v14014_v22 = vmov 920167782   ;;  %v1440_v27 = vshll.u32 %v14015_v3, %v1428_v9  ;;  %v1437_v48 = vshll.u32 %v14017_v36, %v1428_v9 }
 0x134   :  { %v1338_v18 = vshll.u32 %v7306_v42, 16  ;;  %v1444_v49 = vshrl.u32 %v14011_v10, %v7308_v32  ;;  %v1441_v60 = vshrl.u32 %v14014_v22, %v7308_v32  ;;  %v1443_v34 = vshll.u32 %v14014_v22, %v1428_v9 }
 0x135   :  { %v1438_v57 = vshrl.u32 %v14015_v3, %v7308_v32 }
 0x136   :  { %701 = vmatmul.f32.gmra.mxu2 %v6708_v28  ;;  %901 = vmatmul.f32.gmra.mxu3 %v14009_v62  ;;  %v1316_v28 = vshll.u32 %v7304_v2, 16  ;;  %vm1342_vm9 = vc.u32 %v1334_v4, %v1338_v18  ;;  %v1442_v5 = vor.u32 %v1441_v60, %v1440_v27 }
 0x137   :  { %1069 = vmatmul.f32.gmra.mxu0 %v6693_v14  ;;  %v7363_v27 = vor.u32 %v1438_v57, %v1437_v48 }
 0x138   :  { %1215 = vmatmul.f32.gmra.mxu1 %v6693_v14  ;;  %v1309_v14 = vshrl.u32 %v7296_v29, 16  ;;  %vm7325_vm8 = vc.u32 %v1312_v38, %v1316_v28 }
 0x13a   :  { %v7319_v24 = vmul.u32 %v1310_v37, %v1309_v14  ;;  %v7321_v6 = vmul.u32 %v1332_v55, %v1309_v14  ;;  %v1315_v62 = vmul.u32 %v1311_v61, %v1309_v14  ;;  %v7333_v37 = vadd.s32 %v1338_v18, %v1334_v4 }
 0x13b   :  { %v7336_v55 = vshrl.u32 %v1426_v54, 5  ;;  %v1435_v61 = vshrl.u32 %v13650_v41, %v7308_v32  ;;  %v13655_v54 = vmov 0   ;;  %v1337_v43 = vmul.u32 %v1333_v53, %v1309_v14 }
 0x13c   :  { %v1343_v4 = vsel %vm1342_vm9, 1, %v13655_v54  ;;  %v1321_v46 = vsel %vm7325_vm8, 1, %v13655_v54 }
 0x13d   :  { %vm1449_vm12 = vcmp.lt.s32.totalorder %v7336_v55, 4  ;;  %vm1446_vm13 = vcmp.lt.s32.totalorder %v7336_v55, 1  ;;  %vm1448_vm14 = vcmp.lt.s32.totalorder %v7336_v55, 3  ;;  %vm1447_vm15 = vcmp.lt.s32.totalorder %v7336_v55, 2 }
 0x13e   :  { %706 = vmatmul.f32.gmra.mxu2 %v6736_v52  ;;  %907 = vmatmul.f32.gmra.mxu3 %v14010_v56  ;;  %v1421_v56 = vand.u32 8388607, %v13649_v45  ;;  %v1318_v45 = vshll.u32 %v7319_v24, 16  ;;  %v1455_v57 = vsel %vm1449_vm12, %v1442_v5, 920167782 }
 0x13f   :  { %1073 = vmatmul.f32.gmra.mxu0 %v6721_v39 }
 0x140   :  { %1219 = vmatmul.f32.gmra.mxu1 %v6721_v39  ;;  %v1322_v39 = vadd.s32 %v1316_v28, %v1312_v38  ;;  %v14016_v28 = vmov 2475754826   ;;  %v1445_v38 = vor.u32 %v1444_v49, %v1443_v34  ;;  %v14019_v49 = vshll.u32 %v7321_v6, 16 }
 0x141   :  { %v1432_v18 = vshrl.u32 %v14016_v28, %v7308_v32  ;;  %v1434_v41 = vshll.u32 %v14016_v28, %v1428_v9  ;;  %v14020_v34 = vmov 683565275  }
 0x142   :  { %vm1346_vm10 = vc.u32 %v7333_v37, %v14019_v49  ;;  %v1431_v26 = vshll.u32 %v14020_v34, %v1428_v9  ;;  %vm1324_vm11 = vc.u32 %v1322_v39, %v1318_v45  ;;  %v1459_v53 = vsel %vm1449_vm12, %v1445_v38, 1326507024 }
 0x143   :  { %v7361_v44 = vor.u32 %v1435_v61, %v1434_v41  ;;  %v1323_v9 = vadd.s32 %v1321_v46, %v1315_v62  ;;  %v1347_v45 = vsel %vm1346_vm10, 1, %v13655_v54  ;;  %v1325_v48 = vsel %vm1324_vm11, 1, %v13655_v54 }
 0x144   :  { %v7369_v60 = vor.u32 %v1432_v18, %v1431_v26  ;;  %v1460_v26 = vsel %vm1448_vm14, %v1442_v5, %v1459_v53  ;;  %v1456_v62 = vsel %vm1448_vm14, %v7363_v27, %v1455_v57  ;;  %v14021_v5 = vand.u32 4294901760, %v6792_v58  ;;  %v14022_v18 = vld [vmem:[#allocation2_spill] sm:$0xff] }
 0x145   :  { %v1327_v52 = vadd.s32 %v1325_v48, %v1323_v9  ;;  %v1317_v38 = vshrl.u32 %v7304_v2, 16  ;;  %v1341_v9 = vshrl.u32 %v7321_v6, 16  ;;  %v1319_v48 = vshrl.u32 %v7319_v24, 16 }
 0x146   :  { %711 = vmatmul.f32.gmra.mxu2 %v6764_v15  ;;  %913 = vmatmul.f32.gmra.mxu3 %v14018_v51  ;;  %v200_v15 = vadd.f32 %v7010_v31, %v7045_v13  ;;  %v1345_v51 = vadd.s32 %v1343_v4, %v1337_v43  ;;  %v1458_v13 = vsel %vm1446_vm13, %v7361_v44, %v7363_v27  ;;  %v612_v43 = vpop.f32.mrf.mxu2 }
 0x147   :  { %1077 = vmatmul.f32.gmra.mxu0 %v6749_v1  ;;  %v1454_v14 = vsel %vm1446_vm13, %v7369_v60, %v7361_v44  ;;  %v7400_v39 = vsel %vm1447_vm15, %v1458_v13, %v1460_v26  ;;  %v1144_v13 = vpop.f32.mrf.mxu1 }
 0x148   :  { %1223 = vmatmul.f32.gmra.mxu1 %v6749_v1  ;;  %v1422_v1 = vor.u32 8388608, %v1421_v56  ;;  %v462_v46 = vadd.f32 %v7048_v17, %v200_v15  ;;  %v1349_v41 = vadd.s32 %v1347_v45, %v1345_v51  ;;  %v794_v56 = vpop.f32.mrf.mxu3  ;;  %v1339_v17 = vshrl.u32 %v7306_v42, 16  ;;  %v998_v15 = vpop.f32.mrf.mxu0 }
 0x149   :  { %v1457_v4 = vsel %vm1447_vm15, %v1454_v14, %v1456_v62  ;;  %v1328_v42 = vadd.s32 %v1327_v52, %v1317_v38  ;;  %v1466_v53 = vshrl.u32 %v7400_v39, 16 }
 0x14a   :  { %v613_v61 = vadd.f32 %v612_v43, %v462_v46  ;;  %v7406_v49 = vshll.u32 %v1422_v1, 8  ;;  %v1488_v45 = vshrl.u32 %v1457_v4, 16  ;;  %v1296_v1 = vsel %vm1294_vm3, %v7260_v47, 2102212464  ;;  %v14023_v46 = vld [vmem:[#allocation4_spill] sm:$0xff] }
 0x14b   :  { %v1572_v43 = vand.u32 2139095040, %v7281_v16  ;;  %v7420_v14 = vadd.s32 %v1328_v42, %v1319_v48  ;;  %v14024_v24 = vand.u32 4294901760, %v14023_v46 }
 0x14c   :  { %v795_v51 = vadd.f32 %v794_v56, %v613_v61  ;;  %v1463_v2 = vand.u32 65535, %v7406_v49 }
 0x14e   :  { %716 = vmatmul.f32.gmra.mxu2 %v6792_v58  ;;  %919 = vmatmul.f32.gmra.mxu3 %v14021_v5  ;;  %v1350_v58 = vadd.s32 %v1349_v41, %v1339_v17  ;;  %v999_v57 = vadd.f32 %v998_v15, %v795_v51  ;;  %v1275_v41 = vshrl.u32 %v14020_v34, %v7231_v40  ;;  %v14026_v5 = vld [vmem:[#allocation3_spill] sm:$0xff]  ;;  %v14027_v40 = vshll.u32 %v7321_v6, 16 }
 0x14f   :  { %1081 = vmatmul.f32.gmra.mxu0 %v14022_v18  ;;  %v1468_v62 = vmul.u32 %v1466_v53, %v1463_v2  ;;  %v1490_v52 = vmul.u32 %v1488_v45, %v1463_v2  ;;  %v1297_v17 = vsel %vm1293_vm5, %v7258_v35, %v1296_v1  ;;  %v1487_v15 = vand.u32 65535, %v1457_v4 }
 0x150   :  { %1227 = vmatmul.f32.gmra.mxu1 %v14022_v18  ;;  %v1351_v26 = vadd.s32 %v1350_v58, %v1341_v9  ;;  %v7424_v56 = vadd.f32 %v1144_v13, %v999_v57  ;;  %v1295_v47 = vsel %vm1291_vm4, %v1275_v41, %v7263_v7  ;;  %v7436_v61 = vadd.s32 %v7333_v37, %v14027_v40  ;;  %v14028_v13 = vld [vmem:[#allocation6_spill] sm:$0xff] }
 0x151   :  { %v1465_v18 = vand.u32 65535, %v7400_v39  ;;  %v1573_v58 = vshrl.u32 %v1572_v43, 23  ;;  %v1464_v7 = vshrl.u32 %v7406_v49, 16  ;;  %v1471_v51 = vshll.u32 %v1468_v62, 16 }
 0x152   :  { %14025 = vst [vmem:[#allocation2_spill] sm:$0xff] %v7424_v56  ;;  %v1355_v38 = vadd.s32 1, %v1351_v26  ;;  %vm1354_vm0 = vc.u32 %v7420_v14, %v7436_v61  ;;  %v1298_v35 = vsel %vm1292_vm6, %v1295_v47, %v1297_v17  ;;  %v1493_v6 = vshll.u32 %v1490_v52, 16 }
 0x153   :  { %v1467_v42 = vmul.u32 %v1465_v18, %v1463_v2  ;;  %v1469_v37 = vmul.u32 %v1465_v18, %v1464_v7  ;;  %v1489_v57 = vmul.u32 %v1487_v15, %v1463_v2  ;;  %v1491_v39 = vmul.u32 %v1487_v15, %v1464_v7 }
 0x154   :  { %v1356_v9 = vsel %vm1354_vm0, %v1355_v38, %v1351_v26  ;;  %v6391_v48 = vadd.s32 4294967169, %v1573_v58  ;;  %v1352_v4 = vmul.u32 %v7296_v29, %v1298_v35  ;;  %v14029_v43 = vand.u32 4294901760, %v14028_v13  ;;  %v14031_v58 = vld [vmem:[#allocation8_spill] sm:$0xff] }
 0x155   :  { %vm1475_vm1 = vc.u32 %v1467_v42, %v1471_v51  ;;  %v1477_v1 = vadd.s32 %v1471_v51, %v1467_v42  ;;  %vm1497_vm2 = vc.u32 %v1489_v57, %v1493_v6  ;;  %v1495_v26 = vshll.u32 %v1491_v39, 16 }
 0x156   :  { %721 = vmatmul.f32.gmra.mxu2 %v14023_v46  ;;  %925 = vmatmul.f32.gmra.mxu3 %v14024_v24  ;;  %v1499_v46 = vadd.s32 %v1493_v6, %v1489_v57  ;;  %v1357_v41 = vadd.s32 %v1356_v9, %v1352_v4  ;;  %v1473_v24 = vshll.u32 %v1469_v37, 16  ;;  %v1476_v2 = vsel %vm1475_vm1, 1, %v13655_v54  ;;  %v14033_v6 = vld [vmem:[#allocation7_spill] sm:$0xff] }
 0x157   :  { %1085 = vmatmul.f32.gmra.mxu0 %v14026_v5  ;;  %v1470_v47 = vmul.u32 %v1466_v53, %v1464_v7  ;;  %v1498_v29 = vsel %vm1497_vm2, 1, %v13655_v54  ;;  %v1492_v17 = vmul.u32 %v1488_v45, %v1464_v7  ;;  %v14032_v35 = vand.u32 4294901760, %v14031_v58 }
 0x158   :  { %1231 = vmatmul.f32.gmra.mxu1 %v14026_v5  ;;  %v1579_v5 = vadd.s32 1, %v6391_v48  ;;  %vm1479_vm3 = vc.u32 %v1477_v1, %v1473_v24  ;;  %vm1501_vm4 = vc.u32 %v1499_v46, %v1495_v26  ;;  %v1358_v40 = vadd.s32 536870912, %v1357_v41 }
 0x159   :  { %v1478_v18 = vadd.s32 %v1476_v2, %v1470_v47  ;;  %v1480_v38 = vsel %vm1479_vm3, 1, %v13655_v54  ;;  %v1500_v15 = vadd.s32 %v1498_v29, %v1492_v17  ;;  %v1502_v51 = vsel %vm1501_vm4, 1, %v13655_v54  ;;  %v800_v47 = vpop.f32.mrf.mxu3 }
 0x15a   :  { %vm1580_vm5 = vcmp.gt.s32.totalorder %v1579_v5, 0  ;;  %v7459_v53 = vshrl.u32 %v1358_v40, 30  ;;  %v1472_v9 = vshrl.u32 %v1468_v62, 16  ;;  %v1494_v57 = vshrl.u32 %v1490_v52, 16 }
 0x15b   :  { %v1482_v42 = vadd.s32 %v1480_v38, %v1478_v18  ;;  %v1581_v45 = vsel %vm1580_vm5, %v1579_v5, 0  ;;  %v1504_v7 = vadd.s32 %v1502_v51, %v1500_v15  ;;  %v208_v24 = vadd.f32 %v7010_v31, %v7057_v21  ;;  %v1002_v18 = vpop.f32.mrf.mxu0  ;;  %v14037_v38 = vld [vmem:[#allocation9_spill] sm:$0xff] }
 0x15c   :  { %14034 = vst [vmem:[#allocation4_spill] sm:$0xff] %v7459_v53  ;;  %v1583_v48 = vand.u32 31, %v1581_v45  ;;  %v1451_v2 = vsel %vm1449_vm12, %v7363_v27, 2102212464  ;;  %v1474_v5 = vshrl.u32 %v1469_v37, 16  ;;  %v1430_v52 = vshrl.u32 %v14020_v34, %v7308_v32  ;;  %v1148_v27 = vpop.f32.mrf.mxu1 }
 0x15d   :  { %v1483_v4 = vadd.s32 %v1482_v42, %v1472_v9  ;;  %v1505_v1 = vadd.s32 %v1504_v7, %v1494_v57  ;;  %v1496_v29 = vshrl.u32 %v1491_v39, 16  ;;  %v1727_v40 = vand.u32 2139095040, %v7424_v56 }
 0x15e   :  { %726 = vmatmul.f32.gmra.mxu2 %v14028_v13  ;;  %931 = vmatmul.f32.gmra.mxu3 %v14029_v43  ;;  %v1360_v13 = vshll.u32 %v7459_v53, 30  ;;  %v617_v43 = vpop.f32.mrf.mxu2  ;;  %v7473_v17 = vsub.s32 32, %v1583_v48  ;;  %v1450_v37 = vsel %vm1446_vm13, %v1430_v52, %v7369_v60  ;;  %v1452_v32 = vsel %vm1448_vm14, %v7361_v44, %v1451_v2 }
 0x15f   :  { %1089 = vmatmul.f32.gmra.mxu0 %v14030_v30  ;;  %v7479_v21 = vadd.s32 %v1483_v4, %v1474_v5  ;;  %v1506_v39 = vadd.s32 %v1505_v1, %v1496_v29  ;;  %v7488_v15 = vadd.s32 %v1499_v46, %v1495_v26  ;;  %v1453_v60 = vsel %vm1447_vm15, %v1450_v37, %v1452_v32 }
 0x160   :  { %1235 = vmatmul.f32.gmra.mxu1 %v14030_v30  ;;  %v14035_v30 = vld [vmem:[#allocation10_spill] sm:$0xff]  ;;  %v7477_v31 = vsub.s32 %v1357_v41, %v1360_v13  ;;  %v13654_v41 = vand.u32 2147483647, %v7281_v16  ;;  %v1596_v51 = vshrl.u32 %v14014_v22, %v7473_v17  ;;  %v1595_v46 = vshll.u32 %v14015_v3, %v1583_v48 }
 0x161   :  { %v14036_v62 = vand.u32 4294901760, %v14035_v30  ;;  %14038 = vst [vmem:[#allocation3_spill] sm:$0xff] %v7479_v21  ;;  %vm1509_vm7 = vc.u32 %v7479_v21, %v7488_v15  ;;  %v1510_v44 = vadd.s32 1, %v1506_v39  ;;  %v1599_v26 = vshrl.u32 %v14011_v10, %v7473_v17 }
 0x162   :  { %14039 = vst [vmem:[#allocation6_spill] sm:$0xff] %v7488_v15  ;;  %vm1362_vm6 = vcmp.lt.s32.totalorder %v7477_v31, 0  ;;  %v7505_v42 = vshrl.u32 %v1581_v45, 5  ;;  %v1586_v7 = vshll.u32 %v14020_v34, %v1583_v48  ;;  %v1590_v55 = vshrl.u32 %v14017_v36, %v7473_v17 }
 0x163   :  { %v1593_v9 = vshrl.u32 %v14015_v3, %v7473_v17  ;;  %v1597_v57 = vor.u32 %v1596_v51, %v1595_v46  ;;  %v1598_v13 = vshll.u32 %v14014_v22, %v1583_v48  ;;  %v1576_v45 = vand.u32 8388607, %v13654_v41 }
 0x164   :  { %v1592_v2 = vshll.u32 %v14017_v36, %v1583_v48  ;;  %v1511_v5 = vsel %vm1509_vm7, %v1510_v44, %v1506_v39  ;;  %vm1604_vm8 = vcmp.lt.s32.totalorder %v7505_v42, 4  ;;  %v1507_v37 = vmul.u32 %v7406_v49, %v1453_v60  ;;  %v14041_v60 = vld [vmem:[#allocation11_spill] sm:$0xff] }
 0x165   :  { %v1600_v52 = vor.u32 %v1599_v26, %v1598_v13  ;;  %vm1601_vm9 = vcmp.lt.s32.totalorder %v7505_v42, 1  ;;  %vm1603_vm10 = vcmp.lt.s32.totalorder %v7505_v42, 3  ;;  %vm1602_vm12 = vcmp.lt.s32.totalorder %v7505_v42, 2 }
 0x166   :  { %731 = vmatmul.f32.gmra.mxu2 %v14031_v58  ;;  %937 = vmatmul.f32.gmra.mxu3 %v14032_v35  ;;  %v466_v58 = vadd.f32 %v7060_v11, %v208_v24  ;;  %v1728_v35 = vshrl.u32 %v1727_v40, 23  ;;  %v1587_v11 = vshrl.u32 %v14016_v28, %v7473_v17  ;;  %v1589_v24 = vshll.u32 %v14016_v28, %v1583_v48 }
 0x167   :  { %1093 = vmatmul.f32.gmra.mxu0 %v14033_v6  ;;  %v7527_v40 = vor.u32 %v1593_v9, %v1592_v2  ;;  %v1610_v48 = vsel %vm1604_vm8, %v1597_v57, 920167782  ;;  %v1512_v39 = vadd.s32 %v1511_v5, %v1507_v37 }
 0x168   :  { %1239 = vmatmul.f32.gmra.mxu1 %v14033_v6  ;;  %v1363_v6 = vsub.s32 0, %v7477_v31  ;;  %v6394_v4 = vadd.s32 4294967169, %v1728_v35  ;;  %v618_v1 = vadd.f32 %v617_v43, %v466_v58  ;;  %v7525_v43 = vor.u32 %v1590_v55, %v1589_v24  ;;  %v7574_v24 = vpop.f32.mrf.mxu1 }
 0x169   :  { %v1577_v58 = vor.u32 8388608, %v1576_v45  ;;  %v1611_v49 = vsel %vm1603_vm10, %v7527_v40, %v1610_v48  ;;  %v1513_v46 = vadd.s32 536870912, %v1512_v39  ;;  %v14042_v55 = vand.u32 4294901760, %v14041_v60 }
 0x16a   :  { %v801_v29 = vadd.f32 %v800_v47, %v618_v1  ;;  %v1614_v47 = vsel %vm1604_vm8, %v1600_v52, 1326507024  ;;  %v1613_v44 = vsel %vm1601_vm9, %v7525_v43, %v7527_v40  ;;  %v7568_v1 = vpop.f32.mrf.mxu0  ;;  %v7581_v52 = vld [vmem:[%s13581_s2] ss:$0 sm:$0xff] }
 0x16b   :  { %v7564_v13 = vshll.u32 %v1577_v58, 8  ;;  %v7572_v45 = vshrl.u32 %v1513_v46, 30 }
 0x16c   :  { %v1003_v51 = vadd.f32 %v1002_v18, %v801_v29  ;;  %v7546_v18 = vpop.f32.mrf.mxu2  ;;  %v216_v29 = vadd.f32 %v7581_v52, %v7069_v33 }
 0x16d   :  { %14043 = vst [vmem:[#allocation8_spill] sm:$0xff] %v7572_v45  ;;  %v1618_v2 = vand.u32 65535, %v7564_v13 }
 0x16e   :  { %736 = vmatmul.f32.gmra.mxu2 %v14035_v30  ;;  %943 = vmatmul.f32.gmra.mxu3 %v14036_v62  ;;  %v1364_v30 = vsel %vm1362_vm6, %v1363_v6, %v7477_v31  ;;  %v7523_v62 = vor.u32 %v1587_v11, %v1586_v7  ;;  %v7544_v6 = vadd.f32 %v1148_v27, %v1003_v51  ;;  %v7560_v7 = vpop.f32.mrf.mxu3 }
 0x16f   :  { %1097 = vmatmul.f32.gmra.mxu0 %v14037_v38  ;;  %v1365_v32 = vclz %v1364_v30  ;;  %v1615_v11 = vsel %vm1603_vm10, %v1597_v57, %v1614_v47  ;;  %v470_v47 = vadd.f32 %v7072_v59, %v216_v29 }
 0x170   :  { %1243 = vmatmul.f32.gmra.mxu1 %v14037_v38  ;;  %v1734_v38 = vadd.s32 1, %v6394_v4  ;;  %v1609_v35 = vsel %vm1601_vm9, %v7523_v62, %v7525_v43  ;;  %14040 = vst [vmem:[#allocation5_spill] sm:$0xff] %v7544_v6  ;;  %v1616_v4 = vsel %vm1602_vm12, %v1613_v44, %v1615_v11 }
 0x171   :  { %v7558_v26 = vsel %vm1602_vm12, %v1609_v35, %v1611_v49  ;;  %v6386_v9 = vadd.s32 4294967294, %v1365_v32  ;;  %v1621_v5 = vshrl.u32 %v1616_v4, 16  ;;  %v1620_v58 = vand.u32 65535, %v1616_v4 }
 0x172   :  { %vm1735_vm11 = vcmp.gt.s32.totalorder %v1734_v38, 0  ;;  %v1643_v57 = vshrl.u32 %v7558_v26, 16  ;;  %v1642_v32 = vand.u32 65535, %v7558_v26  ;;  %v1619_v49 = vshrl.u32 %v7564_v13, 16 }
 0x173   :  { %v1736_v27 = vsel %vm1735_vm11, %v1734_v38, 0  ;;  %vm6387_vm13 = vcmp.lt.s32.totalorder %v6386_v9, 0  ;;  %v7593_v51 = vmul.u32 %v1621_v5, %v1618_v2 }
 0x174   :  { %v1738_v30 = vand.u32 31, %v1736_v27  ;;  %v7585_v38 = vmul.u32 %v1643_v57, %v1618_v2  ;;  %v7589_v48 = vsel %vm6387_vm13, 0, %v6386_v9  ;;  %v1644_v11 = vmul.u32 %v1642_v32, %v1618_v2 }
 0x175   :  { %v1373_v35 = vsub.s32 4294967266, %v7589_v48  ;;  %v1626_v59 = vshll.u32 %v7593_v51, 16  ;;  %v7607_v9 = vmul.u32 %v1642_v32, %v1619_v49  ;;  %v7610_v29 = vshrl.u32 %v1736_v27, 5 }
 0x176   :  { %741 = vmatmul.f32.gmra.mxu2 %v14041_v60  ;;  %949 = vmatmul.f32.gmra.mxu3 %v14042_v55  ;;  %v7587_v37 = vsub.s32 32, %v1738_v30  ;;  %v1648_v33 = vshll.u32 %v7585_v38, 16  ;;  %v1622_v55 = vmul.u32 %v1620_v58, %v1618_v2  ;;  %v1753_v4 = vshll.u32 %v14014_v22, %v1738_v30 }
 0x177   :  { %1101 = vmatmul.f32.gmra.mxu0 %v6917_v25  ;;  %v7617_v54 = vmul.u32 %v1620_v58, %v1619_v49  ;;  %v1744_v16 = vshll.u32 %v14016_v28, %v1738_v30  ;;  %v1650_v58 = vshll.u32 %v7607_v9, 16  ;;  %vm1759_vm0 = vcmp.lt.s32.totalorder %v7610_v29, 4 }
 0x178   :  { %1247 = vmatmul.f32.gmra.mxu1 %v6917_v25  ;;  %14044 = vst [vmem:[#allocation7_spill] sm:$0xff] %v7587_v37  ;;  %v1515_v25 = vshll.u32 %v7572_v45, 30  ;;  %v1754_v60 = vshrl.u32 %v14011_v10, %v7587_v37  ;;  %v1751_v26 = vshrl.u32 %v14014_v22, %v7587_v37  ;;  %v1745_v41 = vshrl.u32 %v14017_v36, %v7587_v37 }
 0x179   :  { %vm7619_vm14 = vc.u32 %v1644_v11, %v1648_v33  ;;  %v1742_v32 = vshrl.u32 %v14016_v28, %v7587_v37  ;;  %v7625_v27 = vadd.s32 %v1648_v33, %v1644_v11  ;;  %v1747_v45 = vshll.u32 %v14017_v36, %v1738_v30 }
 0x17a   :  { %v7601_v44 = vsub.s32 %v1512_v39, %v1515_v25  ;;  %v1748_v39 = vshrl.u32 %v14015_v3, %v7587_v37  ;;  %v1750_v25 = vshll.u32 %v14015_v3, %v1738_v30  ;;  %v1755_v46 = vor.u32 %v1754_v60, %v1753_v4 }
 0x17b   :  { %vm1630_vm15 = vc.u32 %v1622_v55, %v1626_v59  ;;  %v1632_v22 = vadd.s32 %v1626_v59, %v1622_v55  ;;  %v1741_v3 = vshll.u32 %v14020_v34, %v1738_v30  ;;  %v14047_v10 = vand.u32 2147483647, %v7424_v56 }
 0x17c   :  { %v1752_v53 = vor.u32 %v1751_v26, %v1750_v25  ;;  %v7633_v21 = vor.u32 %v1745_v41, %v1744_v16  ;;  %v7635_v37 = vor.u32 %v1748_v39, %v1747_v45  ;;  %v1628_v33 = vshll.u32 %v7617_v54, 16 }
 0x17d   :  { %v1731_v15 = vand.u32 8388607, %v14047_v10  ;;  %v14048_v60 = vmov 0   ;;  %v7642_v26 = vor.u32 %v1742_v32, %v1741_v3  ;;  %v1769_v30 = vsel %vm1759_vm0, %v1755_v46, 1326507024 }
 0x17e   :  { %v1653_v11 = vsel %vm7619_vm14, 1, %v14048_v60  ;;  %v1631_v55 = vsel %vm1630_vm15, 1, %v14048_v60  ;;  %v1647_v10 = vmul.u32 %v1643_v57, %v1619_v49  ;;  %vm1656_vm1 = vc.u32 %v7625_v27, %v1650_v58 }
 0x17f   :  { %v1765_v16 = vsel %vm1759_vm0, %v1752_v53, 920167782  ;;  %v1625_v41 = vmul.u32 %v1621_v5, %v1619_v49  ;;  %vm1634_vm2 = vc.u32 %v1632_v22, %v1628_v33  ;;  %vm1756_vm3 = vcmp.lt.s32.totalorder %v7610_v29, 1 }
 0x180   :  { %vm1758_vm4 = vcmp.lt.s32.totalorder %v7610_v29, 3  ;;  %v1655_v3 = vadd.s32 %v1653_v11, %v1647_v10  ;;  %v1732_v45 = vor.u32 8388608, %v1731_v15  ;;  %v1768_v57 = vsel %vm1756_vm3, %v7633_v21, %v7635_v37 }
 0x181   :  { %v1770_v46 = vsel %vm1758_vm4, %v1752_v53, %v1769_v30  ;;  %v1633_v59 = vadd.s32 %v1631_v55, %v1625_v41  ;;  %v1657_v4 = vsel %vm1656_vm1, 1, %v14048_v60  ;;  %v1764_v22 = vsel %vm1756_vm3, %v7642_v26, %v7633_v21 }
 0x182   :  { %v1766_v15 = vsel %vm1758_vm4, %v7635_v37, %v1765_v16  ;;  %v1635_v5 = vsel %vm1634_vm2, 1, %v14048_v60  ;;  %vm1757_vm5 = vcmp.lt.s32.totalorder %v7610_v29, 2  ;;  %v623_v49 = vadd.f32 %v7546_v18, %v470_v47 }
 0x183   :  { %v7673_v53 = vsel %vm1757_vm5, %v1768_v57, %v1770_v46  ;;  %v1659_v39 = vadd.s32 %v1657_v4, %v1655_v3  ;;  %v7677_v25 = vsel %vm1757_vm5, %v1764_v22, %v1766_v15  ;;  %v7679_v2 = vshll.u32 %v1732_v45, 8  ;;  %v7706_v46 = vpop.f32.mrf.mxu3 }
 0x184   :  { %v807_v32 = vadd.f32 %v7560_v7, %v623_v49  ;;  %v1374_v33 = vadd.s32 127, %v1373_v35  ;;  %v1518_v11 = vsub.s32 0, %v7601_v44  ;;  %v1637_v30 = vadd.s32 %v1635_v5, %v1633_v59  ;;  %v7692_v35 = vpop.f32.mrf.mxu2  ;;  %746 = vmatmul.f32.gmra.mxu2 %v6960_v23 }
 0x185   :  { %vm1517_vm6 = vcmp.lt.s32.totalorder %v7601_v44, 0  ;;  %v1649_v18 = vshrl.u32 %v7585_v38, 16  ;;  %v1776_v47 = vshrl.u32 %v7673_v53, 16  ;;  %v1353_v10 = vadd.s32 %v7436_v61, %v7420_v14 }
 0x186   :  { %v1007_v55 = vadd.f32 %v7568_v1, %v807_v32  ;;  %v1369_v16 = vsub.s32 32, %v7589_v48  ;;  %v1627_v41 = vshrl.u32 %v7593_v51, 16  ;;  %v1798_v7 = vshrl.u32 %v7677_v25, 16 }
 0x187   :  { %v1585_v38 = vshrl.u32 %v14020_v34, %v7473_v17  ;;  %v1660_v3 = vadd.s32 %v1659_v39, %v1649_v18  ;;  %v1773_v45 = vand.u32 65535, %v7679_v2  ;;  %v1519_v14 = vsel %vm1517_vm6, %v1518_v11, %v7601_v44  ;;  %v7735_v18 = vpop.f32.mrf.mxu1  ;;  %1251 = vmatmul.f32.gmra.mxu1 %v6945_v8 }
 0x188   :  { %v7699_v1 = vadd.f32 %v7574_v24, %v1007_v55  ;;  %v1606_v61 = vsel %vm1604_vm8, %v7527_v40, 2102212464  ;;  %v1638_v51 = vadd.s32 %v1637_v30, %v1627_v41  ;;  %v1882_v57 = vand.u32 2139095040, %v7544_v6 }
 0x189   :  { %v14050_v59 = vand.u32 4294901760, %v6960_v23  ;;  %v1375_v17 = vshll.u32 %v1374_v33, 23  ;;  %v1651_v4 = vshrl.u32 %v7607_v9, 16  ;;  %v7713_v24 = vmul.u32 %v1776_v47, %v1773_v45  ;;  %v7723_v23 = vpop.f32.mrf.mxu0  ;;  %1105 = vmatmul.f32.gmra.mxu0 %v6945_v8 }
 0x18a   :  { %14049 = vst [vmem:[#allocation10_spill] sm:$0xff] %v7699_v1  ;;  %v1371_v22 = vshrl.u32 %v1353_v10, %v1369_v16  ;;  %v1605_v40 = vsel %vm1601_vm9, %v1585_v38, %v7523_v62  ;;  %v1629_v15 = vshrl.u32 %v7617_v54, 16  ;;  %v7721_v5 = vmul.u32 %v1798_v7, %v1773_v45 }
 0x18b   :  { %955 = vmatmul.f32.gmra.mxu3 %v14050_v59  ;;  %v1520_v49 = vclz %v1519_v14  ;;  %v1607_v39 = vsel %vm1603_vm10, %v7525_v43, %v1606_v61  ;;  %v1661_v32 = vadd.s32 %v1660_v3, %v1651_v4  ;;  %v1775_v33 = vand.u32 65535, %v7673_v53 }
 0x18c   :  { %v1370_v62 = vshll.u32 %v7477_v31, %v7589_v48  ;;  %v7732_v54 = vadd.s32 %v1638_v51, %v1629_v15  ;;  %v1797_v11 = vand.u32 65535, %v7677_v25  ;;  %v1883_v30 = vshrl.u32 %v1882_v57, 23 }
 0x18d   :  { %v1376_v55 = vor.u32 4788187, %v1375_v17  ;;  %v1774_v10 = vshrl.u32 %v7679_v2, 16  ;;  %v1781_v43 = vshll.u32 %v7713_v24, 16  ;;  %v1608_v41 = vsel %vm1602_vm12, %v1605_v40, %v1607_v39 }
 0x18e   :  { %v1372_v16 = vor.u32 %v1371_v22, %v1370_v62  ;;  %v7745_v31 = vadd.s32 %v7625_v27, %v1650_v58  ;;  %v1803_v48 = vshll.u32 %v7721_v5, 16  ;;  %v6389_v38 = vadd.s32 4294967294, %v1520_v49 }
 0x18f   :  { %v1665_v3 = vadd.s32 1, %v1661_v32  ;;  %v1777_v14 = vmul.u32 %v1775_v33, %v1773_v45  ;;  %v7748_v8 = vmul.u32 %v1775_v33, %v1774_v10  ;;  %v1799_v61 = vmul.u32 %v1797_v11, %v1773_v45 }
 0x190   :  { %vm1664_vm7 = vc.u32 %v7732_v54, %v7745_v31  ;;  %v7752_v51 = vmul.u32 %v1797_v11, %v1774_v10  ;;  %v6397_v42 = vadd.s32 4294967169, %v1883_v30  ;;  %v1377_v57 = vand.u32 2147483647, %v1376_v55 }
 0x191   :  { %vm1785_vm8 = vc.u32 %v1777_v14, %v1781_v43  ;;  %v1787_v9 = vadd.s32 %v1781_v43, %v1777_v14  ;;  %vm1807_vm9 = vc.u32 %v1799_v61, %v1803_v48  ;;  %v7754_v27 = vadd.s32 %v1803_v48, %v1799_v61 }
 0x192   :  { %v1379_v58 = vcvt.s32.f32 %v1372_v16  ;;  %v1662_v59 = vmul.u32 %v7564_v13, %v1608_v41  ;;  %v1666_v17 = vsel %vm1664_vm7, %v1665_v3, %v1661_v32  ;;  %v1783_v4 = vshll.u32 %v7748_v8, 16 }
 0x193   :  { %vm6390_vm10 = vcmp.lt.s32.totalorder %v6389_v38, 0  ;;  %v1786_v22 = vsel %vm1785_vm8, 1, %v14048_v60  ;;  %v1805_v45 = vshll.u32 %v7752_v51, 16  ;;  %v1889_v40 = vadd.s32 1, %v6397_v42 }
 0x194   :  { %v1380_v15 = vmul.f32 %v1379_v58, %v1377_v57  ;;  %v1780_v49 = vmul.u32 %v1776_v47, %v1774_v10  ;;  %vm1789_vm11 = vc.u32 %v1787_v9, %v1783_v4  ;;  %v1808_v39 = vsel %vm1807_vm9, 1, %v14048_v60 }
 0x195   :  { %v1667_v33 = vadd.s32 %v1666_v17, %v1662_v59  ;;  %v1802_v13 = vmul.u32 %v1798_v7, %v1774_v10  ;;  %vm1811_vm12 = vc.u32 %v7754_v27, %v1805_v45  ;;  %v224_v32 = vadd.f32 %v7581_v52, %v7081_v50  ;;  %v14058_v17 = vld [vmem:[#allocation6_spill] sm:$0xff] }
 0x196   :  { %v1523_v62 = vsel %vm6390_vm10, 0, %v6389_v38  ;;  %v1788_v11 = vadd.s32 %v1786_v22, %v1780_v49  ;;  %v232_v30 = vadd.f32 %v7581_v52, %v7093_v0  ;;  %v1790_v53 = vsel %vm1789_vm11, 1, %v14048_v60 }
 0x197   :  { %v1810_v47 = vadd.s32 %v1808_v39, %v1802_v13  ;;  %vm1890_vm13 = vcmp.gt.s32.totalorder %v1889_v40, 0  ;;  %v1381_v55 = vxor.u32 2147483648, %v1380_v15  ;;  %v1812_v43 = vsel %vm1811_vm12, 1, %v14048_v60  ;;  %v14060_v39 = vld [vmem:[#allocation7_spill] sm:$0xff] }
 0x198   :  { %v1528_v16 = vsub.s32 4294967266, %v1523_v62  ;;  %v1668_v25 = vadd.s32 536870912, %v1667_v33  ;;  %v1792_v7 = vadd.s32 %v1790_v53, %v1788_v11  ;;  %v1891_v10 = vsel %vm1890_vm13, %v1889_v40, 0 }
 0x199   :  { %v474_v41 = vadd.f32 %v7084_v63, %v224_v32  ;;  %v7774_v50 = vadd.f32 %v7096_v19, %v232_v30  ;;  %vm1261_vm14 = vcmp.lt.s32.totalorder %v7216_v12, 0  ;;  %v1814_v48 = vadd.s32 %v1812_v43, %v1810_v47  ;;  %v14052_v19 = vld [vmem:[#allocation24_spill] sm:$0xff] }
 0x19a   :  { %v240_v0 = vadd.f32 %v7581_v52, %v7105_v20  ;;  %v1382_v38 = vsel %vm1261_vm14, %v1381_v55, %v1380_v15  ;;  %v1524_v3 = vsub.s32 32, %v1523_v62  ;;  %v1782_v14 = vshrl.u32 %v7713_v24, 16  ;;  %v14057_v20 = vld [vmem:[#allocation3_spill] sm:$0xff] }
 0x19b   :  { %v1529_v61 = vadd.s32 127, %v1528_v16  ;;  %v7782_v42 = vshrl.u32 %v1668_v25, 30  ;;  %v1804_v63 = vshrl.u32 %v7721_v5, 16  ;;  %v1893_v57 = vand.u32 31, %v1891_v10 }
 0x19c   :  { %v248_v9 = vadd.f32 %v7581_v52, %v14052_v19  ;;  %v14053_v58 = vand.u32 2147483647, %v7216_v12  ;;  %v14054_v59 = vmov 0  ;;  %v1508_v4 = vadd.s32 %v14058_v17, %v14057_v20 }
 0x19d   :  { %14051 = vst [vmem:[#allocation9_spill] sm:$0xff] %v7782_v42  ;;  %v1793_v22 = vadd.s32 %v1792_v7, %v1782_v14  ;;  %v1761_v5 = vsel %vm1759_vm0, %v7635_v37, 2102212464  ;;  %v1815_v40 = vadd.s32 %v1814_v48, %v1804_v63  ;;  %v2037_v15 = vand.u32 2139095040, %v7699_v1  ;;  %v14062_v7 = vld [vmem:[#allocation25_spill] sm:$0xff] }
 0x19e   :  { %vm7789_vm15 = vcmp.le.f32.partialorder %v14053_v58, 0.7853982  ;;  %v1526_v49 = vshrl.u32 %v1508_v4, %v1524_v3  ;;  %v1740_v13 = vshrl.u32 %v14020_v34, %v14060_v39  ;;  %v1784_v32 = vshrl.u32 %v7748_v8, 16 }
 0x19f   :  { %v14055_v59 = vsel %vm7789_vm15, 4294967295, %v14054_v59  ;;  %v7798_v24 = vsel %vm7789_vm15, %v7216_v12, %v1382_v38  ;;  %v628_v11 = vadd.f32 %v7692_v35, %v474_v41  ;;  %v1530_v30 = vshll.u32 %v1529_v61, 23  ;;  %v14061_v35 = vld [vmem:[#allocation22_spill] sm:$0xff] }
 0x1a0   :  { %14056 = vst [vmem:[#allocation11_spill] sm:$0xff] %v14055_v59  ;;  %v1670_v53 = vshll.u32 %v7782_v42, 30  ;;  %v1806_v47 = vshrl.u32 %v7752_v51, 16  ;;  %v7810_v55 = vsub.s32 32, %v1893_v57  ;;  %v1525_v37 = vshll.u32 %v7601_v44, %v1523_v62 }
 0x1a1   :  { %14059 = vst [vmem:[#allocation24_spill] sm:$0xff] %v7798_v24  ;;  %v1760_v43 = vsel %vm1756_vm3, %v1740_v13, %v7642_v26  ;;  %v1762_v16 = vsel %vm1758_vm4, %v7633_v21, %v1761_v5  ;;  %v7819_v8 = vadd.s32 %v1793_v22, %v1784_v32  ;;  %v7822_v25 = vadd.f32 %v14061_v35, %v240_v0  ;;  %v14072_v35 = vld [vmem:[#allocation30_spill] sm:$0xff] }
 0x1a2   :  { %v7825_v41 = vadd.f32 %v14062_v7, %v248_v9  ;;  %v1816_v51 = vadd.s32 %v1815_v40, %v1806_v47  ;;  %v2038_v48 = vshrl.u32 %v2037_v15, 23  ;;  %v7829_v44 = vmul.f32 %v7798_v24, %v7798_v24 }
 0x1a3   :  { %v1527_v62 = vor.u32 %v1526_v49, %v1525_v37  ;;  %v7832_v26 = vadd.s32 %v7754_v27, %v1805_v45  ;;  %v813_v21 = vadd.f32 %v7706_v46, %v628_v11  ;;  %v1531_v38 = vor.u32 4788187, %v1530_v30  ;;  %v7869_v30 = vpop.f32.mrf.mxu2 }
 0x1a4   :  { %14063 = vst [vmem:[#allocation3_spill] sm:$0xff] %v7825_v41  ;;  %v7835_v3 = vsub.s32 %v1667_v33, %v1670_v53  ;;  %v1763_v0 = vsel %vm1757_vm5, %v1760_v43, %v1762_v16  ;;  %v14066_v14 = vmov 1326507024   ;;  %v13669_v63 = vand.u32 2147483647, %v7544_v6  ;;  %v14070_v53 = vld [vmem:[#allocation13_spill] sm:$0xff] }
 0x1a5   :  { %14064 = vst [vmem:[#allocation6_spill] sm:$0xff] %v7829_v44  ;;  %v1909_v61 = vshrl.u32 %v14066_v14, %v7810_v55  ;;  %vm1819_vm0 = vc.u32 %v7819_v8, %v7832_v26  ;;  %v14067_v19 = vmov 920167782   ;;  %v1011_v45 = vadd.f32 %v7723_v23, %v813_v21  ;;  %751 = vmatmul.f32.gmra.mxu2 %v14070_v53 }
 0x1a6   :  { %14065 = vst [vmem:[#allocation7_spill] sm:$0xff] %v7832_v26  ;;  %v1906_v27 = vshrl.u32 %v14067_v19, %v7810_v55  ;;  %v1820_v46 = vadd.s32 1, %v1816_v51  ;;  %v7847_v9 = vshrl.u32 %v1891_v10, 5  ;;  %v1908_v33 = vshll.u32 %v14067_v19, %v1893_v57 }
 0x1a7   :  { %v6400_v29 = vadd.s32 4294967169, %v2038_v48  ;;  %v1900_v58 = vshrl.u32 %v14017_v36, %v7810_v55  ;;  %v14068_v20 = vmov 2102212464   ;;  %v7856_v22 = vadd.f32 %v7735_v18, %v1011_v45  ;;  %v7887_v48 = vpop.f32.mrf.mxu3 }
 0x1a8   :  { %v1903_v17 = vshrl.u32 %v14068_v20, %v7810_v55  ;;  %v1905_v4 = vshll.u32 %v14068_v20, %v1893_v57  ;;  %v1532_v5 = vand.u32 2147483647, %v1531_v38  ;;  %vm1672_vm1 = vcmp.lt.s32.totalorder %v7835_v3, 0 }
 0x1a9   :  { %14069 = vst [vmem:[#allocation22_spill] sm:$0xff] %v7856_v22  ;;  %v1897_v23 = vshrl.u32 %v14016_v28, %v7810_v55  ;;  %v1910_v10 = vor.u32 %v1909_v61, %v1908_v33  ;;  %v1673_v40 = vsub.s32 0, %v7835_v3  ;;  %v1899_v15 = vshll.u32 %v14016_v28, %v1893_v57  ;;  %v14074_v33 = vld [vmem:[#allocation12_spill] sm:$0xff] }
 0x1aa   :  { %v1902_v49 = vshll.u32 %v14017_v36, %v1893_v57  ;;  %v1907_v39 = vor.u32 %v1906_v27, %v1905_v4  ;;  %v1817_v13 = vmul.u32 %v7679_v2, %v1763_v0  ;;  %v1821_v18 = vsel %vm1819_vm0, %v1820_v46, %v1816_v51  ;;  %v14071_v2 = vld [vmem:[#allocation27_spill] sm:$0xff]  ;;  %v7901_v46 = vpop.f32.mrf.mxu0  ;;  %1109 = vmatmul.f32.gmra.mxu0 %v14074_v33  ;;  %v14075_v4 = vld [vmem:[#allocation33_spill] sm:$0xff] }
 0x1ab   :  { %v1896_v32 = vshll.u32 %v14020_v34, %v1893_v57  ;;  %v2044_v11 = vadd.s32 1, %v6400_v29  ;;  %v1886_v47 = vand.u32 8388607, %v13669_v63  ;;  %v7874_v37 = vor.u32 %v1900_v58, %v1899_v15  ;;  %v7919_v15 = vpop.f32.mrf.mxu1  ;;  %1255 = vmatmul.f32.gmra.mxu1 %v14074_v33  ;;  %v14085_v63 = vld [vmem:[#allocation37_spill] sm:$0xff] }
 0x1ac   :  { %v7876_v43 = vor.u32 %v1903_v17, %v1902_v49  ;;  %vm1914_vm2 = vcmp.lt.s32.totalorder %v7847_v9, 4  ;;  %v256_v16 = vadd.f32 %v7581_v52, %v14071_v2  ;;  %v264_v57 = vadd.f32 %v7581_v52, %v14072_v35  ;;  %v14076_v49 = vld [vmem:[#allocation36_spill] sm:$0xff] }
 0x1ad   :  { %v7883_v7 = vor.u32 %v1897_v23, %v1896_v32  ;;  %v1924_v51 = vsel %vm1914_vm2, %v1910_v10, 1326507024  ;;  %v14073_v21 = vand.u32 4294901760, %v14070_v53  ;;  %v1534_v38 = vcvt.s32.f32 %v1527_v62  ;;  %v14077_v32 = vld [vmem:[#allocation28_spill] sm:$0xff] }
 0x1ae   :  { %v1674_v0 = vsel %vm1672_vm1, %v1673_v40, %v7835_v3  ;;  %v7894_v61 = vadd.s32 %v1821_v18, %v1817_v13  ;;  %v1920_v27 = vsel %vm1914_vm2, %v1907_v39, 920167782  ;;  %v1395_v45 = vmul.f32 -0.00019511016, %v7829_v44  ;;  %v14080_v35 = vld [vmem:[#allocation4_spill] sm:$0xff] }
 0x1af   :  { %961 = vmatmul.f32.gmra.mxu3 %v14073_v21  ;;  %vm1911_vm3 = vcmp.lt.s32.totalorder %v7847_v9, 1  ;;  %vm1913_vm4 = vcmp.lt.s32.totalorder %v7847_v9, 3  ;;  %vm2045_vm5 = vcmp.gt.s32.totalorder %v2044_v11, 0  ;;  %v1535_v62 = vmul.f32 %v1534_v38, %v1532_v5 }
 0x1b0   :  { %v1887_v29 = vor.u32 8388608, %v1886_v47  ;;  %v1923_v58 = vsel %vm1911_vm3, %v7874_v37, %v7876_v43  ;;  %v1925_v17 = vsel %vm1913_vm4, %v1907_v39, %v1924_v51  ;;  %v272_v23 = vadd.f32 %v7581_v52, %v14075_v4  ;;  %v14079_v47 = vld [vmem:[#allocation39_spill] sm:$0xff] }
 0x1b1   :  { %v1675_v10 = vclz %v1674_v0  ;;  %v1919_v40 = vsel %vm1911_vm3, %v7883_v7, %v7874_v37  ;;  %v1921_v5 = vsel %vm1913_vm4, %v7876_v43, %v1920_v27  ;;  %v280_v39 = vadd.f32 %v7581_v52, %v14076_v49 }
 0x1b2   :  { %v1823_v13 = vadd.s32 536870912, %v7894_v61  ;;  %vm1912_vm6 = vcmp.lt.s32.totalorder %v7847_v9, 2  ;;  %v2046_v18 = vsel %vm2045_vm5, %v2044_v11, 0  ;;  %v7928_v53 = vadd.f32 %v14077_v32, %v256_v16  ;;  %v14081_v11 = vld [vmem:[#allocation31_spill] sm:$0xff]  ;;  %v14083_v16 = vld [vmem:[#allocation34_spill] sm:$0xff] }
 0x1b3   :  { %v288_v2 = vadd.f32 %v7581_v52, %v14079_v47  ;;  %v1383_v51 = vsub.s32 4, %v14080_v35  ;;  %v1926_v21 = vsel %vm1912_vm6, %v1923_v58, %v1925_v17  ;;  %v1396_v38 = vadd.f32 0.008332121, %v1395_v45  ;;  %v14087_v58 = vld [vmem:[#allocation42_spill] sm:$0xff] }
 0x1b4   :  { %14078 = vst [vmem:[#allocation25_spill] sm:$0xff] %v7928_v53  ;;  %v1536_v0 = vxor.u32 2147483648, %v1535_v62  ;;  %v7937_v27 = vsel %vm1912_vm6, %v1919_v40, %v1921_v5  ;;  %v7939_v33 = vshll.u32 %v1887_v29, 8  ;;  %v7942_v4 = vadd.f32 %v14081_v11, %v264_v57  ;;  %v14089_v5 = vld [vmem:[#allocation40_spill] sm:$0xff] }
 0x1b5   :  { %v7945_v49 = vadd.f32 %v14083_v16, %v272_v23  ;;  %v6392_v32 = vadd.s32 4294967294, %v1675_v10  ;;  %v2048_v47 = vand.u32 31, %v2046_v18  ;;  %v7948_v6 = vadd.f32 %v14085_v63, %v280_v39  ;;  %v14092_v23 = vld [vmem:[#allocation46_spill] sm:$0xff]  ;;  %v14093_v39 = vld [vmem:[#allocation8_spill] sm:$0xff] }
 0x1b6   :  { %14082 = vst [vmem:[#allocation13_spill] sm:$0xff] %v7942_v4  ;;  %v296_v45 = vadd.f32 %v7581_v52, %v14087_v58  ;;  %v7952_v17 = vshrl.u32 %v1823_v13, 30  ;;  %v1931_v40 = vshrl.u32 %v1926_v21, 16  ;;  %v7955_v29 = vadd.f32 %v14089_v5, %v288_v2 }
 0x1b7   :  { %14084 = vst [vmem:[#allocation27_spill] sm:$0xff] %v7945_v49  ;;  %v7960_v57 = vsel %vm1261_vm14, %v1383_v51, %v14080_v35  ;;  %vm1416_vm7 = vcmp.lt.s32.totalorder %v14092_v23, 0  ;;  %v1397_v63 = vmul.f32 %v1396_v38, %v7829_v44  ;;  %v1538_v13 = vsub.s32 4, %v14093_v39  ;;  %v14094_v35 = vld [vmem:[#allocation43_spill] sm:$0xff] }
 0x1b8   :  { %14086 = vst [vmem:[#allocation30_spill] sm:$0xff] %v7948_v6  ;;  %v1537_v52 = vsel %vm1416_vm7, %v1536_v0, %v1535_v62  ;;  %v1928_v11 = vand.u32 65535, %v7939_v33  ;;  %vm6393_vm8 = vcmp.lt.s32.totalorder %v6392_v32, 0  ;;  %v1930_v2 = vand.u32 65535, %v1926_v21 }
 0x1b9   :  { %14088 = vst [vmem:[#allocation12_spill] sm:$0xff] %v7952_v17  ;;  %v7970_v58 = vsub.s32 32, %v2048_v47  ;;  %v7973_v51 = vadd.f32 %v14094_v35, %v296_v45  ;;  %v1825_v5 = vshll.u32 %v7952_v17, 30  ;;  %v1952_v38 = vand.u32 65535, %v7937_v27 }
 0x1ba   :  { %14090 = vst [vmem:[#allocation33_spill] sm:$0xff] %v7955_v29  ;;  %v7976_v10 = vmul.u32 %v1931_v40, %v1928_v11  ;;  %v14096_v0 = vand.u32 2147483647, %v14092_v23  ;;  %v1929_v16 = vshrl.u32 %v7939_v33, 16  ;;  %v14099_v45 = vshrl.u32 %v7937_v27, 16 }
 0x1bb   :  { %14091 = vst [vmem:[#allocation36_spill] sm:$0xff] %v7960_v57  ;;  %v7993_v12 = vadd.f32 -0.16666654, %v1397_v63  ;;  %v8005_v62 = vsel %vm6393_vm8, 0, %v6392_v32  ;;  %v14100_v6 = vand.u32 2147483647, %v7699_v1  ;;  %v2061_v63 = vshrl.u32 %v14067_v19, %v7970_v58 }
 0x1bc   :  { %14095 = vst [vmem:[#allocation28_spill] sm:$0xff] %v7973_v51  ;;  %vm7984_vm9 = vcmp.le.f32.partialorder %v14096_v0, 0.7853982  ;;  %v7991_v35 = vmul.u32 %v14099_v45, %v1928_v11  ;;  %v7998_v51 = vsel %vm1416_vm7, %v1538_v13, %v14093_v39  ;;  %v8007_v29 = vmul.u32 %v1930_v2, %v1929_v16 }
 0x1bd   :  { %v8003_v0 = vsel %vm7984_vm9, %v14092_v23, %v1537_v52  ;;  %v2041_v45 = vand.u32 8388607, %v14100_v6  ;;  %v2064_v49 = vshrl.u32 %v14066_v14, %v7970_v58  ;;  %v8016_v39 = vsub.s32 %v7894_v61, %v1825_v5 }
 0x1be   :  { %v1936_v13 = vshll.u32 %v7976_v10, 16  ;;  %v1954_v52 = vmul.u32 %v1952_v38, %v1928_v11  ;;  %v8019_v23 = vmul.u32 %v1952_v38, %v1929_v16  ;;  %v1932_v32 = vmul.u32 %v1930_v2, %v1928_v11 }
 0x1bf   :  { %v1958_v4 = vshll.u32 %v7991_v35, 16  ;;  %v2060_v1 = vshll.u32 %v14068_v20, %v2048_v47  ;;  %v2063_v6 = vshll.u32 %v14067_v19, %v2048_v47  ;;  %v8024_v17 = vshrl.u32 %v2046_v18, 5 }
 0x1c0   :  { %v2052_v57 = vshrl.u32 %v14016_v28, %v7970_v58  ;;  %v2055_v61 = vshrl.u32 %v14017_v36, %v7970_v58  ;;  %v2058_v5 = vshrl.u32 %v14068_v20, %v7970_v58  ;;  %v1935_v38 = vmul.u32 %v1931_v40, %v1929_v16 }
 0x1c1   :  { %v1938_v11 = vshll.u32 %v8007_v29, 16  ;;  %v2062_v2 = vor.u32 %v2061_v63, %v2060_v1  ;;  %v2065_v59 = vor.u32 %v2064_v49, %v2063_v6  ;;  %vm8033_vm10 = vc.u32 %v1932_v32, %v1936_v13 }
 0x1c2   :  { %v2051_v18 = vshll.u32 %v14020_v34, %v2048_v47  ;;  %v2054_v41 = vshll.u32 %v14016_v28, %v2048_v47  ;;  %v2057_v56 = vshll.u32 %v14017_v36, %v2048_v47  ;;  %v1942_v24 = vadd.s32 %v1936_v13, %v1932_v32 }
 0x1c3   :  { %vm1962_vm11 = vc.u32 %v1954_v52, %v1958_v4  ;;  %v8040_v42 = vadd.s32 %v1958_v4, %v1954_v52  ;;  %v2192_v40 = vand.u32 2139095040, %v7856_v22  ;;  %vm2069_vm12 = vcmp.lt.s32.totalorder %v8024_v17, 4 }
 0x1c4   :  { %v8043_v26 = vor.u32 %v2052_v57, %v2051_v18  ;;  %v8045_v1 = vor.u32 %v2055_v61, %v2054_v41  ;;  %v8047_v49 = vor.u32 %v2058_v5, %v2057_v56  ;;  %v2075_v63 = vsel %vm2069_vm12, %v2062_v2, 920167782 }
 0x1c5   :  { %v2079_v47 = vsel %vm2069_vm12, %v2065_v59, 1326507024  ;;  %v2193_v13 = vshrl.u32 %v2192_v40, 23  ;;  %v633_v4 = vadd.f32 %v7869_v30, %v7774_v50  ;;  %v1941_v57 = vsel %vm8033_vm10, 1, %v14048_v60 }
 0x1c6   :  { %v1960_v41 = vshll.u32 %v8019_v23, 16  ;;  %v1963_v56 = vsel %vm1962_vm11, 1, %v14048_v60  ;;  %v2042_v52 = vor.u32 8388608, %v2041_v45  ;;  %vm2066_vm13 = vcmp.lt.s32.totalorder %v8024_v17, 1 }
 0x1c7   :  { %vm2068_vm14 = vcmp.lt.s32.totalorder %v8024_v17, 3  ;;  %v6403_v32 = vadd.s32 4294967169, %v2193_v13  ;;  %v819_v59 = vadd.f32 %v7887_v48, %v633_v4  ;;  %v2074_v50 = vsel %vm2066_vm13, %v8043_v26, %v8045_v1 }
 0x1c8   :  { %v2076_v30 = vsel %vm2068_vm14, %v8047_v49, %v2075_v63  ;;  %v2078_v53 = vsel %vm2066_vm13, %v8045_v1, %v8047_v49  ;;  %v2080_v45 = vsel %vm2068_vm14, %v2062_v2, %v2079_v47  ;;  %vm1944_vm0 = vc.u32 %v1942_v24, %v1938_v11 }
 0x1c9   :  { %v14103_v48 = vshrl.u32 %v7937_v27, 16  ;;  %vm1966_vm1 = vc.u32 %v8040_v42, %v1960_v41  ;;  %v1015_v61 = vadd.f32 %v7901_v46, %v819_v59  ;;  %v8085_v5 = vmul.f32 %v8003_v0, %v8003_v0 }
 0x1ca   :  { %v1679_v18 = vsub.s32 32, %v8005_v62  ;;  %vm2067_vm5 = vcmp.lt.s32.totalorder %v8024_v17, 2  ;;  %v2199_v40 = vadd.s32 1, %v6403_v32  ;;  %v1943_v2 = vadd.s32 %v1941_v57, %v1935_v38 }
 0x1cb   :  { %v1957_v6 = vmul.u32 %v14103_v48, %v1929_v16  ;;  %14104 = vst [vmem:[#allocation39_spill] sm:$0xff] %v8085_v5  ;;  %v8091_v27 = vsel %vm2067_vm5, %v2074_v50, %v2076_v30  ;;  %v8095_v16 = vsel %vm2067_vm5, %v2078_v53, %v2080_v45  ;;  %v1828_v46 = vsub.s32 0, %v8016_v39 }
 0x1cc   :  { %v1945_v11 = vsel %vm1944_vm0, 1, %v14048_v60  ;;  %v1967_v63 = vsel %vm1966_vm1, 1, %v14048_v60  ;;  %v8100_v47 = vshll.u32 %v2042_v52, 8  ;;  %v1683_v13 = vsub.s32 4294967266, %v8005_v62 }
 0x1cd   :  { %v1965_v24 = vadd.s32 %v1963_v56, %v1957_v6  ;;  %vm1827_vm7 = vcmp.lt.s32.totalorder %v8016_v39, 0  ;;  %v8108_v4 = vadd.f32 %v7919_v15, %v1015_v61  ;;  %v1663_v57 = vadd.s32 %v7745_v31, %v7732_v54 }
 0x1ce   :  { %v2086_v56 = vshrl.u32 %v8095_v16, 16  ;;  %v2108_v32 = vshrl.u32 %v8091_v27, 16  ;;  %vm2200_vm8 = vcmp.gt.s32.totalorder %v2199_v40, 0  ;;  %v8116_v52 = vmul.f32 %v7993_v12, %v7829_v44 }
 0x1cf   :  { %14105 = vst [vmem:[#allocation4_spill] sm:$0xff] %v8108_v4  ;;  %v1550_v59 = vmul.f32 -0.00019511016, %v8085_v5  ;;  %v1947_v50 = vadd.s32 %v1945_v11, %v1943_v2  ;;  %v1969_v30 = vadd.s32 %v1967_v63, %v1965_v24  ;;  %v1680_v15 = vshll.u32 %v7835_v3, %v8005_v62 }
 0x1d0   :  { %v1681_v53 = vshrl.u32 %v1663_v57, %v1679_v18  ;;  %v1829_v45 = vsel %vm1827_vm7, %v1828_v46, %v8016_v39  ;;  %v2083_v54 = vand.u32 65535, %v8100_v47  ;;  %v1684_v31 = vadd.s32 127, %v1683_v13 }
 0x1d1   :  { %v1937_v48 = vshrl.u32 %v7976_v10, 16  ;;  %v1959_v6 = vshrl.u32 %v7991_v35, 16  ;;  %v2201_v61 = vsel %vm2200_vm8, %v2199_v40, 0  ;;  %v1895_v12 = vshrl.u32 %v14020_v34, %v7810_v55 }
 0x1d2   :  { %v1916_v2 = vsel %vm1914_vm2, %v7876_v43, 2102212464  ;;  %v8132_v3 = vmul.u32 %v2086_v56, %v2083_v54  ;;  %v8134_v62 = vmul.u32 %v2108_v32, %v2083_v54  ;;  %v1830_v18 = vclz %v1829_v45 }
 0x1d3   :  { %v1948_v24 = vadd.s32 %v1947_v50, %v1937_v48  ;;  %v1970_v46 = vadd.s32 %v1969_v30, %v1959_v6  ;;  %v2107_v10 = vand.u32 65535, %v8091_v27  ;;  %v1551_v35 = vadd.f32 0.008332121, %v1550_v59 }
 0x1d4   :  { %v8137_v40 = vor.u32 %v1681_v53, %v1680_v15  ;;  %v2085_v55 = vand.u32 65535, %v8095_v16  ;;  %v2203_v11 = vand.u32 31, %v2201_v61  ;;  %v1685_v63 = vshll.u32 %v1684_v31, 23 }
 0x1d5   :  { %v1915_v43 = vsel %vm1911_vm3, %v1895_v12, %v7883_v7  ;;  %v1939_v13 = vshrl.u32 %v8007_v29, 16  ;;  %v1961_v57 = vshrl.u32 %v8019_v23, 16  ;;  %v1917_v50 = vsel %vm1913_vm4, %v7874_v37, %v1916_v2 }
 0x1d6   :  { %v2084_v27 = vshrl.u32 %v8100_v47, 16  ;;  %v2091_v59 = vshll.u32 %v8132_v3, 16  ;;  %v2113_v30 = vshll.u32 %v8134_v62, 16  ;;  %v6395_v15 = vadd.s32 4294967294, %v1830_v18 }
 0x1d7   :  { %v8151_v53 = vadd.s32 %v1948_v24, %v1939_v13  ;;  %v1971_v45 = vadd.s32 %v1970_v46, %v1961_v57  ;;  %v2109_v31 = vmul.u32 %v2107_v10, %v2083_v54  ;;  %v2087_v7 = vmul.u32 %v2085_v55, %v2083_v54 }
 0x1d8   :  { %v8153_v48 = vmul.u32 %v2085_v55, %v2084_v27  ;;  %v8155_v29 = vmul.u32 %v2107_v10, %v2084_v27  ;;  %v8157_v6 = vsub.s32 32, %v2203_v11  ;;  %v8160_v37 = vmul.f32 %v1551_v35, %v8085_v5 }
 0x1d9   :  { %v8162_v12 = vor.u32 4788187, %v1685_v63  ;;  %v8168_v18 = vadd.s32 %v8040_v42, %v1960_v41  ;;  %vm2095_vm2 = vc.u32 %v2087_v7, %v2091_v59  ;;  %v2097_v54 = vadd.s32 %v2091_v59, %v2087_v7 }
 0x1da   :  { %vm2117_vm3 = vc.u32 %v2109_v31, %v2113_v30  ;;  %v8170_v24 = vadd.s32 %v2113_v30, %v2109_v31  ;;  %vm6396_vm4 = vcmp.lt.s32.totalorder %v6395_v15, 0  ;;  %v1918_v46 = vsel %vm1912_vm6, %v1915_v43, %v1917_v50 }
 0x1db   :  { %vm1974_vm10 = vc.u32 %v8151_v53, %v8168_v18  ;;  %v1975_v10 = vadd.s32 1, %v1971_v45  ;;  %v2093_v35 = vshll.u32 %v8153_v48, 16  ;;  %v13687_v23 = vshll.u32 %v8155_v29, 16 }
 0x1dc   :  { %v13688_v42 = vand.u32 2147483647, %v7856_v22  ;;  %v2219_v41 = vshrl.u32 %v14066_v14, %v8157_v6  ;;  %v2096_v55 = vsel %vm2095_vm2, 1, %v14048_v60  ;;  %v2112_v63 = vmul.u32 %v2108_v32, %v2084_v27 }
 0x1dd   :  { %v2118_v13 = vsel %vm2117_vm3, 1, %v14048_v60  ;;  %v2216_v9 = vshrl.u32 %v14067_v19, %v8157_v6  ;;  %v2090_v43 = vmul.u32 %v2086_v56, %v2084_v27  ;;  %vm8187_vm6 = vc.u32 %v2097_v54, %v2093_v35 }
 0x1de   :  { %vm2121_vm11 = vc.u32 %v8170_v24, %v13687_v23  ;;  %v2218_v50 = vshll.u32 %v14067_v19, %v2203_v11  ;;  %v8195_v59 = vshrl.u32 %v2201_v61, 5  ;;  %v2210_v32 = vshrl.u32 %v14017_v36, %v8157_v6 }
 0x1df   :  { %v2213_v30 = vshrl.u32 %v14068_v20, %v8157_v6  ;;  %v2215_v16 = vshll.u32 %v14068_v20, %v2203_v11  ;;  %v2098_v56 = vadd.s32 %v2096_v55, %v2090_v43  ;;  %v2120_v27 = vadd.s32 %v2118_v13, %v2112_v63 }
 0x1e0   :  { %v2207_v31 = vshrl.u32 %v14016_v28, %v8157_v6  ;;  %v2220_v7 = vor.u32 %v2219_v41, %v2218_v50  ;;  %v2122_v54 = vsel %vm2121_vm11, 1, %v14048_v60  ;;  %v2209_v35 = vshll.u32 %v14016_v28, %v2203_v11 }
 0x1e1   :  { %v2212_v61 = vshll.u32 %v14017_v36, %v2203_v11  ;;  %v2217_v38 = vor.u32 %v2216_v9, %v2215_v16  ;;  %v8208_v2 = vsel %vm6396_vm4, 0, %v6395_v15  ;;  %v1976_v23 = vsel %vm1974_vm10, %v1975_v10, %v1971_v45 }
 0x1e2   :  { %v2100_v55 = vsel %vm8187_vm6, 1, %v14048_v60  ;;  %v2206_v41 = vshll.u32 %v14020_v34, %v2203_v11  ;;  %v2196_v63 = vand.u32 8388607, %v13688_v42  ;;  %v8219_v13 = vor.u32 %v2210_v32, %v2209_v35 }
 0x1e3   :  { %v8221_v43 = vor.u32 %v2213_v30, %v2212_v61  ;;  %vm2224_vm0 = vcmp.lt.s32.totalorder %v8195_v59, 4  ;;  %v1972_v15 = vmul.u32 %v7939_v33, %v1918_v46  ;;  %v2124_v9 = vadd.s32 %v2122_v54, %v2120_v27  ;;  %v637_v27 = vpop.f32.mrf.mxu2 }
 0x1e4   :  { %v8225_v50 = vor.u32 %v2207_v31, %v2206_v41  ;;  %v2234_v45 = vsel %vm2224_vm0, %v2220_v7, 1326507024  ;;  %v1687_v10 = vand.u32 2147483647, %v8162_v12  ;;  %v1838_v11 = vsub.s32 4294967266, %v8208_v2 }
 0x1e5   :  { %v2102_v57 = vadd.s32 %v2100_v55, %v2098_v56  ;;  %v2230_v32 = vsel %vm2224_vm0, %v2217_v38, 920167782  ;;  %v8233_v30 = vadd.s32 %v1976_v23, %v1972_v15  ;;  %v2114_v16 = vshrl.u32 %v8134_v62, 16 }
 0x1e6   :  { %vm2221_vm1 = vcmp.lt.s32.totalorder %v8195_v59, 1  ;;  %vm2223_vm7 = vcmp.lt.s32.totalorder %v8195_v59, 3  ;;  %v2092_v33 = vshrl.u32 %v8132_v3, 16  ;;  %v2197_v46 = vor.u32 8388608, %v2196_v63 }
 0x1e7   :  { %v2233_v12 = vsel %vm2221_vm1, %v8219_v13, %v8221_v43  ;;  %v2235_v56 = vsel %vm2223_vm7, %v2217_v38, %v2234_v45  ;;  %v2125_v23 = vadd.s32 %v2124_v9, %v2114_v16  ;;  %v2229_v62 = vsel %vm2221_vm1, %v8225_v50, %v8219_v13  ;;  %v824_v38 = vpop.f32.mrf.mxu3 }
 0x1e8   :  { %v2231_v3 = vsel %vm2223_vm7, %v8221_v43, %v2230_v32  ;;  %v2347_v31 = vand.u32 2139095040, %v8108_v4  ;;  %v1839_v7 = vadd.s32 127, %v1838_v11  ;;  %v2050_v54 = vshrl.u32 %v14020_v34, %v7970_v58  ;;  %v1018_v11 = vpop.f32.mrf.mxu0 }
 0x1e9   :  { %v2103_v35 = vadd.s32 %v2102_v57, %v2092_v33  ;;  %vm2222_vm8 = vcmp.lt.s32.totalorder %v8195_v59, 2  ;;  %v2116_v61 = vshrl.u32 %v8155_v29, 16  ;;  %v638_v63 = vadd.f32 %v637_v27, %v7822_v25 }
 0x1ea   :  { %v8259_v55 = vsel %vm2222_vm8, %v2233_v12, %v2235_v56  ;;  %v2348_v41 = vshrl.u32 %v2347_v31, 23  ;;  %v1978_v15 = vadd.s32 536870912, %v8233_v30  ;;  %v2094_v9 = vshrl.u32 %v8153_v48, 16  ;;  %v1164_v31 = vpop.f32.mrf.mxu1 }
 0x1eb   :  { %v2232_v58 = vsel %vm2222_vm8, %v2229_v62, %v2231_v3  ;;  %v8266_v45 = vshll.u32 %v2197_v46, 8  ;;  %v2071_v57 = vsel %vm2069_vm12, %v8047_v49, 2102212464  ;;  %v2126_v32 = vadd.s32 %v2125_v23, %v2116_v61 }
 0x1ec   :  { %v6406_v16 = vadd.s32 4294967169, %v2348_v41  ;;  %v825_v33 = vadd.f32 %v824_v38, %v638_v63  ;;  %v1834_v12 = vsub.s32 32, %v8208_v2  ;;  %v1840_v25 = vshll.u32 %v1839_v7, 23 }
 0x1ed   :  { %v8272_v56 = vadd.s32 %v2103_v35, %v2094_v9  ;;  %v13689_v48 = vshrl.u32 %v8259_v55, 16  ;;  %v2070_v46 = vsel %vm2066_vm13, %v2050_v54, %v8043_v26  ;;  %v2263_v27 = vshrl.u32 %v2232_v58, 16  ;;  %v14111_v54 = vld [vmem:[#allocation7_spill] sm:$0xff] }
 0x1ee   :  { %v2354_v62 = vadd.s32 1, %v6406_v16  ;;  %v1019_v3 = vadd.f32 %v1018_v11, %v825_v33  ;;  %v8278_v42 = vshrl.u32 %v1978_v15, 30  ;;  %v2072_v49 = vsel %vm2068_vm14, %v8045_v1, %v2071_v57 }
 0x1ef   :  { %v14109_v23 = vshll.u32 %v8155_v29, 16  ;;  %v2238_v35 = vand.u32 65535, %v8266_v45  ;;  %v14110_v38 = vcvt.s32.f32 %v8137_v40  ;;  %v1818_v61 = vadd.s32 %v14111_v54, %v7819_v8 }
 0x1f0   :  { %14108 = vst [vmem:[#allocation31_spill] sm:$0xff] %v8278_v42  ;;  %v2130_v41 = vadd.s32 1, %v2126_v32  ;;  %vm2355_vm12 = vcmp.gt.s32.totalorder %v2354_v62, 0  ;;  %v2073_v40 = vsel %vm2067_vm5, %v2070_v46, %v2072_v49  ;;  %v8308_v8 = vadd.f32 1.0, %v8116_v52  ;;  %v14113_v46 = vld [vmem:[#allocation9_spill] sm:$0xff] }
 0x1f1   :  { %v8286_v7 = vadd.s32 %v8170_v24, %v14109_v23  ;;  %v8291_v26 = vmul.f32 %v14110_v38, %v1687_v10  ;;  %v8299_v1 = vmul.u32 %v13689_v48, %v2238_v35  ;;  %v2356_v29 = vsel %vm2355_vm12, %v2354_v62, 0 }
 0x1f2   :  { %v8301_v24 = vadd.f32 %v1164_v31, %v1019_v3  ;;  %v1836_v63 = vshrl.u32 %v1818_v61, %v1834_v12  ;;  %v8305_v10 = vmul.u32 %v2263_v27, %v2238_v35  ;;  %v2358_v15 = vand.u32 31, %v2356_v29  ;;  %v14118_v3 = vld [vmem:[#allocation47_spill] sm:$0xff] }
 0x1f3   :  { %vm2129_vm13 = vc.u32 %v8272_v56, %v8286_v7  ;;  %v8310_v9 = vor.u32 4788187, %v1840_v25  ;;  %v1980_v11 = vshll.u32 %v8278_v42, 30  ;;  %v2240_v57 = vand.u32 65535, %v8259_v55 }
 0x1f4   :  { %14112 = vst [vmem:[#allocation34_spill] sm:$0xff] %v8301_v24  ;;  %v1835_v16 = vshll.u32 %v8016_v39, %v8208_v2  ;;  %v2131_v33 = vsel %vm2129_vm13, %v2130_v41, %v2126_v32  ;;  %v2262_v12 = vand.u32 65535, %v2232_v58  ;;  %v8316_v62 = vsub.s32 32, %v2358_v15 }
 0x1f5   :  { %v8319_v17 = vadd.f32 -0.16666654, %v8160_v37  ;;  %v2127_v52 = vmul.u32 %v8100_v47, %v2073_v40  ;;  %v2246_v25 = vshll.u32 %v8299_v1, 16  ;;  %v2239_v23 = vshrl.u32 %v8266_v45, 16 }
 0x1f6   :  { %v8325_v49 = vor.u32 %v1836_v63, %v1835_v16  ;;  %v2268_v39 = vshll.u32 %v8305_v10, 16  ;;  %v8331_v58 = vsub.s32 %v8233_v30, %v1980_v11  ;;  %v2242_v32 = vmul.u32 %v2240_v57, %v2238_v35 }
 0x1f7   :  { %v8333_v37 = vadd.s32 %v2131_v33, %v2127_v52  ;;  %v8335_v38 = vmul.u32 %v2240_v57, %v2239_v23  ;;  %v2264_v47 = vmul.u32 %v2262_v12, %v2238_v35  ;;  %v8337_v54 = vmul.u32 %v2262_v12, %v2239_v23 }
 0x1f8   :  { %v2371_v61 = vshrl.u32 %v14067_v19, %v8316_v62  ;;  %vm8341_vm14 = vc.u32 %v2242_v32, %v2246_v25  ;;  %v2267_v63 = vmul.u32 %v2263_v27, %v2239_v23  ;;  %v2374_v30 = vshrl.u32 %v14066_v14, %v8316_v62 }
 0x1f9   :  { %vm8348_vm5 = vc.u32 %v2264_v47, %v2268_v39  ;;  %v8352_v35 = vadd.s32 %v2268_v39, %v2264_v47  ;;  %v8354_v57 = vshrl.u32 %v2356_v29, 5  ;;  %v2370_v16 = vshll.u32 %v14068_v20, %v2358_v15 }
 0x1fa   :  { %v2362_v33 = vshrl.u32 %v14016_v28, %v8316_v62  ;;  %v2365_v27 = vshrl.u32 %v14017_v36, %v8316_v62  ;;  %v2368_v12 = vshrl.u32 %v14068_v20, %v8316_v62  ;;  %v2373_v52 = vshll.u32 %v14067_v19, %v2358_v15 }
 0x1fb   :  { %vm1571_vm2 = vcmp.lt.s32.totalorder %v14118_v3, 0  ;;  %v2248_v39 = vshll.u32 %v8335_v38, 16  ;;  %v2252_v47 = vadd.s32 %v2246_v25, %v2242_v32  ;;  %v13696_v29 = vshll.u32 %v8337_v54, 16 }
 0x1fc   :  { %v2372_v2 = vor.u32 %v2371_v61, %v2370_v16  ;;  %v2361_v31 = vshll.u32 %v14020_v34, %v2358_v15  ;;  %v2364_v48 = vshll.u32 %v14016_v28, %v2358_v15  ;;  %v2367_v40 = vshll.u32 %v14017_v36, %v2358_v15 }
 0x1fd   :  { %v2375_v44 = vor.u32 %v2374_v30, %v2373_v52  ;;  %v2251_v22 = vsel %vm8341_vm14, 1, %v14048_v60  ;;  %v2273_v42 = vsel %vm8348_vm5, 1, %v14048_v60  ;;  %vm8379_vm3 = vc.u32 %v8352_v35, %v13696_v29 }
 0x1fe   :  { %v14121_v32 = vand.u32 2147483647, %v8108_v4  ;;  %v14122_v15 = vand.u32 2147483647, %v14118_v3  ;;  %v8391_v41 = vor.u32 %v2362_v33, %v2361_v31  ;;  %v8393_v11 = vor.u32 %v2365_v27, %v2364_v48 }
 0x1ff   :  { %v8395_v16 = vor.u32 %v2368_v12, %v2367_v40  ;;  %vm2379_vm10 = vcmp.lt.s32.totalorder %v8354_v57, 4  ;;  %v1983_v52 = vsub.s32 0, %v8331_v58  ;;  %v14125_v29 = vshrl.u32 %v8259_v55, 16 }
 0x200   :  { %v2351_v61 = vand.u32 8388607, %v14121_v32  ;;  %vm8387_vm4 = vcmp.le.f32.partialorder %v14122_v15, 0.7853982  ;;  %vm2254_vm6 = vc.u32 %v2252_v47, %v2248_v39  ;;  %v2385_v32 = vsel %vm2379_vm10, %v2372_v2, 920167782 }
 0x201   :  { %v2245_v4 = vmul.u32 %v14125_v29, %v2239_v23  ;;  %vm1982_vm11 = vcmp.lt.s32.totalorder %v8331_v58, 0  ;;  %v2133_v31 = vadd.s32 536870912, %v8333_v37  ;;  %v2275_v33 = vadd.s32 %v2273_v42, %v2267_v63 }
 0x202   :  { %v2389_v48 = vsel %vm2379_vm10, %v2375_v44, 1326507024  ;;  %v2277_v27 = vsel %vm8379_vm3, 1, %v14048_v60  ;;  %vm2376_vm12 = vcmp.lt.s32.totalorder %v8354_v57, 1  ;;  %vm2378_vm13 = vcmp.lt.s32.totalorder %v8354_v57, 3 }
 0x203   :  { %v2253_v40 = vadd.s32 %v2251_v22, %v2245_v4  ;;  %v2255_v55 = vsel %vm2254_vm6, 1, %v14048_v60  ;;  %v2352_v23 = vor.u32 8388608, %v2351_v61  ;;  %v2384_v42 = vsel %vm2376_vm12, %v8391_v41, %v8393_v11 }
 0x204   :  { %v2386_v44 = vsel %vm2378_vm13, %v8395_v16, %v2385_v32  ;;  %v1984_v22 = vsel %vm1982_vm11, %v1983_v52, %v8331_v58  ;;  %v2388_v4 = vsel %vm2376_vm12, %v8393_v11, %v8395_v16  ;;  %v2390_v63 = vsel %vm2378_vm13, %v2372_v2, %v2389_v48 }
 0x205   :  { %v2502_v12 = vand.u32 2139095040, %v8301_v24  ;;  %v14126_v39 = vxor.u32 2147483648, %v8291_v26  ;;  %v8433_v29 = vshrl.u32 %v2133_v31, 30  ;;  %v2279_v25 = vadd.s32 %v2277_v27, %v2275_v33 }
 0x206   :  { %vm2377_vm14 = vcmp.lt.s32.totalorder %v8354_v57, 2  ;;  %v1554_v61 = vmul.f32 %v8319_v17, %v8085_v5  ;;  %v1844_v15 = vcvt.s32.f32 %v8325_v49  ;;  %v2257_v52 = vadd.s32 %v2255_v55, %v2253_v40  ;;  %v14130_v55 = vld [vmem:[#allocation24_spill] sm:$0xff] }
 0x207   :  { %v1692_v47 = vsel %vm1571_vm2, %v14126_v39, %v8291_v26  ;;  %14127 = vst [vmem:[#allocation37_spill] sm:$0xff] %v8433_v29  ;;  %v8441_v2 = vsel %vm2377_vm14, %v2384_v42, %v2386_v44  ;;  %v1985_v32 = vclz %v1984_v22  ;;  %v2269_v48 = vshrl.u32 %v8305_v10, 16 }
 0x208   :  { %v8446_v26 = vsel %vm2377_vm14, %v2388_v4, %v2390_v63  ;;  %v8448_v31 = vshll.u32 %v2352_v23, 8  ;;  %v8453_v17 = vsel %vm8387_vm4, %v14118_v3, %v1692_v47  ;;  %v14129_v49 = vand.u32 2147483647, %v8310_v9 }
 0x209   :  { %14128 = vst [vmem:[#allocation42_spill] sm:$0xff] %v8453_v17  ;;  %v2247_v40 = vshrl.u32 %v8299_v1, 16  ;;  %v2503_v27 = vshrl.u32 %v2502_v12, 23  ;;  %v8460_v10 = vmul.f32 %v8308_v8, %v14130_v55  ;;  %v2135_v42 = vshll.u32 %v8433_v29, 30  ;;  %v14136_v29 = vld [vmem:[#allocation3_spill] sm:$0xff] }
 0x20a   :  { %v1845_v33 = vmul.f32 %v1844_v15, %v14129_v49  ;;  %v2280_v44 = vadd.s32 %v2279_v25, %v2269_v48  ;;  %v13704_v23 = vshrl.u32 %v8441_v2, 16  ;;  %v8464_v22 = vadd.f32 1.0, %v1554_v61  ;;  %v642_v25 = vpop.f32.mrf.mxu2  ;;  %v14134_v61 = vld [vmem:[#allocation2_spill] sm:$0xff] }
 0x20b   :  { %14131 = vst [vmem:[#allocation40_spill] sm:$0xff] %v8460_v10  ;;  %v14132_v4 = vsub.s32 4, %v14113_v46  ;;  %v2258_v1 = vadd.s32 %v2257_v52, %v2247_v40  ;;  %v2396_v63 = vshrl.u32 %v8446_v26, 16  ;;  %v8476_v8 = vmul.f32 %v8453_v17, %v8453_v17 }
 0x20c   :  { %v6398_v12 = vadd.s32 4294967294, %v1985_v32  ;;  %v2271_v39 = vshrl.u32 %v8337_v54, 16  ;;  %v2393_v47 = vand.u32 65535, %v8448_v31  ;;  %vm1726_vm5 = vcmp.lt.s32.totalorder %v14134_v61, 0 }
 0x20d   :  { %v8471_v9 = vsel %vm1571_vm2, %v14132_v4, %v14113_v46  ;;  %14133 = vst [vmem:[#allocation8_spill] sm:$0xff] %v8476_v8  ;;  %v1846_v15 = vxor.u32 2147483648, %v1845_v33  ;;  %v2226_v46 = vsel %vm2224_vm0, %v8221_v43, 2102212464  ;;  %v2249_v52 = vshrl.u32 %v8335_v38, 16  ;;  %v830_v4 = vpop.f32.mrf.mxu3 }
 0x20e   :  { %v6409_v48 = vadd.s32 4294967169, %v2503_v27  ;;  %v8486_v49 = vsub.s32 %v8333_v37, %v2135_v42  ;;  %v2205_v32 = vshrl.u32 %v14020_v34, %v8157_v6  ;;  %v2281_v40 = vadd.s32 %v2280_v44, %v2271_v39 }
 0x20f   :  { %v8492_v55 = vmul.u32 %v13704_v23, %v2393_v47  ;;  %v8494_v5 = vadd.s32 %v2258_v1, %v2249_v52  ;;  %v8496_v3 = vmul.u32 %v2396_v63, %v2393_v47  ;;  %v643_v38 = vadd.f32 %v642_v25, %v14136_v29 }
 0x210   :  { %v2509_v43 = vadd.s32 1, %v6409_v48  ;;  %vm6399_vm0 = vcmp.lt.s32.totalorder %v6398_v12, 0  ;;  %v2225_v37 = vsel %vm2221_vm1, %v2205_v32, %v8225_v50  ;;  %v2227_v6 = vsel %vm2223_vm7, %v8219_v13, %v2226_v46 }
 0x211   :  { %14135 = vst [vmem:[#allocation43_spill] sm:$0xff] %v8494_v5  ;;  %v2417_v27 = vand.u32 65535, %v8441_v2  ;;  %v14137_v42 = vshll.u32 %v8337_v54, 16  ;;  %v2395_v1 = vand.u32 65535, %v8446_v26  ;;  %v831_v29 = vadd.f32 %v830_v4, %v643_v38 }
 0x212   :  { %vm2510_vm2 = vcmp.gt.s32.totalorder %v2509_v43, 0  ;;  %v2285_v39 = vadd.s32 1, %v2281_v40  ;;  %v2394_v25 = vshrl.u32 %v8448_v31, 16  ;;  %v2423_v50 = vshll.u32 %v8492_v55, 16 }
 0x213   :  { %v8509_v44 = vadd.s32 %v8352_v35, %v14137_v42  ;;  %v2511_v52 = vsel %vm2510_vm2, %v2509_v43, 0  ;;  %v8515_v48 = vmul.f32 -0.00019511016, %v8476_v8  ;;  %v2138_v13 = vsub.s32 0, %v8486_v49 }
 0x214   :  { %v2401_v54 = vshll.u32 %v8496_v3, 16  ;;  %v2228_v35 = vsel %vm2222_vm8, %v2225_v37, %v2227_v6  ;;  %v2419_v26 = vmul.u32 %v2417_v27, %v2393_v47  ;;  %v8523_v46 = vmul.u32 %v2417_v27, %v2394_v25 }
 0x215   :  { %14138 = vst [vmem:[#allocation7_spill] sm:$0xff] %v8509_v44  ;;  %vm2284_vm1 = vc.u32 %v8494_v5, %v8509_v44  ;;  %v2513_v32 = vand.u32 31, %v2511_v52  ;;  %v8526_v4 = vsel %vm6399_vm0, 0, %v6398_v12  ;;  %vm2137_vm7 = vcmp.lt.s32.totalorder %v8486_v49, 0  ;;  %v836_v57 = vpop.f32.mrf.mxu3 }
 0x216   :  { %v2397_v43 = vmul.u32 %v2395_v1, %v2393_v47  ;;  %v8529_v38 = vmul.u32 %v2395_v1, %v2394_v25  ;;  %v8533_v42 = vsel %vm1726_vm5, %v1846_v15, %v1845_v33  ;;  %v2286_v23 = vsel %vm2284_vm1, %v2285_v39, %v2281_v40 }
 0x217   :  { %v8535_v17 = vadd.s32 %v2423_v50, %v2419_v26  ;;  %v8537_v59 = vsub.s32 32, %v2513_v32  ;;  %v2282_v37 = vmul.u32 %v8266_v45, %v2228_v35  ;;  %vm2427_vm3 = vc.u32 %v2419_v26, %v2423_v50 }
 0x218   :  { %vm2405_vm8 = vc.u32 %v2397_v43, %v2401_v54  ;;  %v2407_v6 = vadd.s32 %v2401_v54, %v2397_v43  ;;  %v1993_v12 = vsub.s32 4294967266, %v8526_v4  ;;  %v2139_v47 = vsel %vm2137_vm7, %v2138_v13, %v8486_v49 }
 0x219   :  { %14139 = vst [vmem:[#allocation9_spill] sm:$0xff] %v8537_v59  ;;  %v13706_v27 = vshll.u32 %v8523_v46, 16  ;;  %v8544_v33 = vadd.s32 %v2286_v23, %v2282_v37  ;;  %v2400_v15 = vmul.u32 %v2396_v63, %v2394_v25  ;;  %v2403_v40 = vshll.u32 %v8529_v38, 16 }
 0x21a   :  { %v2526_v39 = vshrl.u32 %v14067_v19, %v8537_v59  ;;  %v2406_v45 = vsel %vm2405_vm8, 1, %v14048_v60  ;;  %v2428_v50 = vsel %vm2427_vm3, 1, %v14048_v60  ;;  %v2529_v13 = vshrl.u32 %v14066_v14, %v8537_v59 }
 0x21b   :  { %vm2431_vm6 = vc.u32 %v8535_v17, %v13706_v27  ;;  %vm8556_vm11 = vc.u32 %v2407_v6, %v2403_v40  ;;  %v14142_v63 = vshrl.u32 %v8441_v2, 16  ;;  %v8562_v35 = vshrl.u32 %v2511_v52, 5  ;;  %v1022_v40 = vpop.f32.mrf.mxu0 }
 0x21c   :  { %v2525_v26 = vshll.u32 %v14068_v20, %v2513_v32  ;;  %v2517_v43 = vshrl.u32 %v14016_v28, %v8537_v59  ;;  %v2520_v37 = vshrl.u32 %v14017_v36, %v8537_v59  ;;  %v2523_v27 = vshrl.u32 %v14068_v20, %v8537_v59 }
 0x21d   :  { %v2422_v54 = vmul.u32 %v14142_v63, %v2394_v25  ;;  %v2528_v6 = vshll.u32 %v14067_v19, %v2513_v32  ;;  %v2408_v1 = vadd.s32 %v2406_v45, %v2400_v15  ;;  %v2432_v2 = vsel %vm2431_vm6, 1, %v14048_v60  ;;  %v14183_v63 = vld [vmem:[#allocation13_spill] sm:$0xff] }
 0x21e   :  { %v2527_v25 = vor.u32 %v2526_v39, %v2525_v26  ;;  %v14143_v52 = vand.u32 2147483647, %v14134_v61  ;;  %v2516_v5 = vshll.u32 %v14020_v34, %v2513_v32  ;;  %v2519_v14 = vshll.u32 %v14016_v28, %v2513_v32 }
 0x21f   :  { %v2430_v44 = vadd.s32 %v2428_v50, %v2422_v54  ;;  %v2522_v20 = vshll.u32 %v14017_v36, %v2513_v32  ;;  %v2530_v59 = vor.u32 %v2529_v13, %v2528_v6  ;;  %v2140_v19 = vclz %v2139_v47 }
 0x220   :  { %vm8575_vm0 = vcmp.le.f32.partialorder %v14143_v52, 0.7853982  ;;  %v2410_v15 = vsel %vm8556_vm11, 1, %v14048_v60  ;;  %v14146_v39 = vand.u32 2147483647, %v8301_v24  ;;  %v8587_v50 = vadd.f32 %v1022_v40, %v831_v29 }
 0x221   :  { %v8589_v54 = vor.u32 %v2517_v43, %v2516_v5  ;;  %v8591_v26 = vor.u32 %v2520_v37, %v2519_v14  ;;  %v8593_v52 = vor.u32 %v2523_v27, %v2522_v20  ;;  %vm2534_vm2 = vcmp.lt.s32.totalorder %v8562_v35, 4 }
 0x222   :  { %v2506_v45 = vand.u32 8388607, %v14146_v39  ;;  %v1973_v32 = vadd.s32 %v8168_v18, %v8151_v53  ;;  %v2288_v47 = vadd.s32 536870912, %v8544_v33  ;;  %v2434_v13 = vadd.s32 %v2432_v2, %v2430_v44 }
 0x223   :  { %v2540_v23 = vsel %vm2534_vm2, %v2527_v25, 920167782  ;;  %v1989_v29 = vsub.s32 32, %v8526_v4  ;;  %v1994_v6 = vadd.s32 127, %v1993_v12  ;;  %v2412_v5 = vadd.s32 %v2410_v15, %v2408_v1 }
 0x224   :  { %v2544_v14 = vsel %vm2534_vm2, %v2530_v59, 1326507024  ;;  %v6401_v20 = vadd.s32 4294967294, %v2140_v19  ;;  %v2424_v27 = vshrl.u32 %v8492_v55, 16  ;;  %vm2531_vm1 = vcmp.lt.s32.totalorder %v8562_v35, 1 }
 0x225   :  { %vm2533_vm7 = vcmp.lt.s32.totalorder %v8562_v35, 3  ;;  %v2402_v53 = vshrl.u32 %v8496_v3, 16  ;;  %v2507_v18 = vor.u32 8388608, %v2506_v45  ;;  %v2539_v44 = vsel %vm2531_vm1, %v8589_v54, %v8591_v26 }
 0x226   :  { %v2541_v12 = vsel %vm2533_vm7, %v8593_v52, %v2540_v23  ;;  %v8615_v59 = vshrl.u32 %v2288_v47, 30  ;;  %v2435_v19 = vadd.s32 %v2434_v13, %v2424_v27  ;;  %v2543_v55 = vsel %vm2531_vm1, %v8591_v26, %v8593_v52 }
 0x227   :  { %v2545_v3 = vsel %vm2533_vm7, %v2527_v25, %v2544_v14  ;;  %v1706_v1 = vadd.f32 0.008332121, %v8515_v48  ;;  %v1995_v43 = vshll.u32 %v1994_v6, 23  ;;  %v2413_v37 = vadd.s32 %v2412_v5, %v2402_v53  ;;  %v1168_v6 = vpop.f32.mrf.mxu1 }
 0x228   :  { %vm2532_vm8 = vcmp.lt.s32.totalorder %v8562_v35, 2  ;;  %v8629_v40 = vsel %vm8575_vm0, %v14134_v61, %v8533_v42  ;;  %v1991_v2 = vshrl.u32 %v1973_v32, %v1989_v29  ;;  %v2426_v15 = vshrl.u32 %v8523_v46, 16 }
 0x229   :  { %v8634_v39 = vsel %vm2532_vm8, %v2539_v44, %v2541_v12  ;;  %v2381_v48 = vsel %vm2379_vm10, %v8395_v16, 2102212464  ;;  %v2404_v25 = vshrl.u32 %v8529_v38, 16  ;;  %v8642_v45 = vsel %vm2532_vm8, %v2543_v55, %v2545_v3  ;;  %v647_v12 = vpop.f32.mrf.mxu2 }
 0x22a   :  { %v8644_v47 = vshll.u32 %v2507_v18, 8  ;;  %vm6402_vm3 = vcmp.lt.s32.totalorder %v6401_v20, 0  ;;  %v2290_v42 = vshll.u32 %v8615_v59, 30  ;;  %v2360_v32 = vshrl.u32 %v14020_v34, %v8316_v62 }
 0x22b   :  { %v2436_v13 = vadd.s32 %v2435_v19, %v2426_v15  ;;  %v1990_v23 = vshll.u32 %v8331_v58, %v8526_v4  ;;  %v1996_v29 = vor.u32 4788187, %v1995_v43  ;;  %v8651_v16 = vadd.s32 %v2413_v37, %v2404_v25  ;;  %v14150_v43 = vld [vmem:[#allocation25_spill] sm:$0xff] }
 0x22c   :  { %v2573_v38 = vshrl.u32 %v8634_v39, 16  ;;  %v8656_v5 = vmul.f32 %v8629_v40, %v8629_v40  ;;  %v2380_v14 = vsel %vm2376_vm12, %v2360_v32, %v8391_v41  ;;  %v2382_v62 = vsel %vm2378_vm13, %v8393_v11, %v2381_v48 }
 0x22d   :  { %v13713_v58 = vshrl.u32 %v8642_v45, 16  ;;  %v1992_v4 = vor.u32 %v1991_v2, %v1990_v23  ;;  %v8665_v27 = vsel %vm6402_vm3, 0, %v6401_v20  ;;  %v14148_v53 = vshll.u32 %v8523_v46, 16 }
 0x22e   :  { %14147 = vst [vmem:[#allocation24_spill] sm:$0xff] %v8656_v5  ;;  %v2548_v44 = vand.u32 65535, %v8644_v47  ;;  %v8677_v19 = vmul.f32 %v1706_v1, %v8476_v8  ;;  %v8680_v11 = vsub.s32 %v8544_v33, %v2290_v42  ;;  %v2440_v20 = vadd.s32 1, %v2436_v13 }
 0x22f   :  { %v8670_v18 = vadd.s32 %v8535_v17, %v14148_v53  ;;  %v1997_v55 = vand.u32 2147483647, %v1996_v29  ;;  %v2383_v46 = vsel %vm2377_vm14, %v2380_v14, %v2382_v62  ;;  %v2148_v3 = vsub.s32 4294967266, %v8665_v27 }
 0x230   :  { %v8688_v17 = vmul.u32 %v2573_v38, %v2548_v44  ;;  %v8693_v1 = vmul.u32 %v13713_v58, %v2548_v44  ;;  %v8696_v33 = vadd.f32 %v1168_v6, %v8587_v50  ;;  %v648_v37 = vadd.f32 %v647_v12, %v14150_v43 }
 0x231   :  { %vm2439_vm10 = vc.u32 %v8651_v16, %v8670_v18  ;;  %v1860_v2 = vmul.f32 -0.00019511016, %v8656_v5  ;;  %v1999_v15 = vcvt.s32.f32 %v1992_v4  ;;  %v2128_v48 = vadd.s32 %v8286_v7, %v8272_v56  ;;  %v1026_v4 = vpop.f32.mrf.mxu0 }
 0x232   :  { %14149 = vst [vmem:[#allocation3_spill] sm:$0xff] %v8696_v33  ;;  %v2572_v25 = vand.u32 65535, %v8634_v39  ;;  %v2293_v42 = vsub.s32 0, %v8680_v11  ;;  %v2437_v32 = vmul.u32 %v8448_v31, %v2383_v46  ;;  %v2441_v23 = vsel %vm2439_vm10, %v2440_v20, %v2436_v13  ;;  %v1172_v46 = vpop.f32.mrf.mxu1 }
 0x233   :  { %v2550_v29 = vand.u32 65535, %v8642_v45  ;;  %v2549_v50 = vshrl.u32 %v8644_v47, 16  ;;  %v2578_v6 = vshll.u32 %v8688_v17, 16  ;;  %v2657_v14 = vand.u32 2139095040, %v8696_v33 }
 0x234   :  { %v837_v62 = vadd.f32 %v836_v57, %v648_v37  ;;  %v8709_v53 = vmul.f32 %v1999_v15, %v1997_v55  ;;  %v2149_v56 = vadd.s32 127, %v2148_v3  ;;  %vm2292_vm12 = vcmp.lt.s32.totalorder %v8680_v11, 0 }
 0x235   :  { %v2556_v7 = vshll.u32 %v8693_v1, 16  ;;  %v8713_v12 = vadd.s32 %v2441_v23, %v2437_v32  ;;  %v2574_v31 = vmul.u32 %v2572_v25, %v2548_v44  ;;  %v8715_v13 = vmul.u32 %v2572_v25, %v2549_v50 }
 0x236   :  { %v2658_v20 = vshrl.u32 %v2657_v14, 23  ;;  %v2144_v43 = vsub.s32 32, %v8665_v27  ;;  %v2552_v41 = vmul.u32 %v2550_v29, %v2548_v44  ;;  %v8718_v58 = vmul.u32 %v2550_v29, %v2549_v50 }
 0x237   :  { %v1027_v37 = vadd.f32 %v1026_v4, %v837_v62  ;;  %v2294_v55 = vsel %vm2292_vm12, %v2293_v42, %v8680_v11  ;;  %vm2582_vm13 = vc.u32 %v2574_v31, %v2578_v6  ;;  %v8721_v3 = vadd.s32 %v2578_v6, %v2574_v31 }
 0x238   :  { %v6412_v57 = vadd.s32 4294967169, %v2658_v20  ;;  %v2150_v15 = vshll.u32 %v2149_v56, 23  ;;  %vm2560_vm14 = vc.u32 %v2552_v41, %v2556_v7  ;;  %v2562_v32 = vadd.s32 %v2556_v7, %v2552_v41 }
 0x239   :  { %v8723_v23 = vadd.f32 %v1172_v46, %v1027_v37  ;;  %v2145_v25 = vshll.u32 %v8486_v49, %v8665_v27  ;;  %v2443_v14 = vadd.s32 536870912, %v8713_v12  ;;  %v2580_v44 = vshll.u32 %v8715_v13, 16 }
 0x23a   :  { %v2664_v29 = vadd.s32 1, %v6412_v57  ;;  %v2146_v62 = vshrl.u32 %v2128_v48, %v2144_v43  ;;  %v2295_v4 = vclz %v2294_v55  ;;  %v2558_v42 = vshll.u32 %v8718_v58, 16  ;;  %v14164_v57 = vld [vmem:[#allocation5_spill] sm:$0xff] }
 0x23b   :  { %14151 = vst [vmem:[#allocation25_spill] sm:$0xff] %v8723_v23  ;;  %v2583_v6 = vsel %vm2582_vm13, 1, %v14048_v60  ;;  %v2561_v56 = vsel %vm2560_vm14, 1, %v14048_v60  ;;  %v2577_v41 = vmul.u32 %v2573_v38, %v2549_v50  ;;  %vm2586_vm6 = vc.u32 %v8721_v3, %v2580_v44 }
 0x23c   :  { %vm2665_vm11 = vcmp.gt.s32.totalorder %v2664_v29, 0  ;;  %v2151_v49 = vor.u32 4788187, %v2150_v15  ;;  %v14152_v27 = vshrl.u32 %v8642_v45, 16  ;;  %vm2564_vm3 = vc.u32 %v2562_v32, %v2558_v42  ;;  %v14156_v15 = vld [vmem:[#allocation36_spill] sm:$0xff] }
 0x23d   :  { %v2666_v48 = vsel %vm2665_vm11, %v2664_v29, 0  ;;  %v8741_v31 = vmul.f32 %v8464_v22, %v8003_v0  ;;  %v8743_v20 = vshrl.u32 %v2443_v14, 30  ;;  %v2585_v46 = vadd.s32 %v2583_v6, %v2577_v41 }
 0x23e   :  { %v2555_v7 = vmul.u32 %v14152_v27, %v2549_v50  ;;  %v2668_v39 = vand.u32 31, %v2666_v48  ;;  %v2147_v38 = vor.u32 %v2146_v62, %v2145_v25  ;;  %v6404_v43 = vadd.s32 4294967294, %v2295_v4 }
 0x23f   :  { %14153 = vst [vmem:[#allocation48_spill] sm:$0xff] %v8741_v31  ;;  %v2587_v55 = vsel %vm2586_vm6, 1, %v14048_v60  ;;  %v14157_v45 = vsel %vm7789_vm15, 0, %v14156_v15  ;;  %v14159_v0 = vsel %vm7984_vm9, 0, %v7998_v51  ;;  %v1708_v32 = vadd.f32 -0.16666654, %v8677_v19 }
 0x240   :  { %14154 = vst [vmem:[#allocation49_spill] sm:$0xff] %v8743_v20  ;;  %v2563_v37 = vadd.s32 %v2561_v56, %v2555_v7  ;;  %v8750_v50 = vadd.s32 3, %v14157_v45  ;;  %v8756_v22 = vadd.s32 3, %v14159_v0  ;;  %v2565_v25 = vsel %vm2564_vm3, 1, %v14048_v60  ;;  %v14163_v7 = vld [vmem:[#allocation12_spill] sm:$0xff] }
 0x241   :  { %v1861_v29 = vadd.f32 0.008332121, %v1860_v2  ;;  %v2001_v62 = vxor.u32 2147483648, %v8709_v53  ;;  %v2152_v4 = vand.u32 2147483647, %v2151_v49  ;;  %v14161_v42 = vsel %vm8387_vm4, 0, %v8471_v9 }
 0x242   :  { %14158 = vst [vmem:[#allocation11_spill] sm:$0xff] %v8750_v50  ;;  %v8766_v6 = vadd.s32 3, %v14161_v42  ;;  %v2445_v51 = vshll.u32 %v8743_v20, 30  ;;  %v2589_v21 = vadd.s32 %v2587_v55, %v2585_v46  ;;  %v8769_v56 = vsub.s32 32, %v2668_v39 }
 0x243   :  { %14160 = vst [vmem:[#allocation36_spill] sm:$0xff] %v8756_v22  ;;  %v2154_v41 = vcvt.s32.f32 %v2147_v38  ;;  %vm6405_vm15 = vcmp.lt.s32.totalorder %v6404_v43, 0  ;;  %v2567_v27 = vadd.s32 %v2565_v25, %v2563_v37  ;;  %v1709_v2 = vmul.f32 %v1708_v32, %v8476_v8 }
 0x244   :  { %14162 = vst [vmem:[#allocation50_spill] sm:$0xff] %v8766_v6  ;;  %vm1881_vm9 = vcmp.lt.s32.totalorder %v14164_v57, 0  ;;  %v2579_v30 = vshrl.u32 %v8688_v17, 16  ;;  %v8777_v9 = vmul.f32 %v1861_v29, %v8656_v5  ;;  %v2557_v38 = vshrl.u32 %v8693_v1, 16 }
 0x245   :  { %v2002_v46 = vsel %vm1881_vm9, %v2001_v62, %v8709_v53  ;;  %v8782_v55 = vmul.f32 %v2154_v41, %v2152_v4  ;;  %v14165_v37 = vand.u32 2147483647, %v14164_v57  ;;  %v8791_v45 = vsel %vm6405_vm15, 0, %v6404_v43  ;;  %v14169_v53 = vld [vmem:[#allocation9_spill] sm:$0xff] }
 0x246   :  { %v8794_v17 = vsub.s32 %v8713_v12, %v2445_v51  ;;  %v2590_v0 = vadd.s32 %v2589_v21, %v2579_v30  ;;  %v14168_v32 = vmov 920167782   ;;  %v2515_v29 = vshrl.u32 %v14020_v34, %v14169_v53 }
 0x247   :  { %vm8787_vm4 = vcmp.le.f32.partialorder %v14165_v37, 0.7853982  ;;  %v2681_v25 = vshrl.u32 %v14168_v32, %v8769_v56  ;;  %v2536_v1 = vsel %vm2534_vm2, %v8593_v52, 2102212464  ;;  %v2568_v62 = vadd.s32 %v2567_v27, %v2557_v38 }
 0x248   :  { %v2581_v4 = vshrl.u32 %v8715_v13, 16  ;;  %v2559_v43 = vshrl.u32 %v8718_v58, 16  ;;  %v14170_v12 = vmov 2102212464   ;;  %v14171_v21 = vmov 1326507024  }
 0x249   :  { %v2680_v51 = vshll.u32 %v14170_v12, %v2668_v39  ;;  %v2684_v41 = vshrl.u32 %v14171_v21, %v8769_v56  ;;  %v8809_v30 = vshrl.u32 %v2666_v48, 5  ;;  %v2672_v37 = vshrl.u32 %v14016_v28, %v8769_v56 }
 0x24a   :  { %v2675_v52 = vshrl.u32 %v14017_v36, %v8769_v56  ;;  %v2678_v27 = vshrl.u32 %v14170_v12, %v8769_v56  ;;  %v2448_v58 = vsub.s32 0, %v8794_v17  ;;  %v2591_v38 = vadd.s32 %v2590_v0, %v2581_v4 }
 0x24b   :  { %v2682_v53 = vor.u32 %v2681_v25, %v2680_v51  ;;  %v2683_v19 = vshll.u32 %v14168_v32, %v2668_v39  ;;  %v8819_v14 = vadd.s32 %v2568_v62, %v2559_v43  ;;  %v2671_v48 = vshll.u32 %v14020_v34, %v2668_v39  ;;  %v14173_v51 = vld [vmem:[#allocation10_spill] sm:$0xff] }
 0x24c   :  { %v2674_v49 = vshll.u32 %v14016_v28, %v2668_v39  ;;  %v2677_v42 = vshll.u32 %v14017_v36, %v2668_v39  ;;  %vm2447_vm2 = vcmp.lt.s32.totalorder %v8794_v17, 0  ;;  %v8828_v31 = vadd.s32 %v8721_v3, %v2580_v44 }
 0x24d   :  { %v14172_v0 = vand.u32 2147483647, %v8696_v33  ;;  %v2685_v4 = vor.u32 %v2684_v41, %v2683_v19  ;;  %vm2036_vm10 = vcmp.lt.s32.totalorder %v14173_v51, 0  ;;  %v8833_v62 = vor.u32 %v2672_v37, %v2671_v48 }
 0x24e   :  { %v8835_v43 = vor.u32 %v2675_v52, %v2674_v49  ;;  %v8837_v22 = vor.u32 %v2678_v27, %v2677_v42  ;;  %vm2689_vm12 = vcmp.lt.s32.totalorder %v8809_v30, 4  ;;  %v2535_v13 = vsel %vm2531_vm1, %v2515_v29, %v8589_v54 }
 0x24f   :  { %v2661_v25 = vand.u32 8388607, %v14172_v0  ;;  %v2537_v3 = vsel %vm2533_vm7, %v8591_v26, %v2536_v1  ;;  %v2595_v44 = vadd.s32 1, %v2591_v38  ;;  %v2695_v39 = vsel %vm2689_vm12, %v2682_v53, 920167782 }
 0x250   :  { %v8851_v19 = vsel %vm8787_vm4, %v14164_v57, %v2002_v46  ;;  %v2449_v49 = vsel %vm2447_vm2, %v2448_v58, %v8794_v17  ;;  %vm2594_vm13 = vc.u32 %v8819_v14, %v8828_v31  ;;  %v2812_v54 = vand.u32 2139095040, %v8723_v23 }
 0x251   :  { %v2303_v29 = vsub.s32 4294967266, %v8791_v45  ;;  %vm2686_vm1 = vcmp.lt.s32.totalorder %v8809_v30, 1  ;;  %vm2688_vm7 = vcmp.lt.s32.totalorder %v8809_v30, 3  ;;  %v2699_v26 = vsel %vm2689_vm12, %v2685_v4, 1326507024 }
 0x252   :  { %v2538_v46 = vsel %vm2532_vm8, %v2535_v13, %v2537_v3  ;;  %v2662_v1 = vor.u32 8388608, %v2661_v25  ;;  %v2694_v42 = vsel %vm2686_vm1, %v8833_v62, %v8835_v43  ;;  %v2696_v41 = vsel %vm2688_vm7, %v8837_v22, %v2695_v39 }
 0x253   :  { %v1710_v37 = vadd.f32 1.0, %v1709_v2  ;;  %v2156_v52 = vxor.u32 2147483648, %v8782_v55  ;;  %v2450_v27 = vclz %v2449_v49  ;;  %v2596_v58 = vsel %vm2594_vm13, %v2595_v44, %v2591_v38 }
 0x254   :  { %vm2687_vm14 = vcmp.lt.s32.totalorder %v8809_v30, 2  ;;  %v2698_v35 = vsel %vm2686_vm1, %v8835_v43, %v8837_v22  ;;  %v2700_v48 = vsel %vm2688_vm7, %v2682_v53, %v2699_v26  ;;  %v2813_v0 = vshrl.u32 %v2812_v54, 23 }
 0x255   :  { %v8881_v25 = vmul.f32 %v8851_v19, %v8851_v19  ;;  %v2304_v2 = vadd.s32 127, %v2303_v29  ;;  %v2592_v4 = vmul.u32 %v8644_v47, %v2538_v46  ;;  %v8886_v38 = vsel %vm2687_vm14, %v2694_v42, %v2696_v41  ;;  %v14180_v46 = vld [vmem:[#allocation7_spill] sm:$0xff] }
 0x256   :  { %v14175_v13 = vsub.s32 4, %v14163_v7  ;;  %v1863_v53 = vadd.f32 -0.16666654, %v8777_v9  ;;  %v2299_v44 = vsub.s32 32, %v8791_v45  ;;  %v8895_v39 = vshll.u32 %v2662_v1, 8  ;;  %v14179_v9 = vld [vmem:[#allocation43_spill] sm:$0xff] }
 0x257   :  { %14174 = vst [vmem:[#allocation12_spill] sm:$0xff] %v8881_v25  ;;  %v2157_v47 = vsel %vm2036_vm10, %v2156_v52, %v8782_v55  ;;  %v6407_v49 = vadd.s32 4294967294, %v2450_v27  ;;  %v8900_v54 = vadd.s32 %v2596_v58, %v2592_v4  ;;  %v8904_v29 = vsel %vm2687_vm14, %v2698_v35, %v2700_v48  ;;  %v652_v55 = vpop.f32.mrf.mxu2  ;;  %v14181_v52 = vld [vmem:[#allocation42_spill] sm:$0xff] }
 0x258   :  { %v1849_v3 = vsel %vm1726_vm5, %v14175_v13, %v14163_v7  ;;  %v14176_v26 = vand.u32 2147483647, %v14173_v51  ;;  %v2283_v1 = vadd.s32 %v14180_v46, %v14179_v9  ;;  %v13719_v42 = vshrl.u32 %v8886_v38, 16 }
 0x259   :  { %v6415_v41 = vadd.s32 4294967169, %v2813_v0  ;;  %v8916_v27 = vmul.f32 %v1710_v37, %v14181_v52  ;;  %v1851_v58 = vsel %vm8575_vm0, 0, %v1849_v3  ;;  %v2015_v35 = vmul.f32 -0.00019511016, %v8881_v25 }
 0x25a   :  { %vm8908_vm5 = vcmp.le.f32.partialorder %v14176_v26, 0.7853982  ;;  %v2305_v48 = vshll.u32 %v2304_v2, 23  ;;  %v2301_v13 = vshrl.u32 %v2283_v1, %v2299_v44  ;;  %v2703_v26 = vand.u32 65535, %v8895_v39  ;;  %v842_v1 = vpop.f32.mrf.mxu3 }
 0x25b   :  { %14182 = vst [vmem:[#allocation9_spill] sm:$0xff] %v8916_v27  ;;  %v8924_v4 = vsel %vm8908_vm5, %v14173_v51, %v2157_v47  ;;  %v2706_v0 = vshrl.u32 %v8904_v29, 16  ;;  %v1864_v9 = vmul.f32 %v1863_v53, %v8656_v5  ;;  %vm6408_vm8 = vcmp.lt.s32.totalorder %v6407_v49, 0 }
 0x25c   :  { %v2598_v37 = vadd.s32 536870912, %v8900_v54  ;;  %v653_v3 = vadd.f32 %v652_v55, %v14183_v63  ;;  %v8931_v46 = vadd.s32 3, %v1851_v58  ;;  %v2300_v2 = vshll.u32 %v8680_v11, %v8791_v45 }
 0x25d   :  { %v8937_v47 = vmul.u32 %v13719_v42, %v2703_v26  ;;  %v2819_v44 = vadd.s32 1, %v6415_v41  ;;  %v2016_v61 = vadd.f32 0.008332121, %v2015_v35  ;;  %v8942_v53 = vmul.f32 %v8924_v4, %v8924_v4 }
 0x25e   :  { %14184 = vst [vmem:[#allocation43_spill] sm:$0xff] %v8931_v46  ;;  %v2306_v5 = vor.u32 4788187, %v2305_v48  ;;  %v2302_v55 = vor.u32 %v2301_v13, %v2300_v2  ;;  %v2453_v58 = vsel %vm6408_vm8, 0, %v6407_v49  ;;  %v8944_v63 = vmul.u32 %v2706_v0, %v2703_v26  ;;  %v14186_v46 = vld [vmem:[#allocation31_spill] sm:$0xff] }
 0x25f   :  { %14185 = vst [vmem:[#allocation7_spill] sm:$0xff] %v8942_v53  ;;  %v2727_v11 = vand.u32 65535, %v8886_v38  ;;  %v1865_v45 = vadd.f32 1.0, %v1864_v9  ;;  %v2003_v42 = vsub.s32 4, %v14186_v46  ;;  %v8948_v10 = vshrl.u32 %v2598_v37, 30 }
 0x260   :  { %v8950_v41 = vadd.f32 %v842_v1, %v653_v3  ;;  %v2704_v35 = vshrl.u32 %v8895_v39, 16  ;;  %v2705_v52 = vand.u32 65535, %v8904_v29  ;;  %v2733_v50 = vshll.u32 %v8937_v47, 16 }
 0x261   :  { %14187 = vst [vmem:[#allocation42_spill] sm:$0xff] %v8948_v10  ;;  %vm2820_vm0 = vcmp.gt.s32.totalorder %v2819_v44, 0  ;;  %v2017_v49 = vmul.f32 %v2016_v61, %v8881_v25  ;;  %v2170_v48 = vmul.f32 -0.00019511016, %v8942_v53  ;;  %v2307_v13 = vand.u32 2147483647, %v2306_v5 }
 0x262   :  { %v2454_v2 = vsub.s32 32, %v2453_v58  ;;  %v2309_v9 = vcvt.s32.f32 %v2302_v55  ;;  %v2711_v27 = vshll.u32 %v8944_v63, 16  ;;  %v2729_v37 = vmul.u32 %v2727_v11, %v2703_v26 }
 0x263   :  { %v8958_v6 = vmul.u32 %v2727_v11, %v2704_v35  ;;  %v2438_v3 = vadd.s32 %v8670_v18, %v8651_v16  ;;  %v2458_v1 = vsub.s32 4294967266, %v2453_v58  ;;  %v2600_v29 = vshll.u32 %v8948_v10, 30 }
 0x264   :  { %v2821_v8 = vsel %vm2820_vm0, %v2819_v44, 0  ;;  %v2707_v33 = vmul.u32 %v2705_v52, %v2703_v26  ;;  %v8963_v24 = vmul.u32 %v2705_v52, %v2704_v35  ;;  %vm2737_vm6 = vc.u32 %v2729_v37, %v2733_v50 }
 0x265   :  { %v8965_v61 = vadd.s32 %v2733_v50, %v2729_v37  ;;  %v8970_v5 = vsel %vm1881_vm9, %v2003_v42, %v14186_v46  ;;  %v2171_v55 = vadd.f32 0.008332121, %v2170_v48  ;;  %v2310_v11 = vmul.f32 %v2309_v9, %v2307_v13 }
 0x266   :  { %v2456_v20 = vshrl.u32 %v2438_v3, %v2454_v2  ;;  %vm2715_vm11 = vc.u32 %v2707_v33, %v2711_v27  ;;  %v2717_v16 = vadd.s32 %v2711_v27, %v2707_v33  ;;  %v13735_v18 = vshll.u32 %v8958_v6, 16 }
 0x267   :  { %v2823_v10 = vand.u32 31, %v2821_v8  ;;  %v2455_v26 = vshll.u32 %v8794_v17, %v2453_v58  ;;  %v2459_v44 = vadd.s32 127, %v2458_v1  ;;  %v8975_v52 = vsub.s32 %v8900_v54, %v2600_v29 }
 0x268   :  { %v2738_v50 = vsel %vm2737_vm6, 1, %v14048_v60  ;;  %v2018_v37 = vadd.f32 -0.16666654, %v2017_v49  ;;  %v2713_v42 = vshll.u32 %v8963_v24, 16  ;;  %v14188_v46 = vshrl.u32 %v8886_v38, 16 }
 0x269   :  { %vm2741_vm3 = vc.u32 %v8965_v61, %v13735_v18  ;;  %v2172_v33 = vmul.f32 %v2171_v55, %v8942_v53  ;;  %v2311_v27 = vxor.u32 2147483648, %v2310_v11  ;;  %v8985_v17 = vor.u32 %v2456_v20, %v2455_v26  ;;  %v14189_v20 = vld [vmem:[#allocation22_spill] sm:$0xff]  ;;  %v14191_v55 = vld [vmem:[#allocation37_spill] sm:$0xff]  ;;  %v1176_v18 = vpop.f32.mrf.mxu1 }
 0x26a   :  { %v2732_v48 = vmul.u32 %v14188_v46, %v2704_v35  ;;  %v2716_v54 = vsel %vm2715_vm11, 1, %v14048_v60  ;;  %v2710_v58 = vmul.u32 %v2706_v0, %v2704_v35  ;;  %vm2719_vm15 = vc.u32 %v2717_v16, %v2713_v42 }
 0x26b   :  { %v8988_v49 = vsub.s32 32, %v2823_v10  ;;  %v2460_v2 = vshll.u32 %v2459_v44, 23  ;;  %v2603_v38 = vsub.s32 0, %v8975_v52  ;;  %v2742_v9 = vsel %vm2741_vm3, 1, %v14048_v60 }
 0x26c   :  { %v2740_v13 = vadd.s32 %v2738_v50, %v2732_v48  ;;  %v13734_v3 = vand.u32 2147483647, %v8723_v23  ;;  %vm2191_vm9 = vcmp.lt.s32.totalorder %v14189_v20, 0  ;;  %vm2602_vm2 = vcmp.lt.s32.totalorder %v8975_v52, 0 }
 0x26d   :  { %v2718_v0 = vadd.s32 %v2716_v54, %v2710_v58  ;;  %v8999_v35 = vmul.f32 %v1865_v45, %v8629_v40  ;;  %v9002_v29 = vmul.f32 %v2018_v37, %v8881_v25  ;;  %v2720_v26 = vsel %vm2719_vm15, 1, %v14048_v60 }
 0x26e   :  { %v9006_v44 = vadd.f32 -0.16666654, %v2172_v33  ;;  %v9010_v50 = vsel %vm2191_vm9, %v2311_v27, %v2310_v11  ;;  %v2744_v42 = vadd.s32 %v2742_v9, %v2740_v13  ;;  %v2836_v46 = vshrl.u32 %v14168_v32, %v8988_v49  ;;  %v1030_v9 = vpop.f32.mrf.mxu0 }
 0x26f   :  { %14190 = vst [vmem:[#allocation13_spill] sm:$0xff] %v8999_v35  ;;  %v9014_v48 = vor.u32 4788187, %v2460_v2  ;;  %v2604_v45 = vsel %vm2602_vm2, %v2603_v38, %v8975_v52  ;;  %v9020_v37 = vand.u32 8388607, %v13734_v3  ;;  %v2722_v33 = vadd.s32 %v2720_v26, %v2718_v0 }
 0x270   :  { %v2734_v54 = vshrl.u32 %v8937_v47, 16  ;;  %v2835_v11 = vshll.u32 %v14170_v12, %v2823_v10  ;;  %v2839_v27 = vshrl.u32 %v14171_v21, %v8988_v49  ;;  %v9026_v58 = vshrl.u32 %v2821_v8, 5 }
 0x271   :  { %v2827_v13 = vshrl.u32 %v14016_v28, %v8988_v49  ;;  %v2830_v2 = vshrl.u32 %v14017_v36, %v8988_v49  ;;  %v2833_v38 = vshrl.u32 %v14170_v12, %v8988_v49  ;;  %v2712_v0 = vshrl.u32 %v8944_v63, 16 }
 0x272   :  { %v2745_v47 = vadd.s32 %v2744_v42, %v2734_v54  ;;  %v2837_v26 = vor.u32 %v2836_v46, %v2835_v11  ;;  %v2838_v3 = vshll.u32 %v14168_v32, %v2823_v10  ;;  %v2605_v1 = vclz %v2604_v45 }
 0x273   :  { %v2826_v8 = vshll.u32 %v14020_v34, %v2823_v10  ;;  %v2829_v40 = vshll.u32 %v14016_v28, %v2823_v10  ;;  %v2832_v16 = vshll.u32 %v14017_v36, %v2823_v10  ;;  %v14192_v57 = vand.u32 2147483647, %v14189_v20 }
 0x274   :  { %v2670_v63 = vshrl.u32 %v14020_v34, %v8769_v56  ;;  %v2723_v42 = vadd.s32 %v2722_v33, %v2712_v0  ;;  %v2736_v46 = vshrl.u32 %v8958_v6, 16  ;;  %v2840_v45 = vor.u32 %v2839_v27, %v2838_v3  ;;  %v657_v33 = vpop.f32.mrf.mxu2 }
 0x275   :  { %vm9041_vm13 = vcmp.le.f32.partialorder %v14192_v57, 0.7853982  ;;  %v9048_v54 = vor.u32 %v2827_v13, %v2826_v8  ;;  %v9050_v11 = vor.u32 %v2830_v2, %v2829_v40  ;;  %v9052_v23 = vor.u32 %v2833_v38, %v2832_v16 }
 0x276   :  { %vm2844_vm8 = vcmp.lt.s32.totalorder %v9026_v58, 4  ;;  %v2462_v10 = vand.u32 2147483647, %v9014_v48  ;;  %v2714_v57 = vshrl.u32 %v8963_v24, 16  ;;  %v2746_v36 = vadd.s32 %v2745_v47, %v2736_v46 }
 0x277   :  { %v2850_v56 = vsel %vm2844_vm8, %v2837_v26, 920167782  ;;  %v6410_v0 = vadd.s32 4294967294, %v2605_v1  ;;  %v2690_v3 = vsel %vm2686_vm1, %v2670_v63, %v8833_v62  ;;  %v2691_v16 = vsel %vm2689_vm12, %v8837_v22, 2102212464  ;;  %v848_v1 = vpop.f32.mrf.mxu3 }
 0x278   :  { %v2817_v40 = vor.u32 8388608, %v9020_v37  ;;  %v9066_v27 = vadd.s32 %v2723_v42, %v2714_v57  ;;  %vm2841_vm0 = vcmp.lt.s32.totalorder %v9026_v58, 1  ;;  %vm2843_vm6 = vcmp.lt.s32.totalorder %v9026_v58, 3  ;;  %v14195_v37 = vld [vmem:[#allocation27_spill] sm:$0xff] }
 0x279   :  { %v2854_v24 = vsel %vm2844_vm8, %v2840_v45, 1326507024  ;;  %v2849_v62 = vsel %vm2841_vm0, %v9048_v54, %v9050_v11  ;;  %v2851_v22 = vsel %vm2843_vm6, %v9052_v23, %v2850_v56  ;;  %v1031_v48 = vadd.f32 %v1030_v9, %v8950_v41  ;;  %v1180_v56 = vpop.f32.mrf.mxu1 }
 0x27a   :  { %v658_v13 = vadd.f32 %v657_v33, %v14195_v37  ;;  %v2692_v2 = vsel %vm2688_vm7, %v8835_v43, %v2691_v16  ;;  %v14196_v38 = vshll.u32 %v8958_v6, 16  ;;  %v2750_v8 = vadd.s32 1, %v2746_v36  ;;  %v1034_v43 = vpop.f32.mrf.mxu0 }
 0x27b   :  { %vm2842_vm12 = vcmp.lt.s32.totalorder %v9026_v58, 2  ;;  %v2853_v63 = vsel %vm2841_vm0, %v9050_v11, %v9052_v23  ;;  %v2855_v41 = vsel %vm2843_vm6, %v2837_v26, %v2854_v24  ;;  %v9096_v9 = vadd.f32 %v1176_v18, %v1031_v48 }
 0x27c   :  { %v9087_v47 = vadd.s32 %v8965_v61, %v14196_v38  ;;  %v849_v42 = vadd.f32 %v848_v1, %v658_v13  ;;  %v2020_v6 = vadd.f32 1.0, %v9002_v29  ;;  %v14198_v61 = vsub.s32 4, %v14191_v55 }
 0x27d   :  { %14197 = vst [vmem:[#allocation31_spill] sm:$0xff] %v9096_v9  ;;  %v9108_v45 = vsel %vm2842_vm12, %v2849_v62, %v2851_v22  ;;  %v9114_v18 = vsel %vm9041_vm13, %v14189_v20, %v9010_v50  ;;  %v14199_v29 = vcvt.s32.f32 %v8985_v17  ;;  %v2693_v57 = vsel %vm2687_vm14, %v2690_v3, %v2692_v2 }
 0x27e   :  { %v2159_v46 = vsel %vm2036_vm10, %v14198_v61, %v14191_v55  ;;  %vm2749_vm1 = vc.u32 %v9066_v27, %v9087_v47  ;;  %v9120_v55 = vshll.u32 %v2817_v40, 8  ;;  %vm6411_vm10 = vcmp.lt.s32.totalorder %v6410_v0, 0 }
 0x27f   :  { %v2465_v26 = vmul.f32 %v14199_v29, %v2462_v10  ;;  %v9124_v33 = vsel %vm2842_vm12, %v2853_v63, %v2855_v41  ;;  %v2967_v16 = vand.u32 2139095040, %v9096_v9  ;;  %v1035_v24 = vadd.f32 %v1034_v43, %v849_v42 }
 0x280   :  { %v2161_v50 = vsel %vm8908_vm5, 0, %v2159_v46  ;;  %v2174_v17 = vmul.f32 %v9006_v44, %v8942_v53  ;;  %v2751_v10 = vsel %vm2749_vm1, %v2750_v8, %v2746_v36  ;;  %v2883_v30 = vshrl.u32 %v9108_v45, 16 }
 0x281   :  { %v9134_v3 = vmul.f32 %v9114_v18, %v9114_v18  ;;  %v2747_v40 = vmul.u32 %v8895_v39, %v2693_v57  ;;  %v2968_v1 = vshrl.u32 %v2967_v16, 23  ;;  %v9137_v62 = vadd.f32 %v1180_v56, %v1035_v24 }
 0x282   :  { %v2313_v22 = vsub.s32 4, %v8615_v59  ;;  %v2608_v48 = vsel %vm6411_vm10, 0, %v6410_v0  ;;  %v2858_v7 = vand.u32 65535, %v9120_v55  ;;  %v2861_v37 = vshrl.u32 %v9124_v33, 16 }
 0x283   :  { %14200 = vst [vmem:[#allocation37_spill] sm:$0xff] %v9134_v3  ;;  %v9143_v36 = vmul.f32 %v2020_v6, %v8851_v19  ;;  %v2466_v44 = vxor.u32 2147483648, %v2465_v26  ;;  %v9145_v13 = vadd.s32 %v2751_v10, %v2747_v40  ;;  %v6418_v2 = vadd.s32 4294967169, %v2968_v1  ;;  %v14206_v19 = vld [vmem:[#allocation4_spill] sm:$0xff] }
 0x284   :  { %14201 = vst [vmem:[#allocation27_spill] sm:$0xff] %v9137_v62  ;;  %v14203_v39 = vsel %vm8787_vm4, 0, %v8970_v5  ;;  %v9154_v0 = vadd.s32 3, %v2161_v50  ;;  %v9156_v63 = vmul.u32 %v2883_v30, %v2858_v7  ;;  %v2325_v41 = vmul.f32 -0.00019511016, %v9134_v3 }
 0x285   :  { %14202 = vst [vmem:[#allocation51_spill] sm:$0xff] %v9143_v36  ;;  %v9152_v8 = vadd.s32 3, %v14203_v39  ;;  %vm2346_vm7 = vcmp.lt.s32.totalorder %v14206_v19, 0  ;;  %v2613_v42 = vsub.s32 4294967266, %v2608_v48  ;;  %v2974_v43 = vadd.s32 1, %v6418_v2 }
 0x286   :  { %14205 = vst [vmem:[#allocation53_spill] sm:$0xff] %v9154_v0  ;;  %v2175_v6 = vadd.f32 1.0, %v2174_v17  ;;  %v2314_v61 = vsel %vm2191_vm9, %v2313_v22, %v8615_v59  ;;  %v9163_v15 = vmul.u32 %v2861_v37, %v2858_v7  ;;  %v2882_v5 = vand.u32 65535, %v9108_v45 }
 0x287   :  { %14204 = vst [vmem:[#allocation52_spill] sm:$0xff] %v9152_v8  ;;  %v14207_v29 = vand.u32 2147483647, %v14206_v19  ;;  %v2467_v56 = vsel %vm2346_vm7, %v2466_v44, %v2465_v26  ;;  %v2753_v16 = vadd.s32 536870912, %v9145_v13  ;;  %v2859_v24 = vshrl.u32 %v9120_v55, 16 }
 0x288   :  { %v2860_v59 = vand.u32 65535, %v9124_v33  ;;  %v2888_v50 = vshll.u32 %v9156_v63, 16  ;;  %vm2975_vm14 = vcmp.gt.s32.totalorder %v2974_v43, 0  ;;  %v2316_v45 = vsel %vm9041_vm13, 0, %v2314_v61  ;;  %v14213_v61 = vld [vmem:[#allocation49_spill] sm:$0xff] }
 0x289   :  { %vm9169_vm4 = vcmp.le.f32.partialorder %v14207_v29, 0.7853982  ;;  %v2326_v17 = vadd.f32 0.008332121, %v2325_v41  ;;  %v2609_v10 = vsub.s32 32, %v2608_v48  ;;  %v2614_v40 = vadd.s32 127, %v2613_v42 }
 0x28a   :  { %v9182_v1 = vmul.f32 %v2175_v6, %v8924_v4  ;;  %v2866_v26 = vshll.u32 %v9163_v15, 16  ;;  %v2884_v22 = vmul.u32 %v2882_v5, %v2858_v7  ;;  %v9185_v44 = vmul.u32 %v2882_v5, %v2859_v24 }
 0x28b   :  { %v9190_v33 = vsel %vm9169_vm4, %v14206_v19, %v2467_v56  ;;  %v2593_v25 = vadd.s32 %v8828_v31, %v8819_v14  ;;  %v9194_v2 = vshrl.u32 %v2753_v16, 30  ;;  %v2976_v39 = vsel %vm2975_vm14, %v2974_v43, 0 }
 0x28c   :  { %14210 = vst [vmem:[#allocation54_spill] sm:$0xff] %v9182_v1  ;;  %v2862_v41 = vmul.u32 %v2860_v59, %v2858_v7  ;;  %v9196_v42 = vmul.u32 %v2860_v59, %v2859_v24  ;;  %vm2892_vm5 = vc.u32 %v2884_v22, %v2888_v50  ;;  %v9198_v4 = vadd.s32 %v2888_v50, %v2884_v22 }
 0x28d   :  { %14211 = vst [vmem:[#allocation55_spill] sm:$0xff] %v9190_v33  ;;  %v2327_v6 = vmul.f32 %v2326_v17, %v9134_v3  ;;  %v2468_v5 = vsub.s32 4, %v14213_v61  ;;  %v2611_v29 = vshrl.u32 %v2593_v25, %v2609_v10  ;;  %v2615_v38 = vshll.u32 %v2614_v40, 23 }
 0x28e   :  { %14212 = vst [vmem:[#allocation56_spill] sm:$0xff] %v9194_v2  ;;  %vm2870_vm11 = vc.u32 %v2862_v41, %v2866_v26  ;;  %v2872_v56 = vadd.s32 %v2866_v26, %v2862_v41  ;;  %v13742_v46 = vshll.u32 %v9185_v44, 16  ;;  %v2978_v31 = vand.u32 31, %v2976_v39 }
 0x28f   :  { %v9205_v14 = vmul.f32 %v9190_v33, %v9190_v33  ;;  %v2610_v7 = vshll.u32 %v8975_v52, %v2608_v48  ;;  %v2755_v43 = vshll.u32 %v9194_v2, 30  ;;  %v2893_v16 = vsel %vm2892_vm5, 1, %v14048_v60 }
 0x290   :  { %v2868_v59 = vshll.u32 %v9196_v42, 16  ;;  %v2887_v50 = vmul.u32 %v2883_v30, %v2859_v24  ;;  %vm2896_vm3 = vc.u32 %v9198_v4, %v13742_v46  ;;  %v3122_v17 = vand.u32 2139095040, %v9137_v62 }
 0x291   :  { %14214 = vst [vmem:[#allocation49_spill] sm:$0xff] %v9205_v14  ;;  %v9218_v10 = vsel %vm2346_vm7, %v2468_v5, %v14213_v61  ;;  %v2612_v40 = vor.u32 %v2611_v29, %v2610_v7  ;;  %v2616_v52 = vor.u32 4788187, %v2615_v38  ;;  %v2871_v48 = vsel %vm2870_vm11, 1, %v14048_v60 }
 0x292   :  { %v2865_v26 = vmul.u32 %v2861_v37, %v2859_v24  ;;  %vm2874_vm15 = vc.u32 %v2872_v56, %v2868_v59  ;;  %v2895_v22 = vadd.s32 %v2893_v16, %v2887_v50  ;;  %v9221_v25 = vsub.s32 32, %v2978_v31 }
 0x293   :  { %v9223_v30 = vadd.f32 -0.16666654, %v2327_v6  ;;  %v9225_v41 = vadd.s32 3, %v2316_v45  ;;  %v9228_v46 = vsub.s32 %v9145_v13, %v2755_v43  ;;  %v2897_v20 = vsel %vm2896_vm3, 1, %v14048_v60 }
 0x294   :  { %v9235_v61 = vmul.f32 -0.00019511016, %v9205_v14  ;;  %v2873_v37 = vadd.s32 %v2871_v48, %v2865_v26  ;;  %v3123_v24 = vshrl.u32 %v3122_v17, 23  ;;  %v2617_v5 = vand.u32 2147483647, %v2616_v52 }
 0x295   :  { %14215 = vst [vmem:[#allocation57_spill] sm:$0xff] %v9225_v41  ;;  %v2619_v29 = vcvt.s32.f32 %v2612_v40  ;;  %v2825_v45 = vshrl.u32 %v14020_v34, %v8988_v49  ;;  %v2875_v6 = vsel %vm2874_vm15, 1, %v14048_v60  ;;  %v2846_v13 = vsel %vm2844_vm8, %v9052_v23, 2102212464 }
 0x296   :  { %v2899_v56 = vadd.s32 %v2897_v20, %v2895_v22  ;;  %v13749_v7 = vand.u32 2147483647, %v9096_v9  ;;  %v2991_v43 = vshrl.u32 %v14168_v32, %v9221_v25  ;;  %vm2757_vm9 = vcmp.lt.s32.totalorder %v9228_v46, 0 }
 0x297   :  { %v2758_v16 = vsub.s32 0, %v9228_v46  ;;  %v2889_v59 = vshrl.u32 %v9156_v63, 16  ;;  %v2994_v49 = vshrl.u32 %v14171_v21, %v9221_v25  ;;  %v2877_v50 = vadd.s32 %v2875_v6, %v2873_v37 }
 0x298   :  { %v9251_v17 = vshrl.u32 %v2976_v39, 5  ;;  %v2990_v23 = vshll.u32 %v14170_v12, %v2978_v31  ;;  %v6421_v20 = vadd.s32 4294967169, %v3123_v24  ;;  %v2982_v40 = vshrl.u32 %v14016_v28, %v9221_v25 }
 0x299   :  { %v14216_v52 = vmov 2131351028   ;;  %v2988_v26 = vshrl.u32 %v14170_v12, %v9221_v25  ;;  %v2993_v63 = vshll.u32 %v14168_v32, %v2978_v31  ;;  %v2867_v22 = vshrl.u32 %v9163_v15, 16 }
 0x29a   :  { %v2985_v48 = vshrl.u32 %v14216_v52, %v9221_v25  ;;  %v2900_v38 = vadd.s32 %v2899_v56, %v2889_v59  ;;  %v2971_v39 = vand.u32 8388607, %v13749_v7  ;;  %v2992_v37 = vor.u32 %v2991_v43, %v2990_v23 }
 0x29b   :  { %v2981_v24 = vshll.u32 %v14020_v34, %v2978_v31  ;;  %v2984_v6 = vshll.u32 %v14016_v28, %v2978_v31  ;;  %v2987_v19 = vshll.u32 %v14216_v52, %v2978_v31  ;;  %v2995_v41 = vor.u32 %v2994_v49, %v2993_v63 }
 0x29c   :  { %v2759_v51 = vsel %vm2757_vm9, %v2758_v16, %v9228_v46  ;;  %v2878_v0 = vadd.s32 %v2877_v50, %v2867_v22  ;;  %v2891_v53 = vshrl.u32 %v9185_v44, 16  ;;  %v3129_v15 = vadd.s32 1, %v6421_v20 }
 0x29d   :  { %v9271_v56 = vor.u32 %v2982_v40, %v2981_v24  ;;  %v9273_v59 = vor.u32 %v2985_v48, %v2984_v6  ;;  %v9275_v43 = vor.u32 %v2988_v26, %v2987_v19  ;;  %vm2999_vm2 = vcmp.lt.s32.totalorder %v9251_v17, 4 }
 0x29e   :  { %v9278_v23 = vmul.f32 %v2619_v29, %v2617_v5  ;;  %v2845_v31 = vsel %vm2841_vm0, %v2825_v45, %v9048_v54  ;;  %v2869_v16 = vshrl.u32 %v9196_v42, 16  ;;  %v3005_v49 = vsel %vm2999_vm2, %v2992_v37, 920167782 }
 0x29f   :  { %v2847_v50 = vsel %vm2843_vm6, %v9050_v11, %v2846_v13  ;;  %v2901_v20 = vadd.s32 %v2900_v38, %v2891_v53  ;;  %v2972_v19 = vor.u32 8388608, %v2971_v39  ;;  %v3009_v40 = vsel %vm2999_vm2, %v2995_v41, 1326507024 }
 0x2a0   :  { %v2760_v5 = vclz %v2759_v51  ;;  %v9291_v29 = vadd.s32 %v2878_v0, %v2869_v16  ;;  %vm2996_vm13 = vcmp.lt.s32.totalorder %v9251_v17, 1  ;;  %vm2998_vm8 = vcmp.lt.s32.totalorder %v9251_v17, 3 }
 0x2a1   :  { %v14218_v54 = vshll.u32 %v9185_v44, 16  ;;  %v3004_v53 = vsel %vm2996_vm13, %v9271_v56, %v9273_v59  ;;  %v3006_v51 = vsel %vm2998_vm8, %v9275_v43, %v3005_v49  ;;  %vm3130_vm0 = vcmp.gt.s32.totalorder %v3129_v15, 0 }
 0x2a2   :  { %14217 = vst [vmem:[#allocation58_spill] sm:$0xff] %v9291_v29  ;;  %v3008_v11 = vsel %vm2996_vm13, %v9273_v59, %v9275_v43  ;;  %v3010_v0 = vsel %vm2998_vm8, %v2992_v37, %v3009_v40  ;;  %v13748_v44 = vand.u32 2147483647, %v9137_v62  ;;  %v2905_v38 = vadd.s32 1, %v2901_v20 }
 0x2a3   :  { %v9298_v42 = vadd.s32 %v9198_v4, %v14218_v54  ;;  %v3131_v4 = vsel %vm3130_vm0, %v3129_v15, 0  ;;  %vm2997_vm6 = vcmp.lt.s32.totalorder %v9251_v17, 2  ;;  %v9316_v45 = vshll.u32 %v2972_v19, 8 }
 0x2a4   :  { %v2848_v13 = vsel %vm2842_vm12, %v2845_v31, %v2847_v50  ;;  %v9324_v48 = vsel %vm2997_vm6, %v3004_v53, %v3006_v51  ;;  %v3133_v26 = vand.u32 31, %v3131_v4  ;;  %v9328_v63 = vmul.f32 %v9223_v30, %v9134_v3 }
 0x2a5   :  { %14219 = vst [vmem:[#allocation59_spill] sm:$0xff] %v9298_v42  ;;  %vm2904_vm1 = vc.u32 %v9291_v29, %v9298_v42  ;;  %v9331_v22 = vadd.f32 0.008332121, %v9235_v61  ;;  %v14220_v58 = vsel %vm9169_vm4, 0, %v9218_v10  ;;  %v9341_v37 = vsel %vm2997_vm6, %v3008_v11, %v3010_v0  ;;  %v662_v0 = vpop.f32.mrf.mxu2 }
 0x2a6   :  { %v9337_v39 = vadd.s32 3, %v14220_v58  ;;  %v2621_v24 = vxor.u32 2147483648, %v9278_v23  ;;  %v9344_v6 = vadd.s32 4294967294, %v2760_v5  ;;  %v3126_v30 = vand.u32 8388607, %v13748_v44 }
 0x2a7   :  { %v9348_v15 = vsub.s32 32, %v3133_v26  ;;  %v2902_v61 = vmul.u32 %v9120_v55, %v2848_v13  ;;  %v2906_v57 = vsel %vm2904_vm1, %v2905_v38, %v2901_v20  ;;  %v3013_v10 = vand.u32 65535, %v9316_v45  ;;  %v14222_v38 = vld [vmem:[#allocation34_spill] sm:$0xff] }
 0x2a8   :  { %14221 = vst [vmem:[#allocation60_spill] sm:$0xff] %v9337_v39  ;;  %v13751_v31 = vshrl.u32 %v9324_v48, 16  ;;  %v13750_v16 = vshrl.u32 %v9341_v37, 16  ;;  %v3136_v49 = vshll.u32 %v14020_v34, %v3133_v26  ;;  %v3139_v19 = vshll.u32 %v14016_v28, %v3133_v26 }
 0x2a9   :  { %v3137_v50 = vshrl.u32 %v14016_v28, %v9348_v15  ;;  %v3140_v40 = vshrl.u32 %v14216_v52, %v9348_v15  ;;  %v3143_v55 = vshrl.u32 %v14170_v12, %v9348_v15  ;;  %v3145_v20 = vshll.u32 %v14170_v12, %v3133_v26 }
 0x2aa   :  { %v3146_v5 = vshrl.u32 %v14168_v32, %v9348_v15  ;;  %v9365_v54 = vadd.s32 %v2906_v57, %v2902_v61  ;;  %v3127_v53 = vor.u32 8388608, %v3126_v30  ;;  %v9367_v51 = vshrl.u32 %v3131_v4, 5 }
 0x2ab   :  { %v3142_v11 = vshll.u32 %v14216_v52, %v3133_v26  ;;  %vm2501_vm12 = vcmp.lt.s32.totalorder %v14222_v38, 0  ;;  %v9373_v13 = vmul.u32 %v13751_v31, %v3013_v10  ;;  %v9375_v58 = vor.u32 %v3137_v50, %v3136_v49  ;;  %v14223_v50 = vld [vmem:[#allocation30_spill] sm:$0xff] }
 0x2ac   :  { %v9377_v41 = vor.u32 %v3140_v40, %v3139_v19  ;;  %v3147_v44 = vor.u32 %v3146_v5, %v3145_v20  ;;  %v3037_v61 = vand.u32 65535, %v9324_v48  ;;  %v3148_v4 = vshll.u32 %v14168_v32, %v3133_v26 }
 0x2ad   :  { %v9380_v57 = vor.u32 %v3143_v55, %v3142_v11  ;;  %v3149_v30 = vshrl.u32 %v14171_v21, %v9348_v15  ;;  %vm6414_vm10 = vcmp.lt.s32.totalorder %v9344_v6, 0  ;;  %v3014_v7 = vshrl.u32 %v9316_v45, 16  ;;  %v667_v9 = vpop.f32.mrf.mxu2 }
 0x2ae   :  { %v9389_v49 = vmul.u32 %v13750_v16, %v3013_v10  ;;  %v663_v19 = vadd.f32 %v662_v0, %v14223_v50  ;;  %v3015_v40 = vand.u32 65535, %v9341_v37  ;;  %vm3151_vm7 = vcmp.lt.s32.totalorder %v9367_v51, 1  ;;  %v854_v16 = vpop.f32.mrf.mxu3 }
 0x2af   :  { %v3150_v20 = vor.u32 %v3149_v30, %v3148_v4  ;;  %vm3154_vm4 = vcmp.lt.s32.totalorder %v9367_v51, 4  ;;  %v14224_v26 = vand.u32 2147483647, %v14222_v38  ;;  %v3043_v5 = vshll.u32 %v9373_v13, 16 }
 0x2b0   :  { %vm3153_vm5 = vcmp.lt.s32.totalorder %v9367_v51, 3  ;;  %v3159_v11 = vsel %vm3151_vm7, %v9375_v58, %v9377_v41  ;;  %v3160_v0 = vsel %vm3154_vm4, %v3147_v44, 920167782  ;;  %v2908_v4 = vadd.s32 536870912, %v9365_v54 }
 0x2b1   :  { %vm9397_vm14 = vcmp.le.f32.partialorder %v14224_v26, 0.7853982  ;;  %v9410_v30 = vmul.u32 %v3037_v61, %v3014_v7  ;;  %v3161_v50 = vsel %vm3153_vm5, %v9380_v57, %v3160_v0  ;;  %v9415_v26 = vshll.u32 %v3127_v53, 8 }
 0x2b2   :  { %v3021_v31 = vshll.u32 %v9389_v49, 16  ;;  %v3039_v1 = vmul.u32 %v3037_v61, %v3013_v10  ;;  %vm3152_vm11 = vcmp.lt.s32.totalorder %v9367_v51, 2  ;;  %v3164_v3 = vsel %vm3154_vm4, %v3150_v20, 1326507024 }
 0x2b3   :  { %14227 = vst [vmem:[#allocation30_spill] sm:$0xff] %v9415_v26  ;;  %v3017_v39 = vmul.u32 %v3015_v40, %v3013_v10  ;;  %v9423_v35 = vsel %vm3152_vm11, %v3159_v11, %v3161_v50  ;;  %v3163_v53 = vsel %vm3151_vm7, %v9377_v41, %v9380_v57  ;;  %v3165_v0 = vsel %vm3153_vm5, %v3147_v44, %v3164_v3  ;;  %v1038_v44 = vpop.f32.mrf.mxu0 }
 0x2b4   :  { %v9431_v36 = vmul.u32 %v3015_v40, %v3014_v7  ;;  %vm3047_vm3 = vc.u32 %v3039_v1, %v3043_v5  ;;  %v9433_v61 = vadd.s32 %v3043_v5, %v3039_v1  ;;  %v855_v8 = vadd.f32 %v854_v16, %v663_v19  ;;  %v14229_v16 = vld [vmem:[#allocation42_spill] sm:$0xff] }
 0x2b5   :  { %v2330_v10 = vadd.f32 1.0, %v9328_v63  ;;  %v2622_v20 = vsel %vm2501_vm12, %v2621_v24, %v9278_v23  ;;  %v9439_v11 = vshrl.u32 %v2908_v4, 30  ;;  %v13762_v50 = vshll.u32 %v9410_v30, 16 }
 0x2b6   :  { %vm3025_vm15 = vc.u32 %v3017_v39, %v3021_v31  ;;  %v3027_v62 = vadd.s32 %v3021_v31, %v3017_v39  ;;  %v9444_v3 = vsel %vm3152_vm11, %v3163_v53, %v3165_v0  ;;  %v13767_v1 = vshrl.u32 %v9423_v35, 16 }
 0x2b7   :  { %14228 = vst [vmem:[#allocation61_spill] sm:$0xff] %v9439_v11  ;;  %v2482_v63 = vmul.f32 %v9331_v22, %v9205_v14  ;;  %v2623_v19 = vsub.s32 4, %v14229_v16  ;;  %v9453_v23 = vsel %vm6414_vm10, 0, %v9344_v6  ;;  %v3048_v24 = vsel %vm3047_vm3, 1, %v14048_v60 }
 0x2b8   :  { %v3023_v39 = vshll.u32 %v9431_v36, 16  ;;  %v14230_v31 = vshrl.u32 %v9324_v48, 16  ;;  %vm3051_vm9 = vc.u32 %v9433_v61, %v13762_v50  ;;  %v3168_v22 = vand.u32 65535, %v9415_v26 }
 0x2b9   :  { %v9466_v5 = vsel %vm9397_vm14, %v14222_v38, %v2622_v20  ;;  %v2910_v6 = vshll.u32 %v9439_v11, 30  ;;  %v3026_v4 = vsel %vm3025_vm15, 1, %v14048_v60  ;;  %v14232_v48 = vshrl.u32 %v9341_v37, 16 }
 0x2ba   :  { %v3042_v40 = vmul.u32 %v14230_v31, %v3014_v7  ;;  %14231 = vst [vmem:[#allocation42_spill] sm:$0xff] %v9466_v5  ;;  %vm3029_vm0 = vc.u32 %v3027_v62, %v3023_v39  ;;  %v9475_v50 = vmul.u32 %v13767_v1, %v3168_v22  ;;  %v9478_v2 = vmul.f32 %v2330_v10, %v9114_v18 }
 0x2bb   :  { %v3020_v0 = vmul.u32 %v14232_v48, %v3014_v7  ;;  %v9483_v20 = vsel %vm2501_vm12, %v2623_v19, %v14229_v16  ;;  %v2768_v53 = vsub.s32 4294967266, %v9453_v23  ;;  %v3052_v37 = vsel %vm3051_vm9, 1, %v14048_v60  ;;  %v1184_v7 = vpop.f32.mrf.mxu1  ;;  %v14236_v48 = vld [vmem:[#allocation33_spill] sm:$0xff] }
 0x2bc   :  { %v3050_v31 = vadd.s32 %v3048_v24, %v3042_v40  ;;  %14233 = vst [vmem:[#allocation62_spill] sm:$0xff] %v9478_v2  ;;  %v9487_v62 = vadd.f32 -0.16666654, %v2482_v63  ;;  %v9491_v24 = vmul.f32 %v9466_v5, %v9466_v5  ;;  %v3192_v18 = vand.u32 65535, %v9423_v35 }
 0x2bd   :  { %v3028_v39 = vadd.s32 %v3026_v4, %v3020_v0  ;;  %v9495_v10 = vsub.s32 %v9365_v54, %v2910_v6  ;;  %v3030_v16 = vsel %vm3029_vm0, 1, %v14048_v60  ;;  %v14235_v19 = vshrl.u32 %v9444_v3, 16  ;;  %v860_v0 = vpop.f32.mrf.mxu3 }
 0x2be   :  { %14234 = vst [vmem:[#allocation63_spill] sm:$0xff] %v9491_v24  ;;  %v668_v1 = vadd.f32 %v667_v9, %v14236_v48  ;;  %v2748_v63 = vadd.s32 %v9087_v47, %v9066_v27  ;;  %v3054_v38 = vadd.s32 %v3052_v37, %v3050_v31  ;;  %v3169_v11 = vshrl.u32 %v9415_v26, 16  ;;  %v1042_v27 = vpop.f32.mrf.mxu0 }
 0x2bf   :  { %v9500_v40 = vmul.u32 %v14235_v19, %v3168_v22  ;;  %v3198_v4 = vshll.u32 %v9475_v50, 16  ;;  %v2764_v54 = vsub.s32 32, %v9453_v23  ;;  %v9508_v6 = vadd.s32 127, %v2768_v53 }
 0x2c0   :  { %v3044_v5 = vshrl.u32 %v9373_v13, 16  ;;  %v3170_v19 = vand.u32 65535, %v9444_v3  ;;  %v3032_v33 = vadd.s32 %v3030_v16, %v3028_v39  ;;  %v3194_v2 = vmul.u32 %v3192_v18, %v3168_v22 }
 0x2c1   :  { %v9512_v9 = vmul.u32 %v3192_v18, %v3169_v11  ;;  %v1039_v48 = vadd.f32 %v1038_v44, %v855_v8  ;;  %vm2912_vm1 = vcmp.lt.s32.totalorder %v9495_v10, 0  ;;  %v2913_v47 = vsub.s32 0, %v9495_v10 }
 0x2c2   :  { %v3176_v31 = vshll.u32 %v9500_v40, 16  ;;  %v861_v37 = vadd.f32 %v860_v0, %v668_v1  ;;  %v3022_v53 = vshrl.u32 %v9389_v49, 16  ;;  %v3055_v42 = vadd.s32 %v3054_v38, %v3044_v5 }
 0x2c3   :  { %vm3202_vm12 = vc.u32 %v3194_v2, %v3198_v4  ;;  %v9518_v13 = vadd.s32 %v3198_v4, %v3194_v2  ;;  %v3172_v29 = vmul.u32 %v3170_v19, %v3168_v22  ;;  %v9520_v39 = vmul.u32 %v3170_v19, %v3169_v11  ;;  %v1188_v22 = vpop.f32.mrf.mxu1 }
 0x2c4   :  { %v9522_v18 = vadd.f32 %v1184_v7, %v1039_v48  ;;  %v1043_v8 = vadd.f32 %v1042_v27, %v861_v37  ;;  %v2980_v44 = vshrl.u32 %v14020_v34, %v9221_v25  ;;  %v3033_v16 = vadd.s32 %v3032_v33, %v3022_v53 }
 0x2c5   :  { %v3046_v26 = vshrl.u32 %v9410_v30, 16  ;;  %v3200_v1 = vshll.u32 %v9512_v9, 16  ;;  %vm3180_vm10 = vc.u32 %v3172_v29, %v3176_v31  ;;  %v3182_v49 = vadd.s32 %v3176_v31, %v3172_v29 }
 0x2c6   :  { %14237 = vst [vmem:[#allocation33_spill] sm:$0xff] %v9522_v18  ;;  %v3203_v38 = vsel %vm3202_vm12, 1, %v14048_v60  ;;  %v3277_v2 = vand.u32 2139095040, %v9522_v18  ;;  %v2914_v5 = vsel %vm2912_vm1, %v2913_v47, %v9495_v10  ;;  %v3024_v7 = vshrl.u32 %v9431_v36, 16 }
 0x2c7   :  { %v14238_v25 = vshrl.u32 %v9423_v35, 16  ;;  %vm3206_vm3 = vc.u32 %v9518_v13, %v3200_v1  ;;  %v3001_v29 = vsel %vm2999_vm2, %v9275_v43, 2102212464  ;;  %v3056_v4 = vadd.s32 %v3055_v42, %v3046_v26 }
 0x2c8   :  { %v3178_v0 = vshll.u32 %v9520_v39, 16  ;;  %v3278_v19 = vshrl.u32 %v3277_v2, 23  ;;  %v9543_v48 = vadd.s32 %v3033_v16, %v3024_v7  ;;  %v3181_v27 = vsel %vm3180_vm10, 1, %v14048_v60 }
 0x2c9   :  { %v3197_v33 = vmul.u32 %v14238_v25, %v3169_v11  ;;  %v9546_v47 = vadd.f32 %v1188_v22, %v1043_v8  ;;  %v14240_v35 = vshrl.u32 %v9444_v3, 16  ;;  %v3207_v37 = vsel %vm3206_vm3, 1, %v14048_v60 }
 0x2ca   :  { %vm3184_vm15 = vc.u32 %v3182_v49, %v3178_v0  ;;  %v6424_v53 = vadd.s32 4294967169, %v3278_v19  ;;  %v2915_v25 = vclz %v2914_v5  ;;  %v3000_v43 = vsel %vm2996_vm13, %v2980_v44, %v9271_v56 }
 0x2cb   :  { %v3205_v36 = vadd.s32 %v3203_v38, %v3197_v33  ;;  %14239 = vst [vmem:[#allocation64_spill] sm:$0xff] %v9546_v47  ;;  %v3175_v31 = vmul.u32 %v14240_v35, %v3169_v11  ;;  %v3002_v42 = vsel %vm2998_vm8, %v9273_v59, %v3001_v29  ;;  %v14241_v26 = vshll.u32 %v9410_v30, 16 }
 0x2cc   :  { %v2635_v11 = vmul.f32 -0.00019511016, %v9491_v24  ;;  %v3060_v3 = vadd.s32 1, %v3056_v4  ;;  %v3284_v49 = vadd.s32 1, %v6424_v53  ;;  %v2766_v38 = vshrl.u32 %v2748_v63, %v2764_v54 }
 0x2cd   :  { %v9560_v8 = vadd.s32 %v9433_v61, %v14241_v26  ;;  %v3183_v16 = vadd.s32 %v3181_v27, %v3175_v31  ;;  %v3185_v56 = vsel %vm3184_vm15, 1, %v14048_v60  ;;  %v3209_v44 = vadd.s32 %v3207_v37, %v3205_v36 }
 0x2ce   :  { %v2626_v59 = vsel %vm9397_vm14, 0, %v9483_v20  ;;  %v2770_v30 = vshll.u32 %v9508_v6, 23  ;;  %v3003_v61 = vsel %vm2997_vm6, %v3000_v43, %v3002_v42  ;;  %vm3285_vm13 = vcmp.gt.s32.totalorder %v3284_v49, 0 }
 0x2cf   :  { %vm3059_vm2 = vc.u32 %v9543_v48, %v9560_v8  ;;  %v2765_v2 = vshll.u32 %v9228_v46, %v9453_v23  ;;  %v6416_v63 = vadd.s32 4294967294, %v2915_v25  ;;  %v3199_v54 = vshrl.u32 %v9475_v50, 16 }
 0x2d0   :  { %v3286_v22 = vsel %vm3285_vm13, %v3284_v49, 0  ;;  %v9577_v5 = vmul.f32 %v9487_v62, %v9205_v14  ;;  %v3061_v7 = vsel %vm3059_vm2, %v3060_v3, %v3056_v4  ;;  %v3187_v33 = vadd.s32 %v3185_v56, %v3183_v16 }
 0x2d1   :  { %v3288_v29 = vand.u32 31, %v3286_v22  ;;  %v2636_v0 = vadd.f32 0.008332121, %v2635_v11  ;;  %v9579_v6 = vor.u32 %v2766_v38, %v2765_v2  ;;  %v3057_v17 = vmul.u32 %v9316_v45, %v3003_v61 }
 0x2d2   :  { %v3210_v19 = vadd.s32 %v3209_v44, %v3199_v54  ;;  %v9582_v27 = vor.u32 4788187, %v2770_v30  ;;  %v3177_v46 = vshrl.u32 %v9500_v40, 16  ;;  %v13778_v50 = vand.u32 2147483647, %v9522_v18 }
 0x2d3   :  { %v9586_v23 = vsub.s32 32, %v3288_v29  ;;  %vm6417_vm8 = vcmp.lt.s32.totalorder %v6416_v63, 0  ;;  %v9588_v62 = vadd.s32 %v3061_v7, %v3057_v17  ;;  %v3135_v4 = vshrl.u32 %v14020_v34, %v9348_v15 }
 0x2d4   :  { %v3201_v36 = vshrl.u32 %v9512_v9, 16  ;;  %v3156_v45 = vsel %vm3154_vm4, %v9380_v57, 2102212464  ;;  %v3188_v35 = vadd.s32 %v3187_v33, %v3177_v46  ;;  %v3179_v37 = vshrl.u32 %v9520_v39, 16 }
 0x2d5   :  { %v3292_v40 = vshrl.u32 %v14016_v28, %v9586_v23  ;;  %v3295_v31 = vshrl.u32 %v14216_v52, %v9586_v23  ;;  %v3291_v25 = vshll.u32 %v14020_v34, %v3288_v29  ;;  %v3294_v15 = vshll.u32 %v14016_v28, %v3288_v29 }
 0x2d6   :  { %v3211_v53 = vadd.s32 %v3210_v19, %v3201_v36  ;;  %v3281_v43 = vand.u32 8388607, %v13778_v50  ;;  %v9605_v42 = vshrl.u32 %v3286_v22, 5  ;;  %v3297_v57 = vshll.u32 %v14216_v52, %v3288_v29 }
 0x2d7   :  { %v3298_v26 = vshrl.u32 %v14170_v12, %v9586_v23  ;;  %v9610_v11 = vor.u32 %v3292_v40, %v3291_v25  ;;  %v9612_v3 = vor.u32 %v3295_v31, %v3294_v15  ;;  %v3300_v39 = vshll.u32 %v14170_v12, %v3288_v29  ;;  %v14242_v31 = vld [vmem:[#allocation30_spill] sm:$0xff] }
 0x2d8   :  { %v3301_v16 = vshrl.u32 %v14168_v32, %v9586_v23  ;;  %v9618_v49 = vsel %vm6417_vm8, 0, %v6416_v63  ;;  %v3155_v38 = vsel %vm3151_vm7, %v3135_v4, %v9375_v58  ;;  %v9623_v56 = vadd.s32 %v3188_v35, %v3179_v37 }
 0x2d9   :  { %v3304_v44 = vshrl.u32 %v14171_v21, %v9586_v23  ;;  %v3063_v30 = vadd.s32 536870912, %v9588_v62  ;;  %v9628_v61 = vor.u32 %v3298_v26, %v3297_v57  ;;  %v3303_v54 = vshll.u32 %v14168_v32, %v3288_v29  ;;  %v14243_v57 = vld [vmem:[#allocation58_spill] sm:$0xff]  ;;  %v14244_v26 = vld [vmem:[#allocation59_spill] sm:$0xff] }
 0x2da   :  { %v3302_v2 = vor.u32 %v3301_v16, %v3300_v39  ;;  %v3157_v63 = vsel %vm3153_vm5, %v9377_v41, %v3156_v45  ;;  %v9637_v58 = vadd.s32 %v9518_v13, %v3200_v1  ;;  %v3282_v22 = vor.u32 8388608, %v3281_v43 }
 0x2db   :  { %vm3306_vm6 = vcmp.lt.s32.totalorder %v9605_v42, 1  ;;  %v3215_v7 = vadd.s32 1, %v3211_v53  ;;  %v3305_v33 = vor.u32 %v3304_v44, %v3303_v54  ;;  %vm3309_vm7 = vcmp.lt.s32.totalorder %v9605_v42, 4 }
 0x2dc   :  { %v3314_v29 = vsel %vm3306_vm6, %v9610_v11, %v9612_v3  ;;  %v2772_v17 = vand.u32 2147483647, %v9582_v27  ;;  %vm3214_vm4 = vc.u32 %v9623_v56, %v9637_v58  ;;  %vm3308_vm5 = vcmp.lt.s32.totalorder %v9605_v42, 3 }
 0x2dd   :  { %v3315_v41 = vsel %vm3309_vm7, %v3302_v2, 920167782  ;;  %v9651_v9 = vshrl.u32 %v3063_v30, 30  ;;  %v3158_v13 = vsel %vm3152_vm11, %v3155_v38, %v3157_v63  ;;  %vm3307_vm9 = vcmp.lt.s32.totalorder %v9605_v42, 2 }
 0x2de   :  { %v3316_v1 = vsel %vm3308_vm5, %v9628_v61, %v3315_v41  ;;  %v2919_v19 = vsub.s32 32, %v9618_v49  ;;  %v3318_v46 = vsel %vm3306_vm6, %v9612_v3, %v9628_v61  ;;  %v9668_v4 = vshll.u32 %v3282_v22, 8 }
 0x2df   :  { %v9662_v27 = vsel %vm3307_vm9, %v3314_v29, %v3316_v1  ;;  %v2923_v51 = vsub.s32 4294967266, %v9618_v49  ;;  %v3216_v36 = vsel %vm3214_vm4, %v3215_v7, %v3211_v53  ;;  %v3319_v45 = vsel %vm3309_vm7, %v3305_v33, 1326507024  ;;  %v14246_v33 = vld [vmem:[#allocation3_spill] sm:$0xff] }
 0x2e0   :  { %v3432_v35 = vand.u32 2139095040, %v9546_v47  ;;  %v2637_v40 = vmul.f32 %v2636_v0, %v9491_v24  ;;  %v3212_v37 = vmul.u32 %v14242_v31, %v3158_v13  ;;  %v3320_v25 = vsel %vm3308_vm5, %v3302_v2, %v3319_v45 }
 0x2e1   :  { %v3348_v15 = vshrl.u32 %v9662_v27, 16  ;;  %v2774_v43 = vcvt.s32.f32 %v9579_v6  ;;  %v2903_v39 = vadd.s32 %v14244_v26, %v14243_v57  ;;  %v3065_v53 = vshll.u32 %v9651_v9, 30  ;;  %v866_v26 = vpop.f32.mrf.mxu3 }
 0x2e2   :  { %v3321_v16 = vsel %vm3307_vm9, %v3318_v46, %v3320_v25  ;;  %v2485_v38 = vadd.f32 1.0, %v9577_v5  ;;  %v9686_v0 = vadd.s32 %v3216_v36, %v3212_v37  ;;  %v3323_v44 = vand.u32 65535, %v9668_v4  ;;  %v14247_v46 = vld [vmem:[#allocation55_spill] sm:$0xff] }
 0x2e3   :  { %v3326_v30 = vshrl.u32 %v3321_v16, 16  ;;  %v2775_v2 = vmul.f32 %v2774_v43, %v2772_v17  ;;  %v2921_v54 = vshrl.u32 %v2903_v39, %v2919_v19  ;;  %v2924_v63 = vadd.s32 127, %v2923_v51  ;;  %v672_v19 = vpop.f32.mrf.mxu2 }
 0x2e4   :  { %v3433_v22 = vshrl.u32 %v3432_v35, 23  ;;  %vm2656_vm11 = vcmp.lt.s32.totalorder %v14246_v33, 0  ;;  %v9695_v41 = vmul.u32 %v3348_v15, %v3323_v44  ;;  %v2638_v5 = vadd.f32 -0.16666654, %v2637_v40 }
 0x2e5   :  { %v9691_v29 = vmul.u32 %v3326_v30, %v3323_v44  ;;  %v9701_v13 = vadd.s32 3, %v2626_v59  ;;  %v2920_v17 = vshll.u32 %v9495_v10, %v9618_v49  ;;  %v9706_v1 = vsub.s32 %v9588_v62, %v3065_v53  ;;  %v14249_v49 = vld [vmem:[#allocation28_spill] sm:$0xff] }
 0x2e6   :  { %v9709_v51 = vmul.f32 %v2485_v38, %v14247_v46  ;;  %v3218_v36 = vadd.s32 536870912, %v9686_v0  ;;  %v3325_v45 = vand.u32 65535, %v3321_v16  ;;  %v3347_v35 = vand.u32 65535, %v9662_v27  ;;  %v1046_v46 = vpop.f32.mrf.mxu0 }
 0x2e7   :  { %v2776_v55 = vxor.u32 2147483648, %v2775_v2  ;;  %v9713_v40 = vor.u32 %v2921_v54, %v2920_v17  ;;  %v2925_v20 = vshll.u32 %v2924_v63, 23  ;;  %v6427_v59 = vadd.s32 4294967169, %v3433_v22 }
 0x2e8   :  { %14248 = vst [vmem:[#allocation30_spill] sm:$0xff] %v9709_v51  ;;  %v3324_v31 = vshrl.u32 %v9668_v4, 16  ;;  %v3331_v10 = vshll.u32 %v9691_v29, 16  ;;  %v3353_v62 = vshll.u32 %v9695_v41, 16  ;;  %v673_v37 = vadd.f32 %v672_v19, %v14249_v49 }
 0x2e9   :  { %v9720_v25 = vmul.f32 %v2638_v5, %v9491_v24  ;;  %vm3067_vm14 = vcmp.lt.s32.totalorder %v9706_v1, 0  ;;  %v3068_v43 = vsub.s32 0, %v9706_v1  ;;  %v13777_v57 = vand.u32 2147483647, %v9546_v47 }
 0x2ea   :  { %v9725_v39 = vshrl.u32 %v3218_v36, 30  ;;  %v3327_v53 = vmul.u32 %v3325_v45, %v3323_v44  ;;  %v3349_v16 = vmul.u32 %v3347_v35, %v3323_v44  ;;  %v9727_v38 = vmul.u32 %v3347_v35, %v3324_v31 }
 0x2eb   :  { %v9731_v54 = vsel %vm2656_vm11, %v2776_v55, %v2775_v2  ;;  %v2926_v63 = vor.u32 4788187, %v2925_v20  ;;  %v2929_v22 = vcvt.s32.f32 %v9713_v40  ;;  %v3439_v5 = vadd.s32 1, %v6427_v59 }
 0x2ec   :  { %v9734_v17 = vmul.u32 %v3325_v45, %v3324_v31  ;;  %vm3335_vm0 = vc.u32 %v3327_v53, %v3331_v10  ;;  %vm3357_vm1 = vc.u32 %v3349_v16, %v3353_v62  ;;  %v867_v19 = vadd.f32 %v866_v26, %v673_v37 }
 0x2ed   :  { %v3069_v44 = vsel %vm3067_vm14, %v3068_v43, %v9706_v1  ;;  %v9739_v36 = vadd.s32 %v3353_v62, %v3349_v16  ;;  %v3436_v2 = vand.u32 8388607, %v13777_v57  ;;  %vm3440_vm12 = vcmp.gt.s32.totalorder %v3439_v5, 0 }
 0x2ee   :  { %v3220_v35 = vshll.u32 %v9725_v39, 30  ;;  %v3337_v55 = vadd.s32 %v3331_v10, %v3327_v53  ;;  %v13779_v45 = vshll.u32 %v9727_v38, 16  ;;  %v3441_v40 = vsel %vm3440_vm12, %v3439_v5, 0 }
 0x2ef   :  { %v3336_v20 = vsel %vm3335_vm0, 1, %v14048_v60  ;;  %v3358_v59 = vsel %vm3357_vm1, 1, %v14048_v60  ;;  %v3443_v49 = vand.u32 31, %v3441_v40  ;;  %v9747_v37 = vadd.f32 %v1046_v46, %v867_v19 }
 0x2f0   :  { %v2927_v43 = vand.u32 2147483647, %v2926_v63  ;;  %v3330_v62 = vmul.u32 %v3326_v30, %v3324_v31  ;;  %v3333_v26 = vshll.u32 %v9734_v17, 16  ;;  %v3352_v16 = vmul.u32 %v3348_v15, %v3324_v31 }
 0x2f1   :  { %v3070_v7 = vclz %v3069_v44  ;;  %vm3361_vm10 = vc.u32 %v9739_v36, %v13779_v45  ;;  %v3437_v10 = vor.u32 8388608, %v3436_v2  ;;  %v9755_v53 = vsub.s32 32, %v3443_v49 }
 0x2f2   :  { %v9758_v5 = vsub.s32 %v9686_v0, %v3220_v35  ;;  %v3338_v19 = vadd.s32 %v3336_v20, %v3330_v62  ;;  %vm9760_vm3 = vc.u32 %v3337_v55, %v3333_v26  ;;  %v3360_v30 = vadd.s32 %v3358_v59, %v3352_v16 }
 0x2f3   :  { %v3446_v27 = vshll.u32 %v14020_v34, %v3443_v49  ;;  %v3447_v15 = vshrl.u32 %v14016_v28, %v9755_v53  ;;  %v3449_v31 = vshll.u32 %v14016_v28, %v3443_v49  ;;  %v3450_v46 = vshrl.u32 %v14216_v52, %v9755_v53 }
 0x2f4   :  { %v3362_v44 = vsel %vm3361_vm10, 1, %v14048_v60  ;;  %v9771_v0 = vshrl.u32 %v3441_v40, 5  ;;  %v3452_v2 = vshll.u32 %v14216_v52, %v3443_v49  ;;  %v3453_v35 = vshrl.u32 %v14170_v12, %v9755_v53 }
 0x2f5   :  { %v14252_v55 = vand.u32 2147483647, %v14246_v33  ;;  %v9782_v59 = vor.u32 %v3447_v15, %v3446_v27  ;;  %v9784_v62 = vor.u32 %v3450_v46, %v3449_v31  ;;  %v3455_v26 = vshll.u32 %v14170_v12, %v3443_v49 }
 0x2f6   :  { %v3456_v40 = vshrl.u32 %v14168_v32, %v9755_v53  ;;  %v6419_v16 = vadd.s32 4294967294, %v3070_v7  ;;  %v3340_v57 = vsel %vm9760_vm3, 1, %v14048_v60  ;;  %v3458_v50 = vshll.u32 %v14168_v32, %v3443_v49 }
 0x2f7   :  { %vm9778_vm15 = vcmp.le.f32.partialorder %v14252_v55, 0.7853982  ;;  %v3459_v55 = vshrl.u32 %v14171_v21, %v9755_v53  ;;  %vm3222_vm2 = vcmp.lt.s32.totalorder %v9758_v5, 0  ;;  %v3223_v27 = vsub.s32 0, %v9758_v5 }
 0x2f8   :  { %v9797_v15 = vor.u32 %v3453_v35, %v3452_v2  ;;  %v3457_v31 = vor.u32 %v3456_v40, %v3455_v26  ;;  %v3364_v46 = vadd.s32 %v3362_v44, %v3360_v30  ;;  %vm3461_vm13 = vcmp.lt.s32.totalorder %v9771_v0, 1 }
 0x2f9   :  { %v3460_v45 = vor.u32 %v3459_v55, %v3458_v50  ;;  %vm3464_vm8 = vcmp.lt.s32.totalorder %v9771_v0, 4  ;;  %v3342_v7 = vadd.s32 %v3340_v57, %v3338_v19  ;;  %v3469_v49 = vsel %vm3461_vm13, %v9782_v59, %v9784_v62 }
 0x2fa   :  { %v3470_v63 = vsel %vm3464_vm8, %v3457_v31, 920167782  ;;  %v9807_v6 = vshll.u32 %v3437_v10, 8  ;;  %v2930_v2 = vmul.f32 %v2929_v22, %v2927_v43  ;;  %vm6420_vm4 = vcmp.lt.s32.totalorder %v6419_v16, 0  ;;  %v14255_v10 = vld [vmem:[#allocation25_spill] sm:$0xff] }
 0x2fb   :  { %v3354_v30 = vshrl.u32 %v9695_v41, 16  ;;  %vm3463_vm14 = vcmp.lt.s32.totalorder %v9771_v0, 3  ;;  %v3332_v50 = vshrl.u32 %v9691_v29, 16  ;;  %vm3462_vm0 = vcmp.lt.s32.totalorder %v9771_v0, 2 }
 0x2fc   :  { %v3471_v57 = vsel %vm3463_vm14, %v9797_v15, %v3470_v63  ;;  %v3474_v19 = vsel %vm3464_vm8, %v3460_v45, 1326507024  ;;  %v3224_v22 = vsel %vm3222_vm2, %v3223_v27, %v9758_v5  ;;  %v3473_v29 = vsel %vm3461_vm13, %v9784_v62, %v9797_v15 }
 0x2fd   :  { %v3365_v43 = vadd.s32 %v3364_v46, %v3354_v30  ;;  %v3472_v41 = vsel %vm3462_vm0, %v3469_v49, %v3471_v57  ;;  %vm2811_vm1 = vcmp.lt.s32.totalorder %v14255_v10, 0  ;;  %v3343_v44 = vadd.s32 %v3342_v7, %v3332_v50 }
 0x2fe   :  { %v3475_v35 = vsel %vm3463_vm14, %v3457_v31, %v3474_v19  ;;  %v3478_v45 = vand.u32 65535, %v9807_v6  ;;  %v3503_v26 = vshrl.u32 %v3472_v41, 16  ;;  %v9832_v40 = vadd.f32 1.0, %v9720_v25 }
 0x2ff   :  { %v9838_v55 = vsel %vm9778_vm15, %v14246_v33, %v9731_v54  ;;  %v9841_v27 = vsel %vm6420_vm4, 0, %v6419_v16  ;;  %v3356_v46 = vshrl.u32 %v9727_v38, 16  ;;  %v3225_v7 = vclz %v3224_v22 }
 0x300   :  { %v3334_v31 = vshrl.u32 %v9734_v17, 16  ;;  %v3476_v49 = vsel %vm3462_vm0, %v3473_v29, %v3475_v35  ;;  %v9847_v63 = vmul.u32 %v3503_v26, %v3478_v45  ;;  %v3311_v25 = vsel %vm3309_vm7, %v9628_v61, 2102212464 }
 0x301   :  { %v3366_v30 = vadd.s32 %v3365_v43, %v3356_v46  ;;  %v3481_v54 = vshrl.u32 %v3476_v49, 16  ;;  %v3502_v50 = vand.u32 65535, %v3472_v41  ;;  %v2931_v57 = vxor.u32 2147483648, %v2930_v2 }
 0x302   :  { %v3290_v16 = vshrl.u32 %v14020_v34, %v9586_v23  ;;  %v9854_v19 = vadd.s32 %v3343_v44, %v3334_v31  ;;  %v3480_v22 = vand.u32 65535, %v3476_v49  ;;  %v3078_v17 = vsub.s32 4294967266, %v9841_v27 }
 0x303   :  { %v3479_v29 = vshrl.u32 %v9807_v6, 16  ;;  %v9858_v35 = vmul.u32 %v3481_v54, %v3478_v45  ;;  %v3508_v24 = vshll.u32 %v9847_v63, 16  ;;  %v14257_v61 = vand.u32 2147483647, %v14255_v10 }
 0x304   :  { %14256 = vst [vmem:[#allocation58_spill] sm:$0xff] %v9854_v19  ;;  %v6422_v41 = vadd.s32 4294967294, %v3225_v7  ;;  %v3310_v23 = vsel %vm3306_vm6, %v3290_v16, %v9610_v11  ;;  %v3312_v44 = vsel %vm3308_vm5, %v9612_v3, %v3311_v25  ;;  %v14260_v46 = vshll.u32 %v9727_v38, 16  ;;  %v1192_v7 = vpop.f32.mrf.mxu1 }
 0x305   :  { %vm9863_vm7 = vcmp.le.f32.partialorder %v14257_v61, 0.7853982  ;;  %v3370_v49 = vadd.s32 1, %v3366_v30  ;;  %v3486_v61 = vshll.u32 %v9858_v35, 16  ;;  %v3504_v14 = vmul.u32 %v3502_v50, %v3478_v45 }
 0x306   :  { %v9876_v31 = vadd.s32 %v9739_v36, %v14260_v46  ;;  %v9879_v47 = vmul.u32 %v3502_v50, %v3479_v29  ;;  %v9883_v18 = vmul.f32 %v9838_v55, %v9838_v55  ;;  %v3482_v11 = vmul.u32 %v3480_v22, %v3478_v45 }
 0x307   :  { %v9887_v3 = vmul.u32 %v3480_v22, %v3479_v29  ;;  %v2932_v38 = vsel %vm2811_vm1, %v2931_v57, %v2930_v2  ;;  %v3313_v36 = vsel %vm3307_vm9, %v3310_v23, %v3312_v44  ;;  %vm3512_vm5 = vc.u32 %v3504_v14, %v3508_v24 }
 0x308   :  { %14261 = vst [vmem:[#allocation59_spill] sm:$0xff] %v9876_v31  ;;  %vm3369_vm6 = vc.u32 %v9854_v19, %v9876_v31  ;;  %v9893_v25 = vadd.s32 %v3508_v24, %v3504_v14  ;;  %v3058_v50 = vadd.s32 %v9560_v8, %v9543_v48  ;;  %v3074_v16 = vsub.s32 32, %v9841_v27  ;;  %v677_v31 = vpop.f32.mrf.mxu2  ;;  %v14264_v8 = vld [vmem:[#allocation14_spill] sm:$0xff] }
 0x309   :  { %14262 = vst [vmem:[#allocation55_spill] sm:$0xff] %v9883_v18  ;;  %vm3490_vm12 = vc.u32 %v3482_v11, %v3486_v61  ;;  %v3492_v46 = vadd.s32 %v3486_v61, %v3482_v11  ;;  %v3079_v45 = vadd.s32 127, %v3078_v17  ;;  %vm6423_vm10 = vcmp.lt.s32.totalorder %v6422_v41, 0  ;;  %v872_v17 = vpop.f32.mrf.mxu3 }
 0x30a   :  { %v3371_v22 = vsel %vm3369_vm6, %v3370_v49, %v3366_v30  ;;  %v13790_v19 = vshll.u32 %v9879_v47, 16  ;;  %v3367_v2 = vmul.u32 %v9668_v4, %v3313_v36  ;;  %v3488_v42 = vshll.u32 %v9887_v3, 16 }
 0x30b   :  { %v3507_v57 = vmul.u32 %v3503_v26, %v3479_v29  ;;  %v3513_v14 = vsel %vm3512_vm5, 1, %v14048_v60  ;;  %v3491_v24 = vsel %vm3490_vm12, 1, %v14048_v60  ;;  %v9907_v48 = vadd.f32 %v1192_v7, %v9747_v37  ;;  %v1050_v37 = vpop.f32.mrf.mxu0 }
 0x30c   :  { %vm3516_vm9 = vc.u32 %v9893_v25, %v13790_v19  ;;  %v678_v30 = vadd.f32 %v677_v31, %v14264_v8  ;;  %v2790_v23 = vmul.f32 -0.00019511016, %v9883_v18  ;;  %v9911_v4 = vadd.s32 %v3371_v22, %v3367_v2  ;;  %v14266_v22 = vld [vmem:[#allocation42_spill] sm:$0xff] }
 0x30d   :  { %14263 = vst [vmem:[#allocation28_spill] sm:$0xff] %v9907_v48  ;;  %v3485_v44 = vmul.u32 %v3481_v54, %v3479_v29  ;;  %vm3494_vm3 = vc.u32 %v3492_v46, %v3488_v42  ;;  %v9916_v26 = vsel %vm9863_vm7, %v14255_v10, %v2932_v38  ;;  %v3076_v49 = vshrl.u32 %v3058_v50, %v3074_v16  ;;  %v14268_v29 = vld [vmem:[#allocation56_spill] sm:$0xff]  ;;  %v1196_v50 = vpop.f32.mrf.mxu1 }
 0x30e   :  { %14265 = vst [vmem:[#allocation14_spill] sm:$0xff] %v9916_v26  ;;  %v3228_v61 = vsel %vm6423_vm10, 0, %v6422_v41  ;;  %v3515_v11 = vadd.s32 %v3513_v14, %v3507_v57  ;;  %v3517_v31 = vsel %vm3516_vm9, 1, %v14048_v60  ;;  %v3587_v36 = vand.u32 2139095040, %v9907_v48 }
 0x30f   :  { %v3493_v7 = vadd.s32 %v3491_v24, %v3485_v44  ;;  %v873_v8 = vadd.f32 %v872_v17, %v678_v30  ;;  %v9923_v54 = vmul.f32 %v9832_v40, %v14266_v22  ;;  %v2778_v46 = vsub.s32 4, %v14268_v29 }
 0x310   :  { %v3080_v2 = vshll.u32 %v3079_v45, 23  ;;  %v3495_v38 = vsel %vm3494_vm3, 1, %v14048_v60  ;;  %v3075_v41 = vshll.u32 %v9706_v1, %v9841_v27  ;;  %v3373_v16 = vadd.s32 536870912, %v9911_v4 }
 0x311   :  { %14267 = vst [vmem:[#allocation42_spill] sm:$0xff] %v9923_v54  ;;  %v3588_v42 = vshrl.u32 %v3587_v36, 23  ;;  %v1051_v57 = vadd.f32 %v1050_v37, %v873_v8  ;;  %v2791_v14 = vadd.f32 0.008332121, %v2790_v23  ;;  %v9932_v24 = vmul.f32 %v9916_v26, %v9916_v26  ;;  %v14271_v23 = vld [vmem:[#allocation61_spill] sm:$0xff] }
 0x312   :  { %v3233_v40 = vsub.s32 4294967266, %v3228_v61  ;;  %v3519_v30 = vadd.s32 %v3517_v31, %v3515_v11  ;;  %v3077_v17 = vor.u32 %v3076_v49, %v3075_v41  ;;  %v3497_v44 = vadd.s32 %v3495_v38, %v3493_v7 }
 0x313   :  { %14269 = vst [vmem:[#allocation56_spill] sm:$0xff] %v9932_v24  ;;  %v6430_v45 = vadd.s32 4294967169, %v3588_v42  ;;  %v9934_v22 = vadd.f32 %v1196_v50, %v1051_v57  ;;  %v2779_v1 = vsel %vm2656_vm11, %v2778_v46, %v14268_v29  ;;  %v3081_v27 = vor.u32 4788187, %v3080_v2 }
 0x314   :  { %v3229_v19 = vsub.s32 32, %v3228_v61  ;;  %v3509_v37 = vshrl.u32 %v9847_v63, 16  ;;  %v2933_v36 = vsub.s32 4, %v14271_v23  ;;  %v9941_v8 = vshrl.u32 %v3373_v16, 30 }
 0x315   :  { %14270 = vst [vmem:[#allocation65_spill] sm:$0xff] %v9934_v22  ;;  %v3487_v26 = vshrl.u32 %v9858_v35, 16  ;;  %v3594_v11 = vadd.s32 1, %v6430_v45  ;;  %v2792_v49 = vmul.f32 %v2791_v14, %v9883_v18  ;;  %v3213_v7 = vadd.s32 %v9637_v58, %v9623_v56 }
 0x316   :  { %v3234_v31 = vadd.s32 127, %v3233_v40  ;;  %v3520_v38 = vadd.s32 %v3519_v30, %v3509_v37  ;;  %v2945_v29 = vmul.f32 -0.00019511016, %v9932_v24  ;;  %v3084_v46 = vcvt.s32.f32 %v3077_v17  ;;  %v6504_v37 = vld [vmem:[%s13580_s0 + $0x58] sm:$0xff] }
 0x317   :  { %v3498_v2 = vadd.s32 %v3497_v44, %v3487_v26  ;;  %vm3595_vm11 = vcmp.gt.s32.totalorder %v3594_v11, 0  ;;  %v3082_v63 = vand.u32 2147483647, %v3081_v27  ;;  %v3231_v50 = vshrl.u32 %v3213_v7, %v3229_v19 }
 0x318   :  { %v3511_v41 = vshrl.u32 %v9879_v47, 16  ;;  %v3596_v16 = vsel %vm3595_vm11, %v3594_v11, 0  ;;  %v3230_v35 = vshll.u32 %v9758_v5, %v3228_v61  ;;  %v3375_v42 = vshll.u32 %v9941_v8, 30  ;;  %v6495_v11 = vld [vmem:[%s13580_s0 + $0x20] sm:$0xff] }
 0x319   :  { %v3489_v57 = vshrl.u32 %v9887_v3, 16  ;;  %v3598_v14 = vand.u32 31, %v3596_v16  ;;  %v3235_v56 = vshll.u32 %v3234_v31, 23  ;;  %v3445_v58 = vshrl.u32 %v14020_v34, %v9755_v53  ;;  %6260 = vrot.lane.b32.xlu2 %v6495_v11, %s6532_s26 }
 0x31a   :  { %v3466_v26 = vsel %vm3464_vm8, %v9797_v15, 2102212464  ;;  %v3521_v40 = vadd.s32 %v3520_v38, %v3511_v41  ;;  %v2781_v19 = vsel %vm9778_vm15, 0, %v2779_v1  ;;  %v2793_v30 = vadd.f32 -0.16666654, %v2792_v49 }
 0x31b   :  { %v9962_v5 = vsel %vm2811_vm1, %v2933_v36, %v14271_v23  ;;  %v9964_v3 = vadd.s32 %v3498_v2, %v3489_v57  ;;  %v2946_v61 = vadd.f32 0.008332121, %v2945_v29  ;;  %v3085_v17 = vmul.f32 %v3084_v46, %v3082_v63 }
 0x31c   :  { %v3232_v44 = vor.u32 %v3231_v50, %v3230_v35  ;;  %v3465_v53 = vsel %vm3461_vm13, %v3445_v58, %v9782_v59  ;;  %v9970_v15 = vsub.s32 %v9911_v4, %v3375_v42  ;;  %v3467_v20 = vsel %vm3463_vm14, %v9784_v62, %v3466_v26  ;;  %v6493_v4 = vld [vmem:[%s13580_s0 + $0x10] sm:$0xff] }
 0x31d   :  { %v14272_v45 = vshll.u32 %v9879_v47, 16  ;;  %v9980_v27 = vsub.s32 32, %v3598_v14  ;;  %v9984_v23 = vand.u32 3, %v9701_v13  ;;  %v3236_v59 = vor.u32 4788187, %v3235_v56  ;;  %6256 = vrot.lane.b32.xlu1 %v6493_v4, %s6532_s26  ;;  %v6494_v47 = vld [vmem:[%s13580_s0] sm:$0xff] }
 0x31e   :  { %v3525_v36 = vadd.s32 1, %v3521_v40  ;;  %6252 = vrot.lane.b32.xlu0 %v6494_v47, %s6532_s26  ;;  %v14274_v13 = vld [vmem:[#allocation31_spill] sm:$0xff]  ;;  %v2794_v49 = vmul.f32 %v2793_v30, %v9883_v18  ;;  %v2936_v7 = vsel %vm9863_vm7, 0, %v9962_v5  ;;  %v2947_v31 = vmul.f32 %v2946_v61, %v9932_v24 }
 0x31f   :  { %v9978_v1 = vadd.s32 %v9893_v25, %v14272_v45  ;;  %14273 = vst [vmem:[#allocation61_spill] sm:$0xff] %v9984_v23  ;;  %v2798_v25 = vadd.s32 3, %v2781_v19  ;;  %vm2966_vm15 = vcmp.lt.s32.totalorder %v14274_v13, 0  ;;  %v3468_v38 = vsel %vm3462_vm0, %v3465_v53, %v3467_v20 }
 0x320   :  { %v14275_v29 = vand.u32 2147483647, %v14274_v13  ;;  %v3086_v2 = vxor.u32 2147483648, %v3085_v17  ;;  %v3239_v63 = vcvt.s32.f32 %v3232_v44  ;;  %v3378_v50 = vsub.s32 0, %v9970_v15 }
 0x321   :  { %vm3524_vm2 = vc.u32 %v9964_v3, %v9978_v1  ;;  %v3611_v41 = vshrl.u32 %v14168_v32, %v9980_v27  ;;  %v3237_v43 = vand.u32 2147483647, %v3236_v59  ;;  %vm3377_vm8 = vcmp.lt.s32.totalorder %v9970_v15, 0  ;;  %v6496_v59 = vld [vmem:[%s13580_s0 + $0x18] sm:$0xff] }
 0x322   :  { %vm10011_vm13 = vcmp.le.f32.partialorder %v14275_v29, 0.7853982  ;;  %v3526_v35 = vsel %vm3524_vm2, %v3525_v36, %v3521_v40  ;;  %v3614_v0 = vshrl.u32 %v14171_v21, %v9980_v27  ;;  %v3522_v42 = vmul.u32 %v9807_v6, %v3468_v38  ;;  %v6497_v36 = vld [vmem:[%s13580_s0 + $0x8] sm:$0xff] }
 0x323   :  { %v13793_v57 = vand.u32 2147483647, %v9907_v48  ;;  %v3610_v56 = vshll.u32 %v14170_v12, %v3598_v14  ;;  %v3613_v58 = vshll.u32 %v14168_v32, %v3598_v14  ;;  %v10025_v26 = vshrl.u32 %v3596_v16, 5 }
 0x324   :  { %v3602_v19 = vshrl.u32 %v14016_v28, %v9980_v27  ;;  %v3605_v30 = vshrl.u32 %v14216_v52, %v9980_v27  ;;  %v3608_v40 = vshrl.u32 %v14170_v12, %v9980_v27  ;;  %v3379_v5 = vsel %vm3377_vm8, %v3378_v50, %v9970_v15 }
 0x325   :  { %v10034_v6 = vadd.s32 %v3526_v35, %v3522_v42  ;;  %v3612_v61 = vor.u32 %v3611_v41, %v3610_v56  ;;  %v3615_v44 = vor.u32 %v3614_v0, %v3613_v58  ;;  %v2795_v53 = vadd.f32 1.0, %v2794_v49  ;;  %6258 = vrot.lane.b32.xlu1 %v6496_v59, %s6532_s26  ;;  %v6498_v49 = vld [vmem:[%s13580_s0 + $0x28] sm:$0xff]  ;;  %v6499_v59 = vld [vmem:[%s13580_s0 + $0x38] sm:$0xff] }
 0x326   :  { %v3601_v20 = vshll.u32 %v14020_v34, %v3598_v14  ;;  %v3604_v16 = vshll.u32 %v14016_v28, %v3598_v14  ;;  %v3607_v45 = vshll.u32 %v14216_v52, %v3598_v14  ;;  %6254 = vrot.lane.b32.xlu0 %v6497_v36, %s6532_s26  ;;  %v3087_v4 = vsel %vm2966_vm15, %v3086_v2, %v3085_v17 }
 0x327   :  { %v3240_v47 = vmul.f32 %v3239_v63, %v3237_v43  ;;  %v3591_v11 = vand.u32 8388607, %v13793_v57  ;;  %v3742_v14 = vand.u32 2139095040, %v9934_v22  ;;  %6262 = vrot.lane.b32.xlu2 %v6498_v49, %s6532_s26  ;;  %vm3619_vm4 = vcmp.lt.s32.totalorder %v10025_v26, 4 }
 0x328   :  { %v10056_v38 = vor.u32 %v3602_v19, %v3601_v20  ;;  %v10058_v29 = vor.u32 %v3605_v30, %v3604_v16  ;;  %v10060_v50 = vor.u32 %v3608_v40, %v3607_v45  ;;  %v3380_v17 = vclz %v3379_v5 }
 0x329   :  { %v3528_v2 = vadd.s32 536870912, %v10034_v6  ;;  %v3625_v63 = vsel %vm3619_vm4, %v3612_v61, 920167782  ;;  %v3629_v41 = vsel %vm3619_vm4, %v3615_v44, 1326507024  ;;  %v10068_v43 = vand.u32 3, %v2798_v25 }
 0x32a   :  { %v2948_v35 = vadd.f32 -0.16666654, %v2947_v31  ;;  %v2953_v0 = vadd.s32 3, %v2936_v7  ;;  %v10073_v42 = vsel %vm10011_vm13, %v14274_v13, %v3087_v4  ;;  %v3592_v56 = vor.u32 8388608, %v3591_v11  ;;  %v6501_v11 = vld [vmem:[%s13580_s0 + $0x40] sm:$0xff] }
 0x32b   :  { %14278 = vst [vmem:[#allocation66_spill] sm:$0xff] %v10068_v43  ;;  %vm3616_vm14 = vcmp.lt.s32.totalorder %v10025_v26, 1  ;;  %vm3618_vm0 = vcmp.lt.s32.totalorder %v10025_v26, 3  ;;  %v3743_v58 = vshrl.u32 %v3742_v14, 23  ;;  %v10091_v30 = vmul.f32 %v2795_v53, %v9838_v55  ;;  %v6500_v55 = vld [vmem:[%s13580_s0 + $0x30] sm:$0xff]  ;;  %v14282_v14 = vld [vmem:[#allocation27_spill] sm:$0xff] }
 0x32c   :  { %v3624_v19 = vsel %vm3616_vm14, %v10056_v38, %v10058_v29  ;;  %v3626_v25 = vsel %vm3618_vm0, %v10060_v50, %v3625_v63  ;;  %v3628_v7 = vsel %vm3616_vm14, %v10058_v29, %v10060_v50  ;;  %v3630_v31 = vsel %vm3618_vm0, %v3612_v61, %v3629_v41 }
 0x32d   :  { %14279 = vst [vmem:[#allocation67_spill] sm:$0xff] %v10091_v30  ;;  %v3241_v40 = vxor.u32 2147483648, %v3240_v47  ;;  %v6425_v5 = vadd.s32 4294967294, %v3380_v17  ;;  %v10093_v44 = vshrl.u32 %v3528_v2, 30  ;;  %v2949_v20 = vmul.f32 %v2948_v35, %v9932_v24  ;;  %6266 = vrot.lane.b32.xlu1 %v6499_v59, %s6532_s26 }
 0x32e   :  { %v3088_v16 = vsub.s32 4, %v9651_v9  ;;  %v3243_v45 = vsub.s32 4, %v9725_v39  ;;  %vm3617_vm1 = vcmp.lt.s32.totalorder %v10025_v26, 2  ;;  %6264 = vrot.lane.b32.xlu0 %v6500_v55, %s6532_s26  ;;  %v10109_v61 = vmul.f32 %v10073_v42, %v10073_v42 }
 0x32f   :  { %14280 = vst [vmem:[#allocation68_spill] sm:$0xff] %v10093_v44  ;;  %v10113_v53 = vsel %vm3617_vm1, %v3624_v19, %v3626_v25  ;;  %v10117_v36 = vsel %vm3617_vm1, %v3628_v7, %v3630_v31  ;;  %v6433_v4 = vadd.s32 4294967169, %v3743_v58  ;;  %6268 = vrot.lane.b32.xlu2 %v6501_v11, %s6532_s26  ;;  %v14283_v49 = vand.u32 2147483647, %v14282_v14 }
 0x330   :  { %14281 = vst [vmem:[#allocation69_spill] sm:$0xff] %v10109_v61  ;;  %vm3121_vm6 = vcmp.lt.s32.totalorder %v14282_v14, 0  ;;  %v10130_v2 = vshll.u32 %v3592_v56, 8  ;;  %v13792_v63 = vand.u32 2147483647, %v9934_v22  ;;  %v10133_v41 = vand.u32 3, %v2953_v0 }
 0x331   :  { %vm10125_vm7 = vcmp.le.f32.partialorder %v14283_v49, 0.7853982  ;;  %v3242_v35 = vsel %vm3121_vm6, %v3241_v40, %v3240_v47  ;;  %vm6426_vm5 = vcmp.lt.s32.totalorder %v6425_v5, 0  ;;  %v3530_v58 = vshll.u32 %v10093_v44, 30  ;;  %v6505_v22 = vld [vmem:[%s13580_s0 + $0x68] sm:$0xff] }
 0x332   :  { %14286 = vst [vmem:[#allocation70_spill] sm:$0xff] %v10133_v41  ;;  %v10140_v25 = vsel %vm2966_vm15, %v3088_v16, %v9651_v9  ;;  %v13794_v7 = vshrl.u32 %v10117_v36, 16  ;;  %v3658_v56 = vshrl.u32 %v10113_v53, 16  ;;  %v10144_v31 = vadd.f32 1.0, %v2949_v20 }
 0x333   :  { %v3100_v0 = vmul.f32 -0.00019511016, %v10109_v61  ;;  %v10148_v47 = vsel %vm3121_vm6, %v3243_v45, %v9725_v39  ;;  %v3749_v40 = vadd.s32 1, %v6433_v4  ;;  %v10153_v59 = vsel %vm10125_vm7, %v14282_v14, %v3242_v35  ;;  %v682_v4 = vpop.f32.mrf.mxu2 }
 0x334   :  { %v10155_v55 = vsel %vm6426_vm5, 0, %v6425_v5  ;;  %v3633_v9 = vand.u32 65535, %v10130_v2  ;;  %v10160_v16 = vand.u32 8388607, %v13792_v63  ;;  %v10166_v39 = vsub.s32 %v10034_v6, %v3530_v58  ;;  %v6502_v6 = vld [vmem:[%s13580_s0 + $0x50] sm:$0xff] }
 0x335   :  { %v3657_v45 = vand.u32 65535, %v10113_v53  ;;  %vm3750_vm12 = vcmp.gt.s32.totalorder %v3749_v40, 0  ;;  %6272 = vrot.lane.b32.xlu1 %v6502_v6, %s6532_s26  ;;  %v6503_v53 = vld [vmem:[%s13580_s0 + $0x48] sm:$0xff]  ;;  %v10186_v58 = vadd.f32 0.008332121, %v3100_v0  ;;  %v10190_v19 = vmul.f32 %v10153_v59, %v10153_v59 }
 0x336   :  { %v10174_v11 = vmul.u32 %v13794_v7, %v3633_v9  ;;  %v10176_v49 = vmul.u32 %v3658_v56, %v3633_v9  ;;  %v3751_v35 = vsel %vm3750_vm12, %v3749_v40, 0  ;;  %6270 = vrot.lane.b32.xlu0 %v6503_v53, %s6532_s26  ;;  %v3634_v63 = vshrl.u32 %v10130_v2, 16  ;;  %v14288_v53 = vld [vmem:[#allocation15_spill] sm:$0xff] }
 0x337   :  { %14287 = vst [vmem:[#allocation71_spill] sm:$0xff] %v10190_v19  ;;  %v3753_v62 = vand.u32 31, %v3751_v35  ;;  %6274 = vrot.lane.b32.xlu2 %v6504_v37, %s6532_s26  ;;  %v3747_v0 = vor.u32 8388608, %v10160_v16  ;;  %v10201_v57 = vadd.f32 %v682_v4, %v14288_v53  ;;  %v3635_v40 = vand.u32 65535, %v10117_v36 }
 0x338   :  { %v3659_v20 = vmul.u32 %v3657_v45, %v3633_v9  ;;  %v3641_v14 = vshll.u32 %v10174_v11, 16  ;;  %v10208_v30 = vmul.u32 %v3657_v45, %v3634_v63  ;;  %v3663_v37 = vshll.u32 %v10176_v49, 16 }
 0x339   :  { %v10205_v7 = vsub.s32 32, %v3753_v62  ;;  %v10211_v6 = vshrl.u32 %v3751_v35, 5  ;;  %v3756_v16 = vshll.u32 %v14020_v34, %v3753_v62  ;;  %v3759_v53 = vshll.u32 %v14016_v28, %v3753_v62 }
 0x33a   :  { %v3762_v43 = vshll.u32 %v14216_v52, %v3753_v62  ;;  %v3765_v13 = vshll.u32 %v14170_v12, %v3753_v62  ;;  %v3637_v33 = vmul.u32 %v3635_v40, %v3633_v9  ;;  %v3662_v54 = vmul.u32 %v3658_v56, %v3634_v63 }
 0x33b   :  { %v3757_v4 = vshrl.u32 %v14016_v28, %v10205_v7  ;;  %v3760_v5 = vshrl.u32 %v14216_v52, %v10205_v7  ;;  %v3763_v45 = vshrl.u32 %v14170_v12, %v10205_v7  ;;  %v3766_v35 = vshrl.u32 %v14168_v32, %v10205_v7 }
 0x33c   :  { %v10229_v10 = vmul.u32 %v3635_v40, %v3634_v63  ;;  %vm10231_vm10 = vc.u32 %v3659_v20, %v3663_v37  ;;  %v13814_v56 = vshll.u32 %v10208_v30, 16  ;;  %v10242_v9 = vadd.s32 %v3663_v37, %v3659_v20 }
 0x33d   :  { %v10225_v41 = vor.u32 %v3757_v4, %v3756_v16  ;;  %v10227_v23 = vor.u32 %v3760_v5, %v3759_v53  ;;  %v10235_v51 = vor.u32 %v3763_v45, %v3762_v43  ;;  %v3767_v24 = vor.u32 %v3766_v35, %v3765_v13  ;;  %6278 = vrot.lane.b32.xlu1 %v6505_v22, %s6532_s26  ;;  %v6506_v43 = vld [vmem:[%s13580_s0 + $0x60] sm:$0xff]  ;;  %v6507_v13 = vld [vmem:[%s13580_s0 + $0x70] sm:$0xff] }
 0x33e   :  { %v3768_v5 = vshll.u32 %v14168_v32, %v3753_v62  ;;  %v3769_v40 = vshrl.u32 %v14171_v21, %v10205_v7  ;;  %6276 = vrot.lane.b32.xlu0 %v6506_v43, %s6532_s26  ;;  %vm10255_vm9 = vc.u32 %v3637_v33, %v3641_v14  ;;  %v3647_v62 = vadd.s32 %v3641_v14, %v3637_v33 }
 0x33f   :  { %6280 = vrot.lane.b32.xlu2 %v6507_v13, %s6532_s26  ;;  %vm3771_vm3 = vcmp.lt.s32.totalorder %v10211_v6, 1  ;;  %vm3774_vm11 = vcmp.lt.s32.totalorder %v10211_v6, 4  ;;  %vm3773_vm15 = vcmp.lt.s32.totalorder %v10211_v6, 3  ;;  %v3643_v4 = vshll.u32 %v10229_v10, 16 }
 0x340   :  { %v3770_v20 = vor.u32 %v3769_v40, %v3768_v5  ;;  %v3779_v37 = vsel %vm3771_vm3, %v10225_v41, %v10227_v23  ;;  %v3780_v16 = vsel %vm3774_vm11, %v3767_v24, 920167782  ;;  %v3668_v33 = vsel %vm10231_vm10, 1, %v14048_v60 }
 0x341   :  { %vm3772_vm2 = vcmp.lt.s32.totalorder %v10211_v6, 2  ;;  %v3781_v14 = vsel %vm3773_vm15, %v10235_v51, %v3780_v16  ;;  %vm3671_vm8 = vc.u32 %v10242_v9, %v13814_v56  ;;  %v3783_v18 = vsel %vm3771_vm3, %v10227_v23, %v10235_v51 }
 0x342   :  { %v10281_v53 = vsel %vm3772_vm2, %v3779_v37, %v3781_v14  ;;  %v3784_v45 = vsel %vm3774_vm11, %v3770_v20, 1326507024  ;;  %vm3532_vm6 = vcmp.lt.s32.totalorder %v10166_v39, 0  ;;  %v3646_v35 = vsel %vm10255_vm9, 1, %v14048_v60  ;;  %v878_v14 = vpop.f32.mrf.mxu3  ;;  %v1054_v37 = vpop.f32.mrf.mxu0 }
 0x343   :  { %v3785_v5 = vsel %vm3773_vm15, %v3767_v24, %v3784_v45  ;;  %v10295_v40 = vshll.u32 %v3747_v0, 8  ;;  %v14293_v43 = vshrl.u32 %v10117_v36, 16  ;;  %vm10299_vm5 = vc.u32 %v3647_v62, %v3643_v4  ;;  %v14298_v62 = vld [vmem:[#allocation59_spill] sm:$0xff] }
 0x344   :  { %v3670_v16 = vadd.s32 %v3668_v33, %v3662_v54  ;;  %v10305_v20 = vsel %vm3772_vm2, %v3783_v18, %v3785_v5  ;;  %v3102_v22 = vmul.f32 %v10186_v58, %v10109_v61  ;;  %v14296_v24 = vsub.s32 4294967266, %v10155_v55  ;;  %v14297_v54 = vld [vmem:[#allocation58_spill] sm:$0xff] }
 0x345   :  { %v3640_v13 = vmul.u32 %v14293_v43, %v3634_v63  ;;  %v3672_v45 = vsel %vm3671_vm8, 1, %v14048_v60  ;;  %v6508_v63 = vld [vmem:[%s13580_s0 + $0x80] sm:$0xff]  ;;  %v3368_v4 = vadd.s32 %v14298_v62, %v14297_v54  ;;  %v14299_v33 = vsub.s32 0, %v10166_v39  ;;  %v6509_v43 = vld [vmem:[%s13580_s0 + $0x78] sm:$0xff] }
 0x346   :  { %v3389_v0 = vadd.s32 127, %v14296_v24  ;;  %6284 = vrot.lane.b32.xlu1 %v6508_v63, %s6532_s26  ;;  %6282 = vrot.lane.b32.xlu0 %v6509_v43, %s6532_s26  ;;  %v6510_v24 = vld [vmem:[%s13580_s0 + $0x88] sm:$0xff]  ;;  %v3255_v63 = vmul.f32 -0.00019511016, %v10190_v19  ;;  %v879_v54 = vadd.f32 %v878_v14, %v10201_v57  ;;  %v14300_v62 = vld [vmem:[#allocation14_spill] sm:$0xff]  ;;  %v14302_v43 = vsel %vm10011_vm13, 0, %v10140_v25 }
 0x347   :  { %v3534_v58 = vsel %vm3532_vm6, %v14299_v33, %v10166_v39  ;;  %v3648_v18 = vadd.s32 %v3646_v35, %v3640_v13  ;;  %6286 = vrot.lane.b32.xlu2 %v6510_v24, %s6532_s26  ;;  %v3650_v35 = vsel %vm10299_vm5, 1, %v14048_v60  ;;  %v3788_v13 = vand.u32 65535, %v10295_v40 }
 0x348   :  { %v10341_v33 = vmul.f32 %v10144_v31, %v14300_v62  ;;  %v10347_v56 = vadd.s32 3, %v14302_v43  ;;  %v14303_v24 = vsub.s32 32, %v10155_v55  ;;  %v3674_v36 = vadd.s32 %v3672_v45, %v3670_v16 }
 0x349   :  { %v14304_v48 = vsel %vm10125_vm7, 0, %v10148_v47  ;;  %v3390_v14 = vshll.u32 %v3389_v0, 23  ;;  %v3535_v31 = vclz %v3534_v58  ;;  %v14305_v62 = vshrl.u32 %v10281_v53, 16 }
 0x34a   :  { %14301 = vst [vmem:[#allocation15_spill] sm:$0xff] %v10341_v33  ;;  %v3386_v5 = vshrl.u32 %v3368_v4, %v14303_v24  ;;  %v10355_v57 = vadd.s32 3, %v14304_v48  ;;  %v3385_v25 = vshll.u32 %v9970_v15, %v10155_v55  ;;  %v3652_v43 = vadd.s32 %v3650_v35, %v3648_v18  ;;  %v1200_v55 = vpop.f32.mrf.mxu1 }
 0x34b   :  { %v10359_v46 = vmul.u32 %v14305_v62, %v3788_v13  ;;  %v3664_v4 = vshrl.u32 %v10176_v49, 16  ;;  %v14306_v16 = vshrl.u32 %v10305_v20, 16  ;;  %v10368_v17 = vadd.f32 -0.16666654, %v3102_v22 }
 0x34c   :  { %v10370_v48 = vadd.f32 0.008332121, %v3255_v63  ;;  %v3812_v47 = vand.u32 65535, %v10281_v53  ;;  %v1055_v0 = vadd.f32 %v1054_v37, %v879_v54  ;;  %v10373_v58 = vor.u32 %v3386_v5, %v3385_v25  ;;  %v6511_v63 = vld [vmem:[%s13580_s0 + $0x98] sm:$0xff]  ;;  %v6512_v37 = vld [vmem:[%s13580_s0 + $0x90] sm:$0xff] }
 0x34d   :  { %v10366_v45 = vmul.u32 %v14306_v16, %v3788_v13  ;;  %v3642_v24 = vshrl.u32 %v10174_v11, 16  ;;  %v3675_v62 = vadd.s32 %v3674_v36, %v3664_v4  ;;  %v3790_v15 = vand.u32 65535, %v10305_v20 }
 0x34e   :  { %v10377_v49 = vor.u32 4788187, %v3390_v14  ;;  %v6428_v18 = vadd.s32 4294967294, %v3535_v31  ;;  %v3789_v35 = vshrl.u32 %v10295_v40, 16  ;;  %v3818_v22 = vshll.u32 %v10359_v46, 16  ;;  %6290 = vrot.lane.b32.xlu1 %v6511_v63, %s6532_s26  ;;  %6288 = vrot.lane.b32.xlu0 %v6512_v37, %s6532_s26  ;;  %v6513_v14 = vld [vmem:[%s13580_s0 + $0xa0] sm:$0xff]  ;;  %v687_v37 = vpop.f32.mrf.mxu2 }
 0x34f   :  { %v3621_v11 = vsel %vm3619_vm4, %v10060_v50, 2102212464  ;;  %v3653_v36 = vadd.s32 %v3652_v43, %v3642_v24  ;;  %v3666_v5 = vshrl.u32 %v10208_v30, 16  ;;  %v3796_v54 = vshll.u32 %v10366_v45, 16  ;;  %6292 = vrot.lane.b32.xlu2 %v6513_v14, %s6532_s26 }
 0x350   :  { %v3600_v50 = vshrl.u32 %v14020_v34, %v9980_v27  ;;  %v3814_v31 = vmul.u32 %v3812_v47, %v3788_v13  ;;  %v10400_v25 = vmul.u32 %v3812_v47, %v3789_v35  ;;  %v10402_v43 = vadd.f32 %v1200_v55, %v1055_v0 }
 0x351   :  { %v3644_v4 = vshrl.u32 %v10229_v10, 16  ;;  %v3676_v16 = vadd.s32 %v3675_v62, %v3666_v5  ;;  %v3792_v24 = vmul.u32 %v3790_v15, %v3788_v13  ;;  %v10405_v63 = vmul.u32 %v3790_v15, %v3789_v35  ;;  %v884_v13 = vpop.f32.mrf.mxu3  ;;  %v14309_v5 = vld [vmem:[#allocation16_spill] sm:$0xff] }
 0x352   :  { %14307 = vst [vmem:[#allocation58_spill] sm:$0xff] %v10402_v43  ;;  %v3620_v44 = vsel %vm3616_vm14, %v3600_v50, %v10056_v38  ;;  %v3622_v27 = vsel %vm3618_vm0, %v10058_v29, %v3621_v11  ;;  %vm3822_vm13 = vc.u32 %v3814_v31, %v3818_v22  ;;  %v10413_v47 = vadd.s32 %v3818_v22, %v3814_v31  ;;  %v1058_v50 = vpop.f32.mrf.mxu0 }
 0x353   :  { %vm6429_vm4 = vcmp.lt.s32.totalorder %v6428_v18, 0  ;;  %v10415_v0 = vadd.s32 %v3653_v36, %v3644_v4  ;;  %vm3800_vm7 = vc.u32 %v3792_v24, %v3796_v54  ;;  %v3802_v10 = vadd.s32 %v3796_v54, %v3792_v24  ;;  %v6514_v24 = vld [vmem:[%s13580_s0 + $0xb0] sm:$0xff] }
 0x354   :  { %v14308_v62 = vshll.u32 %v10208_v30, 16  ;;  %v3820_v38 = vshll.u32 %v10400_v25, 16  ;;  %v3897_v55 = vand.u32 2139095040, %v10402_v43  ;;  %v688_v29 = vadd.f32 %v687_v37, %v14309_v5  ;;  %v1204_v5 = vpop.f32.mrf.mxu1 }
 0x355   :  { %v3680_v11 = vadd.s32 1, %v3676_v16  ;;  %v3798_v22 = vshll.u32 %v10405_v63, 16  ;;  %v14310_v36 = vshrl.u32 %v10281_v53, 16  ;;  %v3823_v54 = vsel %vm3822_vm13, 1, %v14048_v60 }
 0x356   :  { %v10420_v15 = vadd.s32 %v10242_v9, %v14308_v62  ;;  %v3801_v30 = vsel %vm3800_vm7, 1, %v14048_v60  ;;  %vm10433_vm14 = vc.u32 %v10413_v47, %v3820_v38  ;;  %v3898_v31 = vshrl.u32 %v3897_v55, 23  ;;  %6296 = vrot.lane.b32.xlu1 %v6514_v24, %s6532_s26  ;;  %v6516_v55 = vld [vmem:[%s13580_s0 + $0xb8] sm:$0xff] }
 0x357   :  { %v3817_v14 = vmul.u32 %v14310_v36, %v3789_v35  ;;  %v885_v4 = vadd.f32 %v884_v13, %v688_v29  ;;  %v3392_v53 = vand.u32 2147483647, %v10377_v49  ;;  %v14313_v37 = vshrl.u32 %v10305_v20, 16  ;;  %v6515_v13 = vld [vmem:[%s13580_s0 + $0xa8] sm:$0xff]  ;;  %6298 = vrot.lane.b32.xlu2 %v6516_v55, %s6532_s26  ;;  %v6519_v55 = vld [vmem:[%s13580_s0 + $0xd0] sm:$0xff] }
 0x358   :  { %vm3679_vm0 = vc.u32 %v10415_v0, %v10420_v15  ;;  %vm3804_vm12 = vc.u32 %v3802_v10, %v3798_v22  ;;  %6294 = vrot.lane.b32.xlu0 %v6515_v13, %s6532_s26  ;;  %v3623_v49 = vsel %vm3617_vm1, %v3620_v44, %v3622_v27  ;;  %v6436_v20 = vadd.s32 4294967169, %v3898_v31  ;;  %v6518_v13 = vld [vmem:[%s13580_s0 + $0xc0] sm:$0xff] }
 0x359   :  { %v3795_v62 = vmul.u32 %v14313_v37, %v3789_v35  ;;  %v3825_v29 = vadd.s32 %v3823_v54, %v3817_v14  ;;  %v1059_v35 = vadd.f32 %v1058_v50, %v885_v4  ;;  %v3394_v10 = vcvt.s32.f32 %v10373_v58 }
 0x35a   :  { %v10458_v22 = vsel %vm6429_vm4, 0, %v6428_v18  ;;  %v3827_v24 = vsel %vm10433_vm14, 1, %v14048_v60  ;;  %v3681_v37 = vsel %vm3679_vm0, %v3680_v11, %v3676_v16  ;;  %v3805_v26 = vsel %vm3804_vm12, 1, %v14048_v60 }
 0x35b   :  { %v3803_v36 = vadd.s32 %v3801_v30, %v3795_v62  ;;  %v3904_v44 = vadd.s32 1, %v6436_v20  ;;  %v10467_v27 = vadd.f32 %v1204_v5, %v1059_v35  ;;  %v10471_v58 = vand.u32 3, %v10347_v56 }
 0x35c   :  { %v3257_v18 = vmul.f32 %v10370_v48, %v10190_v19  ;;  %v3677_v54 = vmul.u32 %v10130_v2, %v3623_v49  ;;  %v10477_v50 = vand.u32 3, %v10355_v57  ;;  %v10479_v30 = vmul.f32 %v3394_v10, %v3392_v53  ;;  %v6517_v53 = vld [vmem:[%s13580_s0 + $0xc8] sm:$0xff] }
 0x35d   :  { %14314 = vst [vmem:[#allocation59_spill] sm:$0xff] %v10467_v27  ;;  %v3829_v16 = vadd.s32 %v3827_v24, %v3825_v29  ;;  %vm3905_vm1 = vcmp.gt.s32.totalorder %v3904_v44, 0  ;;  %v3543_v11 = vsub.s32 4294967266, %v10458_v22  ;;  %v3807_v31 = vadd.s32 %v3805_v26, %v3803_v36 }
 0x35e   :  { %14315 = vst [vmem:[#allocation14_spill] sm:$0xff] %v10471_v58  ;;  %v10482_v9 = vadd.s32 %v3681_v37, %v3677_v54  ;;  %v3906_v4 = vsel %vm3905_vm1, %v3904_v44, 0  ;;  %v10486_v56 = vmul.f32 %v10368_v17, %v10109_v61  ;;  %v3819_v48 = vshrl.u32 %v10359_v46, 16  ;;  %6302 = vrot.lane.b32.xlu1 %v6517_v53, %s6532_s26  ;;  %v14317_v37 = vld [vmem:[#allocation33_spill] sm:$0xff] }
 0x35f   :  { %14316 = vst [vmem:[#allocation16_spill] sm:$0xff] %v10477_v50  ;;  %v13819_v2 = vand.u32 2147483647, %v10402_v43  ;;  %v3908_v57 = vand.u32 31, %v3906_v4  ;;  %v10494_v62 = vadd.f32 -0.16666654, %v3257_v18  ;;  %v3755_v5 = vshrl.u32 %v14020_v34, %v10205_v7  ;;  %6304 = vrot.lane.b32.xlu2 %v6519_v55, %s6532_s26 }
 0x360   :  { %v3776_v17 = vsel %vm3774_vm11, %v10235_v51, 2102212464  ;;  %v3797_v46 = vshrl.u32 %v10366_v45, 16  ;;  %6300 = vrot.lane.b32.xlu0 %v6518_v13, %s6532_s26  ;;  %v3396_v7 = vxor.u32 2147483648, %v10479_v30  ;;  %v3523_v49 = vadd.s32 %v9978_v1, %v9964_v3  ;;  %v6520_v55 = vld [vmem:[%s13580_s0 + $0xe0] sm:$0xff] }
 0x361   :  { %v3830_v51 = vadd.s32 %v3829_v16, %v3819_v48  ;;  %v10513_v29 = vsub.s32 32, %v3908_v57  ;;  %v3544_v45 = vadd.s32 127, %v3543_v11  ;;  %v3683_v20 = vadd.s32 536870912, %v10482_v9 }
 0x362   :  { %v3775_v35 = vsel %vm3771_vm3, %v3755_v5, %v10225_v41  ;;  %v3808_v10 = vadd.s32 %v3807_v31, %v3797_v46  ;;  %v3777_v36 = vsel %vm3773_vm15, %v10227_v23, %v3776_v17  ;;  %v3821_v24 = vshrl.u32 %v10400_v25, 16 }
 0x363   :  { %v3901_v3 = vand.u32 8388607, %v13819_v2  ;;  %v3912_v1 = vshrl.u32 %v14016_v28, %v10513_v29  ;;  %vm3276_vm10 = vcmp.lt.s32.totalorder %v14317_v37, 0  ;;  %v3799_v26 = vshrl.u32 %v10405_v63, 16 }
 0x364   :  { %v3915_v41 = vshrl.u32 %v14216_v52, %v10513_v29  ;;  %v3918_v44 = vshrl.u32 %v14170_v12, %v10513_v29  ;;  %v3921_v23 = vshrl.u32 %v14168_v32, %v10513_v29  ;;  %v3831_v18 = vadd.s32 %v3830_v51, %v3821_v24  ;;  %v6521_v51 = vld [vmem:[%s13580_s0 + $0xd8] sm:$0xff] }
 0x365   :  { %v3911_v54 = vshll.u32 %v14020_v34, %v3908_v57  ;;  %v3914_v16 = vshll.u32 %v14016_v28, %v3908_v57  ;;  %v3920_v11 = vshll.u32 %v14170_v12, %v3908_v57  ;;  %v10538_v31 = vadd.s32 %v3808_v10, %v3799_v26  ;;  %v6522_v10 = vld [vmem:[%s13580_s0 + $0xe8] sm:$0xff] }
 0x366   :  { %v10543_v63 = vadd.s32 %v10413_v47, %v3820_v38  ;;  %v10545_v48 = vshrl.u32 %v3906_v4, 5  ;;  %v3917_v53 = vshll.u32 %v14216_v52, %v3908_v57  ;;  %v3902_v5 = vor.u32 8388608, %v3901_v3  ;;  %6308 = vrot.lane.b32.xlu1 %v6520_v55, %s6532_s26 }
 0x367   :  { %v10548_v17 = vor.u32 %v3912_v1, %v3911_v54  ;;  %v10550_v46 = vor.u32 %v3915_v41, %v3914_v16  ;;  %v3922_v13 = vor.u32 %v3921_v23, %v3920_v11  ;;  %v10556_v25 = vshrl.u32 %v3683_v20, 30  ;;  %6310 = vrot.lane.b32.xlu2 %v6522_v10, %s6532_s26 }
 0x368   :  { %v10558_v47 = vor.u32 %v3918_v44, %v3917_v53  ;;  %v3923_v38 = vshll.u32 %v14168_v32, %v3908_v57  ;;  %v3924_v4 = vshrl.u32 %v14171_v21, %v10513_v29  ;;  %6306 = vrot.lane.b32.xlu0 %v6521_v51, %s6532_s26  ;;  %v14318_v20 = vand.u32 2147483647, %v14317_v37 }
 0x369   :  { %v3539_v57 = vsub.s32 32, %v10458_v22  ;;  %v3545_v3 = vshll.u32 %v3544_v45, 23  ;;  %v3778_v1 = vsel %vm3772_vm2, %v3775_v35, %v3777_v36  ;;  %v3835_v26 = vadd.s32 1, %v3831_v18 }
 0x36a   :  { %vm10573_vm9 = vcmp.le.f32.partialorder %v14318_v20, 0.7853982  ;;  %vm3834_vm3 = vc.u32 %v10538_v31, %v10543_v63  ;;  %v3925_v41 = vor.u32 %v3924_v4, %v3923_v38  ;;  %vm3926_vm11 = vcmp.lt.s32.totalorder %v10545_v48, 1 }
 0x36b   :  { %vm3929_vm15 = vcmp.lt.s32.totalorder %v10545_v48, 4  ;;  %vm3928_vm8 = vcmp.lt.s32.totalorder %v10545_v48, 3  ;;  %v3934_v44 = vsel %vm3926_vm11, %v10548_v17, %v10550_v46  ;;  %v10591_v45 = vshll.u32 %v3902_v5, 8 }
 0x36c   :  { %v3935_v6 = vsel %vm3929_vm15, %v3922_v13, 920167782  ;;  %v3685_v35 = vshll.u32 %v10556_v25, 30  ;;  %vm3927_vm2 = vcmp.lt.s32.totalorder %v10545_v48, 2  ;;  %v3938_v23 = vsel %vm3926_vm11, %v10550_v46, %v10558_v47 }
 0x36d   :  { %v3936_v36 = vsel %vm3928_vm8, %v10558_v47, %v3935_v6  ;;  %v3397_v54 = vsel %vm3276_vm10, %v3396_v7, %v10479_v30  ;;  %v3836_v16 = vsel %vm3834_vm3, %v3835_v26, %v3831_v18  ;;  %v3939_v53 = vsel %vm3929_vm15, %v3925_v41, 1326507024  ;;  %v6523_v18 = vld [vmem:[%s13580_s0 + $0xf8] sm:$0xff] }
 0x36e   :  { %v3937_v11 = vsel %vm3927_vm2, %v3934_v44, %v3936_v36  ;;  %v3541_v5 = vshrl.u32 %v3523_v49, %v3539_v57  ;;  %v3546_v55 = vor.u32 4788187, %v3545_v3  ;;  %v3832_v38 = vmul.u32 %v10295_v40, %v3778_v1  ;;  %6314 = vrot.lane.b32.xlu1 %v6523_v18, %s6532_s26  ;;  %v6524_v57 = vld [vmem:[%s13580_s0 + $0xf0] sm:$0xff] }
 0x36f   :  { %v3940_v4 = vsel %vm3928_vm8, %v3922_v13, %v3939_v53  ;;  %v3943_v10 = vand.u32 65535, %v10591_v45  ;;  %v3968_v30 = vshrl.u32 %v3937_v11, 16  ;;  %v4052_v7 = vand.u32 2139095040, %v10467_v27 }
 0x370   :  { %v3941_v51 = vsel %vm3927_vm2, %v3938_v23, %v3940_v4  ;;  %v3540_v40 = vshll.u32 %v10166_v39, %v10458_v22  ;;  %v10623_v49 = vsub.s32 %v10482_v9, %v3685_v35  ;;  %v10625_v13 = vadd.s32 %v3836_v16, %v3832_v38  ;;  %6312 = vrot.lane.b32.xlu0 %v6524_v57, %s6532_s26 }
 0x371   :  { %v3967_v20 = vand.u32 65535, %v3937_v11  ;;  %v3105_v3 = vadd.f32 1.0, %v10486_v56  ;;  %v3945_v1 = vand.u32 65535, %v3941_v51  ;;  %v3946_v26 = vshrl.u32 %v3941_v51, 16 }
 0x372   :  { %v10632_v41 = vmul.u32 %v3968_v30, %v3943_v10  ;;  %v3259_v39 = vmul.f32 %v10494_v62, %v10190_v19  ;;  %v3398_v22 = vsub.s32 4, %v9941_v8  ;;  %v10640_v9 = vsel %vm10573_vm9, %v14317_v37, %v3397_v54  ;;  %v890_v37 = vpop.f32.mrf.mxu3 }
 0x373   :  { %v3542_v44 = vor.u32 %v3541_v5, %v3540_v40  ;;  %v3547_v6 = vand.u32 2147483647, %v3546_v55  ;;  %v3944_v35 = vshrl.u32 %v10591_v45, 16  ;;  %v10643_v36 = vmul.u32 %v3946_v26, %v3943_v10 }
 0x374   :  { %v4053_v56 = vshrl.u32 %v4052_v7, 23  ;;  %v3688_v23 = vsub.s32 0, %v10623_v49  ;;  %v3838_v16 = vadd.s32 536870912, %v10625_v13  ;;  %v3969_v11 = vmul.u32 %v3967_v20, %v3943_v10  ;;  %v14322_v7 = vld [vmem:[#allocation64_spill] sm:$0xff] }
 0x375   :  { %v3973_v62 = vshll.u32 %v10632_v41, 16  ;;  %v3947_v53 = vmul.u32 %v3945_v1, %v3943_v10  ;;  %v10648_v38 = vmul.u32 %v3945_v1, %v3944_v35  ;;  %v3951_v54 = vshll.u32 %v10643_v36, 16 }
 0x376   :  { %v10651_v4 = vmul.u32 %v3967_v20, %v3944_v35  ;;  %v10654_v5 = vmul.f32 %v3105_v3, %v10073_v42  ;;  %v3260_v55 = vadd.f32 1.0, %v3259_v39  ;;  %v3549_v51 = vcvt.s32.f32 %v3542_v44 }
 0x377   :  { %vm3687_vm6 = vcmp.lt.s32.totalorder %v10623_v49, 0  ;;  %vm3431_vm5 = vcmp.lt.s32.totalorder %v14322_v7, 0  ;;  %vm3955_vm13 = vc.u32 %v3947_v53, %v3951_v54  ;;  %v3957_v18 = vadd.s32 %v3951_v54, %v3947_v53 }
 0x378   :  { %14321 = vst [vmem:[#allocation72_spill] sm:$0xff] %v10654_v5  ;;  %vm3977_vm4 = vc.u32 %v3969_v11, %v3973_v62  ;;  %v6439_v40 = vadd.s32 4294967169, %v4053_v56  ;;  %v10661_v10 = vsel %vm3276_vm10, %v3398_v22, %v9941_v8  ;;  %v10665_v20 = vmul.f32 %v10640_v9, %v10640_v9  ;;  %v692_v56 = vpop.f32.mrf.mxu2 }
 0x379   :  { %v3550_v42 = vmul.f32 %v3549_v51, %v3547_v6  ;;  %v10667_v57 = vadd.s32 %v3973_v62, %v3969_v11  ;;  %v3689_v3 = vsel %vm3687_vm6, %v3688_v23, %v10623_v49  ;;  %v10670_v1 = vshrl.u32 %v3838_v16, 30  ;;  %v14325_v51 = vld [vmem:[#allocation17_spill] sm:$0xff] }
 0x37a   :  { %14323 = vst [vmem:[#allocation73_spill] sm:$0xff] %v10665_v20  ;;  %v3953_v39 = vshll.u32 %v10648_v38, 16  ;;  %v13822_v44 = vshll.u32 %v10651_v4, 16  ;;  %v3950_v53 = vmul.u32 %v3946_v26, %v3944_v35  ;;  %v3956_v8 = vsel %vm3955_vm13, 1, %v14048_v60 }
 0x37b   :  { %14324 = vst [vmem:[#allocation74_spill] sm:$0xff] %v10670_v1  ;;  %v3978_v22 = vsel %vm3977_vm4, 1, %v14048_v60  ;;  %v13823_v54 = vand.u32 2147483647, %v10467_v27  ;;  %v3972_v6 = vmul.u32 %v3968_v30, %v3944_v35  ;;  %v4059_v23 = vadd.s32 1, %v6439_v40 }
 0x37c   :  { %vm3959_vm7 = vc.u32 %v3957_v18, %v3953_v39  ;;  %vm3981_vm14 = vc.u32 %v10667_v57, %v13822_v44  ;;  %v3410_v16 = vmul.f32 -0.00019511016, %v10665_v20  ;;  %v3551_v11 = vxor.u32 2147483648, %v3550_v42 }
 0x37d   :  { %v3690_v62 = vclz %v3689_v3  ;;  %v693_v14 = vadd.f32 %v692_v56, %v14325_v51  ;;  %v3840_v26 = vshll.u32 %v10670_v1, 30  ;;  %v3958_v2 = vadd.s32 %v3956_v8, %v3950_v53  ;;  %v14327_v56 = vld [vmem:[#allocation68_spill] sm:$0xff] }
 0x37e   :  { %v3980_v50 = vadd.s32 %v3978_v22, %v3972_v6  ;;  %vm4060_vm0 = vcmp.gt.s32.totalorder %v4059_v23, 0  ;;  %v3960_v18 = vsel %vm3959_vm7, 1, %v14048_v60  ;;  %v3982_v30 = vsel %vm3981_vm14, 1, %v14048_v60 }
 0x37f   :  { %v4056_v35 = vand.u32 8388607, %v13823_v54  ;;  %v4061_v40 = vsel %vm4060_vm0, %v4059_v23, 0  ;;  %v10688_v39 = vmul.f32 %v3260_v55, %v10153_v59  ;;  %v10694_v22 = vadd.f32 0.008332121, %v3410_v16 }
 0x380   :  { %v4063_v8 = vand.u32 31, %v4061_v40  ;;  %v3552_v6 = vsel %vm3431_vm5, %v3551_v11, %v3550_v42  ;;  %v10698_v51 = vadd.s32 4294967294, %v3690_v62  ;;  %v891_v44 = vadd.f32 %v890_v37, %v693_v14 }
 0x381   :  { %14326 = vst [vmem:[#allocation17_spill] sm:$0xff] %v10688_v39  ;;  %v10701_v23 = vsub.s32 %v10625_v13, %v3840_v26  ;;  %v3962_v59 = vadd.s32 %v3960_v18, %v3958_v2  ;;  %v3984_v55 = vadd.s32 %v3982_v30, %v3980_v50  ;;  %v3952_v3 = vshrl.u32 %v10643_v36, 16 }
 0x382   :  { %v10703_v54 = vsub.s32 32, %v4063_v8  ;;  %v3974_v53 = vshrl.u32 %v10632_v41, 16  ;;  %v4057_v58 = vor.u32 8388608, %v4056_v35  ;;  %v4066_v16 = vshll.u32 %v14020_v34, %v4063_v8 }
 0x383   :  { %v4069_v11 = vshll.u32 %v14016_v28, %v4063_v8  ;;  %v14328_v2 = vand.u32 2147483647, %v14322_v7  ;;  %v10721_v13 = vshrl.u32 %v4061_v40, 5  ;;  %v4072_v41 = vshll.u32 %v14216_v52, %v4063_v8 }
 0x384   :  { %v4067_v42 = vshrl.u32 %v14016_v28, %v10703_v54  ;;  %v4070_v14 = vshrl.u32 %v14216_v52, %v10703_v54  ;;  %v4073_v50 = vshrl.u32 %v14170_v12, %v10703_v54  ;;  %v4075_v36 = vshll.u32 %v14170_v12, %v4063_v8 }
 0x385   :  { %vm10717_vm12 = vcmp.le.f32.partialorder %v14328_v2, 0.7853982  ;;  %v4076_v62 = vshrl.u32 %v14168_v32, %v10703_v54  ;;  %v3963_v26 = vadd.s32 %v3962_v59, %v3952_v3  ;;  %v3985_v18 = vadd.s32 %v3984_v55, %v3974_v53 }
 0x386   :  { %v10727_v30 = vor.u32 %v4067_v42, %v4066_v16  ;;  %v10729_v35 = vor.u32 %v4070_v14, %v4069_v11  ;;  %v10731_v19 = vor.u32 %v4073_v50, %v4072_v41  ;;  %v4078_v33 = vshll.u32 %v14168_v32, %v4063_v8  ;;  %v1062_v42 = vpop.f32.mrf.mxu0 }
 0x387   :  { %v4077_v2 = vor.u32 %v4076_v62, %v4075_v36  ;;  %v4079_v40 = vshrl.u32 %v14171_v21, %v10703_v54  ;;  %vm3842_vm1 = vcmp.lt.s32.totalorder %v10701_v23, 0  ;;  %v3910_v61 = vshrl.u32 %v14020_v34, %v10513_v29 }
 0x388   :  { %v3931_v3 = vsel %vm3929_vm15, %v10558_v47, 2102212464  ;;  %v3976_v53 = vshrl.u32 %v10651_v4, 16  ;;  %v3954_v59 = vshrl.u32 %v10648_v38, 16  ;;  %vm4081_vm10 = vcmp.lt.s32.totalorder %v10721_v13, 1 }
 0x389   :  { %v4080_v55 = vor.u32 %v4079_v40, %v4078_v33  ;;  %vm4084_vm3 = vcmp.lt.s32.totalorder %v10721_v13, 4  ;;  %vm4083_vm6 = vcmp.lt.s32.totalorder %v10721_v13, 3  ;;  %v4089_v29 = vsel %vm4081_vm10, %v10727_v30, %v10729_v35 }
 0x38a   :  { %v3986_v8 = vadd.s32 %v3985_v18, %v3976_v53  ;;  %v4090_v47 = vsel %vm4084_vm3, %v4077_v2, 920167782  ;;  %v10753_v16 = vadd.s32 %v3963_v26, %v3954_v59  ;;  %vm4082_vm15 = vcmp.lt.s32.totalorder %v10721_v13, 2 }
 0x38b   :  { %v4091_v33 = vsel %vm4083_vm6, %v10731_v19, %v4090_v47  ;;  %v10759_v38 = vshll.u32 %v4057_v58, 8  ;;  %v3843_v11 = vsub.s32 0, %v10701_v23  ;;  %v3930_v14 = vsel %vm3926_vm11, %v3910_v61, %v10548_v17 }
 0x38c   :  { %v4092_v50 = vsel %vm4082_vm15, %v4089_v29, %v4091_v33  ;;  %v4093_v41 = vsel %vm4081_vm10, %v10729_v35, %v10731_v19  ;;  %v3932_v58 = vsel %vm3928_vm8, %v10550_v46, %v3931_v3  ;;  %v14331_v36 = vshll.u32 %v10651_v4, 16 }
 0x38d   :  { %v4094_v61 = vsel %vm4084_vm3, %v4080_v55, 1326507024  ;;  %v4123_v17 = vshrl.u32 %v4092_v50, 16  ;;  %v10784_v26 = vsel %vm10717_vm12, %v14322_v7, %v3552_v6  ;;  %v3990_v18 = vadd.s32 1, %v3986_v8 }
 0x38e   :  { %v10777_v62 = vadd.s32 %v10667_v57, %v14331_v36  ;;  %v4095_v40 = vsel %vm4083_vm6, %v4077_v2, %v4094_v61  ;;  %v1063_v53 = vadd.f32 %v1062_v42, %v891_v44  ;;  %vm6432_vm11 = vcmp.lt.s32.totalorder %v10698_v51, 0  ;;  %v1208_v57 = vpop.f32.mrf.mxu1 }
 0x38f   :  { %v4096_v46 = vsel %vm4082_vm15, %v4093_v41, %v4095_v40  ;;  %v4098_v4 = vand.u32 65535, %v10759_v38  ;;  %v3844_v6 = vsel %vm3842_vm1, %v3843_v11, %v10701_v23  ;;  %v3933_v3 = vsel %vm3927_vm2, %v3930_v14, %v3932_v58 }
 0x390   :  { %vm3989_vm8 = vc.u32 %v10753_v16, %v10777_v62  ;;  %v4100_v2 = vand.u32 65535, %v4096_v46  ;;  %v4122_v44 = vand.u32 65535, %v4092_v50  ;;  %v3412_v59 = vmul.f32 %v10694_v22, %v10665_v20 }
 0x391   :  { %v14332_v55 = vsub.s32 4, %v14327_v56  ;;  %v4101_v47 = vshrl.u32 %v4096_v46, 16  ;;  %v10806_v33 = vmul.u32 %v4123_v17, %v4098_v4  ;;  %v10810_v42 = vmul.f32 %v10784_v26, %v10784_v26 }
 0x392   :  { %v3991_v48 = vsel %vm3989_vm8, %v3990_v18, %v3986_v8  ;;  %v4099_v11 = vshrl.u32 %v10759_v38, 16  ;;  %v10813_v14 = vadd.f32 %v1208_v57, %v1063_v53  ;;  %v3693_v22 = vsel %vm6432_vm11, 0, %v10698_v51 }
 0x393   :  { %v3554_v29 = vsel %vm3431_vm5, %v14332_v55, %v14327_v56  ;;  %14333 = vst [vmem:[#allocation68_spill] sm:$0xff] %v10810_v42  ;;  %v3845_v50 = vclz %v3844_v6  ;;  %v3987_v41 = vmul.u32 %v10591_v45, %v3933_v3  ;;  %v10819_v56 = vmul.u32 %v4101_v47, %v4098_v4 }
 0x394   :  { %14334 = vst [vmem:[#allocation75_spill] sm:$0xff] %v10813_v14  ;;  %v10821_v58 = vmul.u32 %v4100_v2, %v4099_v11  ;;  %v4124_v36 = vmul.u32 %v4122_v44, %v4098_v4  ;;  %v10823_v61 = vmul.u32 %v4122_v44, %v4099_v11  ;;  %v4128_v8 = vshll.u32 %v10806_v33, 16 }
 0x395   :  { %v3413_v18 = vadd.f32 -0.16666654, %v3412_v59  ;;  %v10826_v40 = vadd.s32 %v3991_v48, %v3987_v41  ;;  %v4102_v53 = vmul.u32 %v4100_v2, %v4098_v4  ;;  %v4106_v46 = vshll.u32 %v10819_v56, 16 }
 0x396   :  { %v3565_v51 = vmul.f32 -0.00019511016, %v10810_v42  ;;  %vm4132_vm2 = vc.u32 %v4124_v36, %v4128_v8  ;;  %v10830_v57 = vadd.s32 %v4128_v8, %v4124_v36  ;;  %v4207_v45 = vand.u32 2139095040, %v10813_v14 }
 0x397   :  { %v3694_v6 = vsub.s32 32, %v3693_v22  ;;  %v3698_v3 = vsub.s32 4294967266, %v3693_v22  ;;  %vm4110_vm5 = vc.u32 %v4102_v53, %v4106_v46  ;;  %v4112_v44 = vadd.s32 %v4106_v46, %v4102_v53 }
 0x398   :  { %v3678_v55 = vadd.s32 %v10420_v15, %v10415_v0  ;;  %v6434_v59 = vadd.s32 4294967294, %v3845_v50  ;;  %v4108_v48 = vshll.u32 %v10821_v58, 16  ;;  %v13839_v4 = vshll.u32 %v10823_v61, 16 }
 0x399   :  { %v3993_v2 = vadd.s32 536870912, %v10826_v40  ;;  %v4105_v41 = vmul.u32 %v4101_v47, %v4099_v11  ;;  %v4111_v36 = vsel %vm4110_vm5, 1, %v14048_v60  ;;  %v4133_v8 = vsel %vm4132_vm2, 1, %v14048_v60 }
 0x39a   :  { %vm4114_vm13 = vc.u32 %v4112_v44, %v4108_v48  ;;  %v4127_v7 = vmul.u32 %v4123_v17, %v4099_v11  ;;  %vm4136_vm4 = vc.u32 %v10830_v57, %v13839_v4  ;;  %v4208_v53 = vshrl.u32 %v4207_v45, 23 }
 0x39b   :  { %v3414_v0 = vmul.f32 %v3413_v18, %v10665_v20  ;;  %v3556_v15 = vsel %vm10717_vm12, 0, %v3554_v29  ;;  %v3696_v50 = vshrl.u32 %v3678_v55, %v3694_v6  ;;  %v3699_v46 = vadd.s32 127, %v3698_v3 }
 0x39c   :  { %v3695_v47 = vshll.u32 %v10623_v49, %v3693_v22  ;;  %v4113_v27 = vadd.s32 %v4111_v36, %v4105_v41  ;;  %v4135_v43 = vadd.s32 %v4133_v8, %v4127_v7  ;;  %v6442_v1 = vadd.s32 4294967169, %v4208_v53 }
 0x39d   :  { %vm6435_vm7 = vcmp.lt.s32.totalorder %v6434_v59, 0  ;;  %v10847_v44 = vshrl.u32 %v3993_v2, 30  ;;  %v4115_v17 = vsel %vm4114_vm13, 1, %v14048_v60  ;;  %v4137_v11 = vsel %vm4136_vm4, 1, %v14048_v60 }
 0x39e   :  { %v3566_v37 = vadd.f32 0.008332121, %v3565_v51  ;;  %v4214_v29 = vadd.s32 1, %v6442_v1  ;;  %v14335_v49 = vsel %vm10573_vm9, 0, %v10661_v10  ;;  %v10859_v7 = vadd.s32 3, %v3556_v15 }
 0x39f   :  { %v10857_v22 = vadd.s32 3, %v14335_v49  ;;  %v10861_v6 = vor.u32 %v3696_v50, %v3695_v47  ;;  %v3700_v3 = vshll.u32 %v3699_v46, 23  ;;  %v10863_v55 = vsel %vm6435_vm7, 0, %v6434_v59 }
 0x3a0   :  { %v4117_v48 = vadd.s32 %v4115_v17, %v4113_v27  ;;  %v4139_v2 = vadd.s32 %v4137_v11, %v4135_v43  ;;  %vm4215_vm14 = vcmp.gt.s32.totalorder %v4214_v29, 0  ;;  %v10865_v41 = vadd.f32 1.0, %v3414_v0 }
 0x3a1   :  { %v3995_v1 = vshll.u32 %v10847_v44, 30  ;;  %v13838_v24 = vand.u32 2147483647, %v10813_v14  ;;  %v4216_v51 = vsel %vm4215_vm14, %v4214_v29, 0  ;;  %v10870_v10 = vmul.f32 %v3566_v37, %v10810_v42 }
 0x3a2   :  { %v4107_v36 = vshrl.u32 %v10819_v56, 16  ;;  %v4129_v8 = vshrl.u32 %v10806_v33, 16  ;;  %v4218_v53 = vand.u32 31, %v4216_v51  ;;  %v10874_v59 = vor.u32 4788187, %v3700_v3 }
 0x3a3   :  { %v3853_v27 = vsub.s32 4294967266, %v10863_v55  ;;  %v4065_v0 = vshrl.u32 %v14020_v34, %v10703_v54  ;;  %v4086_v15 = vsel %vm4084_vm3, %v10731_v19, 2102212464  ;;  %v10886_v33 = vsub.s32 %v10826_v40, %v3995_v1 }
 0x3a4   :  { %v4118_v50 = vadd.s32 %v4117_v48, %v4107_v36  ;;  %v4140_v46 = vadd.s32 %v4139_v2, %v4129_v8  ;;  %v10883_v47 = vsub.s32 32, %v4218_v53  ;;  %v4109_v56 = vshrl.u32 %v10821_v58, 16 }
 0x3a5   :  { %v4131_v17 = vshrl.u32 %v10823_v61, 16  ;;  %v4211_v11 = vand.u32 8388607, %v13838_v24  ;;  %v4221_v54 = vshll.u32 %v14020_v34, %v4218_v53  ;;  %v4224_v19 = vshll.u32 %v14016_v28, %v4218_v53 }
 0x3a6   :  { %v4222_v37 = vshrl.u32 %v14016_v28, %v10883_v47  ;;  %v4225_v29 = vshrl.u32 %v14216_v52, %v10883_v47  ;;  %v4228_v40 = vshrl.u32 %v14170_v12, %v10883_v47  ;;  %v4230_v58 = vshll.u32 %v14170_v12, %v4218_v53 }
 0x3a7   :  { %v4231_v49 = vshrl.u32 %v14168_v32, %v10883_v47  ;;  %v4234_v3 = vshrl.u32 %v14171_v21, %v10883_v47  ;;  %v10905_v48 = vadd.s32 %v4118_v50, %v4109_v56  ;;  %v4141_v2 = vadd.s32 %v4140_v46, %v4131_v17 }
 0x3a8   :  { %v10907_v1 = vshrl.u32 %v4216_v51, 5  ;;  %v4227_v36 = vshll.u32 %v14216_v52, %v4218_v53  ;;  %v10910_v8 = vor.u32 %v4222_v37, %v4221_v54  ;;  %v10912_v18 = vor.u32 %v4225_v29, %v4224_v19  ;;  %v697_v54 = vpop.f32.mrf.mxu2 }
 0x3a9   :  { %v4232_v45 = vor.u32 %v4231_v49, %v4230_v58  ;;  %v4233_v24 = vshll.u32 %v14168_v32, %v4218_v53  ;;  %v3998_v43 = vsub.s32 0, %v10886_v33  ;;  %v4085_v4 = vsel %vm4081_vm10, %v4065_v0, %v10727_v30  ;;  %v896_v58 = vpop.f32.mrf.mxu3 }
 0x3aa   :  { %v4087_v51 = vsel %vm4083_vm6, %v10729_v35, %v4086_v15  ;;  %v4212_v50 = vor.u32 8388608, %v4211_v11  ;;  %vm3997_vm9 = vcmp.lt.s32.totalorder %v10886_v33, 0  ;;  %v14336_v46 = vshll.u32 %v10823_v61, 16 }
 0x3ab   :  { %v10928_v17 = vor.u32 %v4228_v40, %v4227_v36  ;;  %v4235_v53 = vor.u32 %v4234_v3, %v4233_v24  ;;  %v3854_v37 = vadd.s32 127, %v3853_v27  ;;  %v4145_v19 = vadd.s32 1, %v4141_v2  ;;  %v14337_v27 = vld [vmem:[#allocation18_spill] sm:$0xff] }
 0x3ac   :  { %v10926_v56 = vadd.s32 %v10830_v57, %v14336_v46  ;;  %vm4236_vm0 = vcmp.lt.s32.totalorder %v10907_v1, 1  ;;  %vm4239_vm12 = vcmp.lt.s32.totalorder %v10907_v1, 4  ;;  %v4088_v30 = vsel %vm4082_vm15, %v4085_v4, %v4087_v51 }
 0x3ad   :  { %v4244_v35 = vsel %vm4236_vm0, %v10910_v8, %v10912_v18  ;;  %v4245_v61 = vsel %vm4239_vm12, %v4232_v45, 920167782  ;;  %v3999_v57 = vsel %vm3997_vm9, %v3998_v43, %v10886_v33  ;;  %vm4238_vm10 = vcmp.lt.s32.totalorder %v10907_v1, 3 }
 0x3ae   :  { %vm4144_vm1 = vc.u32 %v10905_v48, %v10926_v56  ;;  %v10944_v24 = vshll.u32 %v4212_v50, 8  ;;  %v698_v13 = vadd.f32 %v697_v54, %v14337_v27  ;;  %vm4237_vm3 = vcmp.lt.s32.totalorder %v10907_v1, 2 }
 0x3af   :  { %v4246_v4 = vsel %vm4238_vm10, %v10928_v17, %v4245_v61  ;;  %v4248_v0 = vsel %vm4236_vm0, %v10912_v18, %v10928_v17  ;;  %v4249_v43 = vsel %vm4239_vm12, %v4235_v53, 1326507024  ;;  %v3702_v15 = vand.u32 2147483647, %v10874_v59 }
 0x3b0   :  { %v4146_v11 = vsel %vm4144_vm1, %v4145_v19, %v4141_v2  ;;  %v4247_v29 = vsel %vm4237_vm3, %v4244_v35, %v4246_v4  ;;  %v4250_v40 = vsel %vm4238_vm10, %v4232_v45, %v4249_v43  ;;  %v3849_v49 = vsub.s32 32, %v10863_v55  ;;  %v14339_v4 = vld [vmem:[#allocation28_spill] sm:$0xff] }
 0x3b1   :  { %v4000_v3 = vclz %v3999_v57  ;;  %v4142_v36 = vmul.u32 %v10759_v38, %v4088_v30  ;;  %v4251_v51 = vsel %vm4237_vm3, %v4248_v0, %v4250_v40  ;;  %v4253_v50 = vand.u32 65535, %v10944_v24  ;;  %v1066_v57 = vpop.f32.mrf.mxu0 }
 0x3b2   :  { %v4255_v46 = vand.u32 65535, %v4251_v51  ;;  %v4256_v59 = vshrl.u32 %v4251_v51, 16  ;;  %v4278_v2 = vshrl.u32 %v4247_v29, 16  ;;  %v3855_v53 = vshll.u32 %v3854_v37, 23 }
 0x3b3   :  { %v10967_v54 = vadd.s32 %v4146_v11, %v4142_v36  ;;  %v4254_v19 = vshrl.u32 %v10944_v24, 16  ;;  %v897_v45 = vadd.f32 %v896_v58, %v698_v13  ;;  %v10972_v35 = vmul.f32 %v10865_v41, %v10640_v9 }
 0x3b4   :  { %v3833_v38 = vadd.s32 %v10543_v63, %v10538_v31  ;;  %v10976_v30 = vmul.u32 %v4256_v59, %v4253_v50  ;;  %v4277_v61 = vand.u32 65535, %v4247_v29  ;;  %v3568_v27 = vadd.f32 -0.16666654, %v10870_v10 }
 0x3b5   :  { %14338 = vst [vmem:[#allocation18_spill] sm:$0xff] %v10972_v35  ;;  %vm3586_vm6 = vcmp.lt.s32.totalorder %v14339_v4, 0  ;;  %v14340_v37 = vcvt.s32.f32 %v10861_v6  ;;  %v10982_v43 = vmul.u32 %v4255_v46, %v4254_v19  ;;  %v10984_v13 = vmul.u32 %v4278_v2, %v4253_v50 }
 0x3b6   :  { %v3851_v9 = vshrl.u32 %v3833_v38, %v3849_v49  ;;  %v6437_v41 = vadd.s32 4294967294, %v4000_v3  ;;  %v4257_v11 = vmul.u32 %v4255_v46, %v4253_v50  ;;  %v4261_v31 = vshll.u32 %v10976_v30, 16  ;;  %v1212_v46 = vpop.f32.mrf.mxu1 }
 0x3b7   :  { %v3705_v0 = vmul.f32 %v14340_v37, %v3702_v15  ;;  %v3850_v63 = vshll.u32 %v10701_v23, %v10863_v55  ;;  %v3856_v29 = vor.u32 4788187, %v3855_v53  ;;  %v4148_v10 = vadd.s32 536870912, %v10967_v54 }
 0x3b8   :  { %v1067_v40 = vadd.f32 %v1066_v57, %v897_v45  ;;  %vm4265_vm15 = vc.u32 %v4257_v11, %v4261_v31  ;;  %v4267_v58 = vadd.s32 %v4261_v31, %v4257_v11  ;;  %v10990_v6 = vmul.u32 %v4277_v61, %v4254_v19 }
 0x3b9   :  { %v4283_v15 = vshll.u32 %v10984_v13, 16  ;;  %v3569_v36 = vmul.f32 %v3568_v27, %v10810_v42  ;;  %v3706_v49 = vxor.u32 2147483648, %v3705_v0  ;;  %v3708_v3 = vsub.s32 4, %v10556_v25 }
 0x3ba   :  { %v4263_v51 = vshll.u32 %v10982_v43, 16  ;;  %v3852_v38 = vor.u32 %v3851_v9, %v3850_v63  ;;  %vm6438_vm11 = vcmp.lt.s32.totalorder %v6437_v41, 0  ;;  %v4266_v23 = vsel %vm4265_vm15, 1, %v14048_v60 }
 0x3bb   :  { %v4279_v55 = vmul.u32 %v4277_v61, %v4253_v50  ;;  %v3857_v53 = vand.u32 2147483647, %v3856_v29  ;;  %v10997_v45 = vshrl.u32 %v4148_v10, 30  ;;  %v4260_v57 = vmul.u32 %v4256_v59, %v4254_v19 }
 0x3bc   :  { %vm4269_vm8 = vc.u32 %v4267_v58, %v4263_v51  ;;  %v4285_v37 = vshll.u32 %v10990_v6, 16  ;;  %v11002_v11 = vadd.f32 %v1212_v46, %v1067_v40  ;;  %v11004_v31 = vsel %vm6438_vm11, 0, %v6437_v41 }
 0x3bd   :  { %vm4287_vm2 = vc.u32 %v4279_v55, %v4283_v15  ;;  %v11000_v27 = vadd.s32 %v4283_v15, %v4279_v55  ;;  %v4268_v39 = vadd.s32 %v4266_v23, %v4260_v57  ;;  %v4282_v9 = vmul.u32 %v4278_v2, %v4254_v19  ;;  %v14348_v23 = vld [vmem:[#allocation65_spill] sm:$0xff]  ;;  %v702_v57 = vpop.f32.mrf.mxu2 }
 0x3be   :  { %14341 = vst [vmem:[#allocation76_spill] sm:$0xff] %v11002_v11  ;;  %v4288_v63 = vsel %vm4287_vm2, 1, %v14048_v60  ;;  %v3570_v42 = vadd.f32 1.0, %v3569_v36  ;;  %v3707_v50 = vsel %vm3586_vm6, %v3706_v49, %v3705_v0  ;;  %v4270_v59 = vsel %vm4269_vm8, 1, %v14048_v60 }
 0x3bf   :  { %vm4291_vm5 = vc.u32 %v11000_v27, %v4285_v37  ;;  %v14342_v61 = vand.u32 2147483647, %v14339_v4  ;;  %v11022_v2 = vsel %vm3586_vm6, %v3708_v3, %v10556_v25  ;;  %v3859_v19 = vcvt.s32.f32 %v3852_v38 }
 0x3c0   :  { %v4290_v41 = vadd.s32 %v4288_v63, %v4282_v9  ;;  %v4008_v0 = vsub.s32 4294967266, %v11004_v31  ;;  %v4150_v10 = vshll.u32 %v10997_v45, 30  ;;  %v4292_v40 = vsel %vm4291_vm5, 1, %v14048_v60 }
 0x3c1   :  { %vm11015_vm13 = vcmp.le.f32.partialorder %v14342_v61, 0.7853982  ;;  %v4362_v58 = vand.u32 2139095040, %v11002_v11  ;;  %v11029_v15 = vand.u32 3, %v10857_v22  ;;  %v3860_v25 = vmul.f32 %v3859_v19, %v3857_v53 }
 0x3c2   :  { %v11034_v36 = vsel %vm11015_vm13, %v14339_v4, %v3707_v50  ;;  %v4272_v49 = vadd.s32 %v4270_v59, %v4268_v39  ;;  %v11038_v51 = vmul.f32 %v3570_v42, %v10784_v26  ;;  %v11041_v46 = vand.u32 3, %v10859_v7 }
 0x3c3   :  { %14345 = vst [vmem:[#allocation77_spill] sm:$0xff] %v11029_v15  ;;  %v4363_v38 = vshrl.u32 %v4362_v58, 23  ;;  %vm3741_vm4 = vcmp.lt.s32.totalorder %v14348_v23, 0  ;;  %v4004_v55 = vsub.s32 32, %v11004_v31  ;;  %v4262_v53 = vshrl.u32 %v10976_v30, 16 }
 0x3c4   :  { %14346 = vst [vmem:[#allocation78_spill] sm:$0xff] %v11038_v51  ;;  %v4294_v39 = vadd.s32 %v4292_v40, %v4290_v41  ;;  %v11051_v26 = vmul.f32 %v11034_v36, %v11034_v36  ;;  %v4009_v42 = vadd.s32 127, %v4008_v0  ;;  %v11054_v7 = vsub.s32 %v10967_v54, %v4150_v10  ;;  %v14350_v40 = vld [vmem:[#allocation19_spill] sm:$0xff] }
 0x3c5   :  { %14347 = vst [vmem:[#allocation79_spill] sm:$0xff] %v11041_v46  ;;  %v6445_v9 = vadd.s32 4294967169, %v4363_v38  ;;  %v3861_v63 = vxor.u32 2147483648, %v3860_v25  ;;  %v3988_v50 = vadd.s32 %v10777_v62, %v10753_v16  ;;  %v4273_v59 = vadd.s32 %v4272_v49, %v4262_v53  ;;  %v902_v62 = vpop.f32.mrf.mxu3 }
 0x3c6   :  { %14349 = vst [vmem:[#allocation80_spill] sm:$0xff] %v11051_v26  ;;  %v4284_v61 = vshrl.u32 %v10984_v13, 16  ;;  %v4005_v30 = vshll.u32 %v10886_v33, %v11004_v31  ;;  %v4220_v19 = vshrl.u32 %v14020_v34, %v10883_v47  ;;  %v703_v0 = vadd.f32 %v702_v57, %v14350_v40 }
 0x3c7   :  { %v4369_v41 = vadd.s32 1, %v6445_v9  ;;  %v4006_v58 = vshrl.u32 %v3988_v50, %v4004_v55  ;;  %v4241_v54 = vsel %vm4239_vm12, %v10928_v17, 2102212464  ;;  %v4264_v10 = vshrl.u32 %v10982_v43, 16 }
 0x3c8   :  { %v4295_v16 = vadd.s32 %v4294_v39, %v4284_v61  ;;  %v4010_v49 = vshll.u32 %v4009_v42, 23  ;;  %v4153_v13 = vsub.s32 0, %v11054_v7  ;;  %v4240_v33 = vsel %vm4236_vm0, %v4220_v19, %v10910_v8  ;;  %v14354_v42 = vld [vmem:[#allocation74_spill] sm:$0xff]  ;;  %v1070_v61 = vpop.f32.mrf.mxu0 }
 0x3c9   :  { %vm4370_vm7 = vcmp.gt.s32.totalorder %v4369_v41, 0  ;;  %v11072_v47 = vadd.s32 %v4273_v59, %v4264_v10  ;;  %v4286_v31 = vshrl.u32 %v10990_v6, 16  ;;  %v13844_v38 = vand.u32 2147483647, %v11002_v11 }
 0x3ca   :  { %v4371_v55 = vsel %vm4370_vm7, %v4369_v41, 0  ;;  %v14351_v17 = vand.u32 2147483647, %v14348_v23  ;;  %vm4152_vm9 = vcmp.lt.s32.totalorder %v11054_v7, 0  ;;  %v4242_v8 = vsel %vm4238_vm10, %v10912_v18, %v4241_v54 }
 0x3cb   :  { %v4373_v53 = vand.u32 31, %v4371_v55  ;;  %v903_v39 = vadd.f32 %v902_v62, %v703_v0  ;;  %v3720_v57 = vmul.f32 -0.00019511016, %v11051_v26  ;;  %v3863_v9 = vsub.s32 4, %v14354_v42 }
 0x3cc   :  { %vm11078_vm14 = vcmp.le.f32.partialorder %v14351_v17, 0.7853982  ;;  %v11091_v50 = vadd.s32 %v11000_v27, %v4285_v37  ;;  %v4296_v59 = vadd.s32 %v4295_v16, %v4286_v31  ;;  %v3862_v19 = vsel %vm3741_vm4, %v3861_v63, %v3860_v25 }
 0x3cd   :  { %v4007_v41 = vor.u32 %v4006_v58, %v4005_v30  ;;  %v4011_v40 = vor.u32 4788187, %v4010_v49  ;;  %v11095_v10 = vsub.s32 32, %v4373_v53  ;;  %v4154_v18 = vsel %vm4152_vm9, %v4153_v13, %v11054_v7 }
 0x3ce   :  { %v4243_v0 = vsel %vm4237_vm3, %v4240_v33, %v4242_v8  ;;  %vm4299_vm0 = vc.u32 %v11072_v47, %v11091_v50  ;;  %v4366_v6 = vand.u32 8388607, %v13844_v38  ;;  %v1071_v63 = vadd.f32 %v1070_v61, %v903_v39  ;;  %v1216_v33 = vpop.f32.mrf.mxu1 }
 0x3cf   :  { %v4377_v37 = vshrl.u32 %v14016_v28, %v11095_v10  ;;  %v4380_v27 = vshrl.u32 %v14216_v52, %v11095_v10  ;;  %v4383_v25 = vshrl.u32 %v14170_v12, %v11095_v10  ;;  %v4300_v30 = vadd.s32 1, %v4296_v59 }
 0x3d0   :  { %v4376_v1 = vshll.u32 %v14020_v34, %v4373_v53  ;;  %v4379_v58 = vshll.u32 %v14016_v28, %v4373_v53  ;;  %v4386_v54 = vshrl.u32 %v14168_v32, %v11095_v10  ;;  %v11114_v16 = vshrl.u32 %v4371_v55, 5 }
 0x3d1   :  { %v4382_v62 = vshll.u32 %v14216_v52, %v4373_v53  ;;  %v4385_v49 = vshll.u32 %v14170_v12, %v4373_v53  ;;  %v4389_v13 = vshrl.u32 %v14171_v21, %v11095_v10  ;;  %v4367_v31 = vor.u32 8388608, %v4366_v6 }
 0x3d2   :  { %v11120_v17 = vor.u32 %v4377_v37, %v4376_v1  ;;  %v11122_v8 = vor.u32 %v4380_v27, %v4379_v58  ;;  %v4388_v39 = vshll.u32 %v14168_v32, %v4373_v53  ;;  %v3721_v61 = vadd.f32 0.008332121, %v3720_v57 }
 0x3d3   :  { %v11128_v55 = vsel %vm3741_vm4, %v3863_v9, %v14354_v42  ;;  %v4384_v3 = vor.u32 %v4383_v25, %v4382_v62  ;;  %v4387_v38 = vor.u32 %v4386_v54, %v4385_v49  ;;  %v11133_v22 = vsel %vm11078_vm14, %v14348_v23, %v3862_v19 }
 0x3d4   :  { %v4301_v6 = vsel %vm4299_vm0, %v4300_v30, %v4296_v59  ;;  %v4390_v37 = vor.u32 %v4389_v13, %v4388_v39  ;;  %v11138_v27 = vadd.f32 %v1216_v33, %v1071_v63  ;;  %v4012_v53 = vand.u32 2147483647, %v4011_v40 }
 0x3d5   :  { %v4155_v57 = vclz %v4154_v18  ;;  %v4297_v1 = vmul.u32 %v10944_v24, %v4243_v0  ;;  %vm4391_vm12 = vcmp.lt.s32.totalorder %v11114_v16, 1  ;;  %v4014_v42 = vcvt.s32.f32 %v4007_v41 }
 0x3d6   :  { %14355 = vst [vmem:[#allocation19_spill] sm:$0xff] %v11138_v27  ;;  %vm4394_vm1 = vcmp.lt.s32.totalorder %v11114_v16, 4  ;;  %v4399_v9 = vsel %vm4391_vm12, %v11120_v17, %v11122_v8  ;;  %v11147_v19 = vshll.u32 %v4367_v31, 8  ;;  %vm4393_vm10 = vcmp.lt.s32.totalorder %v11114_v16, 3 }
 0x3d7   :  { %v11149_v59 = vadd.s32 %v4301_v6, %v4297_v1  ;;  %v4400_v40 = vsel %vm4394_vm1, %v4387_v38, 920167782  ;;  %v4403_v24 = vsel %vm4391_vm12, %v11122_v8, %v4384_v3  ;;  %vm4392_vm3 = vcmp.lt.s32.totalorder %v11114_v16, 2 }
 0x3d8   :  { %v4401_v41 = vsel %vm4393_vm10, %v4384_v3, %v4400_v40  ;;  %v4404_v18 = vsel %vm4394_vm1, %v4390_v37, 1326507024  ;;  %v4517_v0 = vand.u32 2139095040, %v11138_v27  ;;  %v4015_v25 = vmul.f32 %v4014_v42, %v4012_v53 }
 0x3d9   :  { %v6440_v63 = vadd.s32 4294967294, %v4155_v57  ;;  %v4402_v30 = vsel %vm4392_vm3, %v4399_v9, %v4401_v41  ;;  %v4405_v58 = vsel %vm4393_vm10, %v4387_v38, %v4404_v18  ;;  %v4408_v62 = vand.u32 65535, %v11147_v19  ;;  %v14358_v41 = vld [vmem:[#allocation58_spill] sm:$0xff] }
 0x3da   :  { %v4406_v54 = vsel %vm4392_vm3, %v4403_v24, %v4405_v58  ;;  %v4432_v49 = vand.u32 65535, %v4402_v30  ;;  %v4433_v13 = vshrl.u32 %v4402_v30, 16  ;;  %v4303_v33 = vadd.s32 536870912, %v11149_v59 }
 0x3db   :  { %v4409_v31 = vshrl.u32 %v11147_v19, 16  ;;  %v4410_v39 = vand.u32 65535, %v4406_v54  ;;  %v4411_v6 = vshrl.u32 %v4406_v54, 16  ;;  %v14356_v53 = vsel %vm11015_vm13, 0, %v11022_v2 }
 0x3dc   :  { %v3728_v38 = vadd.s32 3, %v14356_v53  ;;  %v4435_v57 = vmul.u32 %v4433_v13, %v4408_v62  ;;  %v4518_v1 = vshrl.u32 %v4517_v0, 23  ;;  %v3722_v42 = vmul.f32 %v3721_v61, %v11051_v26 }
 0x3dd   :  { %v3866_v9 = vsel %vm11078_vm14, 0, %v11128_v55  ;;  %v11183_v40 = vmul.f32 %v11133_v22, %v11133_v22  ;;  %v4436_v24 = vmul.u32 %v4432_v49, %v4409_v31  ;;  %vm3896_vm6 = vcmp.lt.s32.totalorder %v14358_v41, 0 }
 0x3de   :  { %v4016_v18 = vxor.u32 2147483648, %v4015_v25  ;;  %vm6441_vm15 = vcmp.lt.s32.totalorder %v6440_v63, 0  ;;  %v4413_v29 = vmul.u32 %v4411_v6, %v4408_v62  ;;  %v4414_v2 = vmul.u32 %v4410_v39, %v4409_v31 }
 0x3df   :  { %14357 = vst [vmem:[#allocation74_spill] sm:$0xff] %v11183_v40  ;;  %v11186_v30 = vshrl.u32 %v4303_v33, 30  ;;  %v4375_v61 = vshrl.u32 %v14020_v34, %v11095_v10  ;;  %v4396_v43 = vsel %vm4394_vm1, %v4384_v3, 2102212464  ;;  %v4438_v55 = vshll.u32 %v4435_v57, 16 }
 0x3e0   :  { %v4412_v0 = vmul.u32 %v4410_v39, %v4408_v62  ;;  %v4416_v58 = vshll.u32 %v4413_v29, 16  ;;  %v4434_v54 = vmul.u32 %v4432_v49, %v4408_v62  ;;  %v6448_v53 = vadd.s32 4294967169, %v4518_v1 }
 0x3e1   :  { %v4415_v37 = vmul.u32 %v4411_v6, %v4409_v31  ;;  %v4418_v4 = vshll.u32 %v4414_v2, 16  ;;  %v4437_v23 = vmul.u32 %v4433_v13, %v4409_v31  ;;  %v4440_v51 = vshll.u32 %v4436_v24, 16 }
 0x3e2   :  { %vm4420_vm11 = vc.u32 %v4412_v0, %v4416_v58  ;;  %v4422_v46 = vadd.s32 %v4416_v58, %v4412_v0  ;;  %vm4442_vm8 = vc.u32 %v4434_v54, %v4438_v55  ;;  %v4444_v33 = vadd.s32 %v4438_v55, %v4434_v54 }
 0x3e3   :  { %v14359_v35 = vand.u32 2147483647, %v14358_v41  ;;  %v4305_v3 = vshll.u32 %v11186_v30, 30  ;;  %v4395_v62 = vsel %vm4391_vm12, %v4375_v61, %v11120_v17  ;;  %v4421_v49 = vsel %vm4420_vm11, 1, %v14048_v60 }
 0x3e4   :  { %v4443_v13 = vsel %vm4442_vm8, 1, %v14048_v60  ;;  %v4423_v31 = vadd.s32 %v4421_v49, %v4415_v37  ;;  %vm4424_vm5 = vc.u32 %v4422_v46, %v4418_v4  ;;  %vm4446_vm13 = vc.u32 %v4444_v33, %v4440_v51 }
 0x3e5   :  { %vm11194_vm2 = vcmp.le.f32.partialorder %v14359_v35, 0.7853982  ;;  %v4445_v39 = vadd.s32 %v4443_v13, %v4437_v23  ;;  %v4397_v35 = vsel %vm4393_vm10, %v11122_v8, %v4396_v43  ;;  %v4425_v6 = vsel %vm4424_vm5, 1, %v14048_v60 }
 0x3e6   :  { %v4439_v1 = vshrl.u32 %v4435_v57, 16  ;;  %v4447_v55 = vsel %vm4446_vm13, 1, %v14048_v60  ;;  %v4417_v0 = vshrl.u32 %v4413_v29, 16  ;;  %v4427_v58 = vadd.s32 %v4425_v6, %v4423_v31  ;;  %v14363_v6 = vld [vmem:[#allocation20_spill] sm:$0xff] }
 0x3e7   :  { %v4449_v17 = vadd.s32 %v4447_v55, %v4445_v39  ;;  %v4524_v61 = vadd.s32 1, %v6448_v53  ;;  %v3875_v54 = vmul.f32 -0.00019511016, %v11183_v40  ;;  %v4017_v4 = vsel %vm3896_vm6, %v4016_v18, %v4015_v25 }
 0x3e8   :  { %v11213_v46 = vsel %vm6441_vm15, 0, %v6440_v63  ;;  %v4419_v23 = vshrl.u32 %v4414_v2, 16  ;;  %v4428_v37 = vadd.s32 %v4427_v58, %v4417_v0  ;;  %v4441_v8 = vshrl.u32 %v4436_v24, 16 }
 0x3e9   :  { %v4450_v43 = vadd.s32 %v4449_v17, %v4439_v1  ;;  %vm4525_vm4 = vcmp.gt.s32.totalorder %v4524_v61, 0  ;;  %v11216_v57 = vsub.s32 %v11149_v59, %v4305_v3  ;;  %v4398_v29 = vsel %vm4392_vm3, %v4395_v62, %v4397_v35  ;;  %v707_v59 = vpop.f32.mrf.mxu2 }
 0x3ea   :  { %v13852_v53 = vand.u32 2147483647, %v11138_v27  ;;  %v4526_v49 = vsel %vm4525_vm4, %v4524_v61, 0  ;;  %v11221_v13 = vadd.s32 %v4428_v37, %v4419_v23  ;;  %v11223_v25 = vadd.s32 %v4444_v33, %v4440_v51 }
 0x3eb   :  { %v4451_v63 = vadd.s32 %v4450_v43, %v4441_v8  ;;  %v4528_v18 = vand.u32 31, %v4526_v49  ;;  %v3723_v2 = vadd.f32 -0.16666654, %v3722_v42  ;;  %v11225_v31 = vand.u32 3, %v3728_v38 }
 0x3ec   :  { %v3876_v24 = vadd.f32 0.008332121, %v3875_v54  ;;  %v11227_v39 = vadd.s32 3, %v3866_v9  ;;  %v11232_v16 = vsel %vm11194_vm2, %v14358_v41, %v4017_v4  ;;  %v4159_v3 = vsub.s32 32, %v11213_v46 }
 0x3ed   :  { %14362 = vst [vmem:[#allocation81_spill] sm:$0xff] %v11225_v31  ;;  %vm4454_vm7 = vc.u32 %v11221_v13, %v11223_v25  ;;  %v4455_v51 = vadd.s32 1, %v4451_v63  ;;  %v4163_v33 = vsub.s32 4294967266, %v11213_v46  ;;  %v4452_v38 = vmul.u32 %v11147_v19, %v4398_v29 }
 0x3ee   :  { %v4521_v42 = vand.u32 8388607, %v13852_v53  ;;  %v11241_v9 = vsub.s32 32, %v4528_v18  ;;  %vm4307_vm14 = vcmp.lt.s32.totalorder %v11216_v57, 0  ;;  %v4308_v62 = vsub.s32 0, %v11216_v57 }
 0x3ef   :  { %v4456_v35 = vsel %vm4454_vm7, %v4455_v51, %v4451_v63  ;;  %v708_v1 = vadd.f32 %v707_v59, %v14363_v6  ;;  %v4540_v58 = vshll.u32 %v14170_v12, %v4528_v18  ;;  %v4543_v19 = vshll.u32 %v14168_v32, %v4528_v18 }
 0x3f0   :  { %v11246_v55 = vadd.s32 %v4456_v35, %v4452_v38  ;;  %v4532_v0 = vshrl.u32 %v14016_v28, %v11241_v9  ;;  %v4535_v17 = vshrl.u32 %v14216_v52, %v11241_v9  ;;  %v4538_v61 = vshrl.u32 %v14170_v12, %v11241_v9  ;;  %v908_v38 = vpop.f32.mrf.mxu3 }
 0x3f1   :  { %v4541_v54 = vshrl.u32 %v14168_v32, %v11241_v9  ;;  %v4544_v4 = vshrl.u32 %v14171_v21, %v11241_v9  ;;  %v11260_v23 = vshrl.u32 %v4526_v49, 5  ;;  %v4531_v37 = vshll.u32 %v14020_v34, %v4528_v18 }
 0x3f2   :  { %v4534_v8 = vshll.u32 %v14016_v28, %v4528_v18  ;;  %v4537_v43 = vshll.u32 %v14216_v52, %v4528_v18  ;;  %v4143_v29 = vadd.s32 %v10926_v56, %v10905_v48  ;;  %v4309_v63 = vsel %vm4307_vm14, %v4308_v62, %v11216_v57 }
 0x3f3   :  { %v4542_v59 = vor.u32 %v4541_v54, %v4540_v58  ;;  %v4545_v51 = vor.u32 %v4544_v4, %v4543_v19  ;;  %v4522_v35 = vor.u32 8388608, %v4521_v42  ;;  %v11270_v6 = vor.u32 %v4532_v0, %v4531_v37 }
 0x3f4   :  { %v11272_v49 = vor.u32 %v4535_v17, %v4534_v8  ;;  %v11274_v53 = vor.u32 %v4538_v61, %v4537_v43  ;;  %v3724_v31 = vmul.f32 %v3723_v2, %v11051_v26  ;;  %v3877_v18 = vmul.f32 %v3876_v24, %v11183_v40  ;;  %v1074_v24 = vpop.f32.mrf.mxu0 }
 0x3f5   :  { %v11280_v48 = vmul.f32 %v11232_v16, %v11232_v16  ;;  %v4458_v56 = vadd.s32 536870912, %v11246_v55  ;;  %v4161_v62 = vshrl.u32 %v4143_v29, %v4159_v3  ;;  %v4164_v58 = vadd.s32 127, %v4163_v33 }
 0x3f6   :  { %vm4549_vm9 = vcmp.lt.s32.totalorder %v11260_v23, 4  ;;  %v909_v42 = vadd.f32 %v908_v38, %v708_v1  ;;  %v4310_v0 = vclz %v4309_v63  ;;  %vm4546_vm0 = vcmp.lt.s32.totalorder %v11260_v23, 1 }
 0x3f7   :  { %14364 = vst [vmem:[#allocation20_spill] sm:$0xff] %v11280_v48  ;;  %v4555_v19 = vsel %vm4549_vm9, %v4542_v59, 920167782  ;;  %v4559_v2 = vsel %vm4549_vm9, %v4545_v51, 1326507024  ;;  %vm4548_vm12 = vcmp.lt.s32.totalorder %v11260_v23, 3  ;;  %v4554_v3 = vsel %vm4546_vm0, %v11270_v6, %v11272_v49  ;;  %v1220_v51 = vpop.f32.mrf.mxu1 }
 0x3f8   :  { %v4558_v33 = vsel %vm4546_vm0, %v11272_v49, %v11274_v53  ;;  %v11298_v1 = vshll.u32 %v4522_v35, 8  ;;  %v4160_v17 = vshll.u32 %v11054_v7, %v11213_v46  ;;  %v11302_v61 = vshrl.u32 %v4458_v56, 30 }
 0x3f9   :  { %v4556_v54 = vsel %vm4548_vm12, %v11274_v53, %v4555_v19  ;;  %v4560_v4 = vsel %vm4548_vm12, %v4542_v59, %v4559_v2  ;;  %v3878_v37 = vadd.f32 -0.16666654, %v3877_v18  ;;  %v4165_v8 = vshll.u32 %v4164_v58, 23 }
 0x3fa   :  { %14365 = vst [vmem:[#allocation82_spill] sm:$0xff] %v11302_v61  ;;  %vm4547_vm1 = vcmp.lt.s32.totalorder %v11260_v23, 2  ;;  %v1075_v43 = vadd.f32 %v1074_v24, %v909_v42  ;;  %v4030_v29 = vmul.f32 -0.00019511016, %v11280_v48  ;;  %v4162_v63 = vor.u32 %v4161_v62, %v4160_v17 }
 0x3fb   :  { %v4557_v7 = vsel %vm4547_vm1, %v4554_v3, %v4556_v54  ;;  %v4561_v46 = vsel %vm4547_vm1, %v4558_v33, %v4560_v4  ;;  %v6443_v38 = vadd.s32 4294967294, %v4310_v0  ;;  %v4563_v35 = vand.u32 65535, %v11298_v1 }
 0x3fc   :  { %v4564_v59 = vshrl.u32 %v11298_v1, 16  ;;  %v4565_v18 = vand.u32 65535, %v4561_v46  ;;  %v4460_v56 = vshll.u32 %v11302_v61, 30  ;;  %v4566_v58 = vshrl.u32 %v4561_v46, 16 }
 0x3fd   :  { %v4587_v42 = vand.u32 65535, %v4557_v7  ;;  %v4588_v19 = vshrl.u32 %v4557_v7, 16  ;;  %v11318_v2 = vadd.f32 1.0, %v3724_v31  ;;  %v11321_v62 = vand.u32 3, %v11227_v39 }
 0x3fe   :  { %v4166_v24 = vor.u32 4788187, %v4165_v8  ;;  %v11323_v3 = vadd.f32 %v1220_v51, %v1075_v43  ;;  %v3879_v0 = vmul.f32 %v3878_v37, %v11183_v40  ;;  %v4018_v33 = vsub.s32 4, %v10847_v44 }
 0x3ff   :  { %14366 = vst [vmem:[#allocation83_spill] sm:$0xff] %v11321_v62  ;;  %v4568_v17 = vmul.u32 %v4566_v58, %v4563_v35  ;;  %v11327_v54 = vmul.u32 %v4565_v18, %v4564_v59  ;;  %v4031_v4 = vadd.f32 0.008332121, %v4030_v29  ;;  %v4169_v26 = vcvt.s32.f32 %v4162_v63 }
 0x400   :  { %14367 = vst [vmem:[#allocation84_spill] sm:$0xff] %v11323_v3  ;;  %vm6444_vm10 = vcmp.lt.s32.totalorder %v6443_v38, 0  ;;  %v4590_v46 = vmul.u32 %v4588_v19, %v4563_v35  ;;  %v11330_v31 = vsub.s32 %v11246_v55, %v4460_v56  ;;  %v4567_v7 = vmul.u32 %v4565_v18, %v4563_v35 }
 0x401   :  { %v4571_v39 = vshll.u32 %v4568_v17, 16  ;;  %v11332_v62 = vmul.u32 %v4587_v42, %v4564_v59  ;;  %v4167_v8 = vand.u32 2147483647, %v4166_v24  ;;  %v4589_v43 = vmul.u32 %v4587_v42, %v4563_v35  ;;  %v14368_v42 = vld [vmem:[#allocation59_spill] sm:$0xff] }
 0x402   :  { %v4593_v51 = vshll.u32 %v4590_v46, 16  ;;  %v4672_v37 = vand.u32 2139095040, %v11323_v3  ;;  %v11335_v40 = vsel %vm6444_vm10, 0, %v6443_v38  ;;  %v4570_v15 = vmul.u32 %v4566_v58, %v4564_v59 }
 0x403   :  { %v4573_v29 = vshll.u32 %v11327_v54, 16  ;;  %vm4575_vm3 = vc.u32 %v4567_v7, %v4571_v39  ;;  %v4577_v5 = vadd.s32 %v4571_v39, %v4567_v7  ;;  %v4592_v55 = vmul.u32 %v4588_v19, %v4564_v59 }
 0x404   :  { %v4576_v63 = vsel %vm4575_vm3, 1, %v14048_v60  ;;  %vm4597_vm15 = vc.u32 %v4589_v43, %v4593_v51  ;;  %v4463_v18 = vsub.s32 0, %v11330_v31  ;;  %v4595_v24 = vshll.u32 %v11332_v62, 16 }
 0x405   :  { %v4578_v56 = vadd.s32 %v4576_v63, %v4570_v15  ;;  %v4598_v35 = vsel %vm4597_vm15, 1, %v14048_v60  ;;  %vm4051_vm11 = vcmp.lt.s32.totalorder %v14368_v42, 0  ;;  %vm4579_vm8 = vc.u32 %v4577_v5, %v4573_v29 }
 0x406   :  { %v4599_v38 = vadd.s32 %v4593_v51, %v4589_v43  ;;  %v4600_v58 = vadd.s32 %v4598_v35, %v4592_v55  ;;  %v4673_v20 = vshrl.u32 %v4672_v37, 23  ;;  %v11343_v27 = vadd.f32 1.0, %v3879_v0 }
 0x407   :  { %v4170_v61 = vmul.f32 %v4169_v26, %v4167_v8  ;;  %vm4462_vm5 = vcmp.lt.s32.totalorder %v11330_v31, 0  ;;  %v4580_v59 = vsel %vm4579_vm8, 1, %v14048_v60  ;;  %v11350_v15 = vsel %vm3896_vm6, %v4018_v33, %v10847_v44 }
 0x408   :  { %v4318_v19 = vsub.s32 4294967266, %v11335_v40  ;;  %vm4601_vm13 = vc.u32 %v4599_v38, %v4595_v24  ;;  %v6451_v7 = vadd.s32 4294967169, %v4673_v20  ;;  %v4032_v5 = vmul.f32 %v4031_v4, %v11280_v48 }
 0x409   :  { %v4173_v39 = vsub.s32 4, %v10997_v45  ;;  %v4602_v0 = vsel %vm4601_vm13, 1, %v14048_v60  ;;  %v13868_v26 = vand.u32 2147483647, %v11323_v3  ;;  %v4464_v8 = vsel %vm4462_vm5, %v4463_v18, %v11330_v31 }
 0x40a   :  { %v4582_v43 = vadd.s32 %v4580_v59, %v4578_v56  ;;  %v4604_v51 = vadd.s32 %v4602_v0, %v4600_v58  ;;  %v4679_v37 = vadd.s32 1, %v6451_v7  ;;  %v4171_v29 = vxor.u32 2147483648, %v4170_v61 }
 0x40b   :  { %v4314_v44 = vsub.s32 32, %v11335_v40  ;;  %v4551_v20 = vsel %vm4549_vm9, %v11274_v53, 2102212464  ;;  %v4594_v33 = vshrl.u32 %v4590_v46, 16  ;;  %v4319_v4 = vadd.s32 127, %v4318_v19 }
 0x40c   :  { %v4530_v63 = vshrl.u32 %v14020_v34, %v11241_v9  ;;  %v4572_v55 = vshrl.u32 %v4568_v17, 16  ;;  %vm4680_vm6 = vcmp.gt.s32.totalorder %v4679_v37, 0  ;;  %v4298_v18 = vadd.s32 %v11091_v50, %v11072_v47 }
 0x40d   :  { %v4465_v56 = vclz %v4464_v8  ;;  %v4605_v35 = vadd.s32 %v4604_v51, %v4594_v33  ;;  %v4681_v58 = vsel %vm4680_vm6, %v4679_v37, 0  ;;  %v4552_v53 = vsel %vm4548_vm12, %v11272_v49, %v4551_v20 }
 0x40e   :  { %v4550_v59 = vsel %vm4546_vm0, %v4530_v63, %v11270_v6  ;;  %v4583_v46 = vadd.s32 %v4582_v43, %v4572_v55  ;;  %v4676_v9 = vand.u32 8388607, %v13868_v26  ;;  %v4033_v17 = vadd.f32 -0.16666654, %v4032_v5  ;;  %v1224_v26 = vpop.f32.mrf.mxu1 }
 0x40f   :  { %v11376_v19 = vsel %vm4051_vm11, %v4171_v29, %v4170_v61  ;;  %v4596_v47 = vshrl.u32 %v11332_v62, 16  ;;  %v4683_v50 = vand.u32 31, %v4681_v58  ;;  %v4315_v7 = vshll.u32 %v11216_v57, %v11335_v40 }
 0x410   :  { %v4316_v6 = vshrl.u32 %v4298_v18, %v4314_v44  ;;  %v4320_v0 = vshll.u32 %v4319_v4, 23  ;;  %v4574_v8 = vshrl.u32 %v11327_v54, 16  ;;  %v6446_v49 = vadd.s32 4294967294, %v4465_v56 }
 0x411   :  { %v4553_v43 = vsel %vm4547_vm1, %v4550_v59, %v4552_v53  ;;  %v4606_v51 = vadd.s32 %v4605_v35, %v4596_v47  ;;  %v11384_v5 = vsub.s32 32, %v4683_v50  ;;  %v11388_v61 = vadd.s32 %v4599_v38, %v4595_v24 }
 0x412   :  { %v11386_v37 = vadd.s32 %v4583_v46, %v4574_v8  ;;  %v4677_v62 = vor.u32 8388608, %v4676_v9  ;;  %v11390_v29 = vshrl.u32 %v4681_v58, 5  ;;  %v4686_v40 = vshll.u32 %v14020_v34, %v4683_v50  ;;  %v712_v9 = vpop.f32.mrf.mxu2 }
 0x413   :  { %v4687_v57 = vshrl.u32 %v14016_v28, %v11384_v5  ;;  %v4689_v54 = vshll.u32 %v14016_v28, %v4683_v50  ;;  %v4692_v23 = vshll.u32 %v14216_v52, %v4683_v50  ;;  %v4690_v44 = vshrl.u32 %v14216_v52, %v11384_v5 }
 0x414   :  { %v4693_v20 = vshrl.u32 %v14170_v12, %v11384_v5  ;;  %v4695_v24 = vshll.u32 %v14170_v12, %v4683_v50  ;;  %v4696_v38 = vshrl.u32 %v14168_v32, %v11384_v5  ;;  %v14369_v33 = vand.u32 2147483647, %v14368_v42 }
 0x415   :  { %v4610_v63 = vadd.s32 1, %v4606_v51  ;;  %v11410_v55 = vor.u32 %v4687_v57, %v4686_v40  ;;  %v4698_v18 = vshll.u32 %v14168_v32, %v4683_v50  ;;  %v4699_v56 = vshrl.u32 %v14171_v21, %v11384_v5 }
 0x416   :  { %vm11406_vm4 = vcmp.le.f32.partialorder %v14369_v33, 0.7853982  ;;  %vm4609_vm7 = vc.u32 %v11386_v37, %v11388_v61  ;;  %v11417_v35 = vor.u32 %v4690_v44, %v4689_v54  ;;  %v11419_v58 = vor.u32 %v4693_v20, %v4692_v23  ;;  %v14372_v44 = vld [vmem:[#allocation21_spill] sm:$0xff] }
 0x417   :  { %v4697_v59 = vor.u32 %v4696_v38, %v4695_v24  ;;  %v4321_v53 = vor.u32 4788187, %v4320_v0  ;;  %v4700_v46 = vor.u32 %v4699_v56, %v4698_v18  ;;  %vm4701_vm14 = vcmp.lt.s32.totalorder %v11390_v29, 1 }
 0x418   :  { %vm4704_vm9 = vcmp.lt.s32.totalorder %v11390_v29, 4  ;;  %vm6447_vm0 = vcmp.lt.s32.totalorder %v6446_v49, 0  ;;  %v4709_v47 = vsel %vm4701_vm14, %v11410_v55, %v11417_v35  ;;  %v11429_v8 = vshll.u32 %v4677_v62, 8 }
 0x419   :  { %v4710_v50 = vsel %vm4704_vm9, %v4697_v59, 920167782  ;;  %v4317_v40 = vor.u32 %v4316_v6, %v4315_v7  ;;  %v4607_v0 = vmul.u32 %v11298_v1, %v4553_v43  ;;  %v4611_v57 = vsel %vm4609_vm7, %v4610_v63, %v4606_v51  ;;  %v914_v6 = vpop.f32.mrf.mxu3 }
 0x41a   :  { %vm4703_vm12 = vcmp.lt.s32.totalorder %v11390_v29, 3  ;;  %vm4702_vm1 = vcmp.lt.s32.totalorder %v11390_v29, 2  ;;  %v4714_v23 = vsel %vm4704_vm9, %v4700_v46, 1326507024  ;;  %v713_v20 = vadd.f32 %v712_v9, %v14372_v44  ;;  %v717_v29 = vpop.f32.mrf.mxu2 }
 0x41b   :  { %v4711_v54 = vsel %vm4703_vm12, %v11419_v58, %v4710_v50  ;;  %v4322_v24 = vand.u32 2147483647, %v4321_v53  ;;  %v11440_v62 = vsel %vm6447_vm0, 0, %v6446_v49  ;;  %v4713_v7 = vsel %vm4701_vm14, %v11417_v35, %v11419_v58 }
 0x41c   :  { %v4712_v1 = vsel %vm4702_vm1, %v4709_v47, %v4711_v54  ;;  %v11448_v43 = vadd.s32 %v4611_v57, %v4607_v0  ;;  %v4715_v51 = vsel %vm4703_vm12, %v4697_v59, %v4714_v23  ;;  %v4718_v38 = vand.u32 65535, %v11429_v8 }
 0x41d   :  { %v4743_v33 = vshrl.u32 %v4712_v1, 16  ;;  %v4034_v49 = vmul.f32 %v4033_v17, %v11280_v48  ;;  %v11459_v63 = vsel %vm4051_vm11, %v4173_v39, %v10997_v45  ;;  %v4324_v18 = vcvt.s32.f32 %v4317_v40  ;;  %v1078_v39 = vpop.f32.mrf.mxu0 }
 0x41e   :  { %v4742_v56 = vand.u32 65535, %v4712_v1  ;;  %v11465_v53 = vsel %vm11406_vm4, %v14368_v42, %v11376_v19  ;;  %v4716_v59 = vsel %vm4702_vm1, %v4713_v7, %v4715_v51  ;;  %v915_v17 = vadd.f32 %v914_v6, %v713_v20 }
 0x41f   :  { %14373 = vst [vmem:[#allocation21_spill] sm:$0xff] %v11465_v53  ;;  %v4745_v46 = vmul.u32 %v4743_v33, %v4718_v38  ;;  %v4325_v9 = vmul.f32 %v4324_v18, %v4322_v24  ;;  %v4473_v47 = vsub.s32 4294967266, %v11440_v62  ;;  %v4719_v50 = vshrl.u32 %v11429_v8, 16 }
 0x420   :  { %v4720_v45 = vand.u32 65535, %v4716_v59  ;;  %vm4206_vm10 = vcmp.lt.s32.totalorder %v10813_v14, 0  ;;  %v4613_v19 = vadd.s32 536870912, %v11448_v43  ;;  %v4721_v0 = vshrl.u32 %v4716_v59, 16 }
 0x421   :  { %v4748_v57 = vshll.u32 %v4745_v46, 16  ;;  %v11476_v54 = vadd.f32 1.0, %v4034_v49  ;;  %v11483_v44 = vmul.f32 %v11465_v53, %v11465_v53  ;;  %v4746_v20 = vmul.u32 %v4742_v56, %v4719_v50 }
 0x422   :  { %v4723_v24 = vmul.u32 %v4721_v0, %v4718_v38  ;;  %v4724_v1 = vmul.u32 %v4720_v45, %v4719_v50  ;;  %v4744_v7 = vmul.u32 %v4742_v56, %v4718_v38  ;;  %v1079_v6 = vadd.f32 %v1078_v39, %v915_v17 }
 0x423   :  { %14374 = vst [vmem:[#allocation85_spill] sm:$0xff] %v11483_v44  ;;  %v4326_v51 = vxor.u32 2147483648, %v4325_v9  ;;  %v4453_v18 = vadd.s32 %v11223_v25, %v11221_v13  ;;  %v4469_v49 = vsub.s32 32, %v11440_v62  ;;  %v4474_v59 = vadd.s32 127, %v4473_v47 }
 0x424   :  { %v11488_v40 = vshrl.u32 %v4613_v19, 30  ;;  %v4722_v23 = vmul.u32 %v4720_v45, %v4718_v38  ;;  %v4726_v42 = vshll.u32 %v4723_v24, 16  ;;  %vm4752_vm3 = vc.u32 %v4744_v7, %v4748_v57 }
 0x425   :  { %v4747_v41 = vmul.u32 %v4743_v33, %v4719_v50  ;;  %v4750_v48 = vshll.u32 %v4746_v20, 16  ;;  %v4753_v3 = vsel %vm4752_vm3, 1, %v14048_v60  ;;  %v4754_v53 = vadd.s32 %v4748_v57, %v4744_v7 }
 0x426   :  { %v4725_v56 = vmul.u32 %v4721_v0, %v4719_v50  ;;  %v4728_v17 = vshll.u32 %v4724_v1, 16  ;;  %vm4730_vm15 = vc.u32 %v4722_v23, %v4726_v42  ;;  %v11491_v39 = vadd.f32 %v1224_v26, %v1079_v6 }
 0x427   :  { %v14376_v13 = vand.u32 2147483647, %v10813_v14  ;;  %v4731_v38 = vsel %vm4730_vm15, 1, %v14048_v60  ;;  %v4732_v47 = vadd.s32 %v4726_v42, %v4722_v23  ;;  %v4755_v45 = vadd.s32 %v4753_v3, %v4747_v41 }
 0x428   :  { %14375 = vst [vmem:[#allocation86_spill] sm:$0xff] %v11491_v39  ;;  %vm4756_vm8 = vc.u32 %v4754_v53, %v4750_v48  ;;  %v4475_v33 = vshll.u32 %v4474_v59, 23  ;;  %v4615_v19 = vshll.u32 %v11488_v40, 30  ;;  %v4733_v57 = vadd.s32 %v4731_v38, %v4725_v56 }
 0x429   :  { %vm11495_vm11 = vcmp.le.f32.partialorder %v14376_v13, 0.7853982  ;;  %v4757_v50 = vsel %vm4756_vm8, 1, %v14048_v60  ;;  %v4327_v26 = vsel %vm4206_vm10, %v4326_v51, %v4325_v9  ;;  %vm4734_vm5 = vc.u32 %v4732_v47, %v4728_v17 }
 0x42a   :  { %v4749_v0 = vshrl.u32 %v4745_v46, 16  ;;  %v4759_v7 = vadd.s32 %v4757_v50, %v4755_v45  ;;  %v4471_v6 = vshrl.u32 %v4453_v18, %v4469_v49  ;;  %v4706_v13 = vsel %vm4704_vm9, %v11419_v58, 2102212464 }
 0x42b   :  { %v4735_v41 = vsel %vm4734_vm5, 1, %v14048_v60  ;;  %v4751_v3 = vshrl.u32 %v4746_v20, 16  ;;  %v4727_v42 = vshrl.u32 %v4723_v24, 16  ;;  %v4827_v56 = vand.u32 2139095040, %v11491_v39 }
 0x42c   :  { %v4737_v23 = vadd.s32 %v4735_v41, %v4733_v57  ;;  %v4760_v59 = vadd.s32 %v4759_v7, %v4749_v0  ;;  %v4470_v38 = vshll.u32 %v11330_v31, %v11440_v62  ;;  %v4476_v9 = vor.u32 4788187, %v4475_v33 }
 0x42d   :  { %v11512_v46 = vsub.s32 %v11448_v43, %v4615_v19  ;;  %v4685_v51 = vshrl.u32 %v14020_v34, %v11384_v5  ;;  %v4729_v18 = vshrl.u32 %v4724_v1, 16  ;;  %v4828_v17 = vshrl.u32 %v4827_v56, 23 }
 0x42e   :  { %v4738_v58 = vadd.s32 %v4737_v23, %v4727_v42  ;;  %v4761_v49 = vadd.s32 %v4760_v59, %v4751_v3  ;;  %v4185_v20 = vmul.f32 -0.00019511016, %v11483_v44  ;;  %v4472_v24 = vor.u32 %v4471_v6, %v4470_v38  ;;  %v14385_v6 = vld [vmem:[#allocation23_spill] sm:$0xff]  ;;  %v920_v59 = vpop.f32.mrf.mxu3 }
 0x42f   :  { %v4705_v47 = vsel %vm4701_vm14, %v4685_v51, %v11410_v55  ;;  %v4707_v31 = vsel %vm4703_vm12, %v11417_v35, %v4706_v13  ;;  %v11525_v43 = vadd.s32 %v4754_v53, %v4750_v48  ;;  %v6454_v1 = vadd.s32 4294967169, %v4828_v17 }
 0x430   :  { %v11523_v62 = vadd.s32 %v4738_v58, %v4729_v18  ;;  %v4765_v5 = vadd.s32 1, %v4761_v49  ;;  %v11529_v45 = vmul.f32 %v11318_v2, %v11034_v36  ;;  %v11533_v33 = vmul.f32 %v11343_v27, %v11133_v22 }
 0x431   :  { %v11538_v55 = vsel %vm11495_vm11, %v10813_v14, %v4327_v26  ;;  %v4477_v35 = vand.u32 2147483647, %v4476_v9  ;;  %v4618_v19 = vsub.s32 0, %v11512_v46  ;;  %v4708_v48 = vsel %vm4702_vm1, %v4705_v47, %v4707_v31 }
 0x432   :  { %14379 = vst [vmem:[#allocation87_spill] sm:$0xff] %v11529_v45  ;;  %vm4764_vm13 = vc.u32 %v11523_v62, %v11525_v43  ;;  %v4834_v36 = vadd.s32 1, %v6454_v1  ;;  %v11547_v2 = vmul.f32 %v11476_v54, %v11232_v16  ;;  %v14382_v22 = vsel %vm11194_vm2, 0, %v11350_v15 }
 0x433   :  { %14380 = vst [vmem:[#allocation88_spill] sm:$0xff] %v11533_v33  ;;  %v4038_v27 = vadd.s32 3, %v14382_v22  ;;  %v14383_v53 = vsel %vm11406_vm4, 0, %v11459_v63  ;;  %vm4617_vm6 = vcmp.lt.s32.totalorder %v11512_v46, 0  ;;  %v4186_v50 = vadd.f32 0.008332121, %v4185_v20  ;;  %v1082_v22 = vpop.f32.mrf.mxu0 }
 0x434   :  { %14381 = vst [vmem:[#allocation89_spill] sm:$0xff] %v11547_v2  ;;  %v4193_v57 = vadd.s32 3, %v14383_v53  ;;  %v4479_v26 = vcvt.s32.f32 %v4472_v24  ;;  %v4766_v0 = vsel %vm4764_vm13, %v4765_v5, %v4761_v49  ;;  %vm4835_vm7 = vcmp.gt.s32.totalorder %v4834_v36, 0 }
 0x435   :  { %v11560_v16 = vmul.f32 %v11538_v55, %v11538_v55  ;;  %v4762_v10 = vmul.u32 %v11429_v8, %v4708_v48  ;;  %v13876_v15 = vand.u32 2147483647, %v11491_v39  ;;  %v4836_v54 = vsel %vm4835_vm7, %v4834_v36, 0 }
 0x436   :  { %v4480_v4 = vmul.f32 %v4479_v26, %v4477_v35  ;;  %v4619_v63 = vsel %vm4617_vm6, %v4618_v19, %v11512_v46  ;;  %v4838_v7 = vand.u32 31, %v4836_v54  ;;  %v718_v13 = vadd.f32 %v717_v29, %v14385_v6 }
 0x437   :  { %14384 = vst [vmem:[#allocation90_spill] sm:$0xff] %v11560_v16  ;;  %v11568_v42 = vand.u32 3, %v4038_v27  ;;  %v11570_v23 = vadd.s32 %v4766_v0, %v4762_v10  ;;  %v11573_v56 = vand.u32 3, %v4193_v57  ;;  %vm4361_vm2 = vcmp.lt.s32.totalorder %v11002_v11, 0 }
 0x438   :  { %v11576_v38 = vsub.s32 32, %v4838_v7  ;;  %v4187_v9 = vmul.f32 %v4186_v50, %v11483_v44  ;;  %v4328_v51 = vsub.s32 4, %v11186_v30  ;;  %v4620_v18 = vclz %v4619_v63 }
 0x439   :  { %14386 = vst [vmem:[#allocation23_spill] sm:$0xff] %v11568_v42  ;;  %v4831_v58 = vand.u32 8388607, %v13876_v15  ;;  %v4340_v49 = vmul.f32 -0.00019511016, %v11560_v16  ;;  %v4481_v17 = vxor.u32 2147483648, %v4480_v4  ;;  %v921_v24 = vadd.f32 %v920_v59, %v718_v13 }
 0x43a   :  { %14387 = vst [vmem:[#allocation91_spill] sm:$0xff] %v11573_v56  ;;  %v4842_v20 = vshrl.u32 %v14016_v28, %v11576_v38  ;;  %v4768_v47 = vadd.s32 536870912, %v11570_v23  ;;  %v4845_v31 = vshrl.u32 %v14216_v52, %v11576_v38  ;;  %v4848_v5 = vshrl.u32 %v14170_v12, %v11576_v38 }
 0x43b   :  { %v4851_v1 = vshrl.u32 %v14168_v32, %v11576_v38  ;;  %v4841_v35 = vshll.u32 %v14020_v34, %v4838_v7  ;;  %v4844_v19 = vshll.u32 %v14016_v28, %v4838_v7  ;;  %v4850_v48 = vshll.u32 %v14170_v12, %v4838_v7 }
 0x43c   :  { %v4854_v36 = vshrl.u32 %v14171_v21, %v11576_v38  ;;  %v6449_v27 = vadd.s32 4294967294, %v4620_v18  ;;  %v4832_v53 = vor.u32 8388608, %v4831_v58  ;;  %v11597_v57 = vshrl.u32 %v4836_v54, 5 }
 0x43d   :  { %v4847_v29 = vshll.u32 %v14216_v52, %v4838_v7  ;;  %v11600_v50 = vor.u32 %v4842_v20, %v4841_v35  ;;  %v11602_v26 = vor.u32 %v4845_v31, %v4844_v19  ;;  %v4852_v0 = vor.u32 %v4851_v1, %v4850_v48  ;;  %v1228_v1 = vpop.f32.mrf.mxu1 }
 0x43e   :  { %v4853_v10 = vshll.u32 %v14168_v32, %v4838_v7  ;;  %v4188_v63 = vadd.f32 -0.16666654, %v4187_v9  ;;  %v14388_v6 = vand.u32 2147483647, %v11002_v11  ;;  %v1083_v54 = vadd.f32 %v1082_v22, %v921_v24 }
 0x43f   :  { %v11611_v59 = vor.u32 %v4848_v5, %v4847_v29  ;;  %v4329_v18 = vsel %vm4206_vm10, %v4328_v51, %v11186_v30  ;;  %v4341_v58 = vadd.f32 0.008332121, %v4340_v49  ;;  %v11616_v20 = vshrl.u32 %v4768_v47, 30 }
 0x440   :  { %vm11607_vm4 = vcmp.le.f32.partialorder %v14388_v6, 0.7853982  ;;  %v4855_v31 = vor.u32 %v4854_v36, %v4853_v10  ;;  %v4482_v7 = vsel %vm4361_vm2, %v4481_v17, %v4480_v4  ;;  %vm6450_vm14 = vcmp.lt.s32.totalorder %v6449_v27, 0 }
 0x441   :  { %vm4856_vm9 = vcmp.lt.s32.totalorder %v11597_v57, 1  ;;  %vm4859_vm0 = vcmp.lt.s32.totalorder %v11597_v57, 4  ;;  %vm4858_vm12 = vcmp.lt.s32.totalorder %v11597_v57, 3  ;;  %v11629_v51 = vshll.u32 %v4832_v53, 8 }
 0x442   :  { %v4864_v30 = vsel %vm4856_vm9, %v11600_v50, %v11602_v26  ;;  %v4865_v9 = vsel %vm4859_vm0, %v4852_v0, 920167782  ;;  %vm4857_vm1 = vcmp.lt.s32.totalorder %v11597_v57, 2  ;;  %v4868_v49 = vsel %vm4856_vm9, %v11602_v26, %v11611_v59 }
 0x443   :  { %v4866_v4 = vsel %vm4858_vm12, %v11611_v59, %v4865_v9  ;;  %v11639_v17 = vadd.f32 %v1228_v1, %v1083_v54  ;;  %v11641_v24 = vsel %vm6450_vm14, 0, %v6449_v27  ;;  %v4770_v47 = vshll.u32 %v11616_v20, 30 }
 0x444   :  { %v4867_v5 = vsel %vm4857_vm1, %v4864_v30, %v4866_v4  ;;  %v4869_v35 = vsel %vm4859_vm0, %v4855_v31, 1326507024  ;;  %v4189_v19 = vmul.f32 %v4188_v63, %v11483_v44  ;;  %v4342_v48 = vmul.f32 %v4341_v58, %v11560_v16 }
 0x445   :  { %14391 = vst [vmem:[#allocation92_spill] sm:$0xff] %v11639_v17  ;;  %v4870_v36 = vsel %vm4858_vm12, %v4852_v0, %v4869_v35  ;;  %v4897_v22 = vand.u32 65535, %v4867_v5  ;;  %v4331_v27 = vsel %vm11495_vm11, 0, %v4329_v18  ;;  %v4873_v29 = vand.u32 65535, %v11629_v51 }
 0x446   :  { %v4871_v53 = vsel %vm4857_vm1, %v4868_v49, %v4870_v36  ;;  %v4898_v10 = vshrl.u32 %v4867_v5, 16  ;;  %v11660_v6 = vsel %vm11607_vm4, %v11002_v11, %v4482_v7  ;;  %v4628_v63 = vsub.s32 4294967266, %v11641_v24 }
 0x447   :  { %v4874_v54 = vshrl.u32 %v11629_v51, 16  ;;  %v4982_v0 = vand.u32 2139095040, %v11639_v17  ;;  %v11666_v25 = vsub.s32 %v11570_v23, %v4770_v47  ;;  %v4875_v18 = vand.u32 65535, %v4871_v53 }
 0x448   :  { %v4876_v58 = vshrl.u32 %v4871_v53, 16  ;;  %v4900_v31 = vmul.u32 %v4898_v10, %v4873_v29  ;;  %v11668_v1 = vadd.f32 1.0, %v4189_v19  ;;  %v11670_v30 = vadd.f32 -0.16666654, %v4342_v48 }
 0x449   :  { %v11672_v9 = vadd.s32 3, %v4331_v27  ;;  %v4901_v7 = vmul.u32 %v4897_v22, %v4874_v54  ;;  %v11676_v4 = vmul.f32 %v11660_v6, %v11660_v6  ;;  %v4624_v49 = vsub.s32 32, %v11641_v24 }
 0x44a   :  { %v4878_v5 = vmul.u32 %v4876_v58, %v4873_v29  ;;  %v4879_v35 = vmul.u32 %v4875_v18, %v4874_v54  ;;  %v4629_v23 = vadd.s32 127, %v4628_v63  ;;  %v4840_v47 = vshrl.u32 %v14020_v34, %v11576_v38 }
 0x44b   :  { %14392 = vst [vmem:[#allocation93_spill] sm:$0xff] %v11676_v4  ;;  %v4903_v36 = vshll.u32 %v4900_v31, 16  ;;  %v4983_v19 = vshrl.u32 %v4982_v0, 23  ;;  %vm4772_vm10 = vcmp.lt.s32.totalorder %v11666_v25, 0  ;;  %v4877_v48 = vmul.u32 %v4875_v18, %v4873_v29 }
 0x44c   :  { %v4881_v27 = vshll.u32 %v4878_v5, 16  ;;  %v4899_v53 = vmul.u32 %v4897_v22, %v4873_v29  ;;  %v4880_v8 = vmul.u32 %v4876_v58, %v4874_v54  ;;  %v4883_v41 = vshll.u32 %v4879_v35, 16 }
 0x44d   :  { %v4902_v3 = vmul.u32 %v4898_v10, %v4874_v54  ;;  %v4905_v15 = vshll.u32 %v4901_v7, 16  ;;  %v4861_v63 = vsel %vm4859_vm0, %v11611_v59, 2102212464  ;;  %v6457_v2 = vadd.s32 4294967169, %v4983_v19 }
 0x44e   :  { %vm4885_vm3 = vc.u32 %v4877_v48, %v4881_v27  ;;  %v4887_v56 = vadd.s32 %v4881_v27, %v4877_v48  ;;  %vm4907_vm15 = vc.u32 %v4899_v53, %v4903_v36  ;;  %v4909_v14 = vadd.s32 %v4903_v36, %v4899_v53 }
 0x44f   :  { %v4886_v38 = vsel %vm4885_vm3, 1, %v14048_v60  ;;  %v4908_v0 = vsel %vm4907_vm15, 1, %v14048_v60  ;;  %v4773_v29 = vsub.s32 0, %v11666_v25  ;;  %v4904_v54 = vshrl.u32 %v4900_v31, 16 }
 0x450   :  { %v4888_v18 = vadd.s32 %v4886_v38, %v4880_v8  ;;  %vm4889_vm11 = vc.u32 %v4887_v56, %v4883_v41  ;;  %v4910_v22 = vadd.s32 %v4908_v0, %v4902_v3  ;;  %vm4911_vm8 = vc.u32 %v4909_v14, %v4905_v15 }
 0x451   :  { %v4890_v10 = vsel %vm4889_vm11, 1, %v14048_v60  ;;  %v4912_v58 = vsel %vm4911_vm8, 1, %v14048_v60  ;;  %v4882_v36 = vshrl.u32 %v4878_v5, 16  ;;  %v4989_v59 = vadd.s32 1, %v6457_v2 }
 0x452   :  { %v4892_v48 = vadd.s32 %v4890_v10, %v4888_v18  ;;  %v4914_v27 = vadd.s32 %v4912_v58, %v4910_v22  ;;  %v4630_v53 = vshll.u32 %v4629_v23, 23  ;;  %v4860_v19 = vsel %vm4856_vm9, %v4840_v47, %v11600_v50 }
 0x453   :  { %v4862_v41 = vsel %vm4858_vm12, %v11602_v26, %v4861_v63  ;;  %v4884_v3 = vshrl.u32 %v4879_v35, 16  ;;  %v4906_v56 = vshrl.u32 %v4901_v7, 16  ;;  %vm4990_vm5 = vcmp.gt.s32.totalorder %v4989_v59, 0 }
 0x454   :  { %v4893_v8 = vadd.s32 %v4892_v48, %v4882_v36  ;;  %v4915_v38 = vadd.s32 %v4914_v27, %v4904_v54  ;;  %v4608_v31 = vadd.s32 %v11388_v61, %v11386_v37  ;;  %v4774_v2 = vsel %vm4772_vm10, %v4773_v29, %v11666_v25 }
 0x455   :  { %v13882_v5 = vand.u32 2147483647, %v11639_v17  ;;  %v4991_v23 = vsel %vm4990_vm5, %v4989_v59, 0  ;;  %v4863_v50 = vsel %vm4857_vm1, %v4860_v19, %v4862_v41  ;;  %v11706_v26 = vadd.s32 %v4909_v14, %v4905_v15 }
 0x456   :  { %v11704_v47 = vadd.s32 %v4893_v8, %v4884_v3  ;;  %v4916_v7 = vadd.s32 %v4915_v38, %v4906_v56  ;;  %v4495_v35 = vmul.f32 -0.00019511016, %v11676_v4  ;;  %v4625_v37 = vshll.u32 %v11512_v46, %v11641_v24 }
 0x457   :  { %v4626_v61 = vshrl.u32 %v4608_v31, %v4624_v49  ;;  %v4993_v63 = vand.u32 31, %v4991_v23  ;;  %v4631_v0 = vor.u32 4788187, %v4630_v53  ;;  %v4775_v18 = vclz %v4774_v2 }
 0x458   :  { %vm4919_vm13 = vc.u32 %v11704_v47, %v11706_v26  ;;  %v4920_v22 = vadd.s32 1, %v4916_v7  ;;  %v4917_v57 = vmul.u32 %v11629_v51, %v4863_v50  ;;  %v4986_v14 = vand.u32 8388607, %v13882_v5  ;;  %v14393_v50 = vld [vmem:[#allocation82_spill] sm:$0xff] }
 0x459   :  { %v11716_v15 = vshrl.u32 %v4991_v23, 5  ;;  %v11718_v29 = vsub.s32 32, %v4993_v63  ;;  %v4996_v46 = vshll.u32 %v14020_v34, %v4993_v63  ;;  %v4999_v24 = vshll.u32 %v14016_v28, %v4993_v63  ;;  %v722_v23 = vpop.f32.mrf.mxu2 }
 0x45a   :  { %v4921_v10 = vsel %vm4919_vm13, %v4920_v22, %v4916_v7  ;;  %v5002_v49 = vshll.u32 %v14216_v52, %v4993_v63  ;;  %v5005_v51 = vshll.u32 %v14170_v12, %v4993_v63  ;;  %v5008_v36 = vshll.u32 %v14168_v32, %v4993_v63 }
 0x45b   :  { %v4922_v54 = vadd.s32 %v4921_v10, %v4917_v57  ;;  %v4997_v58 = vshrl.u32 %v14016_v28, %v11718_v29  ;;  %v5000_v48 = vshrl.u32 %v14216_v52, %v11718_v29  ;;  %v5003_v27 = vshrl.u32 %v14170_v12, %v11718_v29 }
 0x45c   :  { %v5006_v59 = vshrl.u32 %v14168_v32, %v11718_v29  ;;  %v5009_v53 = vshrl.u32 %v14171_v21, %v11718_v29  ;;  %v6452_v19 = vadd.s32 4294967294, %v4775_v18  ;;  %v4987_v3 = vor.u32 8388608, %v4986_v14 }
 0x45d   :  { %v4923_v41 = vadd.s32 536870912, %v4922_v54  ;;  %v11735_v8 = vor.u32 %v4997_v58, %v4996_v46  ;;  %v11737_v56 = vor.u32 %v5000_v48, %v4999_v24  ;;  %v5004_v38 = vor.u32 %v5003_v27, %v5002_v49  ;;  %v926_v49 = vpop.f32.mrf.mxu3  ;;  %v14395_v58 = vld [vmem:[#allocation21_spill] sm:$0xff] }
 0x45e   :  { %v5007_v31 = vor.u32 %v5006_v59, %v5005_v51  ;;  %v5010_v2 = vor.u32 %v5009_v53, %v5008_v36  ;;  %v4483_v7 = vsub.s32 4, %v14393_v50  ;;  %v4627_v63 = vor.u32 %v4626_v61, %v4625_v37  ;;  %v14394_v37 = vld [vmem:[#allocation26_spill] sm:$0xff] }
 0x45f   :  { %vm5011_vm6 = vcmp.lt.s32.totalorder %v11716_v15, 1  ;;  %vm5014_vm7 = vcmp.lt.s32.totalorder %v11716_v15, 4  ;;  %v4496_v22 = vadd.f32 0.008332121, %v4495_v35  ;;  %v11742_v57 = vshrl.u32 %v4923_v41, 30 }
 0x460   :  { %v5019_v18 = vsel %vm5011_vm6, %v11735_v8, %v11737_v56  ;;  %v5020_v14 = vsel %vm5014_vm7, %v5007_v31, 920167782  ;;  %v4632_v10 = vand.u32 2147483647, %v4631_v0  ;;  %vm6453_vm14 = vcmp.lt.s32.totalorder %v6452_v19, 0 }
 0x461   :  { %vm5013_vm9 = vcmp.lt.s32.totalorder %v11716_v15, 3  ;;  %v723_v61 = vadd.f32 %v722_v23, %v14394_v37  ;;  %vm5012_vm0 = vcmp.lt.s32.totalorder %v11716_v15, 2  ;;  %v5024_v46 = vsel %vm5014_vm7, %v5010_v2, 1326507024 }
 0x462   :  { %v5021_v35 = vsel %vm5013_vm9, %v5004_v38, %v5020_v14  ;;  %v11757_v24 = vshll.u32 %v4987_v3, 8  ;;  %v11761_v51 = vmul.f32 %v11668_v1, %v14395_v58  ;;  %v4634_v0 = vcvt.s32.f32 %v4627_v63 }
 0x463   :  { %v5022_v36 = vsel %vm5012_vm0, %v5019_v18, %v5021_v35  ;;  %v5023_v48 = vsel %vm5011_vm6, %v11737_v56, %v5004_v38  ;;  %v11771_v27 = vsel %vm4361_vm2, %v4483_v7, %v14393_v50  ;;  %v11773_v59 = vsel %vm6453_vm14, 0, %v6452_v19 }
 0x464   :  { %14396 = vst [vmem:[#allocation82_spill] sm:$0xff] %v11761_v51  ;;  %v4925_v53 = vshll.u32 %v11742_v57, 30  ;;  %v5025_v1 = vsel %vm5013_vm9, %v5007_v31, %v5024_v46  ;;  %v11780_v41 = vmul.f32 %v11670_v30, %v11560_v16  ;;  %v4497_v3 = vmul.f32 %v4496_v22, %v11676_v4  ;;  %v1086_v22 = vpop.f32.mrf.mxu0  ;;  %v14397_v31 = vld [vmem:[#allocation19_spill] sm:$0xff] }
 0x465   :  { %v11783_v2 = vmul.f32 %v4634_v0, %v4632_v10  ;;  %v927_v23 = vadd.f32 %v926_v49, %v723_v61  ;;  %v5026_v50 = vsel %vm5012_vm0, %v5023_v48, %v5025_v1  ;;  %v5028_v19 = vand.u32 65535, %v11757_v24 }
 0x466   :  { %v5052_v7 = vand.u32 65535, %v5022_v36  ;;  %v5053_v63 = vshrl.u32 %v5022_v36, 16  ;;  %v4783_v18 = vsub.s32 4294967266, %v11773_v59  ;;  %v5029_v30 = vshrl.u32 %v11757_v24, 16 }
 0x467   :  { %v5030_v14 = vand.u32 65535, %v5026_v50  ;;  %v11794_v37 = vsub.s32 %v4922_v54, %v4925_v53  ;;  %v5031_v61 = vshrl.u32 %v5026_v50, 16  ;;  %v11796_v46 = vadd.f32 -0.16666654, %v4497_v3  ;;  %v1232_v50 = vpop.f32.mrf.mxu1 }
 0x468   :  { %v5055_v35 = vmul.u32 %v5053_v63, %v5028_v19  ;;  %v4636_v49 = vxor.u32 2147483648, %v11783_v2  ;;  %v4763_v58 = vadd.s32 %v11525_v43, %v11523_v62  ;;  %v5056_v0 = vmul.u32 %v5052_v7, %v5029_v30 }
 0x469   :  { %v5033_v36 = vmul.u32 %v5031_v61, %v5028_v19  ;;  %v5034_v48 = vmul.u32 %v5030_v14, %v5029_v30  ;;  %v1087_v5 = vadd.f32 %v1086_v22, %v927_v23  ;;  %vm4516_vm2 = vcmp.lt.s32.totalorder %v14397_v31, 0 }
 0x46a   :  { %v5058_v1 = vshll.u32 %v5055_v35, 16  ;;  %v4779_v10 = vsub.s32 32, %v11773_v59  ;;  %v4784_v54 = vadd.s32 127, %v4783_v18  ;;  %v4995_v53 = vshrl.u32 %v14020_v34, %v11718_v29 }
 0x46b   :  { %v5054_v3 = vmul.u32 %v5052_v7, %v5028_v19  ;;  %v4928_v11 = vsub.s32 0, %v11794_v37  ;;  %v5016_v62 = vsel %vm5014_vm7, %v5004_v38, 2102212464  ;;  %v5032_v43 = vmul.u32 %v5030_v14, %v5028_v19 }
 0x46c   :  { %v5036_v42 = vshll.u32 %v5033_v36, 16  ;;  %v5057_v44 = vmul.u32 %v5053_v63, %v5029_v30  ;;  %v5060_v45 = vshll.u32 %v5056_v0, 16  ;;  %v5035_v22 = vmul.u32 %v5031_v61, %v5029_v30 }
 0x46d   :  { %vm5062_vm12 = vc.u32 %v5054_v3, %v5058_v1  ;;  %v5064_v23 = vadd.s32 %v5058_v1, %v5054_v3  ;;  %v5038_v16 = vshll.u32 %v5034_v48, 16  ;;  %v11808_v18 = vadd.f32 %v1232_v50, %v1087_v5 }
 0x46e   :  { %vm5040_vm1 = vc.u32 %v5032_v43, %v5036_v42  ;;  %v14399_v29 = vand.u32 2147483647, %v14397_v31  ;;  %v5042_v38 = vadd.s32 %v5036_v42, %v5032_v43  ;;  %v5063_v19 = vsel %vm5062_vm12, 1, %v14048_v60 }
 0x46f   :  { %14398 = vst [vmem:[#allocation26_spill] sm:$0xff] %v11808_v18  ;;  %v5041_v33 = vsel %vm5040_vm1, 1, %v14048_v60  ;;  %vm5066_vm3 = vc.u32 %v5064_v23, %v5060_v45  ;;  %v4781_v63 = vshrl.u32 %v4763_v58, %v4779_v10  ;;  %vm4927_vm15 = vcmp.lt.s32.totalorder %v11794_v37, 0 }
 0x470   :  { %vm11812_vm10 = vcmp.le.f32.partialorder %v14399_v29, 0.7853982  ;;  %v5043_v30 = vadd.s32 %v5041_v33, %v5035_v22  ;;  %v5065_v14 = vadd.s32 %v5063_v19, %v5057_v44  ;;  %v4785_v61 = vshll.u32 %v4784_v54, 23 }
 0x471   :  { %v5015_v5 = vsel %vm5011_vm6, %v4995_v53, %v11735_v8  ;;  %vm5044_vm11 = vc.u32 %v5042_v38, %v5038_v16  ;;  %v5067_v1 = vsel %vm5066_vm3, 1, %v14048_v60  ;;  %v5017_v42 = vsel %vm5013_vm9, %v11737_v56, %v5016_v62 }
 0x472   :  { %v5045_v3 = vsel %vm5044_vm11, 1, %v14048_v60  ;;  %v5059_v50 = vshrl.u32 %v5055_v35, 16  ;;  %v5069_v10 = vadd.s32 %v5067_v1, %v5065_v14  ;;  %v4929_v58 = vsel %vm4927_vm15, %v4928_v11, %v11794_v37 }
 0x473   :  { %v5037_v33 = vshrl.u32 %v5033_v36, 16  ;;  %v5047_v44 = vadd.s32 %v5045_v3, %v5043_v30  ;;  %v5137_v54 = vand.u32 2139095040, %v11808_v18  ;;  %v4637_v16 = vsel %vm4516_vm2, %v4636_v49, %v11783_v2 }
 0x474   :  { %v4780_v8 = vshll.u32 %v11666_v25, %v11773_v59  ;;  %v5061_v53 = vshrl.u32 %v5056_v0, 16  ;;  %v5070_v43 = vadd.s32 %v5069_v10, %v5059_v50  ;;  %v4786_v56 = vor.u32 4788187, %v4785_v61 }
 0x475   :  { %v5039_v62 = vshrl.u32 %v5034_v48, 16  ;;  %v5048_v22 = vadd.s32 %v5047_v44, %v5037_v33  ;;  %v5138_v35 = vshrl.u32 %v5137_v54, 23  ;;  %v4345_v29 = vadd.f32 1.0, %v11780_v41  ;;  %v14406_v33 = vld [vmem:[#allocation29_spill] sm:$0xff] }
 0x476   :  { %v4930_v11 = vclz %v4929_v58  ;;  %v5018_v36 = vsel %vm5012_vm0, %v5015_v5, %v5017_v42  ;;  %v5071_v38 = vadd.s32 %v5070_v43, %v5061_v53  ;;  %v4782_v19 = vor.u32 %v4781_v63, %v4780_v8  ;;  %v727_v5 = vpop.f32.mrf.mxu2  ;;  %v932_v8 = vpop.f32.mrf.mxu3 }
 0x477   :  { %v11837_v30 = vadd.s32 %v5048_v22, %v5039_v62  ;;  %v11839_v2 = vadd.s32 %v5064_v23, %v5060_v45  ;;  %v6460_v49 = vadd.s32 4294967169, %v5138_v35  ;;  %v4499_v25 = vmul.f32 %v11796_v46, %v11676_v4 }
 0x478   :  { %v14402_v59 = vsub.s32 4, %v11488_v40  ;;  %v11851_v15 = vsel %vm11812_vm10, %v14397_v31, %v4637_v16  ;;  %v5075_v0 = vadd.s32 1, %v5071_v38  ;;  %v4787_v48 = vand.u32 2147483647, %v4786_v56  ;;  %v14408_v16 = vld [vmem:[#allocation84_spill] sm:$0xff] }
 0x479   :  { %v5072_v45 = vmul.u32 %v11757_v24, %v5018_v36  ;;  %vm5074_vm8 = vc.u32 %v11837_v30, %v11839_v2  ;;  %v5144_v23 = vadd.s32 1, %v6460_v49  ;;  %v11857_v46 = vmul.f32 %v4345_v29, %v11538_v55 }
 0x47a   :  { %v4639_v41 = vsel %vm4516_vm2, %v14402_v59, %v11488_v40  ;;  %v14404_v40 = vsel %vm11607_vm4, 0, %v11771_v27  ;;  %v6455_v14 = vadd.s32 4294967294, %v4930_v11  ;;  %v5076_v61 = vsel %vm5074_vm8, %v5075_v0, %v5071_v38 }
 0x47b   :  { %14403 = vst [vmem:[#allocation21_spill] sm:$0xff] %v11857_v46  ;;  %v4503_v63 = vadd.s32 3, %v14404_v40  ;;  %v4641_v1 = vsel %vm11812_vm10, 0, %v4639_v41  ;;  %v4789_v42 = vcvt.s32.f32 %v4782_v19  ;;  %v5077_v24 = vadd.s32 %v5076_v61, %v5072_v45 }
 0x47c   :  { %vm5145_vm5 = vcmp.gt.s32.totalorder %v5144_v23, 0  ;;  %v4500_v3 = vadd.f32 1.0, %v4499_v25  ;;  %v11867_v50 = vmul.f32 %v11851_v15, %v11851_v15  ;;  %v13894_v55 = vand.u32 2147483647, %v11808_v18 }
 0x47d   :  { %v5146_v13 = vsel %vm5145_vm5, %v5144_v23, 0  ;;  %v4790_v10 = vmul.f32 %v4789_v42, %v4787_v48  ;;  %v5078_v27 = vadd.s32 536870912, %v5077_v24  ;;  %v728_v44 = vadd.f32 %v727_v5, %v14406_v33 }
 0x47e   :  { %14405 = vst [vmem:[#allocation94_spill] sm:$0xff] %v11867_v50  ;;  %v5148_v58 = vand.u32 31, %v5146_v13  ;;  %v11873_v7 = vand.u32 3, %v11672_v9  ;;  %vm4671_vm4 = vcmp.lt.s32.totalorder %v14408_v16, 0  ;;  %vm6456_vm13 = vcmp.lt.s32.totalorder %v6455_v14, 0 }
 0x47f   :  { %v11877_v43 = vand.u32 3, %v4503_v63  ;;  %v11879_v56 = vshrl.u32 %v5078_v27, 30  ;;  %v11884_v22 = vmul.f32 %v4500_v3, %v11660_v6  ;;  %v4650_v35 = vmul.f32 -0.00019511016, %v11867_v50  ;;  %v1090_v63 = vpop.f32.mrf.mxu0 }
 0x480   :  { %14407 = vst [vmem:[#allocation29_spill] sm:$0xff] %v11873_v7  ;;  %v11881_v62 = vsub.s32 32, %v5148_v58  ;;  %v11887_v29 = vadd.s32 3, %v4641_v1  ;;  %v5141_v9 = vand.u32 8388607, %v13894_v55  ;;  %v4791_v11 = vxor.u32 2147483648, %v4790_v10 }
 0x481   :  { %14409 = vst [vmem:[#allocation95_spill] sm:$0xff] %v11877_v43  ;;  %v11891_v36 = vsel %vm6456_vm13, 0, %v6455_v14  ;;  %v933_v19 = vadd.f32 %v932_v8, %v728_v44  ;;  %v14411_v49 = vand.u32 2147483647, %v14408_v16  ;;  %v5151_v6 = vshll.u32 %v14020_v34, %v5148_v58 }
 0x482   :  { %14410 = vst [vmem:[#allocation96_spill] sm:$0xff] %v11884_v22  ;;  %v5152_v38 = vshrl.u32 %v14016_v28, %v11881_v62  ;;  %v5155_v59 = vshrl.u32 %v14216_v52, %v11881_v62  ;;  %v5158_v41 = vshrl.u32 %v14170_v12, %v11881_v62  ;;  %v5161_v0 = vshrl.u32 %v14168_v32, %v11881_v62 }
 0x483   :  { %vm11897_vm6 = vcmp.le.f32.partialorder %v14411_v49, 0.7853982  ;;  %v5080_v48 = vshll.u32 %v11879_v56, 30  ;;  %v5154_v45 = vshll.u32 %v14016_v28, %v5148_v58  ;;  %v5160_v23 = vshll.u32 %v14170_v12, %v5148_v58 }
 0x484   :  { %v5164_v40 = vshrl.u32 %v14171_v21, %v11881_v62  ;;  %v4938_v14 = vsub.s32 4294967266, %v11891_v36  ;;  %v5142_v61 = vor.u32 8388608, %v5141_v9  ;;  %v11914_v5 = vshrl.u32 %v5146_v13, 5 }
 0x485   :  { %v5157_v1 = vshll.u32 %v14216_v52, %v5148_v58  ;;  %v5153_v42 = vor.u32 %v5152_v38, %v5151_v6  ;;  %v11917_v3 = vor.u32 %v5155_v59, %v5154_v45  ;;  %v5162_v27 = vor.u32 %v5161_v0, %v5160_v23  ;;  %v1236_v38 = vpop.f32.mrf.mxu1 }
 0x486   :  { %v5163_v33 = vshll.u32 %v14168_v32, %v5148_v58  ;;  %v4651_v44 = vadd.f32 0.008332121, %v4650_v35  ;;  %v4793_v8 = vsub.s32 4, %v11616_v20  ;;  %v1091_v54 = vadd.f32 %v1090_v63, %v933_v19 }
 0x487   :  { %v5159_v49 = vor.u32 %v5158_v41, %v5157_v1  ;;  %v4792_v53 = vsel %vm4671_vm4, %v4791_v11, %v4790_v10  ;;  %v4918_v13 = vadd.s32 %v11706_v26, %v11704_v47  ;;  %v11925_v9 = vsub.s32 %v5077_v24, %v5080_v48 }
 0x488   :  { %v5165_v55 = vor.u32 %v5164_v40, %v5163_v33  ;;  %v4934_v6 = vsub.s32 32, %v11891_v36  ;;  %v4939_v59 = vadd.s32 127, %v4938_v14  ;;  %vm5166_vm7 = vcmp.lt.s32.totalorder %v11914_v5, 1 }
 0x489   :  { %vm5169_vm14 = vcmp.lt.s32.totalorder %v11914_v5, 4  ;;  %vm5168_vm9 = vcmp.lt.s32.totalorder %v11914_v5, 3  ;;  %v5174_v10 = vsel %vm5166_vm7, %v5153_v42, %v11917_v3  ;;  %v11936_v26 = vshll.u32 %v5142_v61, 8 }
 0x48a   :  { %v5175_v47 = vsel %vm5169_vm14, %v5162_v27, 920167782  ;;  %vm5167_vm0 = vcmp.lt.s32.totalorder %v11914_v5, 2  ;;  %v5178_v58 = vsel %vm5166_vm7, %v11917_v3, %v5159_v49  ;;  %v11944_v35 = vadd.f32 %v1236_v38, %v1091_v54 }
 0x48b   :  { %v5176_v24 = vsel %vm5168_vm9, %v5159_v49, %v5175_v47  ;;  %v11949_v11 = vsel %vm11897_vm6, %v14408_v16, %v4792_v53  ;;  %v5083_v19 = vsub.s32 0, %v11925_v9  ;;  %v5179_v0 = vsel %vm5169_vm14, %v5165_v55, 1326507024 }
 0x48c   :  { %v5177_v41 = vsel %vm5167_vm0, %v5174_v10, %v5176_v24  ;;  %v4936_v48 = vshrl.u32 %v4918_v13, %v4934_v6  ;;  %vm5082_vm2 = vcmp.lt.s32.totalorder %v11925_v9, 0  ;;  %v5180_v54 = vsel %vm5168_vm9, %v5162_v27, %v5179_v0 }
 0x48d   :  { %v5207_v45 = vand.u32 65535, %v5177_v41  ;;  %v4940_v23 = vshll.u32 %v4939_v59, 23  ;;  %v5181_v53 = vsel %vm5167_vm0, %v5178_v58, %v5180_v54  ;;  %v5183_v40 = vand.u32 65535, %v11936_v26 }
 0x48e   :  { %v5208_v63 = vshrl.u32 %v5177_v41, 16  ;;  %v11965_v14 = vsel %vm4671_vm4, %v4793_v8, %v11616_v20  ;;  %v4935_v55 = vshll.u32 %v11794_v37, %v11891_v36  ;;  %v5184_v61 = vshrl.u32 %v11936_v26, 16 }
 0x48f   :  { %v5292_v1 = vand.u32 2139095040, %v11944_v35  ;;  %v5084_v27 = vsel %vm5082_vm2, %v5083_v19, %v11925_v9  ;;  %v5185_v33 = vand.u32 65535, %v5181_v53  ;;  %v5186_v13 = vshrl.u32 %v5181_v53, 16 }
 0x490   :  { %v5210_v38 = vmul.u32 %v5208_v63, %v5183_v40  ;;  %v4652_v6 = vmul.f32 %v4651_v44, %v11867_v50  ;;  %v11975_v59 = vmul.f32 %v11949_v11, %v11949_v11  ;;  %v5150_v20 = vshrl.u32 %v14020_v34, %v11881_v62 }
 0x491   :  { %v5211_v8 = vmul.u32 %v5207_v45, %v5184_v61  ;;  %v4937_v37 = vor.u32 %v4936_v48, %v4935_v55  ;;  %v4941_v36 = vor.u32 4788187, %v4940_v23  ;;  %v5188_v10 = vmul.u32 %v5186_v13, %v5183_v40 }
 0x492   :  { %14414 = vst [vmem:[#allocation97_spill] sm:$0xff] %v11975_v59  ;;  %v5189_v47 = vmul.u32 %v5185_v33, %v5184_v61  ;;  %v5085_v24 = vclz %v5084_v27  ;;  %v5170_v58 = vsel %vm5166_vm7, %v5150_v20, %v5153_v42  ;;  %v5213_v19 = vshll.u32 %v5210_v38, 16 }
 0x493   :  { %v5293_v41 = vshrl.u32 %v5292_v1, 23  ;;  %v5171_v44 = vsel %vm5169_vm14, %v5159_v49, 2102212464  ;;  %v5187_v0 = vmul.u32 %v5185_v33, %v5183_v40  ;;  %v5191_v54 = vshll.u32 %v5188_v10, 16 }
 0x494   :  { %v5209_v53 = vmul.u32 %v5207_v45, %v5183_v40  ;;  %v5190_v31 = vmul.u32 %v5186_v13, %v5184_v61  ;;  %v5193_v16 = vshll.u32 %v5189_v47, 16  ;;  %v5212_v62 = vmul.u32 %v5208_v63, %v5184_v61 }
 0x495   :  { %v5215_v43 = vshll.u32 %v5211_v8, 16  ;;  %vm5195_vm12 = vc.u32 %v5187_v0, %v5191_v54  ;;  %v5197_v48 = vadd.s32 %v5191_v54, %v5187_v0  ;;  %v6458_v55 = vadd.s32 4294967294, %v5085_v24 }
 0x496   :  { %vm5217_vm1 = vc.u32 %v5209_v53, %v5213_v19  ;;  %v5219_v23 = vadd.s32 %v5213_v19, %v5209_v53  ;;  %v5196_v27 = vsel %vm5195_vm12, 1, %v14048_v60  ;;  %v6463_v1 = vadd.s32 4294967169, %v5293_v41 }
 0x497   :  { %v5218_v42 = vsel %vm5217_vm1, 1, %v14048_v60  ;;  %v5198_v20 = vadd.s32 %v5196_v27, %v5190_v31  ;;  %vm5199_vm10 = vc.u32 %v5197_v48, %v5193_v16  ;;  %v5172_v45 = vsel %vm5168_vm9, %v11917_v3, %v5171_v44 }
 0x498   :  { %v5220_v49 = vadd.s32 %v5218_v42, %v5212_v62  ;;  %vm5221_vm3 = vc.u32 %v5219_v23, %v5215_v43  ;;  %v5200_v40 = vsel %vm5199_vm10, 1, %v14048_v60  ;;  %v5214_v63 = vshrl.u32 %v5210_v38, 16 }
 0x499   :  { %v5222_v61 = vsel %vm5221_vm3, 1, %v14048_v60  ;;  %v5192_v33 = vshrl.u32 %v5188_v10, 16  ;;  %v5202_v13 = vadd.s32 %v5200_v40, %v5198_v20  ;;  %v5299_v19 = vadd.s32 1, %v6463_v1 }
 0x49a   :  { %v5224_v24 = vadd.s32 %v5222_v61, %v5220_v49  ;;  %v4805_v0 = vmul.f32 -0.00019511016, %v11975_v59  ;;  %v4942_v41 = vand.u32 2147483647, %v4941_v36  ;;  %vm6459_vm15 = vcmp.lt.s32.totalorder %v6458_v55, 0 }
 0x49b   :  { %v5194_v31 = vshrl.u32 %v5189_v47, 16  ;;  %v5203_v16 = vadd.s32 %v5202_v13, %v5192_v33  ;;  %v5216_v54 = vshrl.u32 %v5211_v8, 16  ;;  %vm5300_vm11 = vcmp.gt.s32.totalorder %v5299_v19, 0 }
 0x49c   :  { %v5225_v53 = vadd.s32 %v5224_v24, %v5214_v63  ;;  %v4944_v62 = vcvt.s32.f32 %v4937_v37  ;;  %v5173_v3 = vsel %vm5167_vm0, %v5170_v58, %v5172_v45  ;;  %v13898_v38 = vand.u32 2147483647, %v11944_v35 }
 0x49d   :  { %v5301_v44 = vsel %vm5300_vm11, %v5299_v19, 0  ;;  %v11994_v10 = vsel %vm6459_vm15, 0, %v6458_v55  ;;  %v11996_v48 = vadd.s32 %v5203_v16, %v5194_v31  ;;  %v11998_v27 = vadd.s32 %v5219_v23, %v5215_v43 }
 0x49e   :  { %v5226_v36 = vadd.s32 %v5225_v53, %v5216_v54  ;;  %v4653_v42 = vadd.f32 -0.16666654, %v4652_v6  ;;  %v4796_v8 = vsel %vm11897_vm6, 0, %v11965_v14  ;;  %v4806_v47 = vadd.f32 0.008332121, %v4805_v0 }
 0x49f   :  { %v5303_v37 = vand.u32 31, %v5301_v44  ;;  %vm4826_vm8 = vcmp.lt.s32.totalorder %v11491_v39, 0  ;;  %v4945_v5 = vmul.f32 %v4944_v62, %v4942_v41  ;;  %v5227_v58 = vmul.u32 %v11936_v26, %v5173_v3 }
 0x4a0   :  { %vm5229_vm5 = vc.u32 %v11996_v48, %v11998_v27  ;;  %v5230_v55 = vadd.s32 1, %v5226_v36  ;;  %v5093_v43 = vsub.s32 4294967266, %v11994_v10  ;;  %v5296_v6 = vand.u32 8388607, %v13898_v38 }
 0x4a1   :  { %v12010_v23 = vshrl.u32 %v5301_v44, 5  ;;  %v12012_v25 = vsub.s32 32, %v5303_v37  ;;  %v5306_v1 = vshll.u32 %v14020_v34, %v5303_v37  ;;  %v5309_v20 = vshll.u32 %v14016_v28, %v5303_v37 }
 0x4a2   :  { %v5231_v14 = vsel %vm5229_vm5, %v5230_v55, %v5226_v36  ;;  %v5312_v26 = vshll.u32 %v14216_v52, %v5303_v37  ;;  %v5315_v40 = vshll.u32 %v14170_v12, %v5303_v37  ;;  %v5318_v63 = vshll.u32 %v14168_v32, %v5303_v37  ;;  %v732_v36 = vpop.f32.mrf.mxu2 }
 0x4a3   :  { %v5232_v49 = vadd.s32 %v5231_v14, %v5227_v58  ;;  %v5307_v45 = vshrl.u32 %v14016_v28, %v12012_v25  ;;  %v14415_v61 = vand.u32 2147483647, %v11491_v39  ;;  %v5310_v13 = vshrl.u32 %v14216_v52, %v12012_v25 }
 0x4a4   :  { %v5313_v24 = vshrl.u32 %v14170_v12, %v12012_v25  ;;  %v5316_v19 = vshrl.u32 %v14168_v32, %v12012_v25  ;;  %v5319_v0 = vshrl.u32 %v14171_v21, %v12012_v25  ;;  %v4946_v41 = vxor.u32 2147483648, %v4945_v5 }
 0x4a5   :  { %vm12023_vm4 = vcmp.le.f32.partialorder %v14415_v61, 0.7853982  ;;  %v5233_v31 = vadd.s32 536870912, %v5232_v49  ;;  %v5297_v16 = vor.u32 8388608, %v5296_v6  ;;  %v12035_v54 = vor.u32 %v5307_v45, %v5306_v1  ;;  %v938_v61 = vpop.f32.mrf.mxu3 }
 0x4a6   :  { %v12037_v53 = vor.u32 %v5310_v13, %v5309_v20  ;;  %v5314_v62 = vor.u32 %v5313_v24, %v5312_v26  ;;  %v5317_v3 = vor.u32 %v5316_v19, %v5315_v40  ;;  %v5320_v44 = vor.u32 %v5319_v0, %v5318_v63  ;;  %v14418_v26 = vld [vmem:[#allocation32_spill] sm:$0xff] }
 0x4a7   :  { %v5089_v37 = vsub.s32 32, %v11994_v10  ;;  %v5094_v58 = vadd.s32 127, %v5093_v43  ;;  %vm5321_vm13 = vcmp.lt.s32.totalorder %v12010_v23, 1  ;;  %vm5324_vm6 = vcmp.lt.s32.totalorder %v12010_v23, 4 }
 0x4a8   :  { %v4807_v55 = vmul.f32 %v4806_v47, %v11975_v59  ;;  %v12043_v14 = vshrl.u32 %v5233_v31, 30  ;;  %v5329_v6 = vsel %vm5321_vm13, %v12035_v54, %v12037_v53  ;;  %v5330_v1 = vsel %vm5324_vm6, %v5317_v3, 920167782 }
 0x4a9   :  { %v4947_v20 = vsel %vm4826_vm8, %v4946_v41, %v4945_v5  ;;  %v5073_v43 = vadd.s32 %v11839_v2, %v11837_v30  ;;  %vm5323_vm7 = vcmp.lt.s32.totalorder %v12010_v23, 3  ;;  %v733_v47 = vadd.f32 %v732_v36, %v14418_v26 }
 0x4aa   :  { %vm5322_vm14 = vcmp.lt.s32.totalorder %v12010_v23, 2  ;;  %v5331_v45 = vsel %vm5323_vm7, %v5314_v62, %v5330_v1  ;;  %v5334_v40 = vsel %vm5324_vm6, %v5320_v44, 1326507024  ;;  %v12062_v63 = vshll.u32 %v5297_v16, 8 }
 0x4ab   :  { %v5091_v13 = vshrl.u32 %v5073_v43, %v5089_v37  ;;  %v5095_v5 = vshll.u32 %v5094_v58, 23  ;;  %v5332_v30 = vsel %vm5322_vm14, %v5329_v6, %v5331_v45  ;;  %v5333_v2 = vsel %vm5321_vm13, %v12037_v53, %v5314_v62  ;;  %v1094_v43 = vpop.f32.mrf.mxu0 }
 0x4ac   :  { %v4654_v24 = vmul.f32 %v4653_v42, %v11867_v50  ;;  %v12070_v19 = vadd.s32 3, %v4796_v8  ;;  %v5235_v0 = vshll.u32 %v12043_v14, 30  ;;  %v5335_v41 = vsel %vm5323_vm7, %v5317_v3, %v5334_v40 }
 0x4ad   :  { %v4808_v31 = vadd.f32 -0.16666654, %v4807_v55  ;;  %v12078_v16 = vsel %vm12023_vm4, %v11491_v39, %v4947_v20  ;;  %v5090_v44 = vshll.u32 %v11925_v9, %v11994_v10  ;;  %v939_v36 = vadd.f32 %v938_v61, %v733_v47 }
 0x4ae   :  { %v5336_v42 = vsel %vm5322_vm14, %v5333_v2, %v5335_v41  ;;  %v5338_v8 = vand.u32 65535, %v12062_v63  ;;  %v5362_v37 = vand.u32 65535, %v5332_v30  ;;  %v5363_v58 = vshrl.u32 %v5332_v30, 16 }
 0x4af   :  { %v5092_v6 = vor.u32 %v5091_v13, %v5090_v44  ;;  %v5096_v1 = vor.u32 4788187, %v5095_v5  ;;  %v5339_v3 = vshrl.u32 %v12062_v63, 16  ;;  %v5340_v55 = vand.u32 65535, %v5336_v42  ;;  %v1240_v44 = vpop.f32.mrf.mxu1 }
 0x4b0   :  { %v12086_v26 = vadd.f32 1.0, %v4654_v24  ;;  %v12088_v20 = vsub.s32 %v5232_v49, %v5235_v0  ;;  %v5341_v45 = vshrl.u32 %v5336_v42, 16  ;;  %v5365_v9 = vmul.u32 %v5363_v58, %v5338_v8 }
 0x4b1   :  { %v4809_v10 = vmul.f32 %v4808_v31, %v11975_v59  ;;  %v4948_v47 = vsub.s32 4, %v11742_v57  ;;  %v12094_v40 = vmul.f32 %v12078_v16, %v12078_v16  ;;  %v5366_v61 = vmul.u32 %v5362_v37, %v5339_v3 }
 0x4b2   :  { %v5343_v13 = vmul.u32 %v5341_v45, %v5338_v8  ;;  %v5344_v5 = vmul.u32 %v5340_v55, %v5339_v3  ;;  %v5368_v30 = vshll.u32 %v5365_v9, 16  ;;  %v1095_v2 = vadd.f32 %v1094_v43, %v939_v36 }
 0x4b3   :  { %14419 = vst [vmem:[#allocation32_spill] sm:$0xff] %v12094_v40  ;;  %v5097_v41 = vand.u32 2147483647, %v5096_v1  ;;  %v5099_v24 = vcvt.s32.f32 %v5092_v6  ;;  %v5305_v49 = vshrl.u32 %v14020_v34, %v12012_v25  ;;  %v5364_v0 = vmul.u32 %v5362_v37, %v5338_v8 }
 0x4b4   :  { %v5238_v31 = vsub.s32 0, %v12088_v20  ;;  %v5326_v42 = vsel %vm5324_vm6, %v5314_v62, 2102212464  ;;  %v5342_v38 = vmul.u32 %v5340_v55, %v5338_v8  ;;  %v5346_v51 = vshll.u32 %v5343_v13, 16 }
 0x4b5   :  { %vm4981_vm9 = vcmp.lt.s32.totalorder %v11639_v17, 0  ;;  %v5367_v50 = vmul.u32 %v5363_v58, %v5339_v3  ;;  %v5370_v46 = vshll.u32 %v5366_v61, 16  ;;  %vm5372_vm0 = vc.u32 %v5364_v0, %v5368_v30 }
 0x4b6   :  { %v5374_v36 = vadd.s32 %v5368_v30, %v5364_v0  ;;  %v5345_v1 = vmul.u32 %v5341_v45, %v5339_v3  ;;  %v5348_v6 = vshll.u32 %v5344_v5, 16  ;;  %vm5350_vm2 = vc.u32 %v5342_v38, %v5346_v51 }
 0x4b7   :  { %v12102_v43 = vadd.f32 %v1240_v44, %v1095_v2  ;;  %v5351_v25 = vsel %vm5350_vm2, 1, %v14048_v60  ;;  %v5352_v37 = vadd.s32 %v5346_v51, %v5342_v38  ;;  %v5373_v7 = vsel %vm5372_vm0, 1, %v14048_v60 }
 0x4b8   :  { %vm5376_vm12 = vc.u32 %v5374_v36, %v5370_v46  ;;  %v5103_v62 = vsub.s32 4, %v11879_v56  ;;  %vm5237_vm1 = vcmp.lt.s32.totalorder %v12088_v20, 0  ;;  %v5353_v8 = vadd.s32 %v5351_v25, %v5345_v1 }
 0x4b9   :  { %v5375_v58 = vadd.s32 %v5373_v7, %v5367_v50  ;;  %v5100_v55 = vmul.f32 %v5099_v24, %v5097_v41  ;;  %v5325_v3 = vsel %vm5321_vm13, %v5305_v49, %v12035_v54  ;;  %vm5354_vm10 = vc.u32 %v5352_v37, %v5348_v6 }
 0x4ba   :  { %v5377_v45 = vsel %vm5376_vm12, 1, %v14048_v60  ;;  %v5327_v51 = vsel %vm5323_vm7, %v12037_v53, %v5326_v42  ;;  %v5355_v38 = vsel %vm5354_vm10, 1, %v14048_v60  ;;  %v5369_v30 = vshrl.u32 %v5365_v9, 16 }
 0x4bb   :  { %v5379_v2 = vadd.s32 %v5377_v45, %v5375_v58  ;;  %v5239_v0 = vsel %vm5237_vm1, %v5238_v31, %v12088_v20  ;;  %v5347_v44 = vshrl.u32 %v5343_v13, 16  ;;  %v5357_v50 = vadd.s32 %v5355_v38, %v5353_v8 }
 0x4bc   :  { %v5447_v7 = vand.u32 2139095040, %v12102_v43  ;;  %v4810_v41 = vadd.f32 1.0, %v4809_v10  ;;  %v4960_v54 = vmul.f32 -0.00019511016, %v12094_v40  ;;  %v5371_v24 = vshrl.u32 %v5366_v61, 16 }
 0x4bd   :  { %v5380_v49 = vadd.s32 %v5379_v2, %v5369_v30  ;;  %v4949_v1 = vsel %vm4826_vm8, %v4948_v47, %v11742_v57  ;;  %v5349_v53 = vshrl.u32 %v5344_v5, 16  ;;  %v5358_v42 = vadd.s32 %v5357_v50, %v5347_v44 }
 0x4be   :  { %v5448_v6 = vshrl.u32 %v5447_v7, 23  ;;  %v5104_v9 = vsel %vm4981_vm9, %v5103_v62, %v11879_v56  ;;  %v5240_v13 = vclz %v5239_v0  ;;  %v5328_v31 = vsel %vm5322_vm14, %v5325_v3, %v5327_v51  ;;  %v737_v51 = vpop.f32.mrf.mxu2  ;;  %v14426_v7 = vld [vmem:[#allocation35_spill] sm:$0xff] }
 0x4bf   :  { %v5381_v10 = vadd.s32 %v5380_v49, %v5371_v24  ;;  %v5101_v25 = vxor.u32 2147483648, %v5100_v55  ;;  %v12127_v37 = vadd.s32 %v5358_v42, %v5349_v53  ;;  %v12129_v61 = vadd.s32 %v5374_v36, %v5370_v46  ;;  %v944_v49 = vpop.f32.mrf.mxu3 }
 0x4c0   :  { %v6466_v8 = vadd.s32 4294967169, %v5448_v6  ;;  %v4951_v57 = vsel %vm12023_vm4, 0, %v4949_v1  ;;  %v4961_v47 = vadd.f32 0.008332121, %v4960_v54  ;;  %v14420_v5 = vand.u32 2147483647, %v11639_v17 }
 0x4c1   :  { %v5385_v56 = vadd.s32 1, %v5381_v10  ;;  %v5382_v62 = vmul.u32 %v12062_v63, %v5328_v31  ;;  %vm5384_vm15 = vc.u32 %v12127_v37, %v12129_v61  ;;  %v12146_v33 = vmul.f32 %v12086_v26, %v11851_v15 }
 0x4c2   :  { %vm12135_vm3 = vcmp.le.f32.partialorder %v14420_v5, 0.7853982  ;;  %v5454_v46 = vadd.s32 1, %v6466_v8  ;;  %v12149_v36 = vmul.f32 %v4810_v41, %v11949_v11  ;;  %v6461_v3 = vadd.s32 4294967294, %v5240_v13 }
 0x4c3   :  { %v5106_v23 = vsel %vm12135_vm3, 0, %v5104_v9  ;;  %14423 = vst [vmem:[#allocation98_spill] sm:$0xff] %v12146_v33  ;;  %v5386_v45 = vsel %vm5384_vm15, %v5385_v56, %v5381_v10  ;;  %v4968_v38 = vadd.s32 3, %v4951_v57  ;;  %v5102_v30 = vsel %vm4981_vm9, %v5101_v25, %v5100_v55 }
 0x4c4   :  { %14424 = vst [vmem:[#allocation99_spill] sm:$0xff] %v12149_v36  ;;  %v5387_v2 = vadd.s32 %v5386_v45, %v5382_v62  ;;  %vm5455_vm11 = vcmp.gt.s32.totalorder %v5454_v46, 0  ;;  %v4962_v63 = vmul.f32 %v4961_v47, %v12094_v40  ;;  %v5123_v0 = vadd.s32 3, %v5106_v23 }
 0x4c5   :  { %v13906_v44 = vand.u32 2147483647, %v12102_v43  ;;  %v5456_v50 = vsel %vm5455_vm11, %v5454_v46, 0  ;;  %v12156_v15 = vand.u32 3, %v11887_v29  ;;  %v738_v41 = vadd.f32 %v737_v51, %v14426_v7  ;;  %v14431_v29 = vld [vmem:[#allocation8_spill] sm:$0xff] }
 0x4c6   :  { %v5388_v11 = vadd.s32 536870912, %v5387_v2  ;;  %v5458_v26 = vand.u32 31, %v5456_v50  ;;  %v12161_v24 = vand.u32 3, %v12070_v19  ;;  %v12166_v55 = vsel %vm12135_vm3, %v11639_v17, %v5102_v30 }
 0x4c7   :  { %14425 = vst [vmem:[#allocation100_spill] sm:$0xff] %v12156_v15  ;;  %vm6462_vm8 = vcmp.lt.s32.totalorder %v6461_v3, 0  ;;  %v4963_v6 = vadd.f32 -0.16666654, %v4962_v63  ;;  %v12174_v9 = vand.u32 3, %v4968_v38  ;;  %v12176_v19 = vand.u32 3, %v5123_v0 }
 0x4c8   :  { %14427 = vst [vmem:[#allocation35_spill] sm:$0xff] %v12161_v24  ;;  %v12170_v53 = vshrl.u32 %v5388_v11, 30  ;;  %v12172_v42 = vsub.s32 32, %v5458_v26  ;;  %v5451_v13 = vand.u32 8388607, %v13906_v44  ;;  %v12182_v31 = vmul.f32 %v12166_v55, %v12166_v55 }
 0x4c9   :  { %14428 = vst [vmem:[#allocation101_spill] sm:$0xff] %v12174_v9  ;;  %v12184_v10 = vsel %vm6462_vm8, 0, %v6461_v3  ;;  %v945_v8 = vadd.f32 %v944_v49, %v738_v41  ;;  %v5461_v57 = vshll.u32 %v14020_v34, %v5458_v26  ;;  %v5464_v23 = vshll.u32 %v14016_v28, %v5458_v26  ;;  %v1098_v3 = vpop.f32.mrf.mxu0 }
 0x4ca   :  { %14429 = vst [vmem:[#allocation102_spill] sm:$0xff] %v12176_v19  ;;  %v5462_v25 = vshrl.u32 %v14016_v28, %v12172_v42  ;;  %v5465_v47 = vshrl.u32 %v14216_v52, %v12172_v42  ;;  %v5468_v5 = vshrl.u32 %v14170_v12, %v12172_v42  ;;  %v5471_v58 = vshrl.u32 %v14168_v32, %v12172_v42 }
 0x4cb   :  { %14430 = vst [vmem:[#allocation103_spill] sm:$0xff] %v12182_v31  ;;  %v5390_v56 = vshll.u32 %v12170_v53, 30  ;;  %v5470_v62 = vshll.u32 %v14170_v12, %v5458_v26  ;;  %v5474_v46 = vshrl.u32 %v14171_v21, %v12172_v42  ;;  %v5248_v45 = vsub.s32 4294967266, %v12184_v10 }
 0x4cc   :  { %v5452_v51 = vor.u32 8388608, %v5451_v13  ;;  %v12201_v38 = vshrl.u32 %v5456_v50, 5  ;;  %v5467_v30 = vshll.u32 %v14216_v52, %v5458_v26  ;;  %v5463_v63 = vor.u32 %v5462_v25, %v5461_v57  ;;  %v1244_v25 = vpop.f32.mrf.mxu1 }
 0x4cd   :  { %v12204_v0 = vor.u32 %v5465_v47, %v5464_v23  ;;  %v5472_v11 = vor.u32 %v5471_v58, %v5470_v62  ;;  %v5473_v7 = vshll.u32 %v14168_v32, %v5458_v26  ;;  %v4964_v41 = vmul.f32 %v4963_v6, %v12094_v40 }
 0x4ce   :  { %v5469_v49 = vor.u32 %v5468_v5, %v5467_v30  ;;  %v1099_v1 = vadd.f32 %v1098_v3, %v945_v8  ;;  %v1698_v54 = vmul.f32 -0.001358992, %v14431_v29  ;;  %v5115_v44 = vmul.f32 -0.00019511016, %v12182_v31 }
 0x4cf   :  { %v5228_v50 = vadd.s32 %v11998_v27, %v11996_v48  ;;  %v12212_v13 = vsub.s32 %v5387_v2, %v5390_v56  ;;  %v5475_v19 = vor.u32 %v5474_v46, %v5473_v7  ;;  %v5244_v57 = vsub.s32 32, %v12184_v10 }
 0x4d0   :  { %v5249_v47 = vadd.s32 127, %v5248_v45  ;;  %vm5476_vm5 = vcmp.lt.s32.totalorder %v12201_v38, 1  ;;  %vm5479_vm4 = vcmp.lt.s32.totalorder %v12201_v38, 4  ;;  %vm5478_vm13 = vcmp.lt.s32.totalorder %v12201_v38, 3 }
 0x4d1   :  { %v5484_v26 = vsel %vm5476_vm5, %v5463_v63, %v12204_v0  ;;  %v5485_v48 = vsel %vm5479_vm4, %v5472_v11, 920167782  ;;  %v12223_v27 = vshll.u32 %v5452_v51, 8  ;;  %vm5477_vm6 = vcmp.lt.s32.totalorder %v12201_v38, 2 }
 0x4d2   :  { %v5486_v2 = vsel %vm5478_vm13, %v5469_v49, %v5485_v48  ;;  %v5488_v6 = vsel %vm5476_vm5, %v12204_v0, %v5469_v49  ;;  %v12231_v8 = vadd.f32 %v1244_v25, %v1099_v1  ;;  %v5116_v5 = vadd.f32 0.008332121, %v5115_v44 }
 0x4d3   :  { %v5393_v58 = vsub.s32 0, %v12212_v13  ;;  %v5487_v56 = vsel %vm5477_vm6, %v5484_v26, %v5486_v2  ;;  %v5489_v23 = vsel %vm5479_vm4, %v5475_v19, 1326507024  ;;  %v5246_v62 = vshrl.u32 %v5228_v50, %v5244_v57 }
 0x4d4   :  { %vm5392_vm7 = vcmp.lt.s32.totalorder %v12212_v13, 0  ;;  %v5490_v46 = vsel %vm5478_vm13, %v5472_v11, %v5489_v23  ;;  %v5517_v3 = vand.u32 65535, %v5487_v56  ;;  %v5250_v45 = vshll.u32 %v5249_v47, 23 }
 0x4d5   :  { %v5491_v1 = vsel %vm5477_vm6, %v5488_v6, %v5490_v46  ;;  %v5493_v44 = vand.u32 65535, %v12223_v27  ;;  %v5518_v51 = vshrl.u32 %v5487_v56, 16  ;;  %v4965_v30 = vadd.f32 1.0, %v4964_v41 }
 0x4d6   :  { %v5245_v7 = vshll.u32 %v12088_v20, %v12184_v10  ;;  %v5494_v19 = vshrl.u32 %v12223_v27, 16  ;;  %v5602_v50 = vand.u32 2139095040, %v12231_v8  ;;  %v5394_v25 = vsel %vm5392_vm7, %v5393_v58, %v12212_v13 }
 0x4d7   :  { %v5495_v57 = vand.u32 65535, %v5491_v1  ;;  %v5496_v11 = vshrl.u32 %v5491_v1, 16  ;;  %v5520_v26 = vmul.u32 %v5518_v51, %v5493_v44  ;;  %v5117_v47 = vmul.f32 %v5116_v5, %v12182_v31 }
 0x4d8   :  { %v5460_v48 = vshrl.u32 %v14020_v34, %v12172_v42  ;;  %v5521_v2 = vmul.u32 %v5517_v3, %v5494_v19  ;;  %v1699_v6 = vadd.f32 0.041655596, %v1698_v54  ;;  %v5247_v41 = vor.u32 %v5246_v62, %v5245_v7 }
 0x4d9   :  { %v5251_v56 = vor.u32 4788187, %v5250_v45  ;;  %v5498_v23 = vmul.u32 %v5496_v11, %v5493_v44  ;;  %v5499_v20 = vmul.u32 %v5495_v57, %v5494_v19  ;;  %v5395_v10 = vclz %v5394_v25 }
 0x4da   :  { %v5480_v46 = vsel %vm5476_vm5, %v5460_v48, %v5463_v63  ;;  %v5523_v17 = vshll.u32 %v5520_v26, 16  ;;  %v5603_v58 = vshrl.u32 %v5602_v50, 23  ;;  %v5481_v1 = vsel %vm5479_vm4, %v5469_v49, 2102212464 }
 0x4db   :  { %v5497_v9 = vmul.u32 %v5495_v57, %v5493_v44  ;;  %v5501_v5 = vshll.u32 %v5498_v23, 16  ;;  %v5519_v39 = vmul.u32 %v5517_v3, %v5493_v44  ;;  %v5500_v33 = vmul.u32 %v5496_v11, %v5494_v19 }
 0x4dc   :  { %v5503_v42 = vshll.u32 %v5499_v20, 16  ;;  %v5522_v15 = vmul.u32 %v5518_v51, %v5494_v19  ;;  %v5525_v54 = vshll.u32 %v5521_v2, 16  ;;  %v5482_v63 = vsel %vm5478_vm13, %v12204_v0, %v5481_v1 }
 0x4dd   :  { %vm5505_vm14 = vc.u32 %v5497_v9, %v5501_v5  ;;  %v5507_v62 = vadd.s32 %v5501_v5, %v5497_v9  ;;  %vm5527_vm9 = vc.u32 %v5519_v39, %v5523_v17  ;;  %v5529_v45 = vadd.s32 %v5523_v17, %v5519_v39 }
 0x4de   :  { %v5506_v7 = vsel %vm5505_vm14, 1, %v14048_v60  ;;  %v5528_v50 = vsel %vm5527_vm9, 1, %v14048_v60  ;;  %v6469_v49 = vadd.s32 4294967169, %v5603_v58  ;;  %v6464_v44 = vadd.s32 4294967294, %v5395_v10 }
 0x4df   :  { %v5508_v25 = vadd.s32 %v5506_v7, %v5500_v33  ;;  %vm5509_vm0 = vc.u32 %v5507_v62, %v5503_v42  ;;  %v5530_v3 = vadd.s32 %v5528_v50, %v5522_v15  ;;  %vm5531_vm2 = vc.u32 %v5529_v45, %v5525_v54 }
 0x4e0   :  { %v5510_v51 = vsel %vm5509_vm0, 1, %v14048_v60  ;;  %v5524_v19 = vshrl.u32 %v5520_v26, 16  ;;  %v5532_v9 = vsel %vm5531_vm2, 1, %v14048_v60  ;;  %v5502_v39 = vshrl.u32 %v5498_v23, 16 }
 0x4e1   :  { %v5512_v17 = vadd.s32 %v5510_v51, %v5508_v25  ;;  %v5534_v57 = vadd.s32 %v5532_v9, %v5530_v3  ;;  %v5609_v11 = vadd.s32 1, %v6469_v49  ;;  %v12264_v0 = vmul.f32 %v4965_v30, %v12078_v16 }
 0x4e2   :  { %v5118_v48 = vadd.f32 -0.16666654, %v5117_v47  ;;  %v5252_v1 = vand.u32 2147483647, %v5251_v56  ;;  %v5504_v58 = vshrl.u32 %v5499_v20, 16  ;;  %v5526_v5 = vshrl.u32 %v5521_v2, 16 }
 0x4e3   :  { %14432 = vst [vmem:[#allocation8_spill] sm:$0xff] %v12264_v0  ;;  %v5513_v33 = vadd.s32 %v5512_v17, %v5502_v39  ;;  %v5535_v15 = vadd.s32 %v5534_v57, %v5524_v19  ;;  %vm5610_vm12 = vcmp.gt.s32.totalorder %v5609_v11, 0  ;;  %v5254_v10 = vcvt.s32.f32 %v5247_v41 }
 0x4e4   :  { %v5483_v26 = vsel %vm5477_vm6, %v5480_v46, %v5482_v63  ;;  %v13916_v42 = vand.u32 2147483647, %v12231_v8  ;;  %v5611_v23 = vsel %vm5610_vm12, %v5609_v11, 0  ;;  %vm6465_vm1 = vcmp.lt.s32.totalorder %v6464_v44, 0 }
 0x4e5   :  { %v12269_v62 = vadd.s32 %v5513_v33, %v5504_v58  ;;  %v12271_v7 = vadd.s32 %v5529_v45, %v5525_v54  ;;  %v5536_v16 = vadd.s32 %v5535_v15, %v5526_v5  ;;  %v12274_v30 = vmul.f32 %v5118_v48, %v12182_v31 }
 0x4e6   :  { %v5258_v47 = vsub.s32 4, %v12043_v14  ;;  %v5613_v2 = vand.u32 31, %v5611_v23  ;;  %v1700_v41 = vmul.f32 %v1699_v6, %v14431_v29  ;;  %v5255_v56 = vmul.f32 %v5254_v10, %v5252_v1  ;;  %v742_v10 = vpop.f32.mrf.mxu2 }
 0x4e7   :  { %v5537_v38 = vmul.u32 %v12223_v27, %v5483_v26  ;;  %vm5539_vm10 = vc.u32 %v12269_v62, %v12271_v7  ;;  %v5540_v20 = vadd.s32 1, %v5536_v16  ;;  %v5398_v46 = vsel %vm6465_vm1, 0, %v6464_v44 }
 0x4e8   :  { %v5606_v54 = vand.u32 8388607, %v13916_v42  ;;  %v12283_v45 = vshrl.u32 %v5611_v23, 5  ;;  %v12285_v63 = vsub.s32 32, %v5613_v2  ;;  %v5616_v49 = vshll.u32 %v14020_v34, %v5613_v2 }
 0x4e9   :  { %v5541_v50 = vsel %vm5539_vm10, %v5540_v20, %v5536_v16  ;;  %v5619_v6 = vshll.u32 %v14016_v28, %v5613_v2  ;;  %v5622_v25 = vshll.u32 %v14216_v52, %v5613_v2  ;;  %vm5136_vm3 = vcmp.lt.s32.totalorder %v11808_v18, 0 }
 0x4ea   :  { %v5542_v27 = vadd.s32 %v5541_v50, %v5537_v38  ;;  %v5617_v3 = vshrl.u32 %v14016_v28, %v12285_v63  ;;  %v5625_v44 = vshll.u32 %v14170_v12, %v5613_v2  ;;  %v5628_v51 = vshll.u32 %v14168_v32, %v5613_v2 }
 0x4eb   :  { %v5620_v19 = vshrl.u32 %v14216_v52, %v12285_v63  ;;  %v5623_v9 = vshrl.u32 %v14170_v12, %v12285_v63  ;;  %v5626_v39 = vshrl.u32 %v14168_v32, %v12285_v63  ;;  %v5629_v17 = vshrl.u32 %v14171_v21, %v12285_v63 }
 0x4ec   :  { %v5399_v57 = vsub.s32 32, %v5398_v46  ;;  %v5543_v11 = vadd.s32 536870912, %v5542_v27  ;;  %v5607_v48 = vor.u32 8388608, %v5606_v54  ;;  %v12303_v1 = vor.u32 %v5617_v3, %v5616_v49 }
 0x4ed   :  { %v12305_v58 = vor.u32 %v5620_v19, %v5619_v6  ;;  %v5624_v33 = vor.u32 %v5623_v9, %v5622_v25  ;;  %v5627_v5 = vor.u32 %v5626_v39, %v5625_v44  ;;  %v5630_v15 = vor.u32 %v5629_v17, %v5628_v51  ;;  %v14436_v25 = vld [vmem:[#allocation38_spill] sm:$0xff]  ;;  %v950_v51 = vpop.f32.mrf.mxu3 }
 0x4ee   :  { %v5403_v26 = vsub.s32 4294967266, %v5398_v46  ;;  %v12307_v23 = vshrl.u32 %v5543_v11, 30  ;;  %vm5631_vm15 = vcmp.lt.s32.totalorder %v12283_v45, 1  ;;  %vm5634_vm11 = vcmp.lt.s32.totalorder %v12283_v45, 4 }
 0x4ef   :  { %v14433_v16 = vand.u32 2147483647, %v11808_v18  ;;  %v5256_v38 = vxor.u32 2147483648, %v5255_v56  ;;  %v5383_v20 = vadd.s32 %v12129_v61, %v12127_v37  ;;  %v5639_v54 = vsel %vm5631_vm15, %v12303_v1, %v12305_v58 }
 0x4f0   :  { %v5640_v50 = vsel %vm5634_vm11, %v5627_v5, 920167782  ;;  %v5545_v49 = vshll.u32 %v12307_v23, 30  ;;  %vm5633_vm5 = vcmp.lt.s32.totalorder %v12283_v45, 3  ;;  %v12327_v6 = vshll.u32 %v5607_v48, 8 }
 0x4f1   :  { %vm12313_vm8 = vcmp.le.f32.partialorder %v14433_v16, 0.7853982  ;;  %v743_v3 = vadd.f32 %v742_v10, %v14436_v25  ;;  %v5401_v44 = vshrl.u32 %v5383_v20, %v5399_v57  ;;  %vm5632_vm4 = vcmp.lt.s32.totalorder %v12283_v45, 2  ;;  %v14437_v10 = vld [vmem:[#allocation50_spill] sm:$0xff]  ;;  %v1102_v25 = vpop.f32.mrf.mxu0 }
 0x4f2   :  { %v5641_v37 = vsel %vm5633_vm5, %v5624_v33, %v5640_v50  ;;  %v5644_v61 = vsel %vm5634_vm11, %v5630_v15, 1326507024  ;;  %v5404_v19 = vadd.s32 127, %v5403_v26  ;;  %v12335_v9 = vsub.s32 %v5542_v27, %v5545_v49 }
 0x4f3   :  { %v5642_v39 = vsel %vm5632_vm4, %v5639_v54, %v5641_v37  ;;  %v5643_v17 = vsel %vm5631_vm15, %v12305_v58, %v5624_v33  ;;  %v5257_v57 = vsel %vm5136_vm3, %v5256_v38, %v5255_v56  ;;  %v5645_v11 = vsel %vm5633_vm5, %v5627_v5, %v5644_v61 }
 0x4f4   :  { %v1701_v48 = vadd.f32 -0.4999988, %v1700_v41  ;;  %v12347_v15 = vand.u32 3, %v14437_v10  ;;  %v5400_v27 = vshll.u32 %v12212_v13, %v5398_v46  ;;  %v5548_v26 = vsub.s32 0, %v12335_v9 }
 0x4f5   :  { %v5648_v16 = vand.u32 65535, %v12327_v6  ;;  %v951_v20 = vadd.f32 %v950_v51, %v743_v3  ;;  %vm5547_vm13 = vcmp.lt.s32.totalorder %v12335_v9, 0  ;;  %v5646_v54 = vsel %vm5632_vm4, %v5643_v17, %v5645_v11 }
 0x4f6   :  { %v5672_v56 = vand.u32 65535, %v5642_v39  ;;  %v5673_v38 = vshrl.u32 %v5642_v39, 16  ;;  %v12355_v50 = vor.u32 %v5401_v44, %v5400_v27  ;;  %v5405_v41 = vshll.u32 %v5404_v19, 23 }
 0x4f7   :  { %v5649_v5 = vshrl.u32 %v12327_v6, 16  ;;  %v5650_v49 = vand.u32 65535, %v5646_v54  ;;  %v12359_v13 = vadd.f32 1.0, %v12274_v30  ;;  %v12366_v46 = vsel %vm5136_vm3, %v5258_v47, %v12043_v14 }
 0x4f8   :  { %v5651_v3 = vshrl.u32 %v5646_v54, 16  ;;  %v5675_v37 = vmul.u32 %v5673_v38, %v5648_v16  ;;  %v12371_v44 = vsel %vm12313_vm8, %v11808_v18, %v5257_v57  ;;  %v5549_v61 = vsel %vm5547_vm13, %v5548_v26, %v12335_v9  ;;  %v1248_v57 = vpop.f32.mrf.mxu1 }
 0x4f9   :  { %14438 = vst [vmem:[#allocation38_spill] sm:$0xff] %v12371_v44  ;;  %v5676_v51 = vmul.u32 %v5672_v56, %v5649_v5  ;;  %v1702_v30 = vmul.f32 %v1701_v48, %v14431_v29  ;;  %v5654_v39 = vmul.u32 %v5650_v49, %v5649_v5  ;;  %v1103_v11 = vadd.f32 %v1102_v25, %v951_v20 }
 0x4fa   :  { %v5653_v19 = vmul.u32 %v5651_v3, %v5648_v16  ;;  %v5678_v17 = vshll.u32 %v5675_v37, 16  ;;  %vm1716_vm6 = vcmp.eq.s32.totalorder %v12347_v15, 0  ;;  %v5406_v14 = vor.u32 4788187, %v5405_v41 }
 0x4fb   :  { %v5409_v47 = vcvt.s32.f32 %v12355_v50  ;;  %v5615_v10 = vshrl.u32 %v14020_v34, %v12285_v63  ;;  %v5674_v27 = vmul.u32 %v5672_v56, %v5648_v16  ;;  %v5550_v54 = vclz %v5549_v61 }
 0x4fc   :  { %v5636_v26 = vsel %vm5634_vm11, %v5624_v33, 2102212464  ;;  %v5652_v42 = vmul.u32 %v5650_v49, %v5648_v16  ;;  %v5656_v29 = vshll.u32 %v5653_v19, 16  ;;  %v5677_v48 = vmul.u32 %v5673_v38, %v5649_v5 }
 0x4fd   :  { %v5680_v18 = vshll.u32 %v5676_v51, 16  ;;  %vm5682_vm7 = vc.u32 %v5674_v27, %v5678_v17  ;;  %v5684_v20 = vadd.s32 %v5678_v17, %v5674_v27  ;;  %v5655_v25 = vmul.u32 %v5651_v3, %v5649_v5 }
 0x4fe   :  { %v5658_v31 = vshll.u32 %v5654_v39, 16  ;;  %vm5660_vm14 = vc.u32 %v5652_v42, %v5656_v29  ;;  %v12381_v41 = vadd.f32 %v1248_v57, %v1103_v11  ;;  %v5662_v63 = vadd.s32 %v5656_v29, %v5652_v42  ;;  %v14439_v57 = vld [vmem:[#allocation47_spill] sm:$0xff] }
 0x4ff   :  { %v5661_v50 = vsel %vm5660_vm14, 1, %v14048_v60  ;;  %v5683_v56 = vsel %vm5682_vm7, 1, %v14048_v60  ;;  %vm5686_vm9 = vc.u32 %v5684_v20, %v5680_v18  ;;  %vm1715_vm0 = vcmp.lt.s32.totalorder %v12347_v15, 2 }
 0x500   :  { %v5635_v33 = vsel %vm5631_vm15, %v5615_v10, %v12303_v1  ;;  %v5663_v16 = vadd.s32 %v5661_v50, %v5655_v25  ;;  %v5685_v38 = vadd.s32 %v5683_v56, %v5677_v48  ;;  %v1703_v49 = vadd.f32 1.0, %v1702_v30  ;;  %v14440_v30 = vld [vmem:[#allocation9_spill] sm:$0xff] }
 0x501   :  { %v6467_v5 = vadd.s32 4294967294, %v5550_v54  ;;  %v5637_v3 = vsel %vm5633_vm5, %v12305_v58, %v5636_v26  ;;  %vm5664_vm2 = vc.u32 %v5662_v63, %v5658_v31  ;;  %v5687_v42 = vsel %vm5686_vm9, 1, %v14048_v60 }
 0x502   :  { %v5407_v61 = vand.u32 2147483647, %v5406_v14  ;;  %v5665_v17 = vsel %vm5664_vm2, 1, %v14048_v60  ;;  %v5679_v11 = vshrl.u32 %v5675_v37, 16  ;;  %v5689_v27 = vadd.s32 %v5687_v42, %v5685_v38 }
 0x503   :  { %vm1712_vm12 = vweird.f32 %v14439_v57  ;;  %v5657_v29 = vshrl.u32 %v5653_v19, 16  ;;  %v5667_v1 = vadd.s32 %v5665_v17, %v5663_v16  ;;  %v5757_v10 = vand.u32 2139095040, %v12381_v41  ;;  %v747_v16 = vpop.f32.mrf.mxu2  ;;  %v14442_v17 = vld [vmem:[#allocation41_spill] sm:$0xff] }
 0x504   :  { %v14441_v54 = vxor.u32 2147483648, %v14440_v30  ;;  %v5638_v31 = vsel %vm5632_vm4, %v5635_v33, %v5637_v3  ;;  %v5659_v58 = vshrl.u32 %v5654_v39, 16  ;;  %v5681_v14 = vshrl.u32 %v5676_v51, 16 }
 0x505   :  { %v5690_v26 = vadd.s32 %v5689_v27, %v5679_v11  ;;  %vm6468_vm1 = vcmp.lt.s32.totalorder %v6467_v5, 0  ;;  %v5668_v37 = vadd.s32 %v5667_v1, %v5657_v29  ;;  %v5758_v25 = vshrl.u32 %v5757_v10, 23  ;;  %v956_v11 = vpop.f32.mrf.mxu3 }
 0x506   :  { %v1718_v48 = vsel %vm1716_vm6, %v1703_v49, %v14441_v54  ;;  %v1720_v50 = vxor.u32 2147483648, %v1703_v49  ;;  %v12404_v19 = vmul.f32 %v12371_v44, %v12371_v44  ;;  %v5410_v63 = vmul.f32 %v5409_v47, %v5407_v61 }
 0x507   :  { %v5691_v56 = vadd.s32 %v5690_v26, %v5681_v14  ;;  %vm1719_vm10 = vcmp.eq.s32.totalorder %v12347_v15, 2  ;;  %vm5291_vm3 = vcmp.lt.s32.totalorder %v11944_v35, 0  ;;  %v12408_v45 = vadd.s32 %v5668_v37, %v5659_v58  ;;  %v1106_v37 = vpop.f32.mrf.mxu0 }
 0x508   :  { %v12410_v39 = vadd.s32 %v5684_v20, %v5680_v18  ;;  %v6472_v51 = vadd.s32 4294967169, %v5758_v25  ;;  %v1721_v33 = vsel %vm1719_vm10, %v1720_v50, %v14440_v30  ;;  %v12413_v38 = vsel %vm6468_vm1, 0, %v6467_v5 }
 0x509   :  { %v5692_v49 = vmul.u32 %v12327_v6, %v5638_v31  ;;  %v5695_v3 = vadd.s32 1, %v5691_v56  ;;  %v1722_v47 = vsel %vm1715_vm0, %v1718_v48, %v1721_v33  ;;  %v13920_v42 = vand.u32 2147483647, %v12381_v41 }
 0x50a   :  { %vm5694_vm15 = vc.u32 %v12408_v45, %v12410_v39  ;;  %v5764_v61 = vadd.s32 1, %v6472_v51  ;;  %v748_v18 = vadd.f32 %v747_v16, %v14442_v17  ;;  %v12424_v20 = vmul.f32 %v12359_v13, %v12166_v55 }
 0x50b   :  { %v5261_v6 = vsel %vm12313_vm8, 0, %v12366_v46  ;;  %v5696_v5 = vsel %vm5694_vm15, %v5695_v3, %v5691_v56  ;;  %vm6219_vm11 = vcmask 523264   ;;  %v5270_v15 = vmul.f32 -0.00019511016, %v12404_v19 }
 0x50c   :  { %14443 = vst [vmem:[#allocation50_spill] sm:$0xff] %v12424_v20  ;;  %v5697_v27 = vadd.s32 %v5696_v5, %v5692_v49  ;;  %vm5765_vm5 = vcmp.gt.s32.totalorder %v5764_v61, 0  ;;  %v1723_v29 = vsel %vm1712_vm12, nan, %v1722_v47  ;;  %v5411_v1 = vxor.u32 2147483648, %v5410_v63 }
 0x50d   :  { %v5554_v10 = vsub.s32 32, %v12413_v38  ;;  %v5558_v55 = vsub.s32 4294967266, %v12413_v38  ;;  %v5766_v13 = vsel %vm5765_vm5, %v5764_v61, 0  ;;  %6222 = vst.msk [vmem:[%s13582_s3 + $0x10] sm:$0xff] %vm6219_vm11, %v1723_v29  ;;  %v14444_v2 = vand.u32 2147483647, %v11944_v35 }
 0x50e   :  { %v5698_v30 = vadd.s32 536870912, %v5697_v27  ;;  %v5761_v57 = vand.u32 8388607, %v13920_v42  ;;  %v5768_v54 = vand.u32 31, %v5766_v13  ;;  %v957_v48 = vadd.f32 %v956_v11, %v748_v18 }
 0x50f   :  { %vm12440_vm8 = vcmp.le.f32.partialorder %v14444_v2, 0.7853982  ;;  %v12448_v14 = vadd.s32 3, %v5261_v6  ;;  %v5538_v26 = vadd.s32 %v12271_v7, %v12269_v62  ;;  %v5271_v25 = vadd.f32 0.008332121, %v5270_v15 }
 0x510   :  { %v12453_v56 = vshrl.u32 %v5698_v30, 30  ;;  %v5769_v16 = vsub.s32 32, %v5768_v54  ;;  %v5412_v51 = vsel %vm5291_vm3, %v5411_v1, %v5410_v63  ;;  %v5555_v33 = vshll.u32 %v12335_v9, %v12413_v38 }
 0x511   :  { %v5556_v49 = vshrl.u32 %v5538_v26, %v5554_v10  ;;  %v5559_v3 = vadd.s32 127, %v5558_v55  ;;  %v5762_v61 = vor.u32 8388608, %v5761_v57  ;;  %v1107_v7 = vadd.f32 %v1106_v37, %v957_v48  ;;  %v1252_v48 = vpop.f32.mrf.mxu1  ;;  %v14448_v26 = vld [vmem:[#allocation6_spill] sm:$0xff] }
 0x512   :  { %v5700_v47 = vshll.u32 %v12453_v56, 30  ;;  %v5772_v62 = vshrl.u32 %v14016_v28, %v5769_v16  ;;  %v5771_v17 = vshll.u32 %v14020_v34, %v5768_v54  ;;  %v5775_v18 = vshrl.u32 %v14216_v52, %v5769_v16 }
 0x513   :  { %v5778_v6 = vshrl.u32 %v14170_v12, %v5769_v16  ;;  %v5781_v5 = vshrl.u32 %v14168_v32, %v5769_v16  ;;  %v5774_v9 = vshll.u32 %v14016_v28, %v5768_v54  ;;  %v5780_v38 = vshll.u32 %v14170_v12, %v5768_v54 }
 0x514   :  { %v12465_v63 = vsub.s32 %v5697_v27, %v5700_v47  ;;  %v5784_v11 = vshrl.u32 %v14171_v21, %v5769_v16  ;;  %v12470_v15 = vshrl.u32 %v5766_v13, 5  ;;  %v5773_v29 = vor.u32 %v5772_v62, %v5771_v17 }
 0x515   :  { %v5777_v1 = vshll.u32 %v14216_v52, %v5768_v54  ;;  %v5783_v10 = vshll.u32 %v14168_v32, %v5768_v54  ;;  %v5776_v2 = vor.u32 %v5775_v18, %v5774_v9  ;;  %v5782_v27 = vor.u32 %v5781_v5, %v5780_v38 }
 0x516   :  { %vm5702_vm4 = vcmp.lt.s32.totalorder %v12465_v63, 0  ;;  %v5703_v55 = vsub.s32 0, %v12465_v63  ;;  %v12477_v30 = vmul.f32 %v5271_v25, %v12404_v19  ;;  %v12482_v57 = vsel %vm12440_vm8, %v11944_v35, %v5412_v51 }
 0x517   :  { %14447 = vst [vmem:[#allocation47_spill] sm:$0xff] %v12482_v57  ;;  %v5779_v13 = vor.u32 %v5778_v6, %v5777_v1  ;;  %v12485_v37 = vmul.f32 -0.001358992, %v14448_v26  ;;  %v12487_v54 = vor.u32 %v5556_v49, %v5555_v33  ;;  %v5560_v47 = vshll.u32 %v5559_v3, 23 }
 0x518   :  { %v5704_v62 = vsel %vm5702_vm4, %v5703_v55, %v12465_v63  ;;  %v5785_v17 = vor.u32 %v5784_v11, %v5783_v10  ;;  %vm5786_vm13 = vcmp.lt.s32.totalorder %v12470_v15, 1  ;;  %vm5789_vm6 = vcmp.lt.s32.totalorder %v12470_v15, 4 }
 0x519   :  { %v5705_v18 = vclz %v5704_v62  ;;  %v12492_v25 = vshll.u32 %v5762_v61, 8  ;;  %vm5788_vm7 = vcmp.lt.s32.totalorder %v12470_v15, 3  ;;  %v5794_v51 = vsel %vm5786_vm13, %v5773_v29, %v5776_v2 }
 0x51a   :  { %v5795_v33 = vsel %vm5789_vm6, %v5782_v27, 920167782  ;;  %v12499_v49 = vadd.f32 %v1252_v48, %v1107_v7  ;;  %vm5787_vm14 = vcmp.lt.s32.totalorder %v12470_v15, 2  ;;  %v5798_v61 = vsel %vm5786_vm13, %v5776_v2, %v5779_v13 }
 0x51b   :  { %v6470_v3 = vadd.s32 4294967294, %v5705_v18  ;;  %v5796_v6 = vsel %vm5788_vm7, %v5779_v13, %v5795_v33  ;;  %v12508_v5 = vmul.f32 %v12482_v57, %v12482_v57  ;;  %v5561_v9 = vor.u32 4788187, %v5560_v47 }
 0x51c   :  { %v5797_v38 = vsel %vm5787_vm14, %v5794_v51, %v5796_v6  ;;  %v5799_v7 = vsel %vm5789_vm6, %v5785_v17, 1326507024  ;;  %v5564_v11 = vcvt.s32.f32 %v12487_v54  ;;  %v5803_v62 = vand.u32 65535, %v12492_v25 }
 0x51d   :  { %vm6471_vm9 = vcmp.lt.s32.totalorder %v6470_v3, 0  ;;  %v5800_v1 = vsel %vm5788_vm7, %v5782_v27, %v5799_v7  ;;  %v5827_v10 = vand.u32 65535, %v5797_v38  ;;  %v5828_v47 = vshrl.u32 %v5797_v38, 16 }
 0x51e   :  { %v5708_v55 = vsel %vm6471_vm9, 0, %v6470_v3  ;;  %v5801_v48 = vsel %vm5787_vm14, %v5798_v61, %v5800_v1  ;;  %v5791_v51 = vsel %vm5789_vm6, %v5779_v13, 2102212464  ;;  %v5804_v17 = vshrl.u32 %v12492_v25, 16 }
 0x51f   :  { %v5713_v18 = vsub.s32 4294967266, %v5708_v55  ;;  %v5912_v54 = vand.u32 2139095040, %v12499_v49  ;;  %v5770_v33 = vshrl.u32 %v14020_v34, %v5769_v16  ;;  %v5805_v6 = vand.u32 65535, %v5801_v48 }
 0x520   :  { %v5806_v27 = vshrl.u32 %v5801_v48, 16  ;;  %v5830_v7 = vmul.u32 %v5828_v47, %v5803_v62  ;;  %v5562_v3 = vand.u32 2147483647, %v5561_v9  ;;  %v5693_v61 = vadd.s32 %v12410_v39, %v12408_v45 }
 0x521   :  { %v5714_v1 = vadd.s32 127, %v5713_v18  ;;  %v5831_v58 = vmul.u32 %v5827_v10, %v5804_v17  ;;  %v5790_v38 = vsel %vm5786_vm13, %v5770_v33, %v5773_v29  ;;  %v5792_v13 = vsel %vm5788_vm7, %v5776_v2, %v5791_v51 }
 0x522   :  { %v5808_v31 = vmul.u32 %v5806_v27, %v5803_v62  ;;  %v5809_v42 = vmul.u32 %v5805_v6, %v5804_v17  ;;  %v5709_v50 = vsub.s32 32, %v5708_v55  ;;  %v5710_v16 = vshll.u32 %v12465_v63, %v5708_v55 }
 0x523   :  { %v5833_v20 = vshll.u32 %v5830_v7, 16  ;;  %v5913_v48 = vshrl.u32 %v5912_v54, 23  ;;  %v5807_v0 = vmul.u32 %v5805_v6, %v5803_v62  ;;  %v5829_v36 = vmul.u32 %v5827_v10, %v5803_v62 }
 0x524   :  { %v5811_v9 = vshll.u32 %v5808_v31, 16  ;;  %v5832_v24 = vmul.u32 %v5828_v47, %v5804_v17  ;;  %v5715_v45 = vshll.u32 %v5714_v1, 23  ;;  %v5810_v39 = vmul.u32 %v5806_v27, %v5804_v17 }
 0x525   :  { %v5813_v18 = vshll.u32 %v5809_v42, 16  ;;  %v5835_v22 = vshll.u32 %v5831_v58, 16  ;;  %vm5837_vm2 = vc.u32 %v5829_v36, %v5833_v20  ;;  %v5839_v33 = vadd.s32 %v5833_v20, %v5829_v36 }
 0x526   :  { %vm5815_vm0 = vc.u32 %v5807_v0, %v5811_v9  ;;  %v5817_v29 = vadd.s32 %v5811_v9, %v5807_v0  ;;  %v5711_v2 = vshrl.u32 %v5693_v61, %v5709_v50  ;;  %v5838_v40 = vsel %vm5837_vm2, 1, %v14048_v60 }
 0x527   :  { %v5816_v51 = vsel %vm5815_vm0, 1, %v14048_v60  ;;  %v6475_v63 = vadd.s32 4294967169, %v5913_v48  ;;  %v5840_v54 = vadd.s32 %v5838_v40, %v5832_v24  ;;  %vm5841_vm1 = vc.u32 %v5839_v33, %v5835_v22 }
 0x528   :  { %v5818_v55 = vadd.s32 %v5816_v51, %v5810_v39  ;;  %vm5819_vm12 = vc.u32 %v5817_v29, %v5813_v18  ;;  %v5716_v10 = vor.u32 4788187, %v5715_v45  ;;  %v5834_v47 = vshrl.u32 %v5830_v7, 16 }
 0x529   :  { %v5820_v62 = vsel %vm5819_vm12, 1, %v14048_v60  ;;  %v5842_v17 = vsel %vm5841_vm1, 1, %v14048_v60  ;;  %v5812_v6 = vshrl.u32 %v5808_v31, 16  ;;  %v5919_v36 = vadd.s32 1, %v6475_v63 }
 0x52a   :  { %v5822_v0 = vadd.s32 %v5820_v62, %v5818_v55  ;;  %v5844_v27 = vadd.s32 %v5842_v17, %v5840_v54  ;;  %v5425_v20 = vmul.f32 -0.00019511016, %v12508_v5  ;;  %v5565_v50 = vmul.f32 %v5564_v11, %v5562_v3 }
 0x52b   :  { %v5712_v61 = vor.u32 %v5711_v2, %v5710_v16  ;;  %v5814_v1 = vshrl.u32 %v5809_v42, 16  ;;  %vm5446_vm10 = vcmp.lt.s32.totalorder %v12102_v43, 0  ;;  %v5836_v40 = vshrl.u32 %v5831_v58, 16 }
 0x52c   :  { %v5823_v48 = vadd.s32 %v5822_v0, %v5812_v6  ;;  %v5845_v24 = vadd.s32 %v5844_v27, %v5834_v47  ;;  %vm5920_vm15 = vcmp.gt.s32.totalorder %v5919_v36, 0  ;;  %v5717_v9 = vand.u32 2147483647, %v5716_v10 }
 0x52d   :  { %v5793_v7 = vsel %vm5787_vm14, %v5790_v38, %v5792_v13  ;;  %v13932_v31 = vand.u32 2147483647, %v12499_v49  ;;  %v5921_v45 = vsel %vm5920_vm15, %v5919_v36, 0  ;;  %v12542_v39 = vadd.f32 -0.16666654, %v12477_v30 }
 0x52e   :  { %v12544_v18 = vadd.s32 %v5823_v48, %v5814_v1  ;;  %v12546_v11 = vadd.s32 %v5839_v33, %v5835_v22  ;;  %v5846_v42 = vadd.s32 %v5845_v24, %v5836_v40  ;;  %v5426_v3 = vadd.f32 0.008332121, %v5425_v20 }
 0x52f   :  { %v5719_v16 = vcvt.s32.f32 %v5712_v61  ;;  %v5923_v58 = vand.u32 31, %v5921_v45  ;;  %v1389_v29 = vadd.f32 0.041655596, %v12485_v37  ;;  %v14449_v2 = vand.u32 2147483647, %v12102_v43 }
 0x530   :  { %v5566_v38 = vxor.u32 2147483648, %v5565_v50  ;;  %v5847_v30 = vmul.u32 %v12492_v25, %v5793_v7  ;;  %vm5849_vm4 = vc.u32 %v12544_v18, %v12546_v11  ;;  %v5850_v22 = vadd.s32 1, %v5846_v42 }
 0x531   :  { %vm12551_vm5 = vcmp.le.f32.partialorder %v14449_v2, 0.7853982  ;;  %v5720_v13 = vmul.f32 %v5719_v16, %v5717_v9  ;;  %v5916_v33 = vand.u32 8388607, %v13932_v31  ;;  %v12560_v51 = vshrl.u32 %v5921_v45, 5  ;;  %v752_v45 = vpop.f32.mrf.mxu2 }
 0x532   :  { %v5924_v37 = vsub.s32 32, %v5923_v58  ;;  %v5851_v63 = vsel %vm5849_vm4, %v5850_v22, %v5846_v42  ;;  %v5926_v55 = vshll.u32 %v14020_v34, %v5923_v58  ;;  %v5929_v54 = vshll.u32 %v14016_v28, %v5923_v58  ;;  %v14453_v22 = vld [vmem:[#allocation44_spill] sm:$0xff] }
 0x533   :  { %v5932_v10 = vshll.u32 %v14216_v52, %v5923_v58  ;;  %vm5601_vm13 = vcmp.lt.s32.totalorder %v12231_v8, 0  ;;  %v5852_v25 = vadd.s32 %v5851_v63, %v5847_v30  ;;  %v5935_v47 = vshll.u32 %v14170_v12, %v5923_v58 }
 0x534   :  { %v5927_v62 = vshrl.u32 %v14016_v28, %v5924_v37  ;;  %v5938_v17 = vshll.u32 %v14168_v32, %v5923_v58  ;;  %v5930_v6 = vshrl.u32 %v14216_v52, %v5924_v37  ;;  %v5933_v0 = vshrl.u32 %v14170_v12, %v5924_v37 }
 0x535   :  { %v5936_v27 = vshrl.u32 %v14168_v32, %v5924_v37  ;;  %v5939_v36 = vshrl.u32 %v14171_v21, %v5924_v37  ;;  %v5567_v20 = vsel %vm5446_vm10, %v5566_v38, %v5565_v50  ;;  %v5853_v61 = vadd.s32 536870912, %v5852_v25 }
 0x536   :  { %v5917_v1 = vor.u32 8388608, %v5916_v33  ;;  %v5928_v48 = vor.u32 %v5927_v62, %v5926_v55  ;;  %v12575_v40 = vor.u32 %v5930_v6, %v5929_v54  ;;  %v5934_v24 = vor.u32 %v5933_v0, %v5932_v10  ;;  %v962_v54 = vpop.f32.mrf.mxu3  ;;  %v14472_v62 = vld [vmem:[#allocation47_spill] sm:$0xff] }
 0x537   :  { %v5937_v9 = vor.u32 %v5936_v27, %v5935_v47  ;;  %v5940_v7 = vor.u32 %v5939_v36, %v5938_v17  ;;  %v5427_v42 = vmul.f32 %v5426_v3, %v12508_v5  ;;  %v12578_v16 = vshrl.u32 %v5853_v61, 30 }
 0x538   :  { %vm5941_vm6 = vcmp.lt.s32.totalorder %v12560_v51, 1  ;;  %vm5944_vm7 = vcmp.lt.s32.totalorder %v12560_v51, 4  ;;  %v5721_v58 = vxor.u32 2147483648, %v5720_v13  ;;  %v1390_v38 = vmul.f32 %v1389_v29, %v14448_v26 }
 0x539   :  { %v5949_v50 = vsel %vm5941_vm6, %v5928_v48, %v12575_v40  ;;  %v5950_v2 = vsel %vm5944_vm7, %v5937_v9, 920167782  ;;  %v12591_v3 = vsel %vm12551_vm5, %v12102_v43, %v5567_v20  ;;  %v5855_v30 = vshll.u32 %v12578_v16, 30 }
 0x53a   :  { %14452 = vst [vmem:[#allocation9_spill] sm:$0xff] %v12591_v3  ;;  %vm5943_vm14 = vcmp.lt.s32.totalorder %v12560_v51, 3  ;;  %v753_v33 = vadd.f32 %v752_v45, %v14453_v22  ;;  %vm5942_vm9 = vcmp.lt.s32.totalorder %v12560_v51, 2  ;;  %v5954_v55 = vsel %vm5944_vm7, %v5940_v7, 1326507024 }
 0x53b   :  { %v5951_v63 = vsel %vm5943_vm14, %v5934_v24, %v5950_v2  ;;  %v12601_v29 = vshll.u32 %v5917_v1, 8  ;;  %v14454_v10 = vand.u32 2147483647, %v12231_v8  ;;  %v12609_v47 = vsub.s32 %v5852_v25, %v5855_v30  ;;  %v1110_v2 = vpop.f32.mrf.mxu0 }
 0x53c   :  { %v5952_v17 = vsel %vm5942_vm9, %v5949_v50, %v5951_v63  ;;  %v5953_v6 = vsel %vm5941_vm6, %v12575_v40, %v5934_v24  ;;  %v12616_v0 = vadd.f32 -0.16666654, %v5427_v42  ;;  %v12620_v27 = vmul.f32 %v12591_v3, %v12591_v3 }
 0x53d   :  { %vm12605_vm0 = vcmp.le.f32.partialorder %v14454_v10, 0.7853982  ;;  %v5722_v36 = vsel %vm5601_vm13, %v5721_v58, %v5720_v13  ;;  %v5955_v25 = vsel %vm5943_vm14, %v5937_v9, %v5954_v55  ;;  %vm5857_vm2 = vcmp.lt.s32.totalorder %v12609_v47, 0 }
 0x53e   :  { %v5858_v20 = vsub.s32 0, %v12609_v47  ;;  %v963_v61 = vadd.f32 %v962_v54, %v753_v33  ;;  %v12628_v1 = vadd.f32 -0.4999988, %v1390_v38  ;;  %v5956_v7 = vsel %vm5942_vm9, %v5953_v6, %v5955_v25 }
 0x53f   :  { %v5958_v45 = vand.u32 65535, %v12601_v29  ;;  %v5982_v42 = vand.u32 65535, %v5952_v17  ;;  %v5983_v50 = vshrl.u32 %v5952_v17, 16  ;;  %v12636_v13 = vsel %vm12605_vm0, %v12231_v8, %v5722_v36 }
 0x540   :  { %v5859_v9 = vsel %vm5857_vm2, %v5858_v20, %v12609_v47  ;;  %v5959_v58 = vshrl.u32 %v12601_v29, 16  ;;  %v5960_v30 = vand.u32 65535, %v5956_v7  ;;  %v5925_v22 = vshrl.u32 %v14020_v34, %v5924_v37 }
 0x541   :  { %v5860_v38 = vclz %v5859_v9  ;;  %v5961_v33 = vshrl.u32 %v5956_v7, 16  ;;  %v5985_v63 = vmul.u32 %v5983_v50, %v5958_v45  ;;  %v5848_v55 = vadd.s32 %v12546_v11, %v12544_v18  ;;  %v1256_v7 = vpop.f32.mrf.mxu1 }
 0x542   :  { %v5964_v54 = vmul.u32 %v5960_v30, %v5959_v58  ;;  %v5986_v10 = vmul.u32 %v5982_v42, %v5959_v58  ;;  %v1111_v17 = vadd.f32 %v1110_v2, %v963_v61  ;;  %v5945_v36 = vsel %vm5941_vm6, %v5925_v22, %v5928_v48 }
 0x543   :  { %v6473_v6 = vadd.s32 4294967294, %v5860_v38  ;;  %v5963_v25 = vmul.u32 %v5961_v33, %v5958_v45  ;;  %v5988_v20 = vshll.u32 %v5985_v63, 16  ;;  %v5946_v31 = vsel %vm5944_vm7, %v5934_v24, 2102212464 }
 0x544   :  { %v5962_v9 = vmul.u32 %v5960_v30, %v5958_v45  ;;  %v5984_v59 = vmul.u32 %v5982_v42, %v5958_v45  ;;  %v5987_v37 = vmul.u32 %v5983_v50, %v5959_v58  ;;  %v5965_v4 = vmul.u32 %v5961_v33, %v5959_v58 }
 0x545   :  { %vm6474_vm12 = vcmp.lt.s32.totalorder %v6473_v6, 0  ;;  %v5966_v3 = vshll.u32 %v5963_v25, 16  ;;  %v5968_v18 = vshll.u32 %v5964_v54, 16  ;;  %v5990_v57 = vshll.u32 %v5986_v10, 16 }
 0x546   :  { %v5863_v11 = vsel %vm6474_vm12, 0, %v6473_v6  ;;  %vm5992_vm1 = vc.u32 %v5984_v59, %v5988_v20  ;;  %v5994_v61 = vadd.s32 %v5988_v20, %v5984_v59  ;;  %v12647_v48 = vadd.f32 %v1256_v7, %v1111_v17 }
 0x547   :  { %v5864_v2 = vsub.s32 32, %v5863_v11  ;;  %v5868_v38 = vsub.s32 4294967266, %v5863_v11  ;;  %vm5970_vm15 = vc.u32 %v5962_v9, %v5966_v3  ;;  %v5972_v24 = vadd.s32 %v5966_v3, %v5962_v9 }
 0x548   :  { %v5971_v22 = vsel %vm5970_vm15, 1, %v14048_v60  ;;  %v5993_v45 = vsel %vm5992_vm1, 1, %v14048_v60  ;;  %vm5996_vm4 = vc.u32 %v5994_v61, %v5990_v57  ;;  %v5865_v33 = vshll.u32 %v12609_v47, %v5863_v11 }
 0x549   :  { %v5866_v42 = vshrl.u32 %v5848_v55, %v5864_v2  ;;  %v5869_v50 = vadd.s32 127, %v5868_v38  ;;  %v5973_v58 = vadd.s32 %v5971_v22, %v5965_v4  ;;  %v5995_v30 = vadd.s32 %v5993_v45, %v5987_v37  ;;  %v6257_v37 = vpop.permute.xlu1 %6256 }
 0x54a   :  { %v5947_v59 = vsel %vm5943_vm14, %v12575_v40, %v5946_v31  ;;  %vm5974_vm6 = vc.u32 %v5972_v24, %v5968_v18  ;;  %v5997_v17 = vsel %vm5996_vm4, 1, %v14048_v60  ;;  %v5989_v3 = vshrl.u32 %v5985_v63, 16 }
 0x54b   :  { %v5870_v6 = vshll.u32 %v5869_v50, 23  ;;  %v5975_v20 = vsel %vm5974_vm6, 1, %v14048_v60  ;;  %v5999_v9 = vadd.s32 %v5997_v17, %v5995_v30  ;;  %v5867_v7 = vor.u32 %v5866_v42, %v5865_v33 }
 0x54c   :  { %v5967_v44 = vshrl.u32 %v5963_v25, 16  ;;  %v5977_v55 = vadd.s32 %v5975_v20, %v5973_v58  ;;  %v6067_v4 = vand.u32 2139095040, %v12647_v48  ;;  %v12660_v47 = vmul.f32 %v12636_v13, %v12636_v13 }
 0x54d   :  { %v5871_v11 = vor.u32 4788187, %v5870_v6  ;;  %v5991_v31 = vshrl.u32 %v5986_v10, 16  ;;  %v6000_v40 = vadd.s32 %v5999_v9, %v5989_v3  ;;  %v5969_v18 = vshrl.u32 %v5964_v54, 16 }
 0x54e   :  { %v5978_v2 = vadd.s32 %v5977_v55, %v5967_v44  ;;  %v6068_v38 = vshrl.u32 %v6067_v4, 23  ;;  %vm13940_vm7 = vcmask 556544   ;;  %v5580_v63 = vmul.f32 -0.00019511016, %v12620_v27 }
 0x54f   :  { %v5872_v22 = vand.u32 2147483647, %v5871_v11  ;;  %v5948_v25 = vsel %vm5942_vm9, %v5945_v36, %v5947_v59  ;;  %v6001_v24 = vadd.s32 %v6000_v40, %v5991_v31  ;;  %6351 = vst.msk [vmem:[%s13582_s3 + $0x10] sm:$0xff] %vm13940_vm7, %v6257_v37  ;;  %v5874_v45 = vcvt.s32.f32 %v5867_v7  ;;  %v14458_v31 = vld [vmem:[#allocation11_spill] sm:$0xff] }
 0x550   :  { %v12669_v42 = vadd.s32 %v5978_v2, %v5969_v18  ;;  %v12671_v10 = vadd.s32 %v5994_v61, %v5990_v57  ;;  %v6478_v44 = vadd.s32 4294967169, %v6068_v38  ;;  %v5735_v54 = vmul.f32 -0.00019511016, %v12660_v47 }
 0x551   :  { %v6005_v50 = vadd.s32 1, %v6001_v24  ;;  %v6064_v58 = vand.u32 2147483647, %v12647_v48  ;;  %v1392_v51 = vmul.f32 %v12628_v1, %v14448_v26  ;;  %v5875_v36 = vmul.f32 %v5874_v45, %v5872_v22 }
 0x552   :  { %v6002_v30 = vmul.u32 %v12601_v29, %v5948_v25  ;;  %vm6004_vm14 = vc.u32 %v12669_v42, %v12671_v10  ;;  %v6074_v33 = vadd.s32 1, %v6478_v44  ;;  %v5274_v57 = vmul.f32 %v12542_v39, %v12404_v19 }
 0x553   :  { %v14457_v61 = vsub.s32 4, %v12170_v53  ;;  %v5429_v26 = vmul.f32 %v12616_v0, %v12508_v5  ;;  %v6006_v1 = vsel %vm6004_vm14, %v6005_v50, %v6001_v24  ;;  %v5568_v29 = vsub.s32 4, %v12307_v23 }
 0x554   :  { %v5581_v17 = vadd.f32 0.008332121, %v5580_v63  ;;  %v6007_v6 = vadd.s32 %v6006_v1, %v6002_v30  ;;  %vm6075_vm9 = vcmp.gt.s32.totalorder %v6074_v33, 0  ;;  %v12693_v20 = vand.u32 3, %v12448_v14 }
 0x555   :  { %v12687_v59 = vsel %vm5291_vm3, %v14457_v61, %v12170_v53  ;;  %v5736_v39 = vadd.f32 0.008332121, %v5735_v54  ;;  %v6071_v3 = vand.u32 8388607, %v6064_v58  ;;  %v6076_v9 = vsel %vm6075_vm9, %v6074_v33, 0 }
 0x556   :  { %v5876_v7 = vxor.u32 2147483648, %v5875_v36  ;;  %v6008_v53 = vadd.s32 536870912, %v6007_v6  ;;  %v6078_v55 = vand.u32 31, %v6076_v9  ;;  %v1393_v4 = vadd.f32 1.0, %v1392_v51 }
 0x557   :  { %v12697_v37 = vadd.f32 1.0, %v5274_v57  ;;  %v5416_v0 = vsel %vm12440_vm8, 0, %v12687_v59  ;;  %v12702_v11 = vadd.f32 1.0, %v5429_v26  ;;  %v1404_v14 = vand.u32 3, %v14458_v31 }
 0x558   :  { %v12708_v40 = vsel %vm5446_vm10, %v5568_v29, %v12307_v23  ;;  %v14459_v18 = vand.u32 2147483647, %v12381_v41  ;;  %v12716_v38 = vshrl.u32 %v6008_v53, 30  ;;  %v6079_v63 = vsub.s32 32, %v6078_v55 }
 0x559   :  { %v12719_v22 = vmul.f32 %v5581_v17, %v12620_v27  ;;  %v12722_v25 = vmul.f32 %v5736_v39, %v12660_v47  ;;  %vm5756_vm2 = vcmp.lt.s32.totalorder %v12381_v41, 0  ;;  %v6072_v24 = vor.u32 8388608, %v6071_v3  ;;  %v14462_v3 = vld [vmem:[#allocation45_spill] sm:$0xff] }
 0x55a   :  { %vm12712_vm3 = vcmp.le.f32.partialorder %v14459_v18, 0.7853982  ;;  %v5877_v23 = vsel %vm5756_vm2, %v5876_v7, %v5875_v36  ;;  %v6010_v45 = vshll.u32 %v12716_v38, 30  ;;  %v6082_v44 = vshrl.u32 %v14016_v28, %v6079_v63 }
 0x55b   :  { %v1410_v54 = vxor.u32 2147483648, %v1393_v4  ;;  %v6081_v50 = vshll.u32 %v14020_v34, %v6078_v55  ;;  %v6085_v51 = vshrl.u32 %v14216_v52, %v6079_v63  ;;  %v6088_v30 = vshrl.u32 %v14170_v12, %v6079_v63 }
 0x55c   :  { %v6091_v33 = vshrl.u32 %v14168_v32, %v6079_v63  ;;  %vm1405_vm10 = vcmp.lt.s32.totalorder %v1404_v14, 2  ;;  %v12733_v57 = vsub.s32 %v6007_v6, %v6010_v45  ;;  %v6084_v61 = vshll.u32 %v14016_v28, %v6078_v55 }
 0x55d   :  { %v6090_v36 = vshll.u32 %v14170_v12, %v6078_v55  ;;  %v6094_v26 = vshrl.u32 %v14171_v21, %v6079_v63  ;;  %v12738_v1 = vshrl.u32 %v6076_v9, 5  ;;  %v6083_v29 = vor.u32 %v6082_v44, %v6081_v50 }
 0x55e   :  { %v6087_v17 = vshll.u32 %v14216_v52, %v6078_v55  ;;  %v6093_v39 = vshll.u32 %v14168_v32, %v6078_v55  ;;  %vm1402_vm12 = vweird.f32 %v14462_v3  ;;  %vm6012_vm1 = vcmp.lt.s32.totalorder %v12733_v57, 0  ;;  %v14463_v55 = vld [vmem:[#allocation40_spill] sm:$0xff] }
 0x55f   :  { %v6013_v6 = vsub.s32 0, %v12733_v57  ;;  %v6086_v7 = vor.u32 %v6085_v51, %v6084_v61  ;;  %v6092_v53 = vor.u32 %v6091_v33, %v6090_v36  ;;  %v12745_v31 = vshll.u32 %v6072_v24, 8 }
 0x560   :  { %v6089_v28 = vor.u32 %v6088_v30, %v6087_v17  ;;  %vm1406_vm15 = vcmp.eq.s32.totalorder %v1404_v14, 0  ;;  %vm1409_vm4 = vcmp.eq.s32.totalorder %v1404_v14, 2  ;;  %v12750_v12 = vsel %vm12712_vm3, %v12381_v41, %v5877_v23 }
 0x561   :  { %v6003_v32 = vadd.s32 %v12671_v10, %v12669_v42  ;;  %v6014_v21 = vsel %vm6012_vm1, %v6013_v6, %v12733_v57  ;;  %v6095_v52 = vor.u32 %v6094_v26, %v6093_v39  ;;  %vm6096_vm6 = vcmp.lt.s32.totalorder %v12738_v1, 1 }
 0x562   :  { %v6015_v9 = vclz %v6014_v21  ;;  %vm6099_vm14 = vcmp.lt.s32.totalorder %v12738_v1, 4  ;;  %v14464_v18 = vxor.u32 2147483648, %v14463_v55  ;;  %vm6098_vm9 = vcmp.lt.s32.totalorder %v12738_v1, 3 }
 0x563   :  { %v6104_v23 = vsel %vm6096_vm6, %v6083_v29, %v6086_v7  ;;  %v6105_v45 = vsel %vm6099_vm14, %v6092_v53, 920167782  ;;  %v1411_v42 = vsel %vm1409_vm4, %v1410_v54, %v14463_v55  ;;  %vm6097_vm1 = vcmp.lt.s32.totalorder %v12738_v1, 2 }
 0x564   :  { %v1408_v24 = vsel %vm1406_vm15, %v1393_v4, %v14464_v18  ;;  %v6476_v10 = vadd.s32 4294967294, %v6015_v9  ;;  %v6106_v44 = vsel %vm6098_vm9, %v6089_v28, %v6105_v45  ;;  %v6108_v50 = vsel %vm6096_vm6, %v6086_v7, %v6089_v28 }
 0x565   :  { %v6107_v4 = vsel %vm6097_vm1, %v6104_v23, %v6106_v44  ;;  %v6109_v51 = vsel %vm6099_vm14, %v6095_v52, 1326507024  ;;  %v6113_v30 = vand.u32 65535, %v12745_v31  ;;  %v1412_v33 = vsel %vm1405_vm10, %v1408_v24, %v1411_v42 }
 0x566   :  { %v12778_v54 = vmul.f32 %v12750_v12, %v12750_v12  ;;  %vm6477_vm15 = vcmp.lt.s32.totalorder %v6476_v10, 0  ;;  %v6110_v61 = vsel %vm6098_vm9, %v6092_v53, %v6109_v51  ;;  %v6137_v36 = vand.u32 65535, %v6107_v4 }
 0x567   :  { %v6018_v26 = vsel %vm6477_vm15, 0, %v6476_v10  ;;  %v6111_v17 = vsel %vm6097_vm1, %v6108_v50, %v6110_v61  ;;  %v6138_v39 = vshrl.u32 %v6107_v4, 16  ;;  %v1413_v6 = vsel %vm1402_vm12, nan, %v1412_v33 }
 0x568   :  { %v6019_v21 = vsub.s32 32, %v6018_v26  ;;  %v6023_v14 = vsub.s32 4294967266, %v6018_v26  ;;  %v6080_v52 = vshrl.u32 %v14020_v34, %v6079_v63  ;;  %v6114_v9 = vshrl.u32 %v12745_v31, 16  ;;  %6220 = vst.msk [vmem:[%s13582_s3] sm:$0xff] %vm6219_vm11, %v1413_v6 }
 0x569   :  { %v6101_v53 = vsel %vm6099_vm14, %v6089_v28, 2102212464  ;;  %v6115_v55 = vand.u32 65535, %v6111_v17  ;;  %v6116_v18 = vshrl.u32 %v6111_v17, 16  ;;  %v6140_v24 = vmul.u32 %v6138_v39, %v6113_v30 }
 0x56a   :  { %v6020_v3 = vshll.u32 %v12733_v57, %v6018_v26  ;;  %v6021_v23 = vshrl.u32 %v6003_v32, %v6019_v21  ;;  %v6024_v45 = vadd.s32 127, %v6023_v14  ;;  %v6141_v42 = vmul.u32 %v6137_v36, %v6114_v9 }
 0x56b   :  { %v5890_v34 = vmul.f32 -0.00019511016, %v12778_v54  ;;  %v6100_v63 = vsel %vm6096_vm6, %v6080_v52, %v6083_v29  ;;  %v6118_v10 = vmul.u32 %v6116_v18, %v6113_v30  ;;  %v6119_v44 = vmul.u32 %v6115_v55, %v6114_v9 }
 0x56c   :  { %v6022_v50 = vor.u32 %v6021_v23, %v6020_v3  ;;  %v6025_v4 = vshll.u32 %v6024_v45, 23  ;;  %v6102_v28 = vsel %vm6098_vm9, %v6086_v7, %v6101_v53  ;;  %v6143_v51 = vshll.u32 %v6140_v24, 16 }
 0x56d   :  { %v6117_v33 = vmul.u32 %v6115_v55, %v6113_v30  ;;  %v6121_v61 = vshll.u32 %v6118_v10, 16  ;;  %v6139_v17 = vmul.u32 %v6137_v36, %v6113_v30  ;;  %v6142_v57 = vmul.u32 %v6138_v39, %v6114_v9 }
 0x56e   :  { %vm5911_vm10 = vcmp.lt.s32.totalorder %v12499_v49, 0  ;;  %v6026_v32 = vor.u32 4788187, %v6025_v4  ;;  %v6120_v26 = vmul.u32 %v6116_v18, %v6114_v9  ;;  %v6123_v6 = vshll.u32 %v6119_v44, 16 }
 0x56f   :  { %v6145_v21 = vshll.u32 %v6141_v42, 16  ;;  %vm6125_vm12 = vc.u32 %v6117_v33, %v6121_v61  ;;  %v6127_v29 = vadd.s32 %v6121_v61, %v6117_v33  ;;  %vm6147_vm4 = vc.u32 %v6139_v17, %v6143_v51 }
 0x570   :  { %v6149_v14 = vadd.s32 %v6143_v51, %v6139_v17  ;;  %v6027_v52 = vand.u32 2147483647, %v6026_v32  ;;  %v6029_v3 = vcvt.s32.f32 %v6022_v50  ;;  %v6126_v23 = vsel %vm6125_vm12, 1, %v14048_v60  ;;  %v14465_v51 = vld [vmem:[#allocation12_spill] sm:$0xff] }
 0x571   :  { %v6148_v7 = vsel %vm6147_vm4, 1, %v14048_v60  ;;  %v6128_v53 = vadd.s32 %v6126_v23, %v6120_v26  ;;  %vm6129_vm6 = vc.u32 %v6127_v29, %v6123_v6  ;;  %v6144_v9 = vshrl.u32 %v6140_v24, 16 }
 0x572   :  { %v6150_v30 = vadd.s32 %v6148_v7, %v6142_v57  ;;  %vm6151_vm14 = vc.u32 %v6149_v14, %v6145_v21  ;;  %v6030_v36 = vmul.f32 %v6029_v3, %v6027_v52  ;;  %v6130_v39 = vsel %vm6129_vm6, 1, %v14048_v60 }
 0x573   :  { %v6152_v55 = vsel %vm6151_vm14, 1, %v14048_v60  ;;  %v6122_v18 = vshrl.u32 %v6118_v10, 16  ;;  %v6132_v45 = vadd.s32 %v6130_v39, %v6128_v53  ;;  %v2008_v33 = vmul.f32 -0.001358992, %v14465_v51  ;;  %v14466_v10 = vld [vmem:[#allocation39_spill] sm:$0xff] }
 0x574   :  { %v6154_v4 = vadd.s32 %v6152_v55, %v6150_v30  ;;  %v5583_v50 = vadd.f32 -0.16666654, %v12719_v22  ;;  %v5723_v61 = vsub.s32 4, %v12453_v56  ;;  %v5891_v17 = vadd.f32 0.008332121, %v5890_v34 }
 0x575   :  { %v6031_v32 = vxor.u32 2147483648, %v6030_v36  ;;  %v6124_v26 = vshrl.u32 %v6119_v44, 16  ;;  %v6133_v57 = vadd.s32 %v6132_v45, %v6122_v18  ;;  %v6146_v6 = vshrl.u32 %v6141_v42, 16 }
 0x576   :  { %v6155_v29 = vadd.s32 %v6154_v4, %v6144_v9  ;;  %v5738_v52 = vadd.f32 -0.16666654, %v12722_v25  ;;  %v6103_v60 = vsel %vm6097_vm1, %v6100_v63, %v6102_v28  ;;  %v12811_v24 = vadd.s32 %v6149_v14, %v6145_v21  ;;  %v14467_v63 = vld [vmem:[#allocation24_spill] sm:$0xff] }
 0x577   :  { %v1543_v3 = vmul.f32 -0.001358992, %v14466_v10  ;;  %v6032_v22 = vsel %vm5911_vm10, %v6031_v32, %v6030_v36  ;;  %v12816_v23 = vadd.s32 %v6133_v57, %v6124_v26  ;;  %v2009_v7 = vadd.f32 0.041655596, %v2008_v33  ;;  %v14494_v14 = vld [vmem:[#allocation60_spill] sm:$0xff] }
 0x578   :  { %v6156_v34 = vadd.s32 %v6155_v29, %v6146_v6  ;;  %v5571_v42 = vsel %vm12551_vm5, 0, %v12708_v40  ;;  %v5724_v25 = vsel %vm5601_vm13, %v5723_v61, %v12453_v56  ;;  %v5892_v1 = vmul.f32 %v5891_v17, %v12778_v54 }
 0x579   :  { %v1853_v44 = vmul.f32 -0.001358992, %v14467_v63  ;;  %v5584_v28 = vmul.f32 %v5583_v50, %v12620_v27  ;;  %v14468_v21 = vand.u32 2147483647, %v12499_v49  ;;  %vm6159_vm1 = vc.u32 %v12816_v23, %v12811_v24  ;;  %v14471_v50 = vld [vmem:[#allocation38_spill] sm:$0xff] }
 0x57a   :  { %v6160_v15 = vadd.s32 1, %v6156_v34  ;;  %v6157_v40 = vmul.u32 %v12745_v31, %v6103_v60  ;;  %v1544_v30 = vadd.f32 0.041655596, %v1543_v3  ;;  %v5739_v36 = vmul.f32 %v5738_v52, %v12660_v47 }
 0x57b   :  { %vm12829_vm9 = vcmp.le.f32.partialorder %v14468_v21, 0.7853982  ;;  %v1854_v53 = vadd.f32 0.041655596, %v1853_v44  ;;  %v5878_v39 = vsub.s32 4, %v12578_v16  ;;  %v2010_v55 = vmul.f32 %v2009_v7, %v14465_v51  ;;  %v14473_v7 = vld [vmem:[#allocation9_spill] sm:$0xff] }
 0x57c   :  { %v12838_v56 = vsel %vm12829_vm9, %v12499_v49, %v6032_v22  ;;  %v6161_v9 = vsel %vm6159_vm1, %v6160_v15, %v6156_v34  ;;  %v5726_v18 = vsel %vm12605_vm0, 0, %v5724_v25  ;;  %v5893_v45 = vadd.f32 -0.16666654, %v5892_v1 }
 0x57d   :  { %v6162_v4 = vadd.s32 %v6161_v9, %v6157_v40  ;;  %v1855_v33 = vmul.f32 %v1854_v53, %v14467_v63  ;;  %v12849_v61 = vmul.f32 %v12697_v37, %v14471_v50  ;;  %v5433_v31 = vadd.s32 3, %v5416_v0 }
 0x57e   :  { %v5585_v17 = vadd.f32 1.0, %v5584_v28  ;;  %v12857_v32 = vmul.f32 %v12838_v56, %v12838_v56  ;;  %v12861_v26 = vmul.f32 %v12702_v11, %v14472_v62  ;;  %v5588_v57 = vadd.s32 3, %v5571_v42 }
 0x57f   :  { %v6163_v6 = vadd.s32 536870912, %v6162_v4  ;;  %v1545_v29 = vmul.f32 %v1544_v30, %v14466_v10  ;;  %v5740_v37 = vadd.f32 1.0, %v5739_v36  ;;  %v5743_v52 = vadd.s32 3, %v5726_v18  ;;  %v14474_v18 = vld [vmem:[#allocation52_spill] sm:$0xff] }
 0x580   :  { %v5879_v46 = vsel %vm5756_vm2, %v5878_v39, %v12578_v16  ;;  %v2011_v59 = vadd.f32 -0.4999988, %v2010_v55  ;;  %v5894_v0 = vmul.f32 %v5893_v45, %v12778_v54  ;;  %v6033_v60 = vsub.s32 4, %v12716_v38 }
 0x581   :  { %v6164_v3 = vshrl.u32 %v6163_v6, 30  ;;  %v1856_v22 = vadd.f32 -0.4999988, %v1855_v33  ;;  %v5282_v11 = vxor.u32 2147483648, %v12849_v61  ;;  %v12870_v34 = vand.u32 3, %v5433_v31  ;;  %v14475_v33 = vld [vmem:[#allocation43_spill] sm:$0xff]  ;;  %v6253_v31 = vpop.permute.xlu0 %6252 }
 0x582   :  { %v12873_v42 = vmul.f32 %v5585_v17, %v14473_v7  ;;  %v6045_v25 = vmul.f32 -0.00019511016, %v12857_v32  ;;  %v5437_v1 = vxor.u32 2147483648, %v12861_v26  ;;  %v5881_v16 = vsel %vm12712_vm3, 0, %v5879_v46  ;;  %6349 = vst.msk [vmem:[%s13582_s3] sm:$0xff] %vm13940_vm7, %v6253_v31 }
 0x583   :  { %v6165_v44 = vshll.u32 %v6164_v3, 30  ;;  %v1546_v28 = vadd.f32 -0.4999988, %v1545_v29  ;;  %v12879_v21 = vand.u32 3, %v5588_v57  ;;  %v12882_v15 = vmul.f32 %v5740_v37, %v12636_v13  ;;  %v14477_v29 = vld [vmem:[#allocation36_spill] sm:$0xff] }
 0x584   :  { %v12884_v40 = vand.u32 3, %v5743_v52  ;;  %v2012_v53 = vmul.f32 %v2011_v59, %v14465_v51  ;;  %v5895_v30 = vadd.f32 1.0, %v5894_v0  ;;  %v12890_v36 = vsel %vm5911_vm10, %v6033_v60, %v12716_v38  ;;  %v14478_v0 = vld [vmem:[#allocation2_spill] sm:$0xff] }
 0x585   :  { %v12892_v39 = vsub.s32 %v6162_v4, %v6165_v44  ;;  %v1857_v2 = vmul.f32 %v1856_v22, %v14467_v63  ;;  %v5592_v9 = vxor.u32 2147483648, %v12873_v42  ;;  %v12896_v55 = vadd.s32 3, %v5881_v16  ;;  %v14479_v60 = vld [vmem:[#allocation46_spill] sm:$0xff] }
 0x586   :  { %v6046_v13 = vadd.f32 0.008332121, %v6045_v25  ;;  %v2024_v45 = vand.u32 3, %v14474_v18  ;;  %v1869_v50 = vand.u32 3, %v14475_v33  ;;  %v1547_v38 = vmul.f32 %v1546_v28, %v14466_v10  ;;  %v14476_v10 = vld [vmem:[#allocation5_spill] sm:$0xff] }
 0x587   :  { %vm6167_vm8 = vcmp.lt.s32.totalorder %v12892_v39, 0  ;;  %v6168_v51 = vsub.s32 0, %v12892_v39  ;;  %v5747_v4 = vxor.u32 2147483648, %v12882_v15  ;;  %v6036_v63 = vsel %vm12829_vm9, 0, %v12890_v36  ;;  %v14495_v36 = vld [vmem:[#allocation37_spill] sm:$0xff] }
 0x588   :  { %vm6066_vm5 = vcmp.lt.s32.totalorder %v12647_v48, 0  ;;  %v2013_v17 = vadd.f32 1.0, %v2012_v53  ;;  %v12909_v62 = vmul.f32 %v5895_v30, %v12750_v12  ;;  %vm2022_vm13 = vweird.f32 %v14476_v10  ;;  %v14482_v30 = vld [vmem:[#allocation51_spill] sm:$0xff] }
 0x589   :  { %v6169_v57 = vsel %vm6167_vm8, %v6168_v51, %v12892_v39  ;;  %v1858_v6 = vadd.f32 1.0, %v1857_v2  ;;  %v1559_v37 = vand.u32 3, %v14477_v29  ;;  %v6047_v52 = vmul.f32 %v6046_v13, %v12857_v32  ;;  %v14483_v13 = vld [vmem:[#allocation13_spill] sm:$0xff] }
 0x58a   :  { %v6170_v46 = vclz %v6169_v57  ;;  %v6188_v59 = vsub.s32 4, %v6164_v3  ;;  %vm2025_vm0 = vcmp.lt.s32.totalorder %v2024_v45, 2  ;;  %vm1867_vm3 = vweird.f32 %v14478_v0  ;;  %v6261_v57 = vpop.permute.xlu2 %6260  ;;  %v6255_v0 = vpop.permute.xlu0 %6254 }
 0x58b   :  { %vm2026_vm2 = vcmp.eq.s32.totalorder %v2024_v45, 0  ;;  %vm2029_vm15 = vcmp.eq.s32.totalorder %v2024_v45, 2  ;;  %vm1870_vm10 = vcmp.lt.s32.totalorder %v1869_v50, 2  ;;  %v1548_v12 = vadd.f32 1.0, %v1547_v38  ;;  %v6259_v45 = vpop.permute.xlu1 %6258 }
 0x58c   :  { %vm12923_vm4 = vcmp.le.f32.partialorder %v6064_v58, 0.7853982  ;;  %v6479_v7 = vadd.s32 4294967294, %v6170_v46  ;;  %v2030_v25 = vxor.u32 2147483648, %v2013_v17  ;;  %vm1871_vm6 = vcmp.eq.s32.totalorder %v1869_v50, 0  ;;  %v14486_v46 = vld [vmem:[#allocation48_spill] sm:$0xff] }
 0x58d   :  { %vm1874_vm14 = vcmp.eq.s32.totalorder %v1869_v50, 2  ;;  %v6158_v16 = vadd.s32 %v12811_v24, %v12816_v23  ;;  %v1875_v44 = vxor.u32 2147483648, %v1858_v6  ;;  %vm1560_vm1 = vcmp.lt.s32.totalorder %v1559_v37, 2 }
 0x58e   :  { %vm1561_vm8 = vcmp.eq.s32.totalorder %v1559_v37, 0  ;;  %v6048_v28 = vadd.f32 -0.16666654, %v6047_v52  ;;  %vm6480_vm7 = vcmp.lt.s32.totalorder %v6479_v7, 0  ;;  %v6189_v53 = vsel %vm6066_vm5, %v6188_v59, %v6164_v3 }
 0x58f   :  { %vm1564_vm12 = vcmp.eq.s32.totalorder %v1559_v37, 2  ;;  %v6173_v58 = vsel %vm6480_vm7, 0, %v6479_v7  ;;  %v2031_v2 = vsel %vm2029_vm15, %v2030_v25, %v14482_v30  ;;  %v1876_v18 = vsel %vm1874_vm14, %v1875_v44, %v14483_v13 }
 0x590   :  { %v1565_v51 = vxor.u32 2147483648, %v1548_v12  ;;  %v6174_v33 = vsub.s32 32, %v6173_v58  ;;  %v6175_v38 = vshll.u32 %v12892_v39, %v6173_v58  ;;  %v6178_v24 = vsub.s32 4294967266, %v6173_v58 }
 0x591   :  { %v14484_v23 = vxor.u32 2147483648, %v14482_v30  ;;  %v14485_v3 = vxor.u32 2147483648, %v14483_v13  ;;  %v14487_v59 = vxor.u32 2147483648, %v14486_v46  ;;  %v14488_v30 = vld [vmem:[#allocation7_spill] sm:$0xff]  ;;  %vm14490_vm7 = vcmask 556544  }
 0x592   :  { %v1566_v25 = vsel %vm1564_vm12, %v1565_v51, %v14486_v46  ;;  %v6176_v44 = vshrl.u32 %v6158_v16, %v6174_v33  ;;  %v6179_v39 = vadd.s32 127, %v6178_v24  ;;  %v14489_v16 = vld [vmem:[#allocation49_spill] sm:$0xff]  ;;  %v6191_v37 = vsel %vm12923_vm4, 0, %v6189_v53 }
 0x593   :  { %v2028_v31 = vsel %vm2026_vm2, %v2013_v17, %v14484_v23  ;;  %v1873_v52 = vsel %vm1871_vm6, %v1858_v6, %v14485_v3  ;;  %v1563_v7 = vsel %vm1561_vm8, %v1548_v12, %v14487_v59  ;;  %v2473_v13 = vmul.f32 -0.001358992, %v14489_v16 }
 0x594   :  { %v2032_v29 = vsel %vm2025_vm0, %v2028_v31, %v2031_v2  ;;  %v1877_v17 = vsel %vm1870_vm10, %v1873_v52, %v1876_v18  ;;  %v1567_v12 = vsel %vm1560_vm1, %v1563_v7, %v1566_v25  ;;  %v2163_v2 = vmul.f32 -0.001358992, %v14488_v30  ;;  %v14492_v18 = vld [vmem:[#allocation53_spill] sm:$0xff]  ;;  %vm14493_vm0 = vmmov %vm14490_vm7 }
 0x595   :  { %v2033_v58 = vsel %vm2022_vm13, nan, %v2032_v29  ;;  %v1878_v6 = vsel %vm1867_vm3, nan, %v1877_v17  ;;  %v6177_v51 = vor.u32 %v6176_v44, %v6175_v38  ;;  %v6180_v10 = vshll.u32 %v6179_v39, 23  ;;  %vm14496_vm9 = vmmov %vm14493_vm0  ;;  %v14498_v17 = vld [vmem:[#allocation57_spill] sm:$0xff] }
 0x596   :  { %6224 = vst.msk [vmem:[%s13582_s3 + $0x20] sm:$0xff] %vm6219_vm11, %v2033_v58  ;;  %vm14491_vm13 = vweird.f32 %v14479_v60  ;;  %v12965_v33 = vand.u32 3, %v14492_v18  ;;  %v2164_v38 = vadd.f32 0.041655596, %v2163_v2  ;;  %v2474_v24 = vadd.f32 0.041655596, %v2473_v13 }
 0x597   :  { %6353 = vst.msk [vmem:[%s13582_s3 + $0x20] sm:$0xff] %vm14490_vm7, %v6261_v57  ;;  %v1568_v50 = vsel %vm14491_vm13, nan, %v1567_v12  ;;  %v12974_v23 = vand.u32 3, %v12896_v55  ;;  %v5902_v60 = vxor.u32 2147483648, %v12909_v62  ;;  %v12981_v31 = vadd.s32 3, %v6036_v63  ;;  %v14497_v58 = vld [vmem:[#allocation10_spill] sm:$0xff] }
 0x598   :  { %6223 = vst.msk [vmem:[%s13582_s3 + $0x18] sm:$0xff] %vm6219_vm11, %v1878_v6  ;;  %v6181_v53 = vor.u32 4788187, %v6180_v10  ;;  %v2165_v55 = vmul.f32 %v2164_v38, %v14488_v30  ;;  %v2475_v57 = vmul.f32 %v2474_v24, %v14489_v16  ;;  %v2489_v29 = vand.u32 3, %v14494_v14  ;;  %v14499_v6 = vld [vmem:[#allocation63_spill] sm:$0xff]  ;;  %v14500_v13 = vld [vmem:[#allocation4_spill] sm:$0xff] }
 0x599   :  { %6352 = vst.msk [vmem:[%s13582_s3 + $0x18] sm:$0xff] %vm14493_vm0, %v6259_v45  ;;  %v2318_v63 = vmul.f32 -0.001358992, %v14495_v36  ;;  %v6184_v52 = vcvt.s32.f32 %v6177_v51  ;;  %v12995_v46 = vadd.s32 3, %v6191_v37  ;;  %vm2181_vm3 = vcmp.eq.s32.totalorder %v12965_v33, 0  ;;  %v14501_v18 = vld [vmem:[#allocation56_spill] sm:$0xff] }
 0x59a   :  { %6221 = vst.msk [vmem:[%s13582_s3 + $0x8] sm:$0xff] %vm6219_vm11, %v1568_v50  ;;  %v6182_v3 = vand.u32 2147483647, %v6181_v53  ;;  %v13003_v59 = vmul.f32 %v6048_v28, %v12857_v32  ;;  %v2166_v7 = vadd.f32 -0.4999988, %v2165_v55  ;;  %vm2180_vm2 = vcmp.lt.s32.totalorder %v12965_v33, 2 }
 0x59b   :  { %6350 = vst.msk [vmem:[%s13582_s3 + $0x8] sm:$0xff] %vm14496_vm9, %v6255_v0  ;;  %v2476_v25 = vadd.f32 -0.4999988, %v2475_v57  ;;  %v2319_v44 = vadd.f32 0.041655596, %v2318_v63  ;;  %vm2177_vm15 = vweird.f32 %v14497_v58  ;;  %vm2184_vm10 = vcmp.eq.s32.totalorder %v12965_v33, 2 }
 0x59c   :  { %v6185_v39 = vmul.f32 %v6184_v52, %v6182_v3  ;;  %v13009_v45 = vand.u32 3, %v14498_v17  ;;  %v2628_v12 = vmul.f32 -0.001358992, %v14499_v6  ;;  %v2167_v2 = vmul.f32 %v2166_v7, %v14488_v30  ;;  %v14502_v57 = vld [vmem:[#allocation54_spill] sm:$0xff]  ;;  %v6263_v17 = vpop.permute.xlu2 %6262 }
 0x59d   :  { %v2477_v28 = vmul.f32 %v2476_v25, %v14489_v16  ;;  %vm2487_vm12 = vweird.f32 %v14500_v13  ;;  %vm2490_vm6 = vcmp.lt.s32.totalorder %v2489_v29, 2  ;;  %v2320_v51 = vmul.f32 %v2319_v44, %v14495_v36  ;;  %v14504_v52 = vld [vmem:[#allocation30_spill] sm:$0xff] }
 0x59e   :  { %v6186_v10 = vxor.u32 2147483648, %v6185_v39  ;;  %vm2491_vm14 = vcmp.eq.s32.totalorder %v2489_v29, 0  ;;  %v2629_v50 = vadd.f32 0.041655596, %v2628_v12  ;;  %v2938_v37 = vmul.f32 -0.001358992, %v14501_v18 }
 0x59f   :  { %v2168_v0 = vadd.f32 1.0, %v2167_v2  ;;  %v2478_v38 = vadd.f32 1.0, %v2477_v28  ;;  %vm2494_vm1 = vcmp.eq.s32.totalorder %v2489_v29, 2  ;;  %v2321_v24 = vadd.f32 -0.4999988, %v2320_v51  ;;  %v14506_v44 = vld [vmem:[#allocation22_spill] sm:$0xff] }
 0x5a0   :  { %v6187_v53 = vsel %vm6066_vm5, %v6186_v10, %v6185_v39  ;;  %vm2335_vm8 = vcmp.lt.s32.totalorder %v13009_v45, 2  ;;  %vm2336_vm7 = vcmp.eq.s32.totalorder %v13009_v45, 0  ;;  %v2630_v30 = vmul.f32 %v2629_v50, %v14499_v6  ;;  %v14507_v10 = vld [vmem:[#allocation55_spill] sm:$0xff]  ;;  %v14511_v29 = vld [vmem:[#allocation25_spill] sm:$0xff] }
 0x5a1   :  { %v2939_v16 = vadd.f32 0.041655596, %v2938_v37  ;;  %v13025_v55 = vsel %vm12923_vm4, %v12647_v48, %v6187_v53  ;;  %v14503_v14 = vxor.u32 2147483648, %v14502_v57  ;;  %v2185_v3 = vxor.u32 2147483648, %v2168_v0  ;;  %v6267_v53 = vpop.permute.xlu1 %6266 }
 0x5a2   :  { %v14505_v7 = vxor.u32 2147483648, %v14504_v52  ;;  %vm2332_vm5 = vweird.f32 %v14506_v44  ;;  %v13036_v39 = vmul.f32 %v13025_v55, %v13025_v55  ;;  %v2495_v12 = vxor.u32 2147483648, %v2478_v38 }
 0x5a3   :  { %v2183_v63 = vsel %vm2181_vm3, %v2168_v0, %v14503_v14  ;;  %v2322_v22 = vmul.f32 %v2321_v24, %v14495_v36  ;;  %v2631_v2 = vadd.f32 -0.4999988, %v2630_v30  ;;  %v2186_v28 = vsel %vm2184_vm10, %v2185_v3, %v14502_v57  ;;  %v14508_v24 = vld [vmem:[#allocation34_spill] sm:$0xff]  ;;  %vm14515_vm10 = vmmov %vm14496_vm9 }
 0x5a4   :  { %v2493_v25 = vsel %vm2491_vm14, %v2478_v38, %v14505_v7  ;;  %vm2339_vm4 = vcmp.eq.s32.totalorder %v13009_v45, 2  ;;  %v2940_v51 = vmul.f32 %v2939_v16, %v14501_v18  ;;  %v2783_v50 = vmul.f32 -0.001358992, %v14507_v10  ;;  %v6269_v44 = vpop.permute.xlu2 %6268 }
 0x5a5   :  { %v6200_v37 = vmul.f32 -0.00019511016, %v13036_v39  ;;  %v2187_v0 = vsel %vm2180_vm2, %v2183_v63, %v2186_v28  ;;  %v2496_v36 = vsel %vm2494_vm1, %v2495_v12, %v14504_v52  ;;  %v2323_v38 = vadd.f32 1.0, %v2322_v22  ;;  %v14509_v63 = vld [vmem:[#allocation62_spill] sm:$0xff] }
 0x5a6   :  { %vm2642_vm13 = vweird.f32 %v14508_v24  ;;  %v2188_v30 = vsel %vm2177_vm15, nan, %v2187_v0  ;;  %v2497_v57 = vsel %vm2490_vm6, %v2493_v25, %v2496_v36  ;;  %v2632_v16 = vmul.f32 %v2631_v2, %v14499_v6  ;;  %v14512_v25 = vld [vmem:[#allocation61_spill] sm:$0xff]  ;;  %v14513_v2 = vld [vmem:[#allocation70_spill] sm:$0xff]  ;;  %vm14520_vm6 = vmmov %vm14496_vm9 }
 0x5a7   :  { %v2941_v14 = vadd.f32 -0.4999988, %v2940_v51  ;;  %v6201_v3 = vadd.f32 0.008332121, %v6200_v37  ;;  %6225 = vst.msk [vmem:[%s13582_s3 + $0x28] sm:$0xff] %vm6219_vm11, %v2188_v30  ;;  %v2498_v33 = vsel %vm2487_vm12, nan, %v2497_v57  ;;  %vm2952_vm0 = vweird.f32 %v14511_v29 }
 0x5a8   :  { %v14510_v52 = vxor.u32 2147483648, %v14509_v63  ;;  %v2340_v7 = vxor.u32 2147483648, %v2323_v38  ;;  %6354 = vst.msk [vmem:[%s13582_s3 + $0x28] sm:$0xff] %vm14496_vm9, %v6263_v17  ;;  %v2633_v6 = vadd.f32 1.0, %v2632_v16  ;;  %vm2646_vm3 = vcmp.eq.s32.totalorder %v14512_v25, 0  ;;  %v14514_v17 = vld [vmem:[#allocation69_spill] sm:$0xff] }
 0x5a9   :  { %v2942_v12 = vmul.f32 %v2941_v14, %v14501_v18  ;;  %v2784_v13 = vadd.f32 0.041655596, %v2783_v50  ;;  %6227 = vst.msk [vmem:[%s13582_s3 + $0x38] sm:$0xff] %vm6219_vm11, %v2498_v33  ;;  %vm2649_vm2 = vcmp.eq.s32.totalorder %v14512_v25, 2  ;;  %vm2956_vm15 = vcmp.eq.s32.totalorder %v14513_v2, 0  ;;  %v6265_v18 = vpop.permute.xlu0 %6264  ;;  %v14516_v50 = vld [vmem:[#allocation42_spill] sm:$0xff] }
 0x5aa   :  { %v2338_v58 = vsel %vm2336_vm7, %v2323_v38, %v14510_v52  ;;  %v2341_v22 = vsel %vm2339_vm4, %v2340_v7, %v14509_v63  ;;  %v3093_v28 = vmul.f32 -0.001358992, %v14514_v17  ;;  %6356 = vst.msk [vmem:[%s13582_s3 + $0x38] sm:$0xff] %vm14515_vm10, %v6267_v53  ;;  %v14517_v37 = vxor.u32 2147483648, %v14516_v50  ;;  %v14518_v53 = vld [vmem:[#allocation15_spill] sm:$0xff]  ;;  %vm14522_vm7 = vmmov %vm14520_vm6 }
 0x5ab   :  { %v2342_v51 = vsel %vm2335_vm8, %v2338_v58, %v2341_v22  ;;  %v2650_v36 = vxor.u32 2147483648, %v2633_v6  ;;  %v2943_v38 = vadd.f32 1.0, %v2942_v12  ;;  %v6202_v30 = vmul.f32 %v6201_v3, %v13036_v39 }
 0x5ac   :  { %v2648_v0 = vsel %vm2646_vm3, %v2633_v6, %v14517_v37  ;;  %v2343_v57 = vsel %vm2332_vm5, nan, %v2342_v51  ;;  %v2785_v16 = vmul.f32 %v2784_v13, %v14507_v10  ;;  %v3094_v14 = vadd.f32 0.041655596, %v3093_v28  ;;  %v14521_v13 = vld [vmem:[#allocation3_spill] sm:$0xff]  ;;  %v6273_v28 = vpop.permute.xlu1 %6272  ;;  %v14524_v37 = vld [vmem:[#allocation73_spill] sm:$0xff] }
 0x5ad   :  { %6226 = vst.msk [vmem:[%s13582_s3 + $0x30] sm:$0xff] %vm6219_vm11, %v2343_v57  ;;  %vm2645_vm12 = vcmp.lt.s32.totalorder %v14512_v25, 2  ;;  %v2651_v45 = vsel %vm2649_vm2, %v2650_v36, %v14516_v50  ;;  %v14519_v33 = vxor.u32 2147483648, %v14518_v53  ;;  %v2960_v52 = vxor.u32 2147483648, %v2943_v38  ;;  %v14523_v50 = vld [vmem:[#allocation31_spill] sm:$0xff] }
 0x5ae   :  { %6355 = vst.msk [vmem:[%s13582_s3 + $0x30] sm:$0xff] %vm14520_vm6, %v6265_v18  ;;  %v2652_v3 = vsel %vm2645_vm12, %v2648_v0, %v2651_v45  ;;  %vm2959_vm14 = vcmp.eq.s32.totalorder %v14513_v2, 2  ;;  %v2786_v58 = vadd.f32 -0.4999988, %v2785_v16  ;;  %v3095_v7 = vmul.f32 %v3094_v14, %v14514_v17  ;;  %v14528_v14 = vld [vmem:[#allocation67_spill] sm:$0xff] }
 0x5af   :  { %v2958_v63 = vsel %vm2956_vm15, %v2943_v38, %v14519_v33  ;;  %v6050_v6 = vadd.f32 1.0, %v13003_v59  ;;  %v2653_v25 = vsel %vm2642_vm13, nan, %v2652_v3  ;;  %vm2955_vm1 = vcmp.lt.s32.totalorder %v14513_v2, 2  ;;  %v14531_v3 = vld [vmem:[#allocation72_spill] sm:$0xff] }
 0x5b0   :  { %v2961_v12 = vsel %vm2959_vm14, %v2960_v52, %v14518_v53  ;;  %vm2797_vm8 = vweird.f32 %v14521_v13  ;;  %v6203_v22 = vadd.f32 -0.16666654, %v6202_v30  ;;  %6228 = vst.msk [vmem:[%s13582_s3 + $0x40] sm:$0xff] %vm6219_vm11, %v2653_v25  ;;  %v2787_v51 = vmul.f32 %v2786_v58, %v14507_v10  ;;  %v14527_v30 = vld [vmem:[#allocation71_spill] sm:$0xff]  ;;  %v14533_v25 = vld [vmem:[#allocation68_spill] sm:$0xff] }
 0x5b1   :  { %v2962_v18 = vsel %vm2955_vm1, %v2958_v63, %v2961_v12  ;;  %v3096_v59 = vadd.f32 -0.4999988, %v3095_v7  ;;  %v13120_v24 = vand.u32 3, %v12995_v46  ;;  %6357 = vst.msk [vmem:[%s13582_s3 + $0x40] sm:$0xff] %vm14522_vm7, %v6269_v44  ;;  %vm3107_vm5 = vweird.f32 %v14523_v50  ;;  %v14525_v46 = vld [vmem:[#allocation66_spill] sm:$0xff]  ;;  %v14539_v50 = vld [vmem:[#allocation16_spill] sm:$0xff] }
 0x5b2   :  { %v2963_v2 = vsel %vm2952_vm0, nan, %v2962_v18  ;;  %v3403_v0 = vmul.f32 -0.001358992, %v14524_v37  ;;  %v2788_v10 = vadd.f32 1.0, %v2787_v51  ;;  %vm2800_vm4 = vcmp.lt.s32.totalorder %v14525_v46, 2  ;;  %vm14526_vm0 = vmmov %vm14520_vm6  ;;  %v14530_v63 = vld [vmem:[#allocation14_spill] sm:$0xff] }
 0x5b3   :  { %6230 = vst.msk [vmem:[%s13582_s3 + $0x50] sm:$0xff] %vm6219_vm11, %v2963_v2  ;;  %vm2801_vm13 = vcmp.eq.s32.totalorder %v14525_v46, 0  ;;  %v3097_v36 = vmul.f32 %v3096_v59, %v14514_v17  ;;  %v13138_v38 = vmul.f32 %v6050_v6, %v12838_v56  ;;  %vm2804_vm9 = vcmp.eq.s32.totalorder %v14525_v46, 2  ;;  %v6275_v46 = vpop.permute.xlu2 %6274  ;;  %vm14536_vm6 = vmmov %vm14526_vm0 }
 0x5b4   :  { %6359 = vst.msk [vmem:[%s13582_s3 + $0x50] sm:$0xff] %vm14526_vm0, %v6273_v28  ;;  %v3404_v29 = vadd.f32 0.041655596, %v3403_v0  ;;  %v3248_v57 = vmul.f32 -0.001358992, %v14527_v30  ;;  %v6204_v16 = vmul.f32 %v6203_v22, %v13036_v39  ;;  %v14529_v45 = vxor.u32 2147483648, %v14528_v14  ;;  %v6271_v22 = vpop.permute.xlu0 %6270 }
 0x5b5   :  { %v2805_v33 = vxor.u32 2147483648, %v2788_v10  ;;  %v3098_v17 = vadd.f32 1.0, %v3097_v36  ;;  %vm3110_vm3 = vcmp.lt.s32.totalorder %v14530_v63, 2  ;;  %vm3111_vm2 = vcmp.eq.s32.totalorder %v14530_v63, 0 }
 0x5b6   :  { %v2803_v53 = vsel %vm2801_vm13, %v2788_v10, %v14529_v45  ;;  %v3405_v56 = vmul.f32 %v3404_v29, %v14524_v37  ;;  %v3249_v52 = vadd.f32 0.041655596, %v3248_v57  ;;  %v14532_v58 = vxor.u32 2147483648, %v14531_v3  ;;  %v14534_v10 = vld [vmem:[#allocation33_spill] sm:$0xff]  ;;  %v14537_v45 = vld [vmem:[#allocation27_spill] sm:$0xff] }
 0x5b7   :  { %v2806_v44 = vsel %vm2804_vm9, %v2805_v33, %v14528_v14  ;;  %v3115_v6 = vxor.u32 2147483648, %v3098_v17  ;;  %v3558_v12 = vmul.f32 -0.001358992, %v14533_v25  ;;  %vm3114_vm15 = vcmp.eq.s32.totalorder %v14530_v63, 2  ;;  %v14538_v33 = vld [vmem:[#allocation74_spill] sm:$0xff] }
 0x5b8   :  { %v3113_v7 = vsel %vm3111_vm2, %v3098_v17, %v14532_v58  ;;  %v2807_v28 = vsel %vm2800_vm4, %v2803_v53, %v2806_v44  ;;  %v3406_v18 = vadd.f32 -0.4999988, %v3405_v56  ;;  %v3250_v51 = vmul.f32 %v3249_v52, %v14527_v30 }
 0x5b9   :  { %v6205_v59 = vadd.f32 1.0, %v6204_v16  ;;  %v2808_v2 = vsel %vm2797_vm8, nan, %v2807_v28  ;;  %v3116_v0 = vsel %vm3114_vm15, %v3115_v6, %v14531_v3  ;;  %vm3417_vm10 = vweird.f32 %v14534_v10  ;;  %v14535_v16 = vld [vmem:[#allocation77_spill] sm:$0xff]  ;;  %v14541_v3 = vld [vmem:[#allocation18_spill] sm:$0xff]  ;;  %v14544_v28 = vld [vmem:[#allocation79_spill] sm:$0xff] }
 0x5ba   :  { %v3559_v36 = vadd.f32 0.041655596, %v3558_v12  ;;  %6229 = vst.msk [vmem:[%s13582_s3 + $0x48] sm:$0xff] %vm6219_vm11, %v2808_v2  ;;  %v3117_v29 = vsel %vm3110_vm3, %v3113_v7, %v3116_v0  ;;  %v3407_v57 = vmul.f32 %v3406_v18, %v14524_v37  ;;  %vm3420_vm12 = vcmp.lt.s32.totalorder %v14535_v16, 2  ;;  %v14545_v2 = vld [vmem:[#allocation17_spill] sm:$0xff] }
 0x5bb   :  { %v3251_v13 = vadd.f32 -0.4999988, %v3250_v51  ;;  %6358 = vst.msk [vmem:[%s13582_s3 + $0x48] sm:$0xff] %vm14536_vm6, %v6271_v22  ;;  %v3118_v14 = vsel %vm3107_vm5, nan, %v3117_v29  ;;  %vm3421_vm14 = vcmp.eq.s32.totalorder %v14535_v16, 0  ;;  %vm3262_vm1 = vweird.f32 %v14537_v45  ;;  %vm14540_vm5 = vmmov %vm14526_vm0  ;;  %v6279_v51 = vpop.permute.xlu1 %6278  ;;  %v6281_v45 = vpop.permute.xlu2 %6280 }
 0x5bc   :  { %v3560_v53 = vmul.f32 %v3559_v36, %v14533_v25  ;;  %v3868_v17 = vmul.f32 -0.001358992, %v14538_v33  ;;  %6231 = vst.msk [vmem:[%s13582_s3 + $0x58] sm:$0xff] %vm6219_vm11, %v3118_v14  ;;  %v3408_v37 = vadd.f32 1.0, %v3407_v57  ;;  %vm3424_vm8 = vcmp.eq.s32.totalorder %v14535_v16, 2  ;;  %v6277_v16 = vpop.permute.xlu0 %6276  ;;  %vm14550_vm3 = vmmov %vm14540_vm5 }
 0x5bd   :  { %v3252_v63 = vmul.f32 %v3251_v13, %v14527_v30  ;;  %vm3265_vm7 = vcmp.lt.s32.totalorder %v14539_v50, 2  ;;  %v13190_v56 = vmul.f32 %v6205_v59, %v13025_v55  ;;  %6360 = vst.msk [vmem:[%s13582_s3 + $0x58] sm:$0xff] %vm14540_vm5, %v6275_v46  ;;  %vm3266_vm4 = vcmp.eq.s32.totalorder %v14539_v50, 0  ;;  %v14543_v30 = vld [vmem:[#allocation80_spill] sm:$0xff] }
 0x5be   :  { %v3561_v52 = vadd.f32 -0.4999988, %v3560_v53  ;;  %v3869_v44 = vadd.f32 0.041655596, %v3868_v17  ;;  %v14542_v58 = vxor.u32 2147483648, %v14541_v3  ;;  %v3425_v6 = vxor.u32 2147483648, %v3408_v37 }
 0x5bf   :  { %v3253_v12 = vadd.f32 1.0, %v3252_v63  ;;  %v3713_v22 = vmul.f32 -0.001358992, %v14543_v30  ;;  %vm3269_vm13 = vcmp.eq.s32.totalorder %v14539_v50, 2  ;;  %vm3576_vm0 = vcmp.eq.s32.totalorder %v14544_v28, 0 }
 0x5c0   :  { %v3423_v7 = vsel %vm3421_vm14, %v3408_v37, %v14542_v58  ;;  %v3562_v55 = vmul.f32 %v3561_v52, %v14533_v25  ;;  %v3870_v18 = vmul.f32 %v3869_v44, %v14538_v33  ;;  %v3426_v59 = vsel %vm3424_vm8, %v3425_v6, %v14541_v3  ;;  %v14547_v37 = vld [vmem:[#allocation20_spill] sm:$0xff]  ;;  %v14548_v44 = vld [vmem:[#allocation78_spill] sm:$0xff] }
 0x5c1   :  { %v14546_v0 = vxor.u32 2147483648, %v14545_v2  ;;  %v3270_v46 = vxor.u32 2147483648, %v3253_v12  ;;  %v3714_v29 = vadd.f32 0.041655596, %v3713_v22  ;;  %v3427_v57 = vsel %vm3420_vm12, %v3423_v7, %v3426_v59  ;;  %v14553_v59 = vld [vmem:[#allocation83_spill] sm:$0xff] }
 0x5c2   :  { %v3563_v13 = vadd.f32 1.0, %v3562_v55  ;;  %vm3579_vm9 = vcmp.eq.s32.totalorder %v14544_v28, 2  ;;  %v3871_v25 = vadd.f32 -0.4999988, %v3870_v18  ;;  %v3428_v14 = vsel %vm3417_vm10, nan, %v3427_v57  ;;  %vm14552_vm10 = vmmov %vm14550_vm3 }
 0x5c3   :  { %v3268_v36 = vsel %vm3266_vm4, %v3253_v12, %v14546_v0  ;;  %v3271_v53 = vsel %vm3269_vm13, %v3270_v46, %v14545_v2  ;;  %v3715_v17 = vmul.f32 %v3714_v29, %v14543_v30  ;;  %v4023_v63 = vmul.f32 -0.001358992, %v14547_v37  ;;  %6233 = vst.msk [vmem:[%s13582_s3 + $0x68] sm:$0xff] %vm6219_vm11, %v3428_v14  ;;  %v14551_v12 = vld [vmem:[#allocation64_spill] sm:$0xff]  ;;  %v14557_v14 = vld [vmem:[#allocation65_spill] sm:$0xff] }
 0x5c4   :  { %v3272_v52 = vsel %vm3265_vm7, %v3268_v36, %v3271_v53  ;;  %v14549_v3 = vxor.u32 2147483648, %v14548_v44  ;;  %v3580_v58 = vxor.u32 2147483648, %v3563_v13  ;;  %v3872_v7 = vmul.f32 %v3871_v25, %v14538_v33  ;;  %6362 = vst.msk [vmem:[%s13582_s3 + $0x68] sm:$0xff] %vm14550_vm3, %v6279_v51  ;;  %v14554_v46 = vld [vmem:[#allocation88_spill] sm:$0xff] }
 0x5c5   :  { %v3273_v6 = vsel %vm3262_vm1, nan, %v3272_v52  ;;  %vm3572_vm2 = vweird.f32 %v14551_v12  ;;  %v3716_v50 = vadd.f32 -0.4999988, %v3715_v17  ;;  %v4024_v22 = vadd.f32 0.041655596, %v4023_v63  ;;  %vm14558_vm1 = vmmov %vm14550_vm3  ;;  %v14559_v63 = vld [vmem:[#allocation81_spill] sm:$0xff]  ;;  %v6285_v52 = vpop.permute.xlu1 %6284 }
 0x5c6   :  { %v3578_v10 = vsel %vm3576_vm0, %v3563_v13, %v14549_v3  ;;  %v6212_v55 = vxor.u32 2147483648, %v13190_v56  ;;  %6232 = vst.msk [vmem:[%s13582_s3 + $0x60] sm:$0xff] %vm6219_vm11, %v3273_v6  ;;  %vm3575_vm15 = vcmp.lt.s32.totalorder %v14544_v28, 2  ;;  %v3581_v33 = vsel %vm3579_vm9, %v3580_v58, %v14548_v44  ;;  %v14556_v13 = vld [vmem:[#allocation90_spill] sm:$0xff]  ;;  %v14560_v3 = vld [vmem:[#allocation87_spill] sm:$0xff]  ;;  %vm14564_vm0 = vmmov %vm14558_vm1 }
 0x5c7   :  { %v3873_v18 = vadd.f32 1.0, %v3872_v7  ;;  %6361 = vst.msk [vmem:[%s13582_s3 + $0x60] sm:$0xff] %vm14552_vm10, %v6277_v16  ;;  %v3582_v51 = vsel %vm3575_vm15, %v3578_v10, %v3581_v33  ;;  %vm3886_vm12 = vcmp.eq.s32.totalorder %v14553_v59, 0  ;;  %v3717_v2 = vmul.f32 %v3716_v50, %v14543_v30  ;;  %vm14570_vm15 = vmmov %vm14564_vm0 }
 0x5c8   :  { %v4025_v0 = vmul.f32 %v4024_v22, %v14547_v37  ;;  %v3583_v36 = vsel %vm3572_vm2, nan, %v3582_v51  ;;  %v14555_v29 = vxor.u32 2147483648, %v14554_v46  ;;  %v4333_v25 = vmul.f32 -0.001358992, %v14556_v13  ;;  %v14562_v22 = vld [vmem:[#allocation85_spill] sm:$0xff] }
 0x5c9   :  { %v3890_v28 = vxor.u32 2147483648, %v3873_v18  ;;  %6234 = vst.msk [vmem:[%s13582_s3 + $0x70] sm:$0xff] %vm6219_vm11, %v3583_v36  ;;  %vm3882_vm6 = vweird.f32 %v14557_v14  ;;  %vm3889_vm14 = vcmp.eq.s32.totalorder %v14553_v59, 2  ;;  %v3718_v53 = vadd.f32 1.0, %v3717_v2  ;;  %v14565_v2 = vld [vmem:[#allocation23_spill] sm:$0xff]  ;;  %v14568_v14 = vld [vmem:[#allocation93_spill] sm:$0xff] }
 0x5ca   :  { %v3888_v57 = vsel %vm3886_vm12, %v3873_v18, %v14555_v29  ;;  %v4026_v30 = vadd.f32 -0.4999988, %v4025_v0  ;;  %6363 = vst.msk [vmem:[%s13582_s3 + $0x70] sm:$0xff] %vm14558_vm1, %v6281_v45  ;;  %vm3885_vm8 = vcmp.lt.s32.totalorder %v14553_v59, 2  ;;  %vm3731_vm7 = vcmp.eq.s32.totalorder %v14559_v63, 0  ;;  %v14563_v18 = vld [vmem:[#allocation28_spill] sm:$0xff]  ;;  %vm14576_vm1 = vmmov %vm14564_vm0 }
 0x5cb   :  { %v3891_v17 = vsel %vm3889_vm14, %v3890_v28, %v14554_v46  ;;  %v4334_v16 = vadd.f32 0.041655596, %v4333_v25  ;;  %v14561_v10 = vxor.u32 2147483648, %v14560_v3  ;;  %v3735_v7 = vxor.u32 2147483648, %v3718_v53  ;;  %v14566_v29 = vld [vmem:[#allocation89_spill] sm:$0xff] }
 0x5cc   :  { %v3892_v44 = vsel %vm3885_vm8, %v3888_v57, %v3891_v17  ;;  %v4027_v6 = vmul.f32 %v4026_v30, %v14547_v37  ;;  %vm3734_vm5 = vcmp.eq.s32.totalorder %v14559_v63, 2  ;;  %v4178_v33 = vmul.f32 -0.001358992, %v14562_v22  ;;  %v6283_v37 = vpop.permute.xlu0 %6282  ;;  %v14569_v30 = vld [vmem:[#allocation58_spill] sm:$0xff] }
 0x5cd   :  { %v3733_v58 = vsel %vm3731_vm7, %v3718_v53, %v14561_v10  ;;  %v3893_v12 = vsel %vm3882_vm6, nan, %v3892_v44  ;;  %v4335_v50 = vmul.f32 %v4334_v16, %v14556_v13  ;;  %vm3727_vm4 = vweird.f32 %v14563_v18  ;;  %v14574_v18 = vld [vmem:[#allocation21_spill] sm:$0xff] }
 0x5ce   :  { %6236 = vst.msk [vmem:[%s13582_s3 + $0x80] sm:$0xff] %vm6219_vm11, %v3893_v12  ;;  %vm3730_vm13 = vcmp.lt.s32.totalorder %v14559_v63, 2  ;;  %v3736_v45 = vsel %vm3734_vm5, %v3735_v7, %v14560_v3  ;;  %v4028_v51 = vadd.f32 1.0, %v4027_v6  ;;  %vm4041_vm9 = vcmp.eq.s32.totalorder %v14565_v2, 0  ;;  %v6287_v3 = vpop.permute.xlu2 %6286  ;;  %v14572_v6 = vld [vmem:[#allocation97_spill] sm:$0xff] }
 0x5cf   :  { %6365 = vst.msk [vmem:[%s13582_s3 + $0x80] sm:$0xff] %vm14564_vm0, %v6285_v52  ;;  %v3737_v59 = vsel %vm3730_vm13, %v3733_v58, %v3736_v45  ;;  %v4336_v0 = vadd.f32 -0.4999988, %v4335_v50  ;;  %v4179_v36 = vadd.f32 0.041655596, %v4178_v33  ;;  %v14567_v57 = vxor.u32 2147483648, %v14566_v29 }
 0x5d0   :  { %v3738_v46 = vsel %vm3727_vm4, nan, %v3737_v59  ;;  %v4045_v25 = vxor.u32 2147483648, %v4028_v51  ;;  %v4488_v53 = vmul.f32 -0.001358992, %v14568_v14  ;;  %vm4037_vm3 = vweird.f32 %v14569_v30  ;;  %v14571_v52 = vld [vmem:[#allocation75_spill] sm:$0xff]  ;;  %v14573_v50 = vld [vmem:[#allocation29_spill] sm:$0xff] }
 0x5d1   :  { %v4043_v28 = vsel %vm4041_vm9, %v4028_v51, %v14567_v57  ;;  %6235 = vst.msk [vmem:[%s13582_s3 + $0x78] sm:$0xff] %vm6219_vm11, %v3738_v46  ;;  %vm4044_vm2 = vcmp.eq.s32.totalorder %v14565_v2, 2  ;;  %v4337_v17 = vmul.f32 %v4336_v0, %v14556_v13  ;;  %v4180_v63 = vmul.f32 %v4179_v36, %v14562_v22  ;;  %v14577_v0 = vld [vmem:[#allocation59_spill] sm:$0xff] }
 0x5d2   :  { %6364 = vst.msk [vmem:[%s13582_s3 + $0x78] sm:$0xff] %vm14570_vm15, %v6283_v37  ;;  %vm4040_vm10 = vcmp.lt.s32.totalorder %v14565_v2, 2  ;;  %v4046_v16 = vsel %vm4044_vm2, %v4045_v25, %v14566_v29  ;;  %vm4347_vm12 = vweird.f32 %v14571_v52  ;;  %v4489_v44 = vadd.f32 0.041655596, %v4488_v53  ;;  %v14578_v36 = vld [vmem:[#allocation91_spill] sm:$0xff]  ;;  %v14579_v25 = vld [vmem:[#allocation94_spill] sm:$0xff]  ;;  %v6291_v53 = vpop.permute.xlu1 %6290 }
 0x5d3   :  { %v4047_v10 = vsel %vm4040_vm10, %v4043_v28, %v4046_v16  ;;  %v4338_v58 = vadd.f32 1.0, %v4337_v17  ;;  %v4181_v7 = vadd.f32 -0.4999988, %v4180_v63  ;;  %v4798_v13 = vmul.f32 -0.001358992, %v14572_v6  ;;  %v14580_v16 = vld [vmem:[#allocation82_spill] sm:$0xff] }
 0x5d4   :  { %v4048_v12 = vsel %vm4037_vm3, nan, %v4047_v10  ;;  %vm4350_vm6 = vcmp.lt.s32.totalorder %v14573_v50, 2  ;;  %vm4351_vm14 = vcmp.eq.s32.totalorder %v14573_v50, 0  ;;  %v4490_v33 = vmul.f32 %v4489_v44, %v14568_v14  ;;  %vm14584_vm3 = vmmov %vm14576_vm1 }
 0x5d5   :  { %6237 = vst.msk [vmem:[%s13582_s3 + $0x88] sm:$0xff] %vm6219_vm11, %v4048_v12  ;;  %v14575_v45 = vxor.u32 2147483648, %v14574_v18  ;;  %v4355_v37 = vxor.u32 2147483648, %v4338_v58  ;;  %v4182_v59 = vmul.f32 %v4181_v7, %v14562_v22  ;;  %v4799_v2 = vadd.f32 0.041655596, %v4798_v13  ;;  %v14582_v13 = vld [vmem:[#allocation76_spill] sm:$0xff] }
 0x5d6   :  { %6366 = vst.msk [vmem:[%s13582_s3 + $0x88] sm:$0xff] %vm14576_vm1, %v6287_v3  ;;  %vm4354_vm8 = vcmp.eq.s32.totalorder %v14573_v50, 2  ;;  %vm4192_vm7 = vweird.f32 %v14577_v0  ;;  %vm4195_vm5 = vcmp.lt.s32.totalorder %v14578_v36, 2  ;;  %v4491_v46 = vadd.f32 -0.4999988, %v4490_v33  ;;  %v14583_v12 = vld [vmem:[#allocation95_spill] sm:$0xff]  ;;  %v6293_v0 = vpop.permute.xlu2 %6292 }
 0x5d7   :  { %v4353_v51 = vsel %vm4351_vm14, %v4338_v58, %v14575_v45  ;;  %v4356_v29 = vsel %vm4354_vm8, %v4355_v37, %v14574_v18  ;;  %v4183_v57 = vadd.f32 1.0, %v4182_v59  ;;  %v4800_v28 = vmul.f32 %v4799_v2, %v14572_v6  ;;  %v14585_v33 = vld [vmem:[#allocation32_spill] sm:$0xff]  ;;  %v6289_v45 = vpop.permute.xlu0 %6288  ;;  %vm14593_vm8 = vmmov %vm14584_vm3 }
 0x5d8   :  { %v4643_v22 = vmul.f32 -0.001358992, %v14579_v25  ;;  %v4357_v30 = vsel %vm4350_vm6, %v4353_v51, %v4356_v29  ;;  %vm4196_vm4 = vcmp.eq.s32.totalorder %v14578_v36, 0  ;;  %vm4199_vm13 = vcmp.eq.s32.totalorder %v14578_v36, 2  ;;  %v14586_v37 = vld [vmem:[#allocation96_spill] sm:$0xff]  ;;  %v14588_v36 = vld [vmem:[#allocation35_spill] sm:$0xff] }
 0x5d9   :  { %v4492_v17 = vmul.f32 %v4491_v46, %v14568_v14  ;;  %v4358_v63 = vsel %vm4347_vm12, nan, %v4357_v30  ;;  %v14581_v44 = vxor.u32 2147483648, %v14580_v16  ;;  %v4200_v10 = vxor.u32 2147483648, %v4183_v57  ;;  %vm14589_vm12 = vmmov %vm14576_vm1 }
 0x5da   :  { %v4801_v58 = vadd.f32 -0.4999988, %v4800_v28  ;;  %6239 = vst.msk [vmem:[%s13582_s3 + $0x98] sm:$0xff] %vm6219_vm11, %v4358_v63  ;;  %vm4502_vm0 = vweird.f32 %v14582_v13  ;;  %vm4505_vm9 = vcmp.lt.s32.totalorder %v14583_v12, 2  ;;  %v4644_v50 = vadd.f32 0.041655596, %v4643_v22  ;;  %v6297_v13 = vpop.permute.xlu1 %6296 }
 0x5db   :  { %v4198_v3 = vsel %vm4196_vm4, %v4183_v57, %v14581_v44  ;;  %v4493_v7 = vadd.f32 1.0, %v4492_v17  ;;  %6368 = vst.msk [vmem:[%s13582_s3 + $0x98] sm:$0xff] %vm14584_vm3, %v6291_v53  ;;  %v4201_v14 = vsel %vm4199_vm13, %v4200_v10, %v14580_v16  ;;  %vm4506_vm2 = vcmp.eq.s32.totalorder %v14583_v12, 0  ;;  %v14590_v63 = vld [vmem:[#allocation99_spill] sm:$0xff]  ;;  %vm14599_vm13 = vmmov %vm14584_vm3 }
 0x5dc   :  { %v4802_v52 = vmul.f32 %v4801_v58, %v14572_v6  ;;  %v4953_v18 = vmul.f32 -0.001358992, %v14585_v33  ;;  %v4202_v51 = vsel %vm4195_vm5, %v4198_v3, %v4201_v14  ;;  %v14587_v59 = vxor.u32 2147483648, %v14586_v37 }
 0x5dd   :  { %v4510_v46 = vxor.u32 2147483648, %v4493_v7  ;;  %v4645_v29 = vmul.f32 %v4644_v50, %v14579_v25  ;;  %v4203_v57 = vsel %vm4192_vm7, nan, %v4202_v51  ;;  %vm4509_vm15 = vcmp.eq.s32.totalorder %v14583_v12, 2  ;;  %v14592_v12 = vld [vmem:[#allocation84_spill] sm:$0xff] }
 0x5de   :  { %v4508_v2 = vsel %vm4506_vm2, %v4493_v7, %v14587_v59  ;;  %v4803_v28 = vadd.f32 1.0, %v4802_v52  ;;  %v4954_v22 = vadd.f32 0.041655596, %v4953_v18  ;;  %6238 = vst.msk [vmem:[%s13582_s3 + $0x90] sm:$0xff] %vm6219_vm11, %v4203_v57  ;;  %vm4816_vm10 = vcmp.eq.s32.totalorder %v14588_v36, 0  ;;  %v14595_v59 = vld [vmem:[#allocation100_spill] sm:$0xff] }
 0x5df   :  { %v4511_v6 = vsel %vm4509_vm15, %v4510_v46, %v14586_v37  ;;  %v4646_v53 = vadd.f32 -0.4999988, %v4645_v29  ;;  %v5263_v30 = vmul.f32 -0.001358992, %v12404_v19  ;;  %6367 = vst.msk [vmem:[%s13582_s3 + $0x90] sm:$0xff] %vm14589_vm12, %v6289_v45  ;;  %v14591_v16 = vxor.u32 2147483648, %v14590_v63  ;;  %vm14604_vm12 = vmmov %vm14593_vm8 }
 0x5e0   :  { %v4512_v17 = vsel %vm4505_vm9, %v4508_v2, %v4511_v6  ;;  %v4820_v3 = vxor.u32 2147483648, %v4803_v28  ;;  %v4955_v10 = vmul.f32 %v4954_v22, %v14585_v33  ;;  %vm4819_vm6 = vcmp.eq.s32.totalorder %v14588_v36, 2  ;;  %v14594_v45 = vld [vmem:[#allocation19_spill] sm:$0xff]  ;;  %v14597_v57 = vld [vmem:[#allocation98_spill] sm:$0xff] }
 0x5e1   :  { %v4818_v44 = vsel %vm4816_vm10, %v4803_v28, %v14591_v16  ;;  %v4513_v58 = vsel %vm4502_vm0, nan, %v4512_v17  ;;  %v4647_v7 = vmul.f32 %v4646_v53, %v14579_v25  ;;  %v5264_v50 = vadd.f32 0.041655596, %v5263_v30  ;;  %v14596_v46 = vld [vmem:[#allocation103_spill] sm:$0xff]  ;;  %v14600_v53 = vld [vmem:[#allocation86_spill] sm:$0xff]  ;;  %v14601_v17 = vld [vmem:[#allocation101_spill] sm:$0xff] }
 0x5e2   :  { %6240 = vst.msk [vmem:[%s13582_s3 + $0xa0] sm:$0xff] %vm6219_vm11, %v4513_v58  ;;  %vm4812_vm14 = vweird.f32 %v14592_v12  ;;  %vm4815_vm1 = vcmp.lt.s32.totalorder %v14588_v36, 2  ;;  %v4821_v14 = vsel %vm4819_vm6, %v4820_v3, %v14590_v63  ;;  %v4956_v52 = vadd.f32 -0.4999988, %v4955_v10  ;;  %v14602_v10 = vld [vmem:[#allocation8_spill] sm:$0xff] }
 0x5e3   :  { %6369 = vst.msk [vmem:[%s13582_s3 + $0xa0] sm:$0xff] %vm14593_vm8, %v6293_v0  ;;  %v4822_v25 = vsel %vm4815_vm1, %v4818_v44, %v4821_v14  ;;  %v4648_v18 = vadd.f32 1.0, %v4647_v7  ;;  %vm4657_vm7 = vweird.f32 %v14594_v45  ;;  %v5265_v51 = vmul.f32 %v5264_v50, %v12404_v19  ;;  %v6295_v44 = vpop.permute.xlu0 %6294 }
 0x5e4   :  { %v4823_v37 = vsel %vm4812_vm14, nan, %v4822_v25  ;;  %vm4661_vm5 = vcmp.eq.s32.totalorder %v14595_v59, 0  ;;  %v4957_v2 = vmul.f32 %v4956_v52, %v14585_v33  ;;  %v5108_v29 = vmul.f32 -0.001358992, %v14596_v46 }
 0x5e5   :  { %6242 = vst.msk [vmem:[%s13582_s3 + $0xb0] sm:$0xff] %vm6219_vm11, %v4823_v37  ;;  %vm4660_vm4 = vcmp.lt.s32.totalorder %v14595_v59, 2  ;;  %v14598_v28 = vxor.u32 2147483648, %v14597_v57  ;;  %v4665_v6 = vxor.u32 2147483648, %v4648_v18  ;;  %v5266_v36 = vadd.f32 -0.4999988, %v5265_v51 }
 0x5e6   :  { %6371 = vst.msk [vmem:[%s13582_s3 + $0xb0] sm:$0xff] %vm14599_vm13, %v6297_v13  ;;  %vm4664_vm0 = vcmp.eq.s32.totalorder %v14595_v59, 2  ;;  %v4958_v33 = vadd.f32 1.0, %v4957_v2  ;;  %vm4967_vm9 = vweird.f32 %v14600_v53  ;;  %v5109_v30 = vadd.f32 0.041655596, %v5108_v29  ;;  %vm14610_vm13 = vmmov %vm14593_vm8 }
 0x5e7   :  { %v4663_v22 = vsel %vm4661_vm5, %v4648_v18, %v14598_v28  ;;  %v4666_v0 = vsel %vm4664_vm0, %v4665_v6, %v14597_v57  ;;  %vm4971_vm3 = vcmp.eq.s32.totalorder %v14601_v17, 0  ;;  %v5267_v63 = vmul.f32 %v5266_v36, %v12404_v19  ;;  %v6299_v18 = vpop.permute.xlu2 %6298  ;;  %v14605_v28 = vld [vmem:[#allocation26_spill] sm:$0xff] }
 0x5e8   :  { %v5418_v16 = vmul.f32 -0.001358992, %v12508_v5  ;;  %v4667_v3 = vsel %vm4660_vm4, %v4663_v22, %v4666_v0  ;;  %v14603_v58 = vxor.u32 2147483648, %v14602_v10  ;;  %v4975_v50 = vxor.u32 2147483648, %v4958_v33  ;;  %v14607_v0 = vld [vmem:[#allocation102_spill] sm:$0xff] }
 0x5e9   :  { %v5110_v12 = vmul.f32 %v5109_v30, %v14596_v46  ;;  %v4668_v14 = vsel %vm4657_vm7, nan, %v4667_v3  ;;  %vm4974_vm2 = vcmp.eq.s32.totalorder %v14601_v17, 2  ;;  %v5268_v52 = vadd.f32 1.0, %v5267_v63 }
 0x5ea   :  { %v4973_v7 = vsel %vm4971_vm3, %v4958_v33, %v14603_v58  ;;  %v5419_v13 = vadd.f32 0.041655596, %v5418_v16  ;;  %6241 = vst.msk [vmem:[%s13582_s3 + $0xa8] sm:$0xff] %vm6219_vm11, %v4668_v14  ;;  %vm4970_vm15 = vcmp.lt.s32.totalorder %v14601_v17, 2  ;;  %v4976_v19 = vsel %vm4974_vm2, %v4975_v50, %v14602_v10  ;;  %v14606_v33 = vld [vmem:[#allocation92_spill] sm:$0xff] }
 0x5eb   :  { %vm5281_vm10 = vcmp.eq.s32.totalorder %v12693_v20, 0  ;;  %v5111_v25 = vadd.f32 -0.4999988, %v5110_v12  ;;  %6370 = vst.msk [vmem:[%s13582_s3 + $0xa8] sm:$0xff] %vm14604_vm12, %v6295_v44  ;;  %v4977_v45 = vsel %vm4970_vm15, %v4973_v7, %v4976_v19  ;;  %v5285_v37 = vxor.u32 2147483648, %v5268_v52  ;;  %v6301_v12 = vpop.permute.xlu0 %6300  ;;  %vm14611_vm12 = vmmov %vm14593_vm8 }
 0x5ec   :  { %v5283_v51 = vsel %vm5281_vm10, %v5268_v52, %v5282_v11  ;;  %v5420_v59 = vmul.f32 %v5419_v13, %v12508_v5  ;;  %v4978_v2 = vsel %vm4967_vm9, nan, %v4977_v45  ;;  %vm5284_vm6 = vcmp.eq.s32.totalorder %v12693_v20, 2 }
 0x5ed   :  { %v5112_v29 = vmul.f32 %v5111_v25, %v14596_v46  ;;  %v5728_v57 = vmul.f32 -0.001358992, %v12660_v47  ;;  %6243 = vst.msk [vmem:[%s13582_s3 + $0xb8] sm:$0xff] %vm6219_vm11, %v4978_v2  ;;  %vm5277_vm14 = vweird.f32 %v14605_v28  ;;  %vm5280_vm1 = vcmp.lt.s32.totalorder %v12693_v20, 2  ;;  %v6303_v46 = vpop.permute.xlu1 %6302 }
 0x5ee   :  { %v5286_v11 = vsel %vm5284_vm6, %v5285_v37, %v12849_v61  ;;  %v5421_v22 = vadd.f32 -0.4999988, %v5420_v59  ;;  %6372 = vst.msk [vmem:[%s13582_s3 + $0xb8] sm:$0xff] %vm14593_vm8, %v6299_v18  ;;  %vm5122_vm7 = vweird.f32 %v14606_v33  ;;  %vm5126_vm5 = vcmp.eq.s32.totalorder %v14607_v0, 0  ;;  %v14608_v61 = vld [vmem:[#allocation50_spill] sm:$0xff] }
 0x5ef   :  { %v5287_v6 = vsel %vm5280_vm1, %v5283_v51, %v5286_v11  ;;  %v5113_v36 = vadd.f32 1.0, %v5112_v29  ;;  %v5729_v53 = vadd.f32 0.041655596, %v5728_v57  ;;  %v5573_v20 = vmul.f32 -0.001358992, %v12620_v27  ;;  %v6305_v37 = vpop.permute.xlu2 %6304  ;;  %vm14612_vm1 = vmmov %vm14593_vm8 }
 0x5f0   :  { %v5288_v30 = vsel %vm5277_vm14, nan, %v5287_v6  ;;  %v5422_v17 = vmul.f32 %v5421_v22, %v12508_v5  ;;  %vm5125_vm4 = vcmp.lt.s32.totalorder %v14607_v0, 2  ;;  %v14609_v63 = vxor.u32 2147483648, %v14608_v61 }
 0x5f1   :  { %6245 = vst.msk [vmem:[%s13582_s3 + $0xc8] sm:$0xff] %vm6219_vm11, %v5288_v30  ;;  %v5130_v44 = vxor.u32 2147483648, %v5113_v36  ;;  %v5730_v3 = vmul.f32 %v5729_v53, %v12660_v47  ;;  %vm5129_vm0 = vcmp.eq.s32.totalorder %v14607_v0, 2  ;;  %vm5432_vm9 = vweird.f32 %v11944_v35 }
 0x5f2   :  { %v5128_v16 = vsel %vm5126_vm5, %v5113_v36, %v14609_v63  ;;  %6374 = vst.msk [vmem:[%s13582_s3 + $0xc8] sm:$0xff] %vm14610_vm13, %v6303_v46  ;;  %v5423_v5 = vadd.f32 1.0, %v5422_v17  ;;  %v5574_v10 = vadd.f32 0.041655596, %v5573_v20  ;;  %vm5436_vm3 = vcmp.eq.s32.totalorder %v12870_v34, 0 }
 0x5f3   :  { %v5131_v58 = vsel %vm5129_vm0, %v5130_v44, %v14608_v61  ;;  %v5731_v7 = vadd.f32 -0.4999988, %v5730_v3  ;;  %v5883_v50 = vmul.f32 -0.001358992, %v12778_v54  ;;  %vm5439_vm2 = vcmp.eq.s32.totalorder %v12870_v34, 2 }
 0x5f4   :  { %v5132_v14 = vsel %vm5125_vm4, %v5128_v16, %v5131_v58  ;;  %v5438_v52 = vsel %vm5436_vm3, %v5423_v5, %v5437_v1  ;;  %v5440_v13 = vxor.u32 2147483648, %v5423_v5  ;;  %v5575_v19 = vmul.f32 %v5574_v10, %v12620_v27 }
 0x5f5   :  { %v5133_v25 = vsel %vm5122_vm7, nan, %v5132_v14  ;;  %v5732_v18 = vmul.f32 %v5731_v7, %v12660_v47  ;;  %v5884_v45 = vadd.f32 0.041655596, %v5883_v50  ;;  %vm5435_vm15 = vcmp.lt.s32.totalorder %v12870_v34, 2  ;;  %v6309_v36 = vpop.permute.xlu1 %6308 }
 0x5f6   :  { %6244 = vst.msk [vmem:[%s13582_s3 + $0xc0] sm:$0xff] %vm6219_vm11, %v5133_v25  ;;  %v5441_v1 = vsel %vm5439_vm2, %v5440_v13, %v12861_v26  ;;  %vm5742_vm10 = vweird.f32 %v12231_v8  ;;  %v5576_v51 = vadd.f32 -0.4999988, %v5575_v19  ;;  %v6193_v29 = vmul.f32 -0.001358992, %v13036_v39  ;;  %v6307_v8 = vpop.permute.xlu0 %6306 }
 0x5f7   :  { %6373 = vst.msk [vmem:[%s13582_s3 + $0xc0] sm:$0xff] %vm14611_vm12, %v6301_v12  ;;  %v5442_v47 = vsel %vm5435_vm15, %v5438_v52, %v5441_v1  ;;  %v5733_v59 = vadd.f32 1.0, %v5732_v18  ;;  %v5885_v2 = vmul.f32 %v5884_v45, %v12778_v54  ;;  %vm5745_vm6 = vcmp.lt.s32.totalorder %v12884_v40, 2  ;;  %vm14614_vm15 = vmmov %vm14612_vm1 }
 0x5f8   :  { %v5443_v34 = vsel %vm5432_vm9, nan, %v5442_v47  ;;  %vm5746_vm14 = vcmp.eq.s32.totalorder %v12884_v40, 0  ;;  %v5577_v26 = vmul.f32 %v5576_v51, %v12620_v27  ;;  %v6194_v22 = vadd.f32 0.041655596, %v6193_v29  ;;  %vm14613_vm9 = vmmov %vm14612_vm1 }
 0x5f9   :  { %6246 = vst.msk [vmem:[%s13582_s3 + $0xd0] sm:$0xff] %vm6219_vm11, %v5443_v34  ;;  %v5748_v57 = vsel %vm5746_vm14, %v5733_v59, %v5747_v4  ;;  %v5750_v28 = vxor.u32 2147483648, %v5733_v59  ;;  %v5886_v11 = vadd.f32 -0.4999988, %v5885_v2  ;;  %vm5749_vm8 = vcmp.eq.s32.totalorder %v12884_v40, 2  ;;  %vm14615_vm14 = vmmov %vm14612_vm1 }
 0x5fa   :  { %6375 = vst.msk [vmem:[%s13582_s3 + $0xd0] sm:$0xff] %vm14612_vm1, %v6305_v37  ;;  %v5578_v35 = vadd.f32 1.0, %v5577_v26  ;;  %vm5587_vm7 = vweird.f32 %v12102_v43  ;;  %v6038_v27 = vmul.f32 -0.001358992, %v12857_v32  ;;  %vm5591_vm5 = vcmp.eq.s32.totalorder %v12879_v21, 0  ;;  %v6311_v43 = vpop.permute.xlu2 %6310 }
 0x5fb   :  { %v5751_v46 = vsel %vm5749_vm8, %v5750_v28, %v12882_v15  ;;  %v5887_v4 = vmul.f32 %v5886_v11, %v12778_v54  ;;  %v6195_v6 = vmul.f32 %v6194_v22, %v13036_v39  ;;  %vm5594_vm4 = vcmp.eq.s32.totalorder %v12879_v21, 2 }
 0x5fc   :  { %v5752_v33 = vsel %vm5745_vm6, %v5748_v57, %v5751_v46  ;;  %v5593_v53 = vsel %vm5591_vm5, %v5578_v35, %v5592_v9  ;;  %v5595_v30 = vxor.u32 2147483648, %v5578_v35  ;;  %v6039_v0 = vadd.f32 0.041655596, %v6038_v27 }
 0x5fd   :  { %v5753_v17 = vsel %vm5742_vm10, nan, %v5752_v33  ;;  %v5888_v15 = vadd.f32 1.0, %v5887_v4  ;;  %v6196_v20 = vadd.f32 -0.4999988, %v6195_v6  ;;  %vm5590_vm13 = vcmp.lt.s32.totalorder %v12879_v21, 2 }
 0x5fe   :  { %6248 = vst.msk [vmem:[%s13582_s3 + $0xe0] sm:$0xff] %vm6219_vm11, %v5753_v17  ;;  %v5596_v54 = vsel %vm5594_vm4, %v5595_v30, %v12873_v42  ;;  %vm5901_vm0 = vcmp.eq.s32.totalorder %v12974_v23, 0  ;;  %v6040_v40 = vmul.f32 %v6039_v0, %v12857_v32  ;;  %v6054_v21 = vand.u32 3, %v12981_v31 }
 0x5ff   :  { %6377 = vst.msk [vmem:[%s13582_s3 + $0xe0] sm:$0xff] %vm14613_vm9, %v6309_v36  ;;  %v5597_v9 = vsel %vm5590_vm13, %v5593_v53, %v5596_v54  ;;  %v5903_v61 = vsel %vm5901_vm0, %v5888_v15, %v5902_v60  ;;  %v5905_v63 = vxor.u32 2147483648, %v5888_v15  ;;  %v6197_v16 = vmul.f32 %v6196_v20, %v13036_v39  ;;  %vm14616_vm13 = vmmov %vm14613_vm9 }
 0x600   :  { %v5598_v42 = vsel %vm5587_vm7, nan, %v5597_v9  ;;  %vm5904_vm3 = vcmp.eq.s32.totalorder %v12974_v23, 2  ;;  %v6041_v44 = vadd.f32 -0.4999988, %v6040_v40  ;;  %v6057_v3 = vxor.u32 2147483648, %v13138_v38 }
 0x601   :  { %6247 = vst.msk [vmem:[%s13582_s3 + $0xd8] sm:$0xff] %vm6219_vm11, %v5598_v42  ;;  %vm5900_vm2 = vcmp.lt.s32.totalorder %v12974_v23, 2  ;;  %v5906_v60 = vsel %vm5904_vm3, %v5905_v63, %v12909_v62  ;;  %v6198_v39 = vadd.f32 1.0, %v6197_v16  ;;  %vm5897_vm10 = vweird.f32 %v12381_v41 }
 0x602   :  { %6376 = vst.msk [vmem:[%s13582_s3 + $0xd8] sm:$0xff] %vm14614_vm15, %v6307_v8  ;;  %v5907_v31 = vsel %vm5900_vm2, %v5903_v61, %v5906_v60  ;;  %vm6211_vm12 = vcmp.eq.s32.totalorder %v13120_v24, 0  ;;  %v6042_v5 = vmul.f32 %v6041_v44, %v12857_v32  ;;  %vm6214_vm6 = vcmp.eq.s32.totalorder %v13120_v24, 2  ;;  %v6315_v32 = vpop.permute.xlu1 %6314 }
 0x603   :  { %v5908_v10 = vsel %vm5897_vm10, nan, %v5907_v31  ;;  %v6213_v23 = vsel %vm6211_vm12, %v6198_v39, %v6212_v55  ;;  %v6215_v58 = vxor.u32 2147483648, %v6198_v39  ;;  %vm6210_vm1 = vcmp.lt.s32.totalorder %v13120_v24, 2  ;;  %v6313_v24 = vpop.permute.xlu0 %6312 }
 0x604   :  { %6249 = vst.msk [vmem:[%s13582_s3 + $0xe8] sm:$0xff] %vm6219_vm11, %v5908_v10  ;;  %v6043_v62 = vadd.f32 1.0, %v6042_v5  ;;  %vm6056_vm8 = vcmp.eq.s32.totalorder %v6054_v21, 0  ;;  %vm6207_vm7 = vweird.f32 %v12647_v48  ;;  %vm6059_vm5 = vcmp.eq.s32.totalorder %v6054_v21, 2 }
 0x605   :  { %6378 = vst.msk [vmem:[%s13582_s3 + $0xe8] sm:$0xff] %vm14615_vm14, %v6311_v43  ;;  %v6216_v41 = vsel %vm6214_vm6, %v6215_v58, %v13190_v56  ;;  %vm6055_vm4 = vcmp.lt.s32.totalorder %v6054_v21, 2  ;;  %vm6052_vm0 = vweird.f32 %v12499_v49 }
 0x606   :  { %v6217_v55 = vsel %vm6210_vm1, %v6213_v23, %v6216_v41  ;;  %v6058_v7 = vsel %vm6056_vm8, %v6043_v62, %v6057_v3  ;;  %v6060_v50 = vxor.u32 2147483648, %v6043_v62 }
 0x607   :  { %v6218_v12 = vsel %vm6207_vm7, nan, %v6217_v55 }
 0x608   :  { %6251 = vst.msk [vmem:[%s13582_s3 + $0xf8] sm:$0xff] %vm6219_vm11, %v6218_v12  ;;  %v6061_v14 = vsel %vm6059_vm5, %v6060_v50, %v13138_v38 }
 0x609   :  { %6380 = vst.msk [vmem:[%s13582_s3 + $0xf8] sm:$0xff] %vm14616_vm13, %v6315_v32  ;;  %v6062_v48 = vsel %vm6055_vm4, %v6058_v7, %v6061_v14 }
 0x60a   :  { %v6063_v56 = vsel %vm6052_vm0, nan, %v6062_v48 }
 0x60b   :  { %6250 = vst.msk [vmem:[%s13582_s3 + $0xf0] sm:$0xff] %vm6219_vm11, %v6063_v56 }
 0x60c   :  { %6379 = vst.msk [vmem:[%s13582_s3 + $0xf0] sm:$0xff] %vm14613_vm9, %v6313_v24 }

</bundles_post_ra>
